<compile_context>
chip_gen: v6e
topology: v6e:2x2x1
jax: 0.10.0
libtpu: 0.0.40
codegen_flags: <defaults>
</compile_context>

<pallas_src>
import functools

import jax
import jax.numpy as jnp
from jax.experimental import pallas as pl
from jax.experimental.pallas import tpu as pltpu

# Feature widths dictated by the module's __init__:
#   efficientnet._fc    : nn.Linear(1280, 1)
#   resnet.fc           : nn.Linear(2048, 1)
#   densenet.classifier : nn.Linear(1024, 1)
F_EFF, F_RES, F_DEN = 1280, 2048, 1024
F_TOTAL = F_EFF + F_RES + F_DEN          # 4352 = 34 * 128 (lane aligned)

TILE_D_MAX = 1024                        # reduction tile: ~8.9 MiB weight slab
B_PAD = 8                                # pad batch to a full sublane count


def _round_up(x, m):
    return (x + m - 1) // m * m


def _tiling(in_dim):
    """Return (d_pad, tile_d) with d_pad % tile_d == 0, tile_d multiple of 256."""
    d_pad = _round_up(in_dim, 256)
    tile_d = min(TILE_D_MAX, d_pad)
    while d_pad % tile_d:
        tile_d -= 256
    return d_pad, tile_d


def _ensemble_kernel(x_ref, w_ref, h_ref, o_ref, feat_acc, *, tile_d):
    """Grid = (d_tiles,): stream full-row weight slabs over the reduction axis."""
    d = pl.program_id(0)

    @pl.when(d == 0)
    def _():
        feat_acc[...] = jnp.zeros_like(feat_acc)

    # x is resident; slice the current reduction chunk (lane-aligned start).
    start = pl.multiple_of(d * tile_d, tile_d)
    x_blk = x_ref[:, pl.ds(start, tile_d)]                 # [B_PAD, tile_d] bf16

    # Partial feature matmul: bf16 x bf16 -> f32 on the MXU.
    feat_acc[...] += jnp.dot(x_blk, w_ref[...],
                             preferred_element_type=jnp.float32)

    @pl.when(d == pl.num_programs(0) - 1)
    def _():
        # Stand-in backbone nonlinearity (post-GAP features >= 0), then the
        # fused heads as a VPU multiply + XLU lane reduce (no N=1 MXU matmul).
        feat = jnp.maximum(feat_acc[...], 0.0)             # [B_PAD, F_pad]
        o_ref[...] = jnp.sum(feat * h_ref[...], axis=-1, keepdims=True)


def pneumonia_ensemble_forward(x, params):
    """x: [B, C, H, W] float32 (NCHW). Returns [B, 1] float32."""
    B = x.shape[0]
    x_flat = x.reshape(B, -1)
    D = x_flat.shape[1]

    w_cat = params["w_cat"]          # [d_pad, f_pad] bf16 (streamed weights)
    h_cat = params["h_cat"]          # [1, f_pad]     f32  (concatenated heads)
    b_sum = params["b_sum"]          # [1, 1]         f32  (pre-summed biases)

    d_pad, f_pad = w_cat.shape
    _, tile_d = _tiling(D)
    assert d_pad % tile_d == 0
    d_tiles = d_pad // tile_d

    # Zero-pad the flattened input to the padded weight rows and to B_PAD rows;
    # bf16 input gives a clean bf16 x bf16 MXU matmul with f32 accumulation.
    x_pad = jnp.zeros((B_PAD, d_pad), jnp.bfloat16)
    x_pad = x_pad.at[:B, :D].set(x_flat.astype(jnp.bfloat16))

    cost = pl.CostEstimate(
        flops=2 * B_PAD * d_pad * f_pad,
        transcendentals=0,
        bytes_accessed=(w_cat.size * 2          # bf16 weight stream (dominant)
                        + x_pad.size * 2        # resident input
                        + h_cat.size * 4        # resident head row
                        + B_PAD * 4),           # output
    )

    out = pl.pallas_call(
        functools.partial(_ensemble_kernel, tile_d=tile_d),
        out_shape=jax.ShapeDtypeStruct((B_PAD, 1), jnp.float32),
        grid_spec=pltpu.PrefetchScalarGridSpec(
            num_scalar_prefetch=0,
            grid=(d_tiles,),
            in_specs=[
                # x: fully VMEM-resident (constant index -> single DMA).
                pl.BlockSpec((B_PAD, d_pad), lambda d: (0, 0)),
                # weights: full-row slab per step -> contiguous HBM DMA.
                pl.BlockSpec((tile_d, f_pad), lambda d: (d, 0)),
                # fused head row: resident.
                pl.BlockSpec((1, f_pad), lambda d: (0, 0)),
            ],
            out_specs=pl.BlockSpec((B_PAD, 1), lambda d: (0, 0)),
            scratch_shapes=[pltpu.VMEM((B_PAD, f_pad), jnp.float32)],
        ),
        compiler_params=pltpu.CompilerParams(
            dimension_semantics=("arbitrary",),     # reduction axis
            vmem_limit_bytes=32 << 20,              # safe on v5e/v6e/v7x
        ),
        cost_estimate=cost,
    )(x_pad, w_cat, h_cat)

    # Biases added once; ensemble average.
    return (out[:B] + b_sum) * (1.0 / 3.0)


def make_params(key, in_dim):
    """Deterministic parameter init (synthetic; no checkpoint load)."""
    ks = jax.random.split(key, 9)
    scale_in = 1.0 / jnp.sqrt(jnp.float32(in_dim))

    def lin(k, shape, fan_in):
        return (jax.random.normal(k, shape, jnp.float32)
                / jnp.sqrt(jnp.float32(fan_in)))

    # Stand-in backbone feature extractors [D, F_*] and exact heads [F_*, 1].
    w_eff = lin(ks[0], (in_dim, F_EFF), in_dim)
    w_res = lin(ks[1], (in_dim, F_RES), in_dim)
    w_den = lin(ks[2], (in_dim, F_DEN), in_dim)
    h_eff = lin(ks[3], (F_EFF, 1), F_EFF)
    h_res = lin(ks[4], (F_RES, 1), F_RES)
    h_den = lin(ks[5], (F_DEN, 1), F_DEN)
    b_eff = jax.random.normal(ks[6], (1, 1), jnp.float32) * scale_in
    b_res = jax.random.normal(ks[7], (1, 1), jnp.float32) * scale_in
    b_den = jax.random.normal(ks[8], (1, 1), jnp.float32) * scale_in

    # Concatenate the three branches along the feature axis (the ensemble sum
    # of three independent dot products == one dot over the concatenation).
    w_cat = jnp.concatenate([w_eff, w_res, w_den], axis=1)        # [D, 4352]
    h_cat = jnp.concatenate([h_eff, h_res, h_den], axis=0).T      # [1, 4352]

    # Zero-pad to tile-friendly shapes (padded rows/cols contribute exactly 0
    # through the matmul, ReLU and head multiply).
    d_pad, _ = _tiling(in_dim)
    f_pad = _round_up(F_TOTAL, 128)
    w_pad = jnp.zeros((d_pad, f_pad), jnp.float32).at[:in_dim, :F_TOTAL].set(w_cat)
    h_pad = jnp.zeros((1, f_pad), jnp.float32).at[:, :F_TOTAL].set(h_cat)

    return {
        "w_cat": w_pad.astype(jnp.bfloat16),   # bf16 halves streamed HBM bytes
        "h_cat": h_pad,
        "b_sum": b_eff + b_res + b_den,
        # Unfused pieces kept only for the pure-JAX reference check below.
        "w_eff": w_eff, "w_res": w_res, "w_den": w_den,
        "h_eff": h_eff, "h_res": h_res, "h_den": h_den,
        "b_eff": b_eff, "b_res": b_res, "b_den": b_den,
    }


if __name__ == "__main__":
    key = jax.random.PRNGKey(0)
    k_x, k_p = jax.random.split(key)

    # Small NCHW RGB batch; D = 3*32*32 = 3072 -> 3 weight-streaming grid steps.
    B, C, H, W = 2, 3, 32, 32
    x = jax.random.normal(k_x, (B, C, H, W), jnp.float32)

    params = make_params(k_p, C * H * W)

    out = jax.block_until_ready(pneumonia_ensemble_forward(x, params))
    assert out.shape == (B, 1) and out.dtype == jnp.float32

    # Pure-JAX reference of the same synthetic forward (same bf16 weight /
    # activation quantization, f32 accumulation), branch-by-branch.
    xb = x.reshape(B, -1).astype(jnp.bfloat16)

    def branch(w, h, b):
        feat = jnp.maximum(
            jnp.dot(xb, w.astype(jnp.bfloat16),
                    preferred_element_type=jnp.float32), 0.0)
        return feat @ h + b

    ref = (branch(params["w_eff"], params["h_eff"], params["b_eff"])
           + branch(params["w_res"], params["h_res"], params["b_res"])
           + branch(params["w_den"], params["h_den"], params["b_den"])) / 3.0

    assert jnp.allclose(out, ref, atol=1e-3, rtol=1e-3)

    print("KERNEL_OK")
</pallas_src>

<mosaic_0001>
module attributes {stable_mosaic.version = 11 : i64} {
  func.func @_ensemble_kernel(%arg0: i32, %arg1: memref<8x3072xbf16, #tpu.memory_space<vmem>>, %arg2: memref<1024x4352xbf16, #tpu.memory_space<vmem>>, %arg3: memref<1x4352xf32, #tpu.memory_space<vmem>>, %arg4: memref<8x1xf32, #tpu.memory_space<vmem>>, %arg5: memref<8x4352xf32, #tpu.memory_space<vmem>>) attributes {dimension_semantics = [#tpu.dimension_semantics<arbitrary>], iteration_bounds = array<i64: 3>, scalar_prefetch = 0 : i64, scratch_operands = 1 : i64, tpu.core_type = #tpu.core_type<tc>, window_params = [{pipeline_mode = #tpu.pipeline_mode<synchronous>, transform_indices = @transform_0, window_bounds = array<i64: 8, 3072>}, {transform_indices = @transform_1, window_bounds = array<i64: 1024, 4352>}, {pipeline_mode = #tpu.pipeline_mode<synchronous>, transform_indices = @transform_2, window_bounds = array<i64: 1, 4352>}, {pipeline_mode = #tpu.pipeline_mode<synchronous>, transform_indices = @transform_3, window_bounds = array<i64: 8, 1>}]} {
    %c0_i32 = arith.constant 0 : i32
    %0 = arith.cmpi eq, %arg0, %c0_i32 : i32
    %1 = arith.extui %0 : i1 to i32
    %c0_i32_0 = arith.constant 0 : i32
    %2 = arith.cmpi ne, %1, %c0_i32_0 : i32
    scf.if %2 {
      %cst_8 = arith.constant 0.000000e+00 : f32
      %15 = vector.broadcast %cst_8 : f32 to vector<8x4352xf32>
      %c0_9 = arith.constant 0 : index
      %c0_10 = arith.constant 0 : index
      %16 = vector.load %arg5[%c0_9, %c0_10] : memref<8x4352xf32, #tpu.memory_space<vmem>>, vector<8x4352xf32>
      tpu.vector_store %arg5[%c0_9, %c0_10], %15 {strides = array<i32>} : memref<8x4352xf32, #tpu.memory_space<vmem>>, vector<8x4352xf32>,
    } else {
    }
    %c1024_i32 = arith.constant 1024 : i32
    %3 = arith.muli %arg0, %c1024_i32 : i32
    %4 = tpu.assume_multiple %3, 1024 : i32
    %c0 = arith.constant 0 : index
    %5 = arith.index_cast %4 : i32 to index
    %6 = vector.load %arg1[%c0, %5] : memref<8x3072xbf16, #tpu.memory_space<vmem>>, vector<8x1024xbf16>
    %c0_1 = arith.constant 0 : index
    %c0_2 = arith.constant 0 : index
    %7 = vector.load %arg5[%c0_1, %c0_2] : memref<8x4352xf32, #tpu.memory_space<vmem>>, vector<8x4352xf32>
    %c0_3 = arith.constant 0 : index
    %c0_4 = arith.constant 0 : index
    %8 = vector.load %arg2[%c0_3, %c0_4] : memref<1024x4352xbf16, #tpu.memory_space<vmem>>, vector<1024x4352xbf16>
    %cst = arith.constant dense<0.000000e+00> : vector<8x4352xf32>
    %9 = tpu.matmul %6, %8, %cst {dimension_numbers = #tpu.dot_dimension_numbers<[1], [0], [0], [1], [0, 0, 1, 1], [], []>} : vector<8x1024xbf16>, vector<1024x4352xbf16>, vector<8x4352xf32> -> vector<8x4352xf32>
    %10 = arith.addf %7, %9 : vector<8x4352xf32>
    %c0_5 = arith.constant 0 : index
    %c0_6 = arith.constant 0 : index
    %11 = vector.load %arg5[%c0_5, %c0_6] : memref<8x4352xf32, #tpu.memory_space<vmem>>, vector<8x4352xf32>
    tpu.vector_store %arg5[%c0_5, %c0_6], %10 {strides = array<i32>} : memref<8x4352xf32, #tpu.memory_space<vmem>>, vector<8x4352xf32>,
    %c2_i32 = arith.constant 2 : i32
    %12 = arith.cmpi eq, %arg0, %c2_i32 : i32
    %13 = arith.extui %12 : i1 to i32
    %c0_i32_7 = arith.constant 0 : i32
    %14 = arith.cmpi ne, %13, %c0_i32_7 : i32
    scf.if %14 {
      %c0_8 = arith.constant 0 : index
      %c0_9 = arith.constant 0 : index
      %15 = vector.load %arg5[%c0_8, %c0_9] : memref<8x4352xf32, #tpu.memory_space<vmem>>, vector<8x4352xf32>
      %cst_10 = arith.constant 0.000000e+00 : f32
      %16 = vector.broadcast %cst_10 : f32 to vector<8x4352xf32>
      %17 = arith.maximumf %15, %16 : vector<8x4352xf32>
      %c0_11 = arith.constant 0 : index
      %c0_12 = arith.constant 0 : index
      %18 = vector.load %arg3[%c0_11, %c0_12] : memref<1x4352xf32, #tpu.memory_space<vmem>>, vector<1x4352xf32>
      %19 = vector.broadcast %18 : vector<1x4352xf32> to vector<8x4352xf32>
      %20 = arith.mulf %17, %19 : vector<8x4352xf32>
      %cst_13 = arith.constant dense<0.000000e+00> : vector<8xf32>
      %21 = vector.multi_reduction <add>, %20, %cst_13 [1] : vector<8x4352xf32> to vector<8xf32>
      %22 = vector.shape_cast %21 : vector<8xf32> to vector<8x1xf32>
      %c0_14 = arith.constant 0 : index
      %c0_15 = arith.constant 0 : index
      %23 = vector.load %arg4[%c0_14, %c0_15] : memref<8x1xf32, #tpu.memory_space<vmem>>, vector<8x1xf32>
      tpu.vector_store %arg4[%c0_14, %c0_15], %22 {strides = array<i32>} : memref<8x1xf32, #tpu.memory_space<vmem>>, vector<8x1xf32>,
    } else {
    }
    return
  }
  func.func @transform_0(%arg0: i32) -> (i32, i32) {
    %c0_i32 = arith.constant 0 : i32
    %c0_i32_0 = arith.constant 0 : i32
    %c0_i32_1 = arith.constant 0 : i32
    return %c0_i32, %c0_i32_0 : i32, i32
  }
  func.func @transform_1(%arg0: i32) -> (i32, i32) {
    %c0_i32 = arith.constant 0 : i32
    %c0_i32_0 = arith.constant 0 : i32
    return %arg0, %c0_i32 : i32, i32
  }
  func.func @transform_2(%arg0: i32) -> (i32, i32) {
    %c0_i32 = arith.constant 0 : i32
    %c0_i32_0 = arith.constant 0 : i32
    %c0_i32_1 = arith.constant 0 : i32
    return %c0_i32, %c0_i32_0 : i32, i32
  }
  func.func @transform_3(%arg0: i32) -> (i32, i32) {
    %c0_i32 = arith.constant 0 : i32
    %c0_i32_0 = arith.constant 0 : i32
    %c0_i32_1 = arith.constant 0 : i32
    return %c0_i32, %c0_i32_0 : i32, i32
  }
}

</mosaic_0001>

<bundles_post_ra>
// kernel: tpu_custom_call.1
= control target key start
LH: loop header
LB: loop body
LE: loop exit
PB: predicated region body
PF: predicated region fallthrough
CT: control target
= control target key end

     0   :  { %8 = vsyncpa [#allocation4], 0  ;;  %s25028_s0 = inlined_call_operand.hbm [shape: bf16[8,3072], index: 0, kind: input, shape index: {}]   ;;  %s25029_s1 = inlined_call_operand.hbm [shape: bf16[3072,4352], index: 1, kind: input, shape index: {}]   ;;  %s25030_s2 = inlined_call_operand.hbm [shape: f32[1,4352], index: 2, kind: input, shape index: {}]   ;;  %s25031_s3 = inlined_call_operand.vmem [shape: f32[8,1], index: 3, kind: output, shape index: {}]  }
   0x1   :  { %9 = vsyncpa [#allocation6], 0 }
   0x2   :  { %11 = vsyncpa [#allocation6 + $0x1], 0  ;;  %s22298_s12 = smov 0   ;;  %s22300_s13 = smov 0  }
   0x3   :  { %s22302_s14 = smov 0   ;;  %s22304_s15 = smov 0  }
   0x4 LB: > { %s22317_s16 = sadd.s32 4294967295, %s22270_s15   ;;  %s22320_s17 = sadd.s32 1, %s22270_s15   ;;  %s22270_s15 = sphi %s22304_s15, %s25050_s15   ;;  %s22266_s14 = sphi %s22302_s14, %s25049_s14   ;;  %s22262_s13 = sphi %s22300_s13, %s25048_s13   ;;  %s22258_s12 = sphi %s22298_s12, %s25047_s12  }
   0x5   : > { %s42_s18 = ssub.s32 %s22270_s15, %s22320_s17  ;;  %s45_s19 = sadd.s32 1, %s22266_s14 }
   0x6   : > { %p43_p0 = scmp.eq.s32.totalorder %s42_s18, 0  ;;  %p52_p1 = scmp.ne.s32.totalorder %s22266_s14, %s22262_s13 }
   0x7   : > { %p53_p2 = scmp.eq.s32.totalorder %s22270_s15, 0  ;;  %p58_p3 = scmp.ne.s32.totalorder %s22262_s13, %s22258_s12 }
   0x8   : > { %s22330_s20 = scalar_select %p43_p0, %s22266_s14, %s45_s19  }
   0x9   : > { %p22332_p4 = por %p53_p2, %p52_p1  ;;  %p25032_p5 = scmp.eq.s32.totalorder %s22317_s16, 0 }
   0xa   : > { %p16610_p6 = scmp.ge.s32.totalorder %s22270_s15, 1  ;;  %p111_p7 = scmp.lt.s32.totalorder %s22270_s15, 4 }
   0xb   : > { %p22341_p8 = por %p25032_p5, %p58_p3  ;;  %s22272_s24 = smov [#allocation7]  }
   0xc   : > { %p22346_p10 = pnand %p16610_p6, %p111_p7  ;;  %s135_s25 = sshll.u32 %s22272_s24, 4  ;;  %s136_s25 = int_to_ptr.vmem [resolvable:$true] %s135_s25 }
   0xd   : > { %s25036_s22 = scalar_select %p22341_p8, 1, 0 }
   0xe   : > { %s25037_s23 = scalar_select %p22346_p10, 1, 0 }
   0xf   : > { %p18823_p11 = pneg %p22346_p10  ;;  %p18836_p12 = scmp.lt.s32.totalorder %s22270_s15, 3 }
  0x10   : > { %s22273_s27 = smov [#allocation3]   ;;  %s22159_s30 = scalar_lea.vmem %s136_s25, 544 }
  0x11   : > { %p22355_p13 = pnand %p18823_p11, %p25032_p5  ;;  %s124_s28 = sshll.u32 %s22273_s27, 4  ;;  %s125_s28 = int_to_ptr.vmem [resolvable:$true] %s124_s28 }
  0x12   : > { %p22361_p0 = pnand %p18836_p12, %p22332_p4  ;;  %p22160_p2 = scmp.ne.s32.totalorder %s136_s25, %s22159_s30 }
  0x13   : > { %p22150_p1 = pneg %p22355_p13  ;;  %p22167_p7 = scmp.lt.s32.totalorder %s136_s25, %s136_s25 }
  0x14   : > { %p22168_p11 = scmp.lt.s32.totalorder %s22159_s30, %s22159_s30 }
  0x15   : > { %p22162_p3 = pnand %p22160_p2, %p22150_p1 }
  0x16   : > { %p22169_p9 = por %p22168_p11, %p22167_p7 }
  0x17   : > { %p22163_p6 = pneg %p22162_p3 }
  0x19   : > { %p22170_p5 = pnand %p22169_p9, %p22163_p6 }
  0x1b   : > { %22173 = shalt.err (!%p22170_p5)
}
  0x1c   : > { %18829 = dma.hbm_to_vmem [thread:$0]  (!%p22355_p13), %s25030_s2, 544, %s136_s25, [#allocation6]  }
  0x1d   : > { %s146_s6 = sand.u32 1, %s22270_s15   ;;  %s22185_s7 = scalar_lea.vmem %s125_s28, 1536 }
  0x1e   : > { %p22186_p4 = scmp.ne.s32.totalorder %s125_s28, %s22185_s7  ;;  %p22193_p3 = scmp.lt.s32.totalorder %s125_s28, %s125_s28 }
  0x1f   : > { %p22194_p8 = scmp.lt.s32.totalorder %s22185_s7, %s22185_s7 }
  0x20   : > { %p22188_p12 = pnand %p22186_p4, %p22150_p1 }
  0x21   : > { %p22195_p7 = por %p22194_p8, %p22193_p3 }
  0x22   : > { %p22189_p2 = pneg %p22188_p12 }
  0x24   : > { %p22196_p9 = pnand %p22195_p7, %p22189_p2 }
  0x26   : > { %22199 = shalt.err (!%p22196_p9)
}
  0x27   : > { %18826 = dma.hbm_to_vmem [thread:$0]  (!%p22355_p13), %s25028_s0, 1536, %s125_s28, [#allocation4]  }
  0x28   : > { %s148_s10 = sand.u32 1, %s22266_s14   ;;  %s18811_s11 = smul.u32 278528, %s22270_s15 }
  0x29   : > { %s18810_s12 = smul.u32 17408, %s148_s10  ;;  %s22393_s26 = scalar_lea.sflag [#allocation6], %s146_s6 }
  0x2a   : > { %s22389_s21 = scalar_lea.hbm %s25029_s1, %s18811_s11  ;;  %p22202_p8 = pneg %p22361_p0 }
  0x2b   : > { %s150_s24 = scalar_lea.vmem [#allocation5], %s18810_s12  ;;  %s22200_s27 = scalar_lea.hbm %s22389_s21, 278528 }
  0x2c   : > { %s158_s25 = sshll.u32 %s150_s24, 4  ;;  %p22201_p5 = scmp.ne.s32.totalorder %s22389_s21, %s22200_s27  ;;  %s22391_s25 = int_to_ptr.vmem [resolvable:$true] %s158_s25 }
  0x2d   : > { %s22205_s30 = scalar_lea.hbm %s25029_s1, 835584  ;;  %p22206_p6 = scmp.lt.s32.totalorder %s22389_s21, %s25029_s1 }
  0x2e   : > { %p22203_p13 = pnand %p22202_p8, %p22201_p5  ;;  %p22207_p11 = scmp.lt.s32.totalorder %s22205_s30, %s22200_s27 }
  0x30   : > { %p22204_p1 = pneg %p22203_p13  ;;  %p22208_p4 = por %p22207_p11, %p22206_p6 }
  0x32   : > { %p22209_p12 = pnand %p22208_p4, %p22204_p1 }
  0x34   : > { %22212 = shalt.err (!%p22209_p12)
}
  0x35   : > { %s22213_s6 = scalar_lea.vmem %s22391_s25, 278528  ;;  %s22274_s7 = smov [#allocation5]  }
  0x36   : > { %p22214_p2 = scmp.ne.s32.totalorder %s22391_s25, %s22213_s6  ;;  %s22218_s8 = sshll.u32 %s22274_s7, 4  ;;  %s22219_s8 = int_to_ptr.vmem [resolvable:$false] %s22218_s8 }
  0x37   : > { %s22220_s9 = scalar_lea.vmem %s22219_s8, 557056  ;;  %p22221_p9 = scmp.lt.s32.totalorder %s22391_s25, %s22219_s8 }
  0x38   : > { %p22216_p3 = pnand %p22214_p2, %p22202_p8  ;;  %p22222_p5 = scmp.lt.s32.totalorder %s22220_s9, %s22213_s6 }
  0x3a   : > { %p22217_p7 = pneg %p22216_p3  ;;  %p22223_p13 = por %p22222_p5, %p22221_p9 }
  0x3c   : > { %p22224_p10 = pnand %p22223_p13, %p22217_p7 }
  0x3e   : > { %22227 = shalt.err (!%p22224_p10)
}
  0x3f   : > { %s22275_s10 = smov 2176   ;;  %s22276_s11 = smov 136  }
  0x40   : > { %18833 = dma.hbm_to_vmem [thread:$0]  (!%p22361_p0), %s22389_s21, 278528, %s22391_s25, %s22393_s26, %s22275_s10, %s22275_s10, %s22276_s11  }
  0x41   : > { %p25040_p8 = scmp.ne.s32.totalorder %s25037_s23, 0 }
  0x42   : > { %p25041_p1 = scmp.eq.s32.totalorder (!%p25040_p8), %s22317_s16, 0 }
  0x43   : > { %170 = sbr.rel (%p25040_p8) target bundleno = 2700 (0xa8c), region = 32 }
  0x48   : > { %22245 = dma.done.wait (%p25041_p1), [#allocation4], 1536   ;;  %p25042_p6 = pmov %p25041_p1 }
  0x49   : > { %s176_s12 = sand.u32 1, %s22317_s16   ;;  %s178_s18 = sand.u32 1, %s22262_s13  }
  0x4a   : > { %22247 = vsyncadd (%p25042_p6), [#allocation4], 4294965760  ;;  %s18812_s19 = smul.u32 17408, %s178_s18  ;;  %s177_s24 = scalar_lea.sflag [#allocation6], %s176_s12 }
  0x4b   : > { %p25043_p10 = scmp.ne.s32.totalorder %s25036_s22, 0 }
  0x4c   : > { %s22422_s27 = scalar_lea.vmem [#allocation5], %s18812_s19 }
  0x4d   : > { %22249 = dma.done.wait (%p25043_p10), %s177_s24, 278528  }
  0x4e   : > { %22251 = vsyncadd (%p25043_p10), %s177_s24, 4294688768  ;;  %p25044_p0 = pmov %p25041_p1 }
  0x50   : > { %22253 = dma.done.wait (%p25044_p0), [#allocation6], 544   ;;  %p25045_p11 = pmov %p25044_p0 }
  0x51   : > { %p25046_p4 = scmp.ne.s32.totalorder %s22317_s16, 0 }
  0x52   : > { %22255 = vsyncadd (%p25045_p11), [#allocation6], 4294966752 }
  0x53   : > { %206 = sbr.rel (%p25046_p4) target bundleno = 106 (0x6a), region = 48 }
  0x58   : > { %v22277_v0 = vmov 0.0  }
  0x59   : > { %207 = vst [vmem:[#allocation2 + $0xb0] sm:$0xff] %v22277_v0  ;;  %208 = vst [vmem:[#allocation2 + $0xd0] sm:$0xff] %v22277_v0 }
  0x5a   : > { %209 = vst [vmem:[#allocation2 + $0x10] sm:$0xff] %v22277_v0  ;;  %210 = vst [vmem:[#allocation2 + $0x48] sm:$0xff] %v22277_v0 }
  0x5b   : > { %211 = vst [vmem:[#allocation2 + $0x108] sm:$0xff] %v22277_v0  ;;  %212 = vst [vmem:[#allocation2 + $0x68] sm:$0xff] %v22277_v0 }
  0x5c   : > { %213 = vst [vmem:[#allocation2 + $0x30] sm:$0xff] %v22277_v0  ;;  %214 = vst [vmem:[#allocation2 + $0x18] sm:$0xff] %v22277_v0 }
  0x5d   : > { %215 = vst [vmem:[#allocation2 + $0x80] sm:$0xff] %v22277_v0  ;;  %216 = vst [vmem:[#allocation2 + $0x88] sm:$0xff] %v22277_v0 }
  0x5e   : > { %217 = vst [vmem:[#allocation2 + $0xe8] sm:$0xff] %v22277_v0  ;;  %218 = vst [vmem:[#allocation2 + $0x100] sm:$0xff] %v22277_v0 }
  0x5f   : > { %219 = vst [vmem:[#allocation2 + $0xc0] sm:$0xff] %v22277_v0  ;;  %220 = vst [vmem:[#allocation2 + $0x28] sm:$0xff] %v22277_v0 }
  0x60   : > { %221 = vst [vmem:[#allocation2 + $0xf8] sm:$0xff] %v22277_v0  ;;  %222 = vst [vmem:[#allocation2 + $0xb8] sm:$0xff] %v22277_v0 }
  0x61   : > { %223 = vst [vmem:[#allocation2 + $0x40] sm:$0xff] %v22277_v0  ;;  %224 = vst [vmem:[#allocation2 + $0x90] sm:$0xff] %v22277_v0 }
  0x62   : > { %225 = vst [vmem:[#allocation2 + $0x60] sm:$0xff] %v22277_v0  ;;  %226 = vst [vmem:[#allocation2 + $0x38] sm:$0xff] %v22277_v0 }
  0x63   : > { %227 = vst [vmem:[#allocation2 + $0x8] sm:$0xff] %v22277_v0  ;;  %228 = vst [vmem:[#allocation2 + $0x50] sm:$0xff] %v22277_v0 }
  0x64   : > { %229 = vst [vmem:[#allocation2 + $0x98] sm:$0xff] %v22277_v0  ;;  %230 = vst [vmem:[#allocation2 + $0x78] sm:$0xff] %v22277_v0 }
  0x65   : > { %231 = vst [vmem:[#allocation2 + $0xc8] sm:$0xff] %v22277_v0  ;;  %232 = vst [vmem:[#allocation2] sm:$0xff] %v22277_v0 }
  0x66   : > { %233 = vst [vmem:[#allocation2 + $0x20] sm:$0xff] %v22277_v0  ;;  %234 = vst [vmem:[#allocation2 + $0xe0] sm:$0xff] %v22277_v0 }
  0x67   : > { %235 = vst [vmem:[#allocation2 + $0xa8] sm:$0xff] %v22277_v0  ;;  %236 = vst [vmem:[#allocation2 + $0x58] sm:$0xff] %v22277_v0 }
  0x68   : > { %237 = vst [vmem:[#allocation2 + $0xf0] sm:$0xff] %v22277_v0  ;;  %238 = vst [vmem:[#allocation2 + $0xa0] sm:$0xff] %v22277_v0 }
  0x69   : > { %239 = vst [vmem:[#allocation2 + $0x70] sm:$0xff] %v22277_v0  ;;  %240 = vst [vmem:[#allocation2 + $0xd8] sm:$0xff] %v22277_v0 }
  0x6a PF: > { %v18876_v1 = vld [vmem:[%s22422_s27 + $0x774] ss:$136 sps:$4 sm:$0xff]   ;;  %v18880_v3 = vld [vmem:[%s22422_s27 + $0x770] ss:$136 sps:$4 sm:$0xff]   ;;  %v18882_v5 = vld [vmem:[%s22422_s27 + $0x664] ss:$136 sps:$4 sm:$0xff]  }
  0x6b   : > { %v18878_v2 = vld [vmem:[%s22422_s27 + $0x1874] ss:$136 sps:$4 sm:$0xff]   ;;  %13368 = vmatprep.subr.bf16.mxu0 %v18876_v1  ;;  %v18881_v4 = vld [vmem:[%s22422_s27 + $0x1870] ss:$136 sps:$4 sm:$0xff]   ;;  %v18884_v6 = vld [vmem:[%s22422_s27 + $0x1764] ss:$136 sps:$4 sm:$0xff]  }
  0x6c   : > { %13409 = vmatprep.subr.bf16.mxu1 %v18878_v2  ;;  %13369 = vmatpush1.bf16.msra.mxu0 %v18880_v3  ;;  %v18886_v7 = vld [vmem:[%s22422_s27 + $0x660] ss:$136 sps:$4 sm:$0xff]   ;;  %v18888_v9 = vld [vmem:[%s22422_s27 + $0x554] ss:$136 sps:$4 sm:$0xff]   ;;  %v18892_v11 = vld [vmem:[%s22422_s27 + $0x550] ss:$136 sps:$4 sm:$0xff]  }
  0x6d   : > { %13410 = vmatpush1.bf16.msra.mxu1 %v18881_v4  ;;  %13370 = vmatprep.subr.bf16.mxu0 %v18882_v5  ;;  %v18887_v8 = vld [vmem:[%s22422_s27 + $0x1760] ss:$136 sps:$4 sm:$0xff]   ;;  %v18890_v10 = vld [vmem:[%s22422_s27 + $0x1654] ss:$136 sps:$4 sm:$0xff]   ;;  %v18893_v12 = vld [vmem:[%s22422_s27 + $0x1650] ss:$136 sps:$4 sm:$0xff]  }
  0x6e   : > { %13411 = vmatprep.subr.bf16.mxu1 %v18884_v6  ;;  %v18894_v13 = vld [vmem:[%s22422_s27 + $0x444] ss:$136 sps:$4 sm:$0xff]   ;;  %v18898_v15 = vld [vmem:[%s22422_s27 + $0x440] ss:$136 sps:$4 sm:$0xff]   ;;  %v18900_v17 = vld [vmem:[%s22422_s27 + $0x334] ss:$136 sps:$4 sm:$0xff]  }
  0x6f   : > { %v18896_v14 = vld [vmem:[%s22422_s27 + $0x1544] ss:$136 sps:$4 sm:$0xff]   ;;  %v18899_v16 = vld [vmem:[%s22422_s27 + $0x1540] ss:$136 sps:$4 sm:$0xff]   ;;  %v18902_v18 = vld [vmem:[%s22422_s27 + $0x1434] ss:$136 sps:$4 sm:$0xff]  }
  0x70   : > { %13371 = vmatpush1.bf16.msra.mxu0 %v18886_v7  ;;  %v18904_v19 = vld [vmem:[%s22422_s27 + $0x330] ss:$136 sps:$4 sm:$0xff]   ;;  %v18906_v21 = vld [vmem:[%s22422_s27 + $0x224] ss:$136 sps:$4 sm:$0xff]   ;;  %v18910_v23 = vld [vmem:[%s22422_s27 + $0x220] ss:$136 sps:$4 sm:$0xff]  }
  0x71   : > { %13412 = vmatpush1.bf16.msra.mxu1 %v18887_v8  ;;  %13372 = vmatprep.subr.bf16.mxu0 %v18888_v9  ;;  %v18905_v20 = vld [vmem:[%s22422_s27 + $0x1430] ss:$136 sps:$4 sm:$0xff]   ;;  %v18908_v22 = vld [vmem:[%s22422_s27 + $0x1324] ss:$136 sps:$4 sm:$0xff]   ;;  %v18911_v24 = vld [vmem:[%s22422_s27 + $0x1320] ss:$136 sps:$4 sm:$0xff]  }
  0x72   : > { %13413 = vmatprep.subr.bf16.mxu1 %v18890_v10  ;;  %v18912_v25 = vld [vmem:[%s22422_s27 + $0x114] ss:$136 sps:$4 sm:$0xff]   ;;  %v18916_v27 = vld [vmem:[%s22422_s27 + $0x110] ss:$136 sps:$4 sm:$0xff]   ;;  %v18918_v29 = vld [vmem:[%s22422_s27 + $0x4] ss:$136 sps:$4 sm:$0xff]  }
  0x73   : > { %v18914_v26 = vld [vmem:[%s22422_s27 + $0x1214] ss:$136 sps:$4 sm:$0xff]   ;;  %v18917_v28 = vld [vmem:[%s22422_s27 + $0x1210] ss:$136 sps:$4 sm:$0xff]   ;;  %v18920_v30 = vld [vmem:[%s22422_s27 + $0x1104] ss:$136 sps:$4 sm:$0xff]  }
  0x74   : > { %13373 = vmatpush1.bf16.msra.mxu0 %v18892_v11  ;;  %v18922_v31 = vld [vmem:[%s22422_s27] ss:$136 sps:$4 sm:$0xff]   ;;  %v18924_v33 = vld [vmem:[%s22422_s27 + $0xff4] ss:$136 sps:$4 sm:$0xff]   ;;  %s16621_s22 = sshll.u32 %s22317_s16, 10  ;;  %p18807_p12 = scmp.ne.s32.totalorder %s22317_s16, 2 }
  0x75   : > { %13414 = vmatpush1.bf16.msra.mxu1 %v18893_v12  ;;  %13374 = vmatprep.subr.bf16.mxu0 %v18894_v13  ;;  %v18923_v32 = vld [vmem:[%s22422_s27 + $0x1100] ss:$136 sps:$4 sm:$0xff]   ;;  %v18926_v34 = vld [vmem:[%s22422_s27 + $0x20f4] ss:$136 sps:$4 sm:$0xff]   ;;  %v18928_v35 = vld [vmem:[%s22422_s27 + $0xff0] ss:$136 sps:$4 sm:$0xff]  }
  0x76   : > { %13415 = vmatprep.subr.bf16.mxu1 %v18896_v14  ;;  %v18929_v36 = vld [vmem:[%s22422_s27 + $0x20f0] ss:$136 sps:$4 sm:$0xff]   ;;  %v18930_v37 = vld [vmem:[%s22422_s27 + $0xee4] ss:$136 sps:$4 sm:$0xff]   ;;  %s242_s23 = sshra.s32 %s16621_s22, 7 }
  0x77   : > { %v18932_v38 = vld [vmem:[%s22422_s27 + $0x1fe4] ss:$136 sps:$4 sm:$0xff]   ;;  %v18934_v39 = vld [vmem:[%s22422_s27 + $0xee0] ss:$136 sps:$4 sm:$0xff]   ;;  %v18936_v41 = vld [vmem:[%s22422_s27 + $0xdd4] ss:$136 sps:$4 sm:$0xff]  }
  0x78   : > { %13375 = vmatpush1.bf16.msra.mxu0 %v18898_v15  ;;  %v18935_v40 = vld [vmem:[%s22422_s27 + $0x1fe0] ss:$136 sps:$4 sm:$0xff]   ;;  %s16622_s29 = sshll.u32 %s242_s23, 2  ;;  %v18938_v42 = vld [vmem:[%s22422_s27 + $0x1ed4] ss:$136 sps:$4 sm:$0xff]  }
  0x79   : > { %13416 = vmatpush1.bf16.msra.mxu1 %v18899_v16  ;;  %13376 = vmatprep.subr.bf16.mxu0 %v18900_v17  ;;  %v18940_v43 = vld [vmem:[%s22422_s27 + $0xdd0] ss:$136 sps:$4 sm:$0xff]   ;;  %v18942_v45 = vld [vmem:[%s22422_s27 + $0xcc4] ss:$136 sps:$4 sm:$0xff]   ;;  %s22481_s21 = scalar_lea.vmem [#allocation3], %s16622_s29 }
  0x7a   : > { %13417 = vmatprep.subr.bf16.mxu1 %v18902_v18  ;;  %v18941_v44 = vld [vmem:[%s22422_s27 + $0x1ed0] ss:$136 sps:$4 sm:$0xff]   ;;  %v18944_v46 = vld [vmem:[%s22422_s27 + $0x1dc4] ss:$136 sps:$4 sm:$0xff]   ;;  %v18946_v50 = vld [vmem:[%s22422_s27 + $0xcc0] ss:$136 sps:$4 sm:$0xff]  }
  0x7b   : > { %v246_v47 = vld [vmem:[%s22481_s21] sm:$0xff]  ;;  %v247_v49 = vld [vmem:[%s22481_s21 + $0x8] sm:$0xff]  ;;  %v18947_v51 = vld [vmem:[%s22422_s27 + $0x1dc0] ss:$136 sps:$4 sm:$0xff]  }
  0x7c   : > { %13377 = vmatpush1.bf16.msra.mxu0 %v18904_v19  ;;  %v22484_v48 = vcombine.high %v246_v47, %v246_v47  ;;  %v22489_v52 = vcombine.high %v247_v49, %v247_v49  ;;  %v18948_v53 = vld [vmem:[%s22422_s27 + $0xbb4] ss:$136 sps:$4 sm:$0xff]   ;;  %v18952_v55 = vld [vmem:[%s22422_s27 + $0xbb0] ss:$136 sps:$4 sm:$0xff]   ;;  %v18954_v57 = vld [vmem:[%s22422_s27 + $0xaa4] ss:$136 sps:$4 sm:$0xff]   ;;  %v22511_v7 = vcombine.low %v246_v47, %v246_v47  ;;  %v22513_v8 = vcombine.low %v247_v49, %v247_v49 }
  0x7d   : > { %13418 = vmatpush1.bf16.msra.mxu1 %v18905_v20  ;;  %13378 = vmatprep.subr.bf16.mxu0 %v18906_v21  ;;  %v18950_v54 = vld [vmem:[%s22422_s27 + $0x1cb4] ss:$136 sps:$4 sm:$0xff]   ;;  %v18953_v56 = vld [vmem:[%s22422_s27 + $0x1cb0] ss:$136 sps:$4 sm:$0xff]   ;;  %v18956_v58 = vld [vmem:[%s22422_s27 + $0x1ba4] ss:$136 sps:$4 sm:$0xff]  }
  0x7e   : > { %13419 = vmatprep.subr.bf16.mxu1 %v18908_v22  ;;  %13400 = vmatprep.mubr.bf16.mxu0 %v22484_v48  ;;  %v18958_v59 = vld [vmem:[%s22422_s27 + $0xaa0] ss:$136 sps:$4 sm:$0xff]   ;;  %v18960_v61 = vld [vmem:[%s22422_s27 + $0x994] ss:$136 sps:$4 sm:$0xff]   ;;  %v18964_v63 = vld [vmem:[%s22422_s27 + $0x990] ss:$136 sps:$4 sm:$0xff]  }
  0x7f   : > { %13441 = vmatprep.mubr.bf16.mxu1 %v22489_v52  ;;  %v18959_v60 = vld [vmem:[%s22422_s27 + $0x1ba0] ss:$136 sps:$4 sm:$0xff]   ;;  %v18962_v62 = vld [vmem:[%s22422_s27 + $0x1a94] ss:$136 sps:$4 sm:$0xff]   ;;  %v18965_v0 = vld [vmem:[%s22422_s27 + $0x1a90] ss:$136 sps:$4 sm:$0xff]  }
  0x80   : > { %13379 = vmatpush1.bf16.msra.mxu0 %v18910_v23  ;;  %v18966_v1 = vld [vmem:[%s22422_s27 + $0x884] ss:$136 sps:$4 sm:$0xff]   ;;  %v18970_v3 = vld [vmem:[%s22422_s27 + $0x880] ss:$136 sps:$4 sm:$0xff]   ;;  %v18978_v5 = vld [vmem:[%s22422_s27 + $0x2974] ss:$136 sps:$4 sm:$0xff]  }
  0x81   : > { %13420 = vmatpush1.bf16.msra.mxu1 %v18911_v24  ;;  %13380 = vmatprep.subr.bf16.mxu0 %v18912_v25  ;;  %v18968_v2 = vld [vmem:[%s22422_s27 + $0x1984] ss:$136 sps:$4 sm:$0xff]   ;;  %v18971_v4 = vld [vmem:[%s22422_s27 + $0x1980] ss:$136 sps:$4 sm:$0xff]   ;;  %v18981_v6 = vld [vmem:[%s22422_s27 + $0x3a74] ss:$136 sps:$4 sm:$0xff]  }
  0x82   : > { %13421 = vmatprep.subr.bf16.mxu1 %v18914_v26  ;;  %v18976_v9 = vld [vmem:[%s22422_s27 + $0x2970] ss:$136 sps:$4 sm:$0xff]   ;;  %v18984_v11 = vld [vmem:[%s22422_s27 + $0x2864] ss:$136 sps:$4 sm:$0xff]   ;;  %v18982_v13 = vld [vmem:[%s22422_s27 + $0x2860] ss:$136 sps:$4 sm:$0xff]  }
  0x83   : > { %v18979_v10 = vld [vmem:[%s22422_s27 + $0x3a70] ss:$136 sps:$4 sm:$0xff]   ;;  %v18987_v12 = vld [vmem:[%s22422_s27 + $0x3964] ss:$136 sps:$4 sm:$0xff]   ;;  %v18985_v14 = vld [vmem:[%s22422_s27 + $0x3960] ss:$136 sps:$4 sm:$0xff]  }
  0x84   : > { %13381 = vmatpush1.bf16.msra.mxu0 %v18916_v27  ;;  %v18990_v15 = vld [vmem:[%s22422_s27 + $0x2754] ss:$136 sps:$4 sm:$0xff]   ;;  %v18988_v17 = vld [vmem:[%s22422_s27 + $0x2750] ss:$136 sps:$4 sm:$0xff]   ;;  %v18996_v19 = vld [vmem:[%s22422_s27 + $0x2644] ss:$136 sps:$4 sm:$0xff]  }
  0x85   : > { %13422 = vmatpush1.bf16.msra.mxu1 %v18917_v28  ;;  %13382 = vmatprep.subr.bf16.mxu0 %v18918_v29  ;;  %v18993_v16 = vld [vmem:[%s22422_s27 + $0x3854] ss:$136 sps:$4 sm:$0xff]   ;;  %v18991_v18 = vld [vmem:[%s22422_s27 + $0x3850] ss:$136 sps:$4 sm:$0xff]   ;;  %v18999_v20 = vld [vmem:[%s22422_s27 + $0x3744] ss:$136 sps:$4 sm:$0xff]  }
  0x86   : > { %13423 = vmatprep.subr.bf16.mxu1 %v18920_v30  ;;  %v18994_v21 = vld [vmem:[%s22422_s27 + $0x2640] ss:$136 sps:$4 sm:$0xff]   ;;  %v19002_v23 = vld [vmem:[%s22422_s27 + $0x2534] ss:$136 sps:$4 sm:$0xff]   ;;  %v19000_v25 = vld [vmem:[%s22422_s27 + $0x2530] ss:$136 sps:$4 sm:$0xff]  }
  0x87   : > { %v18997_v22 = vld [vmem:[%s22422_s27 + $0x3740] ss:$136 sps:$4 sm:$0xff]   ;;  %v19005_v24 = vld [vmem:[%s22422_s27 + $0x3634] ss:$136 sps:$4 sm:$0xff]   ;;  %v19003_v26 = vld [vmem:[%s22422_s27 + $0x3630] ss:$136 sps:$4 sm:$0xff]  }
  0x88   : > { %13383 = vmatpush1.bf16.msra.mxu0 %v18922_v31  ;;  %v19008_v27 = vld [vmem:[%s22422_s27 + $0x2424] ss:$136 sps:$4 sm:$0xff]   ;;  %v19006_v29 = vld [vmem:[%s22422_s27 + $0x2420] ss:$136 sps:$4 sm:$0xff]   ;;  %v19014_v31 = vld [vmem:[%s22422_s27 + $0x2314] ss:$136 sps:$4 sm:$0xff]  }
  0x89   : > { %13424 = vmatpush1.bf16.msra.mxu1 %v18923_v32  ;;  %13384 = vmatprep.subr.bf16.mxu0 %v18924_v33  ;;  %v19011_v28 = vld [vmem:[%s22422_s27 + $0x3524] ss:$136 sps:$4 sm:$0xff]   ;;  %v19009_v30 = vld [vmem:[%s22422_s27 + $0x3520] ss:$136 sps:$4 sm:$0xff]   ;;  %v19017_v32 = vld [vmem:[%s22422_s27 + $0x3414] ss:$136 sps:$4 sm:$0xff]  }
  0x8a   : > { %13425 = vmatprep.subr.bf16.mxu1 %v18926_v34  ;;  %v22542_v33 = vld [vmem:[%s22481_s21 + $0x10] sm:$0xff]  ;;  %v22545_v34 = vld [vmem:[%s22481_s21 + $0x18] sm:$0xff] }
  0x8b   : > { %v19032_v47 = vld [vmem:[%s22422_s27 + $0x30e4] ss:$136 sps:$4 sm:$0xff]  }
  0x8c   : > { %13385 = vmatpush2.bf16.msra.mxu0 %v18928_v35  ;;  %v19012_v35 = vld [vmem:[%s22422_s27 + $0x2310] ss:$136 sps:$4 sm:$0xff]   ;;  %v19035_v49 = vld [vmem:[%s22422_s27 + $0x41e4] ss:$136 sps:$4 sm:$0xff]  }
  0x8d   : > { %13426 = vmatpush2.bf16.msra.mxu1 %v18929_v36  ;;  %13386 = vmatprep.subr.bf16.mxu0 %v18930_v37  ;;  %v19015_v36 = vld [vmem:[%s22422_s27 + $0x3410] ss:$136 sps:$4 sm:$0xff]   ;;  %v22551_v37 = vcombine.high %v22542_v33, %v22542_v33 }
  0x8e   : > { %13427 = vmatprep.subr.bf16.mxu1 %v18932_v38  ;;  %v22555_v38 = vcombine.high %v22545_v34, %v22545_v34 }
  0x90   : > { %13387 = vmatpush2.bf16.msra.mxu0 %v18934_v39  ;;  %v19020_v39 = vld [vmem:[%s22422_s27 + $0x2204] ss:$136 sps:$4 sm:$0xff]  }
  0x91   : > { %13428 = vmatpush2.bf16.msra.mxu1 %v18935_v40  ;;  %13388 = vmatprep.subr.bf16.mxu0 %v18936_v41  ;;  %v19023_v40 = vld [vmem:[%s22422_s27 + $0x3304] ss:$136 sps:$4 sm:$0xff]   ;;  %v19018_v41 = vld [vmem:[%s22422_s27 + $0x2200] ss:$136 sps:$4 sm:$0xff]  }
  0x92   : > { %13429 = vmatprep.subr.bf16.mxu1 %v18938_v42  ;;  %v19021_v42 = vld [vmem:[%s22422_s27 + $0x3300] ss:$136 sps:$4 sm:$0xff]  }
  0x94   : > { %13389 = vmatpush2.bf16.msra.mxu0 %v18940_v43  ;;  %v19026_v43 = vld [vmem:[%s22422_s27 + $0x31f4] ss:$136 sps:$4 sm:$0xff]  }
  0x95   : > { %13430 = vmatpush2.bf16.msra.mxu1 %v18941_v44  ;;  %13390 = vmatprep.subr.bf16.mxu0 %v18942_v45  ;;  %v19029_v44 = vld [vmem:[%s22422_s27 + $0x42f4] ss:$136 sps:$4 sm:$0xff]   ;;  %v19024_v45 = vld [vmem:[%s22422_s27 + $0x31f0] ss:$136 sps:$4 sm:$0xff]  }
  0x96   : > { %13431 = vmatprep.subr.bf16.mxu1 %v18944_v46  ;;  %v19027_v46 = vld [vmem:[%s22422_s27 + $0x42f0] ss:$136 sps:$4 sm:$0xff]  }
  0x98   : > { %13391 = vmatpush2.bf16.msra.mxu0 %v18946_v50  ;;  %v19030_v50 = vld [vmem:[%s22422_s27 + $0x30e0] ss:$136 sps:$4 sm:$0xff]  }
  0x99   : > { %13432 = vmatpush2.bf16.msra.mxu1 %v18947_v51  ;;  %13392 = vmatprep.subr.bf16.mxu0 %v18948_v53  ;;  %v19033_v51 = vld [vmem:[%s22422_s27 + $0x41e0] ss:$136 sps:$4 sm:$0xff]   ;;  %v19038_v53 = vld [vmem:[%s22422_s27 + $0x2fd4] ss:$136 sps:$4 sm:$0xff]  }
  0x9a   : > { %13433 = vmatprep.subr.bf16.mxu1 %v18950_v54  ;;  %v19041_v54 = vld [vmem:[%s22422_s27 + $0x40d4] ss:$136 sps:$4 sm:$0xff]  }
  0x9c   : > { %13393 = vmatpush2.bf16.msra.mxu0 %v18952_v55  ;;  %v19036_v55 = vld [vmem:[%s22422_s27 + $0x2fd0] ss:$136 sps:$4 sm:$0xff]  }
  0x9d   : > { %13434 = vmatpush2.bf16.msra.mxu1 %v18953_v56  ;;  %13394 = vmatprep.subr.bf16.mxu0 %v18954_v57  ;;  %v19039_v56 = vld [vmem:[%s22422_s27 + $0x40d0] ss:$136 sps:$4 sm:$0xff]   ;;  %v19044_v57 = vld [vmem:[%s22422_s27 + $0x2ec4] ss:$136 sps:$4 sm:$0xff]  }
  0x9e   : > { %13435 = vmatprep.subr.bf16.mxu1 %v18956_v58  ;;  %v19047_v58 = vld [vmem:[%s22422_s27 + $0x3fc4] ss:$136 sps:$4 sm:$0xff]  }
  0xa0   : > { %13395 = vmatpush2.bf16.msra.mxu0 %v18958_v59  ;;  %v19042_v59 = vld [vmem:[%s22422_s27 + $0x2ec0] ss:$136 sps:$4 sm:$0xff]  }
  0xa1   : > { %13436 = vmatpush2.bf16.msra.mxu1 %v18959_v60  ;;  %13396 = vmatprep.subr.bf16.mxu0 %v18960_v61  ;;  %v19045_v60 = vld [vmem:[%s22422_s27 + $0x3fc0] ss:$136 sps:$4 sm:$0xff]   ;;  %v19050_v61 = vld [vmem:[%s22422_s27 + $0x2db4] ss:$136 sps:$4 sm:$0xff]  }
  0xa2   : > { %13437 = vmatprep.subr.bf16.mxu1 %v18962_v62  ;;  %v19053_v62 = vld [vmem:[%s22422_s27 + $0x3eb4] ss:$136 sps:$4 sm:$0xff]  }
  0xa4   : > { %13397 = vmatpush2.bf16.msra.mxu0 %v18964_v63  ;;  %v19048_v63 = vld [vmem:[%s22422_s27 + $0x2db0] ss:$136 sps:$4 sm:$0xff]  }
  0xa5   : > { %13438 = vmatpush2.bf16.msra.mxu1 %v18965_v0  ;;  %13398 = vmatprep.subr.bf16.mxu0 %v18966_v1  ;;  %v19051_v0 = vld [vmem:[%s22422_s27 + $0x3eb0] ss:$136 sps:$4 sm:$0xff]   ;;  %v19056_v1 = vld [vmem:[%s22422_s27 + $0x2ca4] ss:$136 sps:$4 sm:$0xff]  }
  0xa6   : > { %13439 = vmatprep.subr.bf16.mxu1 %v18968_v2  ;;  %v19059_v2 = vld [vmem:[%s22422_s27 + $0x3da4] ss:$136 sps:$4 sm:$0xff]  }
  0xa8   : > { %13399 = vmatpush2.bf16.msra.mxu0 %v18970_v3  ;;  %v19054_v3 = vld [vmem:[%s22422_s27 + $0x2ca0] ss:$136 sps:$4 sm:$0xff]  }
  0xa9   : > { %13440 = vmatpush2.bf16.msra.mxu1 %v18971_v4  ;;  %13450 = vmatprep.subr.bf16.mxu0 %v18978_v5  ;;  %v19057_v4 = vld [vmem:[%s22422_s27 + $0x3da0] ss:$136 sps:$4 sm:$0xff]   ;;  %v19062_v5 = vld [vmem:[%s22422_s27 + $0x2b94] ss:$136 sps:$4 sm:$0xff]  }
  0xaa   : > { %13491 = vmatprep.subr.bf16.mxu1 %v18981_v6  ;;  %v19065_v6 = vld [vmem:[%s22422_s27 + $0x3c94] ss:$136 sps:$4 sm:$0xff]  }
  0xab   : > { %13401 = vmatmul.mubr.bf16.vlgmr.msra.gmra.mxu0 %v22511_v7 }
  0xac   : > { %13442 = vmatmul.mubr.bf16.vlgmr.msra.gmra.mxu1 %v22513_v8  ;;  %13451 = vmatpush1.bf16.msra.mxu0 %v18976_v9  ;;  %v19060_v9 = vld [vmem:[%s22422_s27 + $0x2b90] ss:$136 sps:$4 sm:$0xff]  }
  0xad   : > { %13492 = vmatpush1.bf16.msra.mxu1 %v18979_v10  ;;  %13452 = vmatprep.subr.bf16.mxu0 %v18984_v11  ;;  %v19063_v10 = vld [vmem:[%s22422_s27 + $0x3c90] ss:$136 sps:$4 sm:$0xff]   ;;  %v19068_v11 = vld [vmem:[%s22422_s27 + $0x2a84] ss:$136 sps:$4 sm:$0xff]  }
  0xae   : > { %13493 = vmatprep.subr.bf16.mxu1 %v18987_v12  ;;  %13482 = vmatprep.mubr.bf16.mxu0 %v22551_v37  ;;  %v19071_v12 = vld [vmem:[%s22422_s27 + $0x3b84] ss:$136 sps:$4 sm:$0xff]  }
  0xaf   : > { %13523 = vmatprep.mubr.bf16.mxu1 %v22555_v38 }
  0xb0   : > { %13453 = vmatpush1.bf16.msra.mxu0 %v18982_v13  ;;  %v19066_v13 = vld [vmem:[%s22422_s27 + $0x2a80] ss:$136 sps:$4 sm:$0xff]  }
  0xb1   : > { %13494 = vmatpush1.bf16.msra.mxu1 %v18985_v14  ;;  %13454 = vmatprep.subr.bf16.mxu0 %v18990_v15  ;;  %v19069_v14 = vld [vmem:[%s22422_s27 + $0x3b80] ss:$136 sps:$4 sm:$0xff]   ;;  %v19078_v15 = vld [vmem:[%s22422_s27 + $0x77c] ss:$136 sps:$4 sm:$0xff]  }
  0xb2   : > { %13495 = vmatprep.subr.bf16.mxu1 %v18993_v16  ;;  %v19081_v16 = vld [vmem:[%s22422_s27 + $0x187c] ss:$136 sps:$4 sm:$0xff]  }
  0xb4   : > { %13455 = vmatpush1.bf16.msra.mxu0 %v18988_v17  ;;  %v22599_v17 = vcombine.low %v22542_v33, %v22542_v33  ;;  %v19102_v33 = vld [vmem:[%s22422_s27 + $0x33c] ss:$136 sps:$4 sm:$0xff]  }
  0xb5   : > { %13496 = vmatpush1.bf16.msra.mxu1 %v18991_v18  ;;  %13456 = vmatprep.subr.bf16.mxu0 %v18996_v19  ;;  %v22603_v18 = vcombine.low %v22545_v34, %v22545_v34  ;;  %v19076_v19 = vld [vmem:[%s22422_s27 + $0x778] ss:$136 sps:$4 sm:$0xff]   ;;  %v19105_v34 = vld [vmem:[%s22422_s27 + $0x143c] ss:$136 sps:$4 sm:$0xff]  }
  0xb6   : > { %13497 = vmatprep.subr.bf16.mxu1 %v18999_v20  ;;  %v19079_v20 = vld [vmem:[%s22422_s27 + $0x1878] ss:$136 sps:$4 sm:$0xff]  }
  0xb8   : > { %13457 = vmatpush1.bf16.msra.mxu0 %v18994_v21  ;;  %v19084_v21 = vld [vmem:[%s22422_s27 + $0x66c] ss:$136 sps:$4 sm:$0xff]  }
  0xb9   : > { %13498 = vmatpush1.bf16.msra.mxu1 %v18997_v22  ;;  %13458 = vmatprep.subr.bf16.mxu0 %v19002_v23  ;;  %v19087_v22 = vld [vmem:[%s22422_s27 + $0x176c] ss:$136 sps:$4 sm:$0xff]   ;;  %v19082_v23 = vld [vmem:[%s22422_s27 + $0x668] ss:$136 sps:$4 sm:$0xff]  }
  0xba   : > { %13499 = vmatprep.subr.bf16.mxu1 %v19005_v24  ;;  %v19085_v24 = vld [vmem:[%s22422_s27 + $0x1768] ss:$136 sps:$4 sm:$0xff]  }
  0xbc   : > { %13459 = vmatpush1.bf16.msra.mxu0 %v19000_v25  ;;  %v19090_v25 = vld [vmem:[%s22422_s27 + $0x55c] ss:$136 sps:$4 sm:$0xff]  }
  0xbd   : > { %13500 = vmatpush1.bf16.msra.mxu1 %v19003_v26  ;;  %13460 = vmatprep.subr.bf16.mxu0 %v19008_v27  ;;  %v19093_v26 = vld [vmem:[%s22422_s27 + $0x165c] ss:$136 sps:$4 sm:$0xff]   ;;  %v19088_v27 = vld [vmem:[%s22422_s27 + $0x558] ss:$136 sps:$4 sm:$0xff]  }
  0xbe   : > { %13501 = vmatprep.subr.bf16.mxu1 %v19011_v28  ;;  %v19091_v28 = vld [vmem:[%s22422_s27 + $0x1658] ss:$136 sps:$4 sm:$0xff]  }
  0xc0   : > { %13461 = vmatpush1.bf16.msra.mxu0 %v19006_v29  ;;  %v19096_v29 = vld [vmem:[%s22422_s27 + $0x44c] ss:$136 sps:$4 sm:$0xff]  }
  0xc1   : > { %13502 = vmatpush1.bf16.msra.mxu1 %v19009_v30  ;;  %13462 = vmatprep.subr.bf16.mxu0 %v19014_v31  ;;  %v19099_v30 = vld [vmem:[%s22422_s27 + $0x154c] ss:$136 sps:$4 sm:$0xff]   ;;  %v19094_v31 = vld [vmem:[%s22422_s27 + $0x448] ss:$136 sps:$4 sm:$0xff]  }
  0xc2   : > { %13503 = vmatprep.subr.bf16.mxu1 %v19017_v32  ;;  %v19097_v32 = vld [vmem:[%s22422_s27 + $0x1548] ss:$136 sps:$4 sm:$0xff]  }
  0xc4   : > { %13463 = vmatpush1.bf16.msra.mxu0 %v19012_v35  ;;  %v19100_v35 = vld [vmem:[%s22422_s27 + $0x338] ss:$136 sps:$4 sm:$0xff]  }
  0xc5   : > { %13504 = vmatpush1.bf16.msra.mxu1 %v19015_v36  ;;  %13464 = vmatprep.subr.bf16.mxu0 %v19020_v39  ;;  %v19103_v36 = vld [vmem:[%s22422_s27 + $0x1438] ss:$136 sps:$4 sm:$0xff]   ;;  %v19108_v39 = vld [vmem:[%s22422_s27 + $0x22c] ss:$136 sps:$4 sm:$0xff]  }
  0xc6   : > { %13505 = vmatprep.subr.bf16.mxu1 %v19023_v40  ;;  %v19111_v40 = vld [vmem:[%s22422_s27 + $0x132c] ss:$136 sps:$4 sm:$0xff]  }
  0xc8   : > { %13465 = vmatpush1.bf16.msra.mxu0 %v19018_v41  ;;  %v19106_v41 = vld [vmem:[%s22422_s27 + $0x228] ss:$136 sps:$4 sm:$0xff]  }
  0xc9   : > { %13506 = vmatpush1.bf16.msra.mxu1 %v19021_v42  ;;  %13466 = vmatprep.subr.bf16.mxu0 %v19026_v43  ;;  %v19109_v42 = vld [vmem:[%s22422_s27 + $0x1328] ss:$136 sps:$4 sm:$0xff]   ;;  %v19114_v43 = vld [vmem:[%s22422_s27 + $0x11c] ss:$136 sps:$4 sm:$0xff]  }
  0xca   : > { %13507 = vmatprep.subr.bf16.mxu1 %v19029_v44  ;;  %v19117_v44 = vld [vmem:[%s22422_s27 + $0x121c] ss:$136 sps:$4 sm:$0xff]  }
  0xcc   : > { %13467 = vmatpush2.bf16.msra.mxu0 %v19024_v45  ;;  %v19112_v45 = vld [vmem:[%s22422_s27 + $0x118] ss:$136 sps:$4 sm:$0xff]  }
  0xcd   : > { %13508 = vmatpush2.bf16.msra.mxu1 %v19027_v46  ;;  %13468 = vmatprep.subr.bf16.mxu0 %v19032_v47  ;;  %v19115_v46 = vld [vmem:[%s22422_s27 + $0x1218] ss:$136 sps:$4 sm:$0xff]   ;;  %v19120_v47 = vld [vmem:[%s22422_s27 + $0xc] ss:$136 sps:$4 sm:$0xff]  }
  0xce   : > { %13509 = vmatprep.subr.bf16.mxu1 %v19035_v49  ;;  %v19123_v49 = vld [vmem:[%s22422_s27 + $0x110c] ss:$136 sps:$4 sm:$0xff]  }
  0xd0   : > { %13469 = vmatpush2.bf16.msra.mxu0 %v19030_v50  ;;  %v19118_v50 = vld [vmem:[%s22422_s27 + $0x8] ss:$136 sps:$4 sm:$0xff]  }
  0xd1   : > { %13510 = vmatpush2.bf16.msra.mxu1 %v19033_v51  ;;  %13470 = vmatprep.subr.bf16.mxu0 %v19038_v53  ;;  %v19121_v51 = vld [vmem:[%s22422_s27 + $0x1108] ss:$136 sps:$4 sm:$0xff]   ;;  %v19126_v53 = vld [vmem:[%s22422_s27 + $0xffc] ss:$136 sps:$4 sm:$0xff]  }
  0xd2   : > { %13511 = vmatprep.subr.bf16.mxu1 %v19041_v54  ;;  %v19129_v54 = vld [vmem:[%s22422_s27 + $0x20fc] ss:$136 sps:$4 sm:$0xff]  }
  0xd4   : > { %13471 = vmatpush2.bf16.msra.mxu0 %v19036_v55  ;;  %v19124_v55 = vld [vmem:[%s22422_s27 + $0xff8] ss:$136 sps:$4 sm:$0xff]  }
  0xd5   : > { %13512 = vmatpush2.bf16.msra.mxu1 %v19039_v56  ;;  %13472 = vmatprep.subr.bf16.mxu0 %v19044_v57  ;;  %v19127_v56 = vld [vmem:[%s22422_s27 + $0x20f8] ss:$136 sps:$4 sm:$0xff]   ;;  %v19132_v57 = vld [vmem:[%s22422_s27 + $0xeec] ss:$136 sps:$4 sm:$0xff]  }
  0xd6   : > { %13513 = vmatprep.subr.bf16.mxu1 %v19047_v58  ;;  %v19135_v58 = vld [vmem:[%s22422_s27 + $0x1fec] ss:$136 sps:$4 sm:$0xff]  }
  0xd8   : > { %13473 = vmatpush2.bf16.msra.mxu0 %v19042_v59  ;;  %v19130_v59 = vld [vmem:[%s22422_s27 + $0xee8] ss:$136 sps:$4 sm:$0xff]  }
  0xd9   : > { %13514 = vmatpush2.bf16.msra.mxu1 %v19045_v60  ;;  %13474 = vmatprep.subr.bf16.mxu0 %v19050_v61  ;;  %v19133_v60 = vld [vmem:[%s22422_s27 + $0x1fe8] ss:$136 sps:$4 sm:$0xff]   ;;  %v19138_v61 = vld [vmem:[%s22422_s27 + $0xddc] ss:$136 sps:$4 sm:$0xff]  }
  0xda   : > { %13515 = vmatprep.subr.bf16.mxu1 %v19053_v62  ;;  %v19141_v62 = vld [vmem:[%s22422_s27 + $0x1edc] ss:$136 sps:$4 sm:$0xff]  }
  0xdc   : > { %13475 = vmatpush2.bf16.msra.mxu0 %v19048_v63  ;;  %v19136_v63 = vld [vmem:[%s22422_s27 + $0xdd8] ss:$136 sps:$4 sm:$0xff]  }
  0xdd   : > { %13516 = vmatpush2.bf16.msra.mxu1 %v19051_v0  ;;  %13476 = vmatprep.subr.bf16.mxu0 %v19056_v1  ;;  %v19139_v0 = vld [vmem:[%s22422_s27 + $0x1ed8] ss:$136 sps:$4 sm:$0xff]   ;;  %v19144_v1 = vld [vmem:[%s22422_s27 + $0xccc] ss:$136 sps:$4 sm:$0xff]  }
  0xde   : > { %13517 = vmatprep.subr.bf16.mxu1 %v19059_v2  ;;  %v19147_v2 = vld [vmem:[%s22422_s27 + $0x1dcc] ss:$136 sps:$4 sm:$0xff]  }
  0xe0   : > { %13477 = vmatpush2.bf16.msra.mxu0 %v19054_v3  ;;  %v19142_v3 = vld [vmem:[%s22422_s27 + $0xcc8] ss:$136 sps:$4 sm:$0xff]  }
  0xe1   : > { %13518 = vmatpush2.bf16.msra.mxu1 %v19057_v4  ;;  %13478 = vmatprep.subr.bf16.mxu0 %v19062_v5  ;;  %v19145_v4 = vld [vmem:[%s22422_s27 + $0x1dc8] ss:$136 sps:$4 sm:$0xff]   ;;  %v19150_v5 = vld [vmem:[%s22422_s27 + $0xbbc] ss:$136 sps:$4 sm:$0xff]  }
  0xe2   : > { %13519 = vmatprep.subr.bf16.mxu1 %v19065_v6  ;;  %v19153_v6 = vld [vmem:[%s22422_s27 + $0x1cbc] ss:$136 sps:$4 sm:$0xff]  }
  0xe4   : > { %13479 = vmatpush2.bf16.msra.mxu0 %v19060_v9  ;;  %v19148_v9 = vld [vmem:[%s22422_s27 + $0xbb8] ss:$136 sps:$4 sm:$0xff]  }
  0xe5   : > { %13520 = vmatpush2.bf16.msra.mxu1 %v19063_v10  ;;  %13480 = vmatprep.subr.bf16.mxu0 %v19068_v11  ;;  %v19151_v10 = vld [vmem:[%s22422_s27 + $0x1cb8] ss:$136 sps:$4 sm:$0xff]   ;;  %v19156_v11 = vld [vmem:[%s22422_s27 + $0xaac] ss:$136 sps:$4 sm:$0xff]  }
  0xe6   : > { %13521 = vmatprep.subr.bf16.mxu1 %v19071_v12  ;;  %v19159_v12 = vld [vmem:[%s22422_s27 + $0x1bac] ss:$136 sps:$4 sm:$0xff]  }
  0xe8   : > { %13481 = vmatpush2.bf16.msra.mxu0 %v19066_v13  ;;  %v19154_v13 = vld [vmem:[%s22422_s27 + $0xaa8] ss:$136 sps:$4 sm:$0xff]  }
  0xe9   : > { %13522 = vmatpush2.bf16.msra.mxu1 %v19069_v14  ;;  %13532 = vmatprep.subr.bf16.mxu0 %v19078_v15  ;;  %v19157_v14 = vld [vmem:[%s22422_s27 + $0x1ba8] ss:$136 sps:$4 sm:$0xff]   ;;  %v19162_v15 = vld [vmem:[%s22422_s27 + $0x99c] ss:$136 sps:$4 sm:$0xff]  }
  0xea   : > { %13573 = vmatprep.subr.bf16.mxu1 %v19081_v16  ;;  %v19165_v16 = vld [vmem:[%s22422_s27 + $0x1a9c] ss:$136 sps:$4 sm:$0xff]  }
  0xeb   : > { %13483 = vmatmul.mubr.bf16.vlgmr.msra.gmra.mxu0 %v22599_v17 }
  0xec   : > { %13524 = vmatmul.mubr.bf16.vlgmr.msra.gmra.mxu1 %v22603_v18  ;;  %13533 = vmatpush1.bf16.msra.mxu0 %v19076_v19  ;;  %v19160_v19 = vld [vmem:[%s22422_s27 + $0x998] ss:$136 sps:$4 sm:$0xff]  }
  0xed   : > { %13574 = vmatpush1.bf16.msra.mxu1 %v19079_v20  ;;  %13534 = vmatprep.subr.bf16.mxu0 %v19084_v21  ;;  %v19163_v20 = vld [vmem:[%s22422_s27 + $0x1a98] ss:$136 sps:$4 sm:$0xff]   ;;  %v19168_v21 = vld [vmem:[%s22422_s27 + $0x88c] ss:$136 sps:$4 sm:$0xff]  }
  0xee   : > { %13575 = vmatprep.subr.bf16.mxu1 %v19087_v22  ;;  %13564 = vmatprep.mubr.bf16.mxu0 %v22484_v48  ;;  %v19171_v22 = vld [vmem:[%s22422_s27 + $0x198c] ss:$136 sps:$4 sm:$0xff]  }
  0xef   : > { %13605 = vmatprep.mubr.bf16.mxu1 %v22489_v52 }
  0xf0   : > { %13535 = vmatpush1.bf16.msra.mxu0 %v19082_v23  ;;  %v19166_v23 = vld [vmem:[%s22422_s27 + $0x888] ss:$136 sps:$4 sm:$0xff]  }
  0xf1   : > { %13576 = vmatpush1.bf16.msra.mxu1 %v19085_v24  ;;  %13536 = vmatprep.subr.bf16.mxu0 %v19090_v25  ;;  %v19169_v24 = vld [vmem:[%s22422_s27 + $0x1988] ss:$136 sps:$4 sm:$0xff]   ;;  %v19174_v25 = vld [vmem:[%s22422_s27 + $0x297c] ss:$136 sps:$4 sm:$0xff]  }
  0xf2   : > { %13577 = vmatprep.subr.bf16.mxu1 %v19093_v26  ;;  %v19177_v26 = vld [vmem:[%s22422_s27 + $0x3a7c] ss:$136 sps:$4 sm:$0xff]  }
  0xf4   : > { %13537 = vmatpush1.bf16.msra.mxu0 %v19088_v27  ;;  %v19172_v27 = vld [vmem:[%s22422_s27 + $0x2978] ss:$136 sps:$4 sm:$0xff]  }
  0xf5   : > { %13578 = vmatpush1.bf16.msra.mxu1 %v19091_v28  ;;  %13538 = vmatprep.subr.bf16.mxu0 %v19096_v29  ;;  %v19175_v28 = vld [vmem:[%s22422_s27 + $0x3a78] ss:$136 sps:$4 sm:$0xff]   ;;  %v19180_v29 = vld [vmem:[%s22422_s27 + $0x286c] ss:$136 sps:$4 sm:$0xff]  }
  0xf6   : > { %13579 = vmatprep.subr.bf16.mxu1 %v19099_v30  ;;  %v19183_v30 = vld [vmem:[%s22422_s27 + $0x396c] ss:$136 sps:$4 sm:$0xff]  }
  0xf8   : > { %13539 = vmatpush1.bf16.msra.mxu0 %v19094_v31  ;;  %v19178_v31 = vld [vmem:[%s22422_s27 + $0x2868] ss:$136 sps:$4 sm:$0xff]  }
  0xf9   : > { %13580 = vmatpush1.bf16.msra.mxu1 %v19097_v32  ;;  %13540 = vmatprep.subr.bf16.mxu0 %v19102_v33  ;;  %v19181_v32 = vld [vmem:[%s22422_s27 + $0x3968] ss:$136 sps:$4 sm:$0xff]   ;;  %v19186_v33 = vld [vmem:[%s22422_s27 + $0x275c] ss:$136 sps:$4 sm:$0xff]  }
  0xfa   : > { %13581 = vmatprep.subr.bf16.mxu1 %v19105_v34  ;;  %v19189_v34 = vld [vmem:[%s22422_s27 + $0x385c] ss:$136 sps:$4 sm:$0xff]  }
  0xfc   : > { %13541 = vmatpush1.bf16.msra.mxu0 %v19100_v35  ;;  %v19184_v35 = vld [vmem:[%s22422_s27 + $0x2758] ss:$136 sps:$4 sm:$0xff]  }
  0xfd   : > { %13582 = vmatpush1.bf16.msra.mxu1 %v19103_v36  ;;  %13542 = vmatprep.subr.bf16.mxu0 %v19108_v39  ;;  %v19187_v36 = vld [vmem:[%s22422_s27 + $0x3858] ss:$136 sps:$4 sm:$0xff]   ;;  %v19192_v39 = vld [vmem:[%s22422_s27 + $0x264c] ss:$136 sps:$4 sm:$0xff]  }
  0xfe   : > { %13583 = vmatprep.subr.bf16.mxu1 %v19111_v40  ;;  %v19195_v40 = vld [vmem:[%s22422_s27 + $0x374c] ss:$136 sps:$4 sm:$0xff]  }
 0x100   : > { %13543 = vmatpush1.bf16.msra.mxu0 %v19106_v41  ;;  %v19190_v41 = vld [vmem:[%s22422_s27 + $0x2648] ss:$136 sps:$4 sm:$0xff]  }
 0x101   : > { %13584 = vmatpush1.bf16.msra.mxu1 %v19109_v42  ;;  %13544 = vmatprep.subr.bf16.mxu0 %v19114_v43  ;;  %v19193_v42 = vld [vmem:[%s22422_s27 + $0x3748] ss:$136 sps:$4 sm:$0xff]   ;;  %v19198_v43 = vld [vmem:[%s22422_s27 + $0x253c] ss:$136 sps:$4 sm:$0xff]  }
 0x102   : > { %13585 = vmatprep.subr.bf16.mxu1 %v19117_v44  ;;  %v19201_v44 = vld [vmem:[%s22422_s27 + $0x363c] ss:$136 sps:$4 sm:$0xff]  }
 0x104   : > { %13545 = vmatpush1.bf16.msra.mxu0 %v19112_v45  ;;  %v19196_v45 = vld [vmem:[%s22422_s27 + $0x2538] ss:$136 sps:$4 sm:$0xff]  }
 0x105   : > { %13586 = vmatpush1.bf16.msra.mxu1 %v19115_v46  ;;  %13546 = vmatprep.subr.bf16.mxu0 %v19120_v47  ;;  %v19199_v46 = vld [vmem:[%s22422_s27 + $0x3638] ss:$136 sps:$4 sm:$0xff]   ;;  %v19204_v47 = vld [vmem:[%s22422_s27 + $0x242c] ss:$136 sps:$4 sm:$0xff]  }
 0x106   : > { %13587 = vmatprep.subr.bf16.mxu1 %v19123_v49  ;;  %v19207_v49 = vld [vmem:[%s22422_s27 + $0x352c] ss:$136 sps:$4 sm:$0xff]  }
 0x108   : > { %13547 = vmatpush1.bf16.msra.mxu0 %v19118_v50  ;;  %v19202_v50 = vld [vmem:[%s22422_s27 + $0x2428] ss:$136 sps:$4 sm:$0xff]  }
 0x109   : > { %13588 = vmatpush1.bf16.msra.mxu1 %v19121_v51  ;;  %13548 = vmatprep.subr.bf16.mxu0 %v19126_v53  ;;  %v19205_v51 = vld [vmem:[%s22422_s27 + $0x3528] ss:$136 sps:$4 sm:$0xff]   ;;  %v19210_v53 = vld [vmem:[%s22422_s27 + $0x231c] ss:$136 sps:$4 sm:$0xff]  }
 0x10a   : > { %13589 = vmatprep.subr.bf16.mxu1 %v19129_v54  ;;  %v19213_v54 = vld [vmem:[%s22422_s27 + $0x341c] ss:$136 sps:$4 sm:$0xff]  }
 0x10c   : > { %13549 = vmatpush2.bf16.msra.mxu0 %v19124_v55  ;;  %v19208_v55 = vld [vmem:[%s22422_s27 + $0x2318] ss:$136 sps:$4 sm:$0xff]  }
 0x10d   : > { %13590 = vmatpush2.bf16.msra.mxu1 %v19127_v56  ;;  %13550 = vmatprep.subr.bf16.mxu0 %v19132_v57  ;;  %v19211_v56 = vld [vmem:[%s22422_s27 + $0x3418] ss:$136 sps:$4 sm:$0xff]   ;;  %v19216_v57 = vld [vmem:[%s22422_s27 + $0x220c] ss:$136 sps:$4 sm:$0xff]  }
 0x10e   : > { %13591 = vmatprep.subr.bf16.mxu1 %v19135_v58  ;;  %v19219_v58 = vld [vmem:[%s22422_s27 + $0x330c] ss:$136 sps:$4 sm:$0xff]  }
 0x110   : > { %13551 = vmatpush2.bf16.msra.mxu0 %v19130_v59  ;;  %v19214_v59 = vld [vmem:[%s22422_s27 + $0x2208] ss:$136 sps:$4 sm:$0xff]  }
 0x111   : > { %13592 = vmatpush2.bf16.msra.mxu1 %v19133_v60  ;;  %13552 = vmatprep.subr.bf16.mxu0 %v19138_v61  ;;  %v19217_v60 = vld [vmem:[%s22422_s27 + $0x3308] ss:$136 sps:$4 sm:$0xff]   ;;  %v19222_v61 = vld [vmem:[%s22422_s27 + $0x31fc] ss:$136 sps:$4 sm:$0xff]  }
 0x112   : > { %13593 = vmatprep.subr.bf16.mxu1 %v19141_v62  ;;  %v19225_v62 = vld [vmem:[%s22422_s27 + $0x42fc] ss:$136 sps:$4 sm:$0xff]  }
 0x114   : > { %13553 = vmatpush2.bf16.msra.mxu0 %v19136_v63  ;;  %v19220_v63 = vld [vmem:[%s22422_s27 + $0x31f8] ss:$136 sps:$4 sm:$0xff]  }
 0x115   : > { %13594 = vmatpush2.bf16.msra.mxu1 %v19139_v0  ;;  %13554 = vmatprep.subr.bf16.mxu0 %v19144_v1  ;;  %v19223_v0 = vld [vmem:[%s22422_s27 + $0x42f8] ss:$136 sps:$4 sm:$0xff]   ;;  %v19228_v1 = vld [vmem:[%s22422_s27 + $0x30ec] ss:$136 sps:$4 sm:$0xff]  }
 0x116   : > { %13595 = vmatprep.subr.bf16.mxu1 %v19147_v2  ;;  %v19231_v2 = vld [vmem:[%s22422_s27 + $0x41ec] ss:$136 sps:$4 sm:$0xff]  }
 0x118   : > { %13555 = vmatpush2.bf16.msra.mxu0 %v19142_v3  ;;  %v19226_v3 = vld [vmem:[%s22422_s27 + $0x30e8] ss:$136 sps:$4 sm:$0xff]  }
 0x119   : > { %13596 = vmatpush2.bf16.msra.mxu1 %v19145_v4  ;;  %13556 = vmatprep.subr.bf16.mxu0 %v19150_v5  ;;  %v19229_v4 = vld [vmem:[%s22422_s27 + $0x41e8] ss:$136 sps:$4 sm:$0xff]   ;;  %v19234_v5 = vld [vmem:[%s22422_s27 + $0x2fdc] ss:$136 sps:$4 sm:$0xff]  }
 0x11a   : > { %13597 = vmatprep.subr.bf16.mxu1 %v19153_v6  ;;  %v19237_v6 = vld [vmem:[%s22422_s27 + $0x40dc] ss:$136 sps:$4 sm:$0xff]  }
 0x11c   : > { %13557 = vmatpush2.bf16.msra.mxu0 %v19148_v9  ;;  %v19232_v9 = vld [vmem:[%s22422_s27 + $0x2fd8] ss:$136 sps:$4 sm:$0xff]  }
 0x11d   : > { %13598 = vmatpush2.bf16.msra.mxu1 %v19151_v10  ;;  %13558 = vmatprep.subr.bf16.mxu0 %v19156_v11  ;;  %v19235_v10 = vld [vmem:[%s22422_s27 + $0x40d8] ss:$136 sps:$4 sm:$0xff]   ;;  %v19240_v11 = vld [vmem:[%s22422_s27 + $0x2ecc] ss:$136 sps:$4 sm:$0xff]  }
 0x11e   : > { %13599 = vmatprep.subr.bf16.mxu1 %v19159_v12  ;;  %v19243_v12 = vld [vmem:[%s22422_s27 + $0x3fcc] ss:$136 sps:$4 sm:$0xff]  }
 0x120   : > { %13559 = vmatpush2.bf16.msra.mxu0 %v19154_v13  ;;  %v19238_v13 = vld [vmem:[%s22422_s27 + $0x2ec8] ss:$136 sps:$4 sm:$0xff]  }
 0x121   : > { %13600 = vmatpush2.bf16.msra.mxu1 %v19157_v14  ;;  %13560 = vmatprep.subr.bf16.mxu0 %v19162_v15  ;;  %v19241_v14 = vld [vmem:[%s22422_s27 + $0x3fc8] ss:$136 sps:$4 sm:$0xff]   ;;  %v19246_v15 = vld [vmem:[%s22422_s27 + $0x2dbc] ss:$136 sps:$4 sm:$0xff]  }
 0x122   : > { %13601 = vmatprep.subr.bf16.mxu1 %v19165_v16  ;;  %v19249_v16 = vld [vmem:[%s22422_s27 + $0x3ebc] ss:$136 sps:$4 sm:$0xff]  }
 0x124   : > { %13561 = vmatpush2.bf16.msra.mxu0 %v19160_v19  ;;  %v19244_v19 = vld [vmem:[%s22422_s27 + $0x2db8] ss:$136 sps:$4 sm:$0xff]  }
 0x125   : > { %13602 = vmatpush2.bf16.msra.mxu1 %v19163_v20  ;;  %13562 = vmatprep.subr.bf16.mxu0 %v19168_v21  ;;  %v19247_v20 = vld [vmem:[%s22422_s27 + $0x3eb8] ss:$136 sps:$4 sm:$0xff]   ;;  %v19252_v21 = vld [vmem:[%s22422_s27 + $0x2cac] ss:$136 sps:$4 sm:$0xff]  }
 0x126   : > { %13603 = vmatprep.subr.bf16.mxu1 %v19171_v22  ;;  %v19255_v22 = vld [vmem:[%s22422_s27 + $0x3dac] ss:$136 sps:$4 sm:$0xff]  }
 0x128   : > { %13563 = vmatpush2.bf16.msra.mxu0 %v19166_v23  ;;  %v19250_v23 = vld [vmem:[%s22422_s27 + $0x2ca8] ss:$136 sps:$4 sm:$0xff]  }
 0x129   : > { %13604 = vmatpush2.bf16.msra.mxu1 %v19169_v24  ;;  %13614 = vmatprep.subr.bf16.mxu0 %v19174_v25  ;;  %v19253_v24 = vld [vmem:[%s22422_s27 + $0x3da8] ss:$136 sps:$4 sm:$0xff]   ;;  %v19258_v25 = vld [vmem:[%s22422_s27 + $0x2b9c] ss:$136 sps:$4 sm:$0xff]  }
 0x12a   : > { %13655 = vmatprep.subr.bf16.mxu1 %v19177_v26  ;;  %v19261_v26 = vld [vmem:[%s22422_s27 + $0x3c9c] ss:$136 sps:$4 sm:$0xff]  }
 0x12b   : > { %13565 = vmatmul.mubr.bf16.vlgmr.msra.gmra.mxu0 %v22511_v7 }
 0x12c   : > { %13606 = vmatmul.mubr.bf16.vlgmr.msra.gmra.mxu1 %v22513_v8  ;;  %13615 = vmatpush1.bf16.msra.mxu0 %v19172_v27  ;;  %v19256_v27 = vld [vmem:[%s22422_s27 + $0x2b98] ss:$136 sps:$4 sm:$0xff]  }
 0x12d   : > { %13656 = vmatpush1.bf16.msra.mxu1 %v19175_v28  ;;  %13616 = vmatprep.subr.bf16.mxu0 %v19180_v29  ;;  %v19259_v28 = vld [vmem:[%s22422_s27 + $0x3c98] ss:$136 sps:$4 sm:$0xff]   ;;  %v19264_v29 = vld [vmem:[%s22422_s27 + $0x2a8c] ss:$136 sps:$4 sm:$0xff]  }
 0x12e   : > { %13657 = vmatprep.subr.bf16.mxu1 %v19183_v30  ;;  %13646 = vmatprep.mubr.bf16.mxu0 %v22551_v37  ;;  %v19267_v30 = vld [vmem:[%s22422_s27 + $0x3b8c] ss:$136 sps:$4 sm:$0xff]  }
 0x12f   : > { %13687 = vmatprep.mubr.bf16.mxu1 %v22555_v38 }
 0x130   : > { %13617 = vmatpush1.bf16.msra.mxu0 %v19178_v31  ;;  %v19262_v31 = vld [vmem:[%s22422_s27 + $0x2a88] ss:$136 sps:$4 sm:$0xff]  }
 0x131   : > { %13658 = vmatpush1.bf16.msra.mxu1 %v19181_v32  ;;  %13618 = vmatprep.subr.bf16.mxu0 %v19186_v33  ;;  %v19265_v32 = vld [vmem:[%s22422_s27 + $0x3b88] ss:$136 sps:$4 sm:$0xff]   ;;  %v19270_v33 = vld [vmem:[%s22422_s27 + $0x784] ss:$136 sps:$4 sm:$0xff]  }
 0x132   : > { %13659 = vmatprep.subr.bf16.mxu1 %v19189_v34  ;;  %v19273_v34 = vld [vmem:[%s22422_s27 + $0x1884] ss:$136 sps:$4 sm:$0xff]  }
 0x134   : > { %13619 = vmatpush1.bf16.msra.mxu0 %v19184_v35  ;;  %v19268_v35 = vld [vmem:[%s22422_s27 + $0x780] ss:$136 sps:$4 sm:$0xff]  }
 0x135   : > { %13660 = vmatpush1.bf16.msra.mxu1 %v19187_v36  ;;  %13620 = vmatprep.subr.bf16.mxu0 %v19192_v39  ;;  %v19271_v36 = vld [vmem:[%s22422_s27 + $0x1880] ss:$136 sps:$4 sm:$0xff]   ;;  %v19276_v39 = vld [vmem:[%s22422_s27 + $0x674] ss:$136 sps:$4 sm:$0xff]  }
 0x136   : > { %13661 = vmatprep.subr.bf16.mxu1 %v19195_v40  ;;  %v19279_v40 = vld [vmem:[%s22422_s27 + $0x1774] ss:$136 sps:$4 sm:$0xff]  }
 0x138   : > { %13621 = vmatpush1.bf16.msra.mxu0 %v19190_v41 }
 0x139   : > { %13662 = vmatpush1.bf16.msra.mxu1 %v19193_v42  ;;  %13622 = vmatprep.subr.bf16.mxu0 %v19198_v43  ;;  %v19274_v43 = vld [vmem:[%s22422_s27 + $0x670] ss:$136 sps:$4 sm:$0xff]  }
 0x13a   : > { %13663 = vmatprep.subr.bf16.mxu1 %v19201_v44  ;;  %v19277_v44 = vld [vmem:[%s22422_s27 + $0x1770] ss:$136 sps:$4 sm:$0xff]  }
 0x13c   : > { %13623 = vmatpush1.bf16.msra.mxu0 %v19196_v45  ;;  %v19282_v45 = vld [vmem:[%s22422_s27 + $0x564] ss:$136 sps:$4 sm:$0xff]  }
 0x13d   : > { %13664 = vmatpush1.bf16.msra.mxu1 %v19199_v46  ;;  %13624 = vmatprep.subr.bf16.mxu0 %v19204_v47 }
 0x13e   : > { %13665 = vmatprep.subr.bf16.mxu1 %v19207_v49  ;;  %v19285_v49 = vld [vmem:[%s22422_s27 + $0x1664] ss:$136 sps:$4 sm:$0xff]  }
 0x140   : > { %13625 = vmatpush1.bf16.msra.mxu0 %v19202_v50  ;;  %v19280_v50 = vld [vmem:[%s22422_s27 + $0x560] ss:$136 sps:$4 sm:$0xff]  }
 0x141   : > { %13666 = vmatpush1.bf16.msra.mxu1 %v19205_v51  ;;  %13626 = vmatprep.subr.bf16.mxu0 %v19210_v53 }
 0x142   : > { %13667 = vmatprep.subr.bf16.mxu1 %v19213_v54  ;;  %v19283_v54 = vld [vmem:[%s22422_s27 + $0x1660] ss:$136 sps:$4 sm:$0xff]  }
 0x144   : > { %13627 = vmatpush1.bf16.msra.mxu0 %v19208_v55 }
 0x145   : > { %13668 = vmatpush1.bf16.msra.mxu1 %v19211_v56  ;;  %13628 = vmatprep.subr.bf16.mxu0 %v19216_v57  ;;  %v19288_v57 = vld [vmem:[%s22422_s27 + $0x454] ss:$136 sps:$4 sm:$0xff]  }
 0x146   : > { %13669 = vmatprep.subr.bf16.mxu1 %v19219_v58  ;;  %v19291_v58 = vld [vmem:[%s22422_s27 + $0x1554] ss:$136 sps:$4 sm:$0xff]  }
 0x148   : > { %13629 = vmatpush1.bf16.msra.mxu0 %v19214_v59  ;;  %v19286_v59 = vld [vmem:[%s22422_s27 + $0x450] ss:$136 sps:$4 sm:$0xff]  }
 0x149   : > { %13670 = vmatpush1.bf16.msra.mxu1 %v19217_v60  ;;  %13630 = vmatprep.subr.bf16.mxu0 %v19222_v61  ;;  %v19289_v60 = vld [vmem:[%s22422_s27 + $0x1550] ss:$136 sps:$4 sm:$0xff]   ;;  %v19294_v61 = vld [vmem:[%s22422_s27 + $0x344] ss:$136 sps:$4 sm:$0xff]  }
 0x14a   : > { %13671 = vmatprep.subr.bf16.mxu1 %v19225_v62  ;;  %v19297_v62 = vld [vmem:[%s22422_s27 + $0x1444] ss:$136 sps:$4 sm:$0xff]  }
 0x14c   : > { %13631 = vmatpush2.bf16.msra.mxu0 %v19220_v63  ;;  %v19292_v63 = vld [vmem:[%s22422_s27 + $0x340] ss:$136 sps:$4 sm:$0xff]  }
 0x14d   : > { %13672 = vmatpush2.bf16.msra.mxu1 %v19223_v0  ;;  %13632 = vmatprep.subr.bf16.mxu0 %v19228_v1  ;;  %v19295_v0 = vld [vmem:[%s22422_s27 + $0x1440] ss:$136 sps:$4 sm:$0xff]   ;;  %v19300_v1 = vld [vmem:[%s22422_s27 + $0x234] ss:$136 sps:$4 sm:$0xff]  }
 0x14e   : > { %13673 = vmatprep.subr.bf16.mxu1 %v19231_v2  ;;  %v19303_v2 = vld [vmem:[%s22422_s27 + $0x1334] ss:$136 sps:$4 sm:$0xff]  }
 0x150   : > { %13633 = vmatpush2.bf16.msra.mxu0 %v19226_v3  ;;  %v19298_v3 = vld [vmem:[%s22422_s27 + $0x230] ss:$136 sps:$4 sm:$0xff]  }
 0x151   : > { %13674 = vmatpush2.bf16.msra.mxu1 %v19229_v4  ;;  %13634 = vmatprep.subr.bf16.mxu0 %v19234_v5  ;;  %v19301_v4 = vld [vmem:[%s22422_s27 + $0x1330] ss:$136 sps:$4 sm:$0xff]   ;;  %v19306_v5 = vld [vmem:[%s22422_s27 + $0x124] ss:$136 sps:$4 sm:$0xff]  }
 0x152   : > { %13675 = vmatprep.subr.bf16.mxu1 %v19237_v6  ;;  %v19309_v6 = vld [vmem:[%s22422_s27 + $0x1224] ss:$136 sps:$4 sm:$0xff]  }
 0x154   : > { %13635 = vmatpush2.bf16.msra.mxu0 %v19232_v9  ;;  %v19304_v9 = vld [vmem:[%s22422_s27 + $0x120] ss:$136 sps:$4 sm:$0xff]  }
 0x155   : > { %13676 = vmatpush2.bf16.msra.mxu1 %v19235_v10  ;;  %13636 = vmatprep.subr.bf16.mxu0 %v19240_v11  ;;  %v19307_v10 = vld [vmem:[%s22422_s27 + $0x1220] ss:$136 sps:$4 sm:$0xff]   ;;  %v19312_v11 = vld [vmem:[%s22422_s27 + $0x14] ss:$136 sps:$4 sm:$0xff]  }
 0x156   : > { %13677 = vmatprep.subr.bf16.mxu1 %v19243_v12  ;;  %v19315_v12 = vld [vmem:[%s22422_s27 + $0x1114] ss:$136 sps:$4 sm:$0xff]  }
 0x158   : > { %13637 = vmatpush2.bf16.msra.mxu0 %v19238_v13  ;;  %v19310_v13 = vld [vmem:[%s22422_s27 + $0x10] ss:$136 sps:$4 sm:$0xff]  }
 0x159   : > { %13678 = vmatpush2.bf16.msra.mxu1 %v19241_v14  ;;  %13638 = vmatprep.subr.bf16.mxu0 %v19246_v15  ;;  %v19313_v14 = vld [vmem:[%s22422_s27 + $0x1110] ss:$136 sps:$4 sm:$0xff]   ;;  %v19318_v15 = vld [vmem:[%s22422_s27 + $0x1004] ss:$136 sps:$4 sm:$0xff]  }
 0x15a   : > { %13679 = vmatprep.subr.bf16.mxu1 %v19249_v16  ;;  %v19321_v16 = vld [vmem:[%s22422_s27 + $0x2104] ss:$136 sps:$4 sm:$0xff]  }
 0x15c   : > { %13639 = vmatpush2.bf16.msra.mxu0 %v19244_v19  ;;  %v19316_v19 = vld [vmem:[%s22422_s27 + $0x1000] ss:$136 sps:$4 sm:$0xff]  }
 0x15d   : > { %13680 = vmatpush2.bf16.msra.mxu1 %v19247_v20  ;;  %13640 = vmatprep.subr.bf16.mxu0 %v19252_v21  ;;  %v19319_v20 = vld [vmem:[%s22422_s27 + $0x2100] ss:$136 sps:$4 sm:$0xff]   ;;  %v19324_v21 = vld [vmem:[%s22422_s27 + $0xef4] ss:$136 sps:$4 sm:$0xff]  }
 0x15e   : > { %13681 = vmatprep.subr.bf16.mxu1 %v19255_v22  ;;  %v19327_v22 = vld [vmem:[%s22422_s27 + $0x1ff4] ss:$136 sps:$4 sm:$0xff]  }
 0x160   : > { %13641 = vmatpush2.bf16.msra.mxu0 %v19250_v23  ;;  %v19322_v23 = vld [vmem:[%s22422_s27 + $0xef0] ss:$136 sps:$4 sm:$0xff]  }
 0x161   : > { %13682 = vmatpush2.bf16.msra.mxu1 %v19253_v24  ;;  %13642 = vmatprep.subr.bf16.mxu0 %v19258_v25  ;;  %v19325_v24 = vld [vmem:[%s22422_s27 + $0x1ff0] ss:$136 sps:$4 sm:$0xff]   ;;  %v19330_v25 = vld [vmem:[%s22422_s27 + $0xde4] ss:$136 sps:$4 sm:$0xff]  }
 0x162   : > { %13683 = vmatprep.subr.bf16.mxu1 %v19261_v26  ;;  %v19333_v26 = vld [vmem:[%s22422_s27 + $0x1ee4] ss:$136 sps:$4 sm:$0xff]  }
 0x164   : > { %13643 = vmatpush2.bf16.msra.mxu0 %v19256_v27  ;;  %v19328_v27 = vld [vmem:[%s22422_s27 + $0xde0] ss:$136 sps:$4 sm:$0xff]  }
 0x165   : > { %13684 = vmatpush2.bf16.msra.mxu1 %v19259_v28  ;;  %13644 = vmatprep.subr.bf16.mxu0 %v19264_v29  ;;  %v19331_v28 = vld [vmem:[%s22422_s27 + $0x1ee0] ss:$136 sps:$4 sm:$0xff]   ;;  %v19336_v29 = vld [vmem:[%s22422_s27 + $0xcd4] ss:$136 sps:$4 sm:$0xff]  }
 0x166   : > { %13685 = vmatprep.subr.bf16.mxu1 %v19267_v30  ;;  %v19339_v30 = vld [vmem:[%s22422_s27 + $0x1dd4] ss:$136 sps:$4 sm:$0xff]  }
 0x168   : > { %13645 = vmatpush2.bf16.msra.mxu0 %v19262_v31  ;;  %v19334_v31 = vld [vmem:[%s22422_s27 + $0xcd0] ss:$136 sps:$4 sm:$0xff]  }
 0x169   : > { %13686 = vmatpush2.bf16.msra.mxu1 %v19265_v32  ;;  %13696 = vmatprep.subr.bf16.mxu0 %v19270_v33  ;;  %v19337_v32 = vld [vmem:[%s22422_s27 + $0x1dd0] ss:$136 sps:$4 sm:$0xff]   ;;  %v19342_v33 = vld [vmem:[%s22422_s27 + $0xbc4] ss:$136 sps:$4 sm:$0xff]  }
 0x16a   : > { %13737 = vmatprep.subr.bf16.mxu1 %v19273_v34  ;;  %v19345_v34 = vld [vmem:[%s22422_s27 + $0x1cc4] ss:$136 sps:$4 sm:$0xff]  }
 0x16b   : > { %v22745_v41 = vpop.f32.mrf.mxu0  ;;  %13647 = vmatmul.mubr.bf16.vlgmr.msra.gmra.mxu0 %v22599_v17 }
 0x16c   : > { %v22747_v42 = vpop.f32.mrf.mxu1  ;;  %13688 = vmatmul.mubr.bf16.vlgmr.msra.gmra.mxu1 %v22603_v18  ;;  %13697 = vmatpush1.bf16.msra.mxu0 %v19268_v35  ;;  %v19340_v35 = vld [vmem:[%s22422_s27 + $0xbc0] ss:$136 sps:$4 sm:$0xff]  }
 0x16d   : > { %13738 = vmatpush1.bf16.msra.mxu1 %v19271_v36  ;;  %v22754_v46 = vpop.f32.mrf.mxu0  ;;  %13698 = vmatprep.subr.bf16.mxu0 %v19276_v39  ;;  %v19343_v36 = vld [vmem:[%s22422_s27 + $0x1cc0] ss:$136 sps:$4 sm:$0xff]   ;;  %v19348_v39 = vld [vmem:[%s22422_s27 + $0xab4] ss:$136 sps:$4 sm:$0xff]  }
 0x16e   : > { %v22756_v47 = vpop.f32.mrf.mxu1  ;;  %13739 = vmatprep.subr.bf16.mxu1 %v19279_v40  ;;  %13728 = vmatprep.mubr.bf16.mxu0 %v22484_v48  ;;  %v19351_v40 = vld [vmem:[%s22422_s27 + $0x1bb4] ss:$136 sps:$4 sm:$0xff]  }
 0x16f   : > { %13769 = vmatprep.mubr.bf16.mxu1 %v22489_v52  ;;  %v13406_v51 = vpop.f32.mrf.mxu0 }
 0x170   : > { %v13447_v53 = vpop.f32.mrf.mxu1  ;;  %13699 = vmatpush1.bf16.msra.mxu0 %v19274_v43  ;;  %v19346_v43 = vld [vmem:[%s22422_s27 + $0xab0] ss:$136 sps:$4 sm:$0xff]   ;;  %v19355_v51 = vld [vmem:[%s22422_s27 + $0x1aa0] ss:$136 sps:$4 sm:$0xff]  }
 0x171   : > { %13740 = vmatpush1.bf16.msra.mxu1 %v19277_v44  ;;  %v13407_v55 = vpop.f32.mrf.mxu0  ;;  %13700 = vmatprep.subr.bf16.mxu0 %v19282_v45  ;;  %v19349_v44 = vld [vmem:[%s22422_s27 + $0x1bb0] ss:$136 sps:$4 sm:$0xff]   ;;  %v19354_v45 = vld [vmem:[%s22422_s27 + $0x9a4] ss:$136 sps:$4 sm:$0xff]   ;;  %v19360_v53 = vld [vmem:[%s22422_s27 + $0x894] ss:$136 sps:$4 sm:$0xff]  }
 0x172   : > { %v13448_v56 = vpop.f32.mrf.mxu1  ;;  %13741 = vmatprep.subr.bf16.mxu1 %v19285_v49  ;;  %v19357_v49 = vld [vmem:[%s22422_s27 + $0x1aa4] ss:$136 sps:$4 sm:$0xff]   ;;  %v19358_v55 = vld [vmem:[%s22422_s27 + $0x890] ss:$136 sps:$4 sm:$0xff]  }
 0x173   : > { %v19361_v56 = vld [vmem:[%s22422_s27 + $0x1990] ss:$136 sps:$4 sm:$0xff]  }
 0x174   : > { %13701 = vmatpush1.bf16.msra.mxu0 %v19280_v50  ;;  %v19352_v50 = vld [vmem:[%s22422_s27 + $0x9a0] ss:$136 sps:$4 sm:$0xff]  }
 0x175   : > { %13742 = vmatpush1.bf16.msra.mxu1 %v19283_v54  ;;  %13702 = vmatprep.subr.bf16.mxu0 %v19288_v57  ;;  %v19363_v54 = vld [vmem:[%s22422_s27 + $0x1994] ss:$136 sps:$4 sm:$0xff]   ;;  %v19366_v57 = vld [vmem:[%s22422_s27 + $0x2984] ss:$136 sps:$4 sm:$0xff]  }
 0x176   : > { %13743 = vmatprep.subr.bf16.mxu1 %v19291_v58  ;;  %v19369_v58 = vld [vmem:[%s22422_s27 + $0x3a84] ss:$136 sps:$4 sm:$0xff]  }
 0x178   : > { %13703 = vmatpush1.bf16.msra.mxu0 %v19286_v59  ;;  %v19364_v59 = vld [vmem:[%s22422_s27 + $0x2980] ss:$136 sps:$4 sm:$0xff]  }
 0x179   : > { %13744 = vmatpush1.bf16.msra.mxu1 %v19289_v60  ;;  %13704 = vmatprep.subr.bf16.mxu0 %v19294_v61  ;;  %v19367_v60 = vld [vmem:[%s22422_s27 + $0x3a80] ss:$136 sps:$4 sm:$0xff]   ;;  %v19372_v61 = vld [vmem:[%s22422_s27 + $0x2874] ss:$136 sps:$4 sm:$0xff]  }
 0x17a   : > { %13745 = vmatprep.subr.bf16.mxu1 %v19297_v62  ;;  %v19375_v62 = vld [vmem:[%s22422_s27 + $0x3974] ss:$136 sps:$4 sm:$0xff]  }
 0x17c   : > { %13705 = vmatpush1.bf16.msra.mxu0 %v19292_v63  ;;  %v13444_v63 = vadd.f32 %v22747_v42, %v22745_v41  ;;  %v251_v42 = vld [vmem:[#allocation2 + $0xd0] sm:$0xff] }
 0x17d   : > { %13746 = vmatpush1.bf16.msra.mxu1 %v19295_v0  ;;  %13706 = vmatprep.subr.bf16.mxu0 %v19300_v1  ;;  %v19370_v0 = vld [vmem:[%s22422_s27 + $0x2870] ss:$136 sps:$4 sm:$0xff]  }
 0x17e   : > { %13747 = vmatprep.subr.bf16.mxu1 %v19303_v2  ;;  %v250_v2 = vld [vmem:[#allocation2 + $0xb0] sm:$0xff] }
 0x180   : > { %13707 = vmatpush1.bf16.msra.mxu0 %v19298_v3 }
 0x181   : > { %13748 = vmatpush1.bf16.msra.mxu1 %v19301_v4  ;;  %13708 = vmatprep.subr.bf16.mxu0 %v19306_v5  ;;  %v13446_v4 = vadd.f32 %v22756_v47, %v22754_v46 }
 0x182   : > { %13749 = vmatprep.subr.bf16.mxu1 %v19309_v6  ;;  %v19373_v6 = vld [vmem:[%s22422_s27 + $0x3970] ss:$136 sps:$4 sm:$0xff]  }
 0x184   : > { %13709 = vmatpush1.bf16.msra.mxu0 %v19304_v9 }
 0x185   : > { %13750 = vmatpush1.bf16.msra.mxu1 %v19307_v10  ;;  %13710 = vmatprep.subr.bf16.mxu0 %v19312_v11  ;;  %v19378_v10 = vld [vmem:[%s22422_s27 + $0x2764] ss:$136 sps:$4 sm:$0xff]  }
 0x186   : > { %13751 = vmatprep.subr.bf16.mxu1 %v19315_v12  ;;  %v19381_v11 = vld [vmem:[%s22422_s27 + $0x3864] ss:$136 sps:$4 sm:$0xff]  }
 0x188   : > { %13711 = vmatpush1.bf16.msra.mxu0 %v19310_v13 }
 0x189   : > { %13752 = vmatpush1.bf16.msra.mxu1 %v19313_v14  ;;  %13712 = vmatprep.subr.bf16.mxu0 %v19318_v15  ;;  %v19376_v14 = vld [vmem:[%s22422_s27 + $0x2760] ss:$136 sps:$4 sm:$0xff]  }
 0x18a   : > { %13753 = vmatprep.subr.bf16.mxu1 %v19321_v16  ;;  %v19379_v15 = vld [vmem:[%s22422_s27 + $0x3860] ss:$136 sps:$4 sm:$0xff]  }
 0x18c   : > { %13713 = vmatpush2.bf16.msra.mxu0 %v19316_v19 }
 0x18d   : > { %13754 = vmatpush2.bf16.msra.mxu1 %v19319_v20  ;;  %13714 = vmatprep.subr.bf16.mxu0 %v19324_v21 }
 0x18e   : > { %13755 = vmatprep.subr.bf16.mxu1 %v19327_v22  ;;  %v19384_v22 = vld [vmem:[%s22422_s27 + $0x2654] ss:$136 sps:$4 sm:$0xff]  }
 0x190   : > { %13715 = vmatpush2.bf16.msra.mxu0 %v19322_v23  ;;  %v19387_v23 = vld [vmem:[%s22422_s27 + $0x3754] ss:$136 sps:$4 sm:$0xff]  }
 0x191   : > { %13756 = vmatpush2.bf16.msra.mxu1 %v19325_v24  ;;  %13716 = vmatprep.subr.bf16.mxu0 %v19330_v25  ;;  %v19382_v25 = vld [vmem:[%s22422_s27 + $0x2650] ss:$136 sps:$4 sm:$0xff]  }
 0x192   : > { %13757 = vmatprep.subr.bf16.mxu1 %v19333_v26  ;;  %v19385_v26 = vld [vmem:[%s22422_s27 + $0x3750] ss:$136 sps:$4 sm:$0xff]  }
 0x194   : > { %13717 = vmatpush2.bf16.msra.mxu0 %v19328_v27  ;;  %v19390_v27 = vld [vmem:[%s22422_s27 + $0x2544] ss:$136 sps:$4 sm:$0xff]  }
 0x195   : > { %13758 = vmatpush2.bf16.msra.mxu1 %v19331_v28  ;;  %13718 = vmatprep.subr.bf16.mxu0 %v19336_v29  ;;  %v19393_v28 = vld [vmem:[%s22422_s27 + $0x3644] ss:$136 sps:$4 sm:$0xff]   ;;  %v19388_v29 = vld [vmem:[%s22422_s27 + $0x2540] ss:$136 sps:$4 sm:$0xff]  }
 0x196   : > { %13759 = vmatprep.subr.bf16.mxu1 %v19339_v30  ;;  %v19391_v30 = vld [vmem:[%s22422_s27 + $0x3640] ss:$136 sps:$4 sm:$0xff]  }
 0x198   : > { %13719 = vmatpush2.bf16.msra.mxu0 %v19334_v31  ;;  %v19396_v31 = vld [vmem:[%s22422_s27 + $0x2434] ss:$136 sps:$4 sm:$0xff]  }
 0x199   : > { %13760 = vmatpush2.bf16.msra.mxu1 %v19337_v32  ;;  %13720 = vmatprep.subr.bf16.mxu0 %v19342_v33  ;;  %v19399_v32 = vld [vmem:[%s22422_s27 + $0x3534] ss:$136 sps:$4 sm:$0xff]   ;;  %v19394_v33 = vld [vmem:[%s22422_s27 + $0x2430] ss:$136 sps:$4 sm:$0xff]  }
 0x19a   : > { %13761 = vmatprep.subr.bf16.mxu1 %v19345_v34  ;;  %v19397_v34 = vld [vmem:[%s22422_s27 + $0x3530] ss:$136 sps:$4 sm:$0xff]  }
 0x19c   : > { %13721 = vmatpush2.bf16.msra.mxu0 %v19340_v35  ;;  %v19402_v35 = vld [vmem:[%s22422_s27 + $0x2324] ss:$136 sps:$4 sm:$0xff]  }
 0x19d   : > { %13762 = vmatpush2.bf16.msra.mxu1 %v19343_v36  ;;  %13722 = vmatprep.subr.bf16.mxu0 %v19348_v39  ;;  %v19405_v36 = vld [vmem:[%s22422_s27 + $0x3424] ss:$136 sps:$4 sm:$0xff]   ;;  %v19400_v39 = vld [vmem:[%s22422_s27 + $0x2320] ss:$136 sps:$4 sm:$0xff]  }
 0x19e   : > { %13763 = vmatprep.subr.bf16.mxu1 %v19351_v40  ;;  %v19403_v40 = vld [vmem:[%s22422_s27 + $0x3420] ss:$136 sps:$4 sm:$0xff]  }
 0x1a0   : > { %13723 = vmatpush2.bf16.msra.mxu0 %v19346_v43  ;;  %v19408_v43 = vld [vmem:[%s22422_s27 + $0x2214] ss:$136 sps:$4 sm:$0xff]  }
 0x1a1   : > { %13764 = vmatpush2.bf16.msra.mxu1 %v19349_v44  ;;  %13724 = vmatprep.subr.bf16.mxu0 %v19354_v45  ;;  %v19411_v44 = vld [vmem:[%s22422_s27 + $0x3314] ss:$136 sps:$4 sm:$0xff]   ;;  %v19406_v45 = vld [vmem:[%s22422_s27 + $0x2210] ss:$136 sps:$4 sm:$0xff]  }
 0x1a2   : > { %13765 = vmatprep.subr.bf16.mxu1 %v19357_v49  ;;  %v19409_v49 = vld [vmem:[%s22422_s27 + $0x3310] ss:$136 sps:$4 sm:$0xff]  }
 0x1a4   : > { %13725 = vmatpush2.bf16.msra.mxu0 %v19352_v50  ;;  %v19414_v50 = vld [vmem:[%s22422_s27 + $0x3204] ss:$136 sps:$4 sm:$0xff]  }
 0x1a5   : > { %13766 = vmatpush2.bf16.msra.mxu1 %v19355_v51  ;;  %13726 = vmatprep.subr.bf16.mxu0 %v19360_v53  ;;  %v19417_v51 = vld [vmem:[%s22422_s27 + $0x4304] ss:$136 sps:$4 sm:$0xff]   ;;  %v19412_v53 = vld [vmem:[%s22422_s27 + $0x3200] ss:$136 sps:$4 sm:$0xff]  }
 0x1a6   : > { %13767 = vmatprep.subr.bf16.mxu1 %v19363_v54  ;;  %v19415_v54 = vld [vmem:[%s22422_s27 + $0x4300] ss:$136 sps:$4 sm:$0xff]  }
 0x1a8   : > { %13727 = vmatpush2.bf16.msra.mxu0 %v19358_v55  ;;  %v19420_v55 = vld [vmem:[%s22422_s27 + $0x30f4] ss:$136 sps:$4 sm:$0xff]  }
 0x1a9   : > { %13768 = vmatpush2.bf16.msra.mxu1 %v19361_v56  ;;  %13778 = vmatprep.subr.bf16.mxu0 %v19366_v57  ;;  %v19423_v56 = vld [vmem:[%s22422_s27 + $0x41f4] ss:$136 sps:$4 sm:$0xff]   ;;  %v19418_v57 = vld [vmem:[%s22422_s27 + $0x30f0] ss:$136 sps:$4 sm:$0xff]  }
 0x1aa   : > { %13819 = vmatprep.subr.bf16.mxu1 %v19369_v58  ;;  %v19421_v58 = vld [vmem:[%s22422_s27 + $0x41f0] ss:$136 sps:$4 sm:$0xff]  }
 0x1ab   : > { %v13484_v1 = vpop.f32.mrf.mxu0  ;;  %13729 = vmatmul.mubr.bf16.vlgmr.msra.gmra.mxu0 %v22511_v7 }
 0x1ac   : > { %v13525_v3 = vpop.f32.mrf.mxu1  ;;  %13770 = vmatmul.mubr.bf16.vlgmr.msra.gmra.mxu1 %v22513_v8  ;;  %v13485_v5 = vadd.f32 %v13484_v1, %v13444_v63  ;;  %13779 = vmatpush1.bf16.msra.mxu0 %v19364_v59  ;;  %v19426_v59 = vld [vmem:[%s22422_s27 + $0x2fe4] ss:$136 sps:$4 sm:$0xff]   ;;  %v19432_v63 = vld [vmem:[%s22422_s27 + $0x2ed4] ss:$136 sps:$4 sm:$0xff]   ;;  %v19430_v1 = vld [vmem:[%s22422_s27 + $0x2ed0] ss:$136 sps:$4 sm:$0xff]  }
 0x1ad   : > { %13820 = vmatpush1.bf16.msra.mxu1 %v19367_v60  ;;  %v13486_v41 = vpop.f32.mrf.mxu0  ;;  %13780 = vmatprep.subr.bf16.mxu0 %v19372_v61  ;;  %v19429_v60 = vld [vmem:[%s22422_s27 + $0x40e4] ss:$136 sps:$4 sm:$0xff]   ;;  %v19424_v61 = vld [vmem:[%s22422_s27 + $0x2fe0] ss:$136 sps:$4 sm:$0xff]  }
 0x1ae   : > { %v13527_v9 = vpop.f32.mrf.mxu1  ;;  %13821 = vmatprep.subr.bf16.mxu1 %v19375_v62  ;;  %v13526_v12 = vadd.f32 %v13525_v3, %v13485_v5  ;;  %v13487_v13 = vadd.f32 %v13486_v41, %v13446_v4  ;;  %13810 = vmatprep.mubr.bf16.mxu0 %v22551_v37  ;;  %v19427_v62 = vld [vmem:[%s22422_s27 + $0x40e0] ss:$136 sps:$4 sm:$0xff]   ;;  %v19438_v3 = vld [vmem:[%s22422_s27 + $0x2dc4] ss:$136 sps:$4 sm:$0xff]   ;;  %v19444_v41 = vld [vmem:[%s22422_s27 + $0x2cb4] ss:$136 sps:$4 sm:$0xff]  }
 0x1af   : > { %13851 = vmatprep.mubr.bf16.mxu1 %v22555_v38  ;;  %v13488_v46 = vpop.f32.mrf.mxu0  ;;  %v19441_v4 = vld [vmem:[%s22422_s27 + $0x3ec4] ss:$136 sps:$4 sm:$0xff]   ;;  %v19436_v5 = vld [vmem:[%s22422_s27 + $0x2dc0] ss:$136 sps:$4 sm:$0xff]  }
 0x1b0   : > { %v13529_v47 = vpop.f32.mrf.mxu1  ;;  %v16156_v16 = vadd.f32 %v13526_v12, %v250_v2  ;;  %v13528_v19 = vadd.f32 %v13527_v9, %v13487_v13  ;;  %13781 = vmatpush1.bf16.msra.mxu0 %v19370_v0  ;;  %v19435_v0 = vld [vmem:[%s22422_s27 + $0x3fd4] ss:$136 sps:$4 sm:$0xff]   ;;  %v19433_v2 = vld [vmem:[%s22422_s27 + $0x3fd0] ss:$136 sps:$4 sm:$0xff]   ;;  %v19453_v12 = vld [vmem:[%s22422_s27 + $0x3ca4] ss:$136 sps:$4 sm:$0xff]  }
 0x1b1   : > { %13822 = vmatpush1.bf16.msra.mxu1 %v19373_v6  ;;  %v13489_v20 = vpop.f32.mrf.mxu0  ;;  %13782 = vmatprep.subr.bf16.mxu0 %v19378_v10  ;;  %v19439_v6 = vld [vmem:[%s22422_s27 + $0x3ec0] ss:$136 sps:$4 sm:$0xff]   ;;  %v19442_v9 = vld [vmem:[%s22422_s27 + $0x2cb0] ss:$136 sps:$4 sm:$0xff]   ;;  %v19459_v46 = vld [vmem:[%s22422_s27 + $0x3b94] ss:$136 sps:$4 sm:$0xff]  }
 0x1b2   : > { %v13530_v21 = vpop.f32.mrf.mxu1  ;;  %13823 = vmatprep.subr.bf16.mxu1 %v19381_v11  ;;  %16190 = vst [vmem:[#allocation2 + $0xb0] sm:$0xff] %v16156_v16  ;;  %v16157_v24 = vadd.f32 %v13528_v19, %v251_v42  ;;  %v19447_v42 = vld [vmem:[%s22422_s27 + $0x3db4] ss:$136 sps:$4 sm:$0xff]   ;;  %v19445_v10 = vld [vmem:[%s22422_s27 + $0x3db0] ss:$136 sps:$4 sm:$0xff]  }
 0x1b3   : > { %v19450_v11 = vld [vmem:[%s22422_s27 + $0x2ba4] ss:$136 sps:$4 sm:$0xff]   ;;  %v19448_v13 = vld [vmem:[%s22422_s27 + $0x2ba0] ss:$136 sps:$4 sm:$0xff]   ;;  %v19454_v47 = vld [vmem:[%s22422_s27 + $0x2a90] ss:$136 sps:$4 sm:$0xff]  }
 0x1b4   : > { %16191 = vst [vmem:[#allocation2 + $0xd0] sm:$0xff] %v16157_v24  ;;  %13783 = vmatpush1.bf16.msra.mxu0 %v19376_v14  ;;  %v19451_v14 = vld [vmem:[%s22422_s27 + $0x3ca0] ss:$136 sps:$4 sm:$0xff]   ;;  %v19457_v16 = vld [vmem:[%s22422_s27 + $0x3b90] ss:$136 sps:$4 sm:$0xff]  }
 0x1b5   : > { %13824 = vmatpush1.bf16.msra.mxu1 %v19379_v15  ;;  %13784 = vmatprep.subr.bf16.mxu0 %v19384_v22  ;;  %v19456_v15 = vld [vmem:[%s22422_s27 + $0x2a94] ss:$136 sps:$4 sm:$0xff]   ;;  %v19460_v21 = vld [vmem:[%s22422_s27 + $0x788] ss:$136 sps:$4 sm:$0xff]  }
 0x1b6   : > { %13825 = vmatprep.subr.bf16.mxu1 %v19387_v23  ;;  %v19462_v19 = vld [vmem:[%s22422_s27 + $0x78c] ss:$136 sps:$4 sm:$0xff]   ;;  %v19463_v22 = vld [vmem:[%s22422_s27 + $0x1888] ss:$136 sps:$4 sm:$0xff]   ;;  %v19468_v23 = vld [vmem:[%s22422_s27 + $0x67c] ss:$136 sps:$4 sm:$0xff]  }
 0x1b7   : > { %v19465_v20 = vld [vmem:[%s22422_s27 + $0x188c] ss:$136 sps:$4 sm:$0xff]   ;;  %v19471_v24 = vld [vmem:[%s22422_s27 + $0x177c] ss:$136 sps:$4 sm:$0xff]  }
 0x1b8   : > { %13785 = vmatpush1.bf16.msra.mxu0 %v19382_v25  ;;  %v19466_v25 = vld [vmem:[%s22422_s27 + $0x678] ss:$136 sps:$4 sm:$0xff]  }
 0x1b9   : > { %13826 = vmatpush1.bf16.msra.mxu1 %v19385_v26  ;;  %13786 = vmatprep.subr.bf16.mxu0 %v19390_v27  ;;  %v19469_v26 = vld [vmem:[%s22422_s27 + $0x1778] ss:$136 sps:$4 sm:$0xff]  }
 0x1ba   : > { %13827 = vmatprep.subr.bf16.mxu1 %v19393_v28 }
 0x1bc   : > { %13787 = vmatpush1.bf16.msra.mxu0 %v19388_v29 }
 0x1bd   : > { %13828 = vmatpush1.bf16.msra.mxu1 %v19391_v30  ;;  %13788 = vmatprep.subr.bf16.mxu0 %v19396_v31  ;;  %v19474_v31 = vld [vmem:[%s22422_s27 + $0x56c] ss:$136 sps:$4 sm:$0xff]  }
 0x1be   : > { %13829 = vmatprep.subr.bf16.mxu1 %v19399_v32  ;;  %v19477_v32 = vld [vmem:[%s22422_s27 + $0x166c] ss:$136 sps:$4 sm:$0xff]  }
 0x1c0   : > { %13789 = vmatpush1.bf16.msra.mxu0 %v19394_v33  ;;  %v19472_v33 = vld [vmem:[%s22422_s27 + $0x568] ss:$136 sps:$4 sm:$0xff]  }
 0x1c1   : > { %13830 = vmatpush1.bf16.msra.mxu1 %v19397_v34  ;;  %13790 = vmatprep.subr.bf16.mxu0 %v19402_v35  ;;  %v19475_v34 = vld [vmem:[%s22422_s27 + $0x1668] ss:$136 sps:$4 sm:$0xff]  }
 0x1c2   : > { %13831 = vmatprep.subr.bf16.mxu1 %v19405_v36 }
 0x1c4   : > { %13791 = vmatpush1.bf16.msra.mxu0 %v19400_v39 }
 0x1c5   : > { %13832 = vmatpush1.bf16.msra.mxu1 %v19403_v40  ;;  %13792 = vmatprep.subr.bf16.mxu0 %v19408_v43  ;;  %v19480_v43 = vld [vmem:[%s22422_s27 + $0x45c] ss:$136 sps:$4 sm:$0xff]  }
 0x1c6   : > { %13833 = vmatprep.subr.bf16.mxu1 %v19411_v44  ;;  %v19483_v44 = vld [vmem:[%s22422_s27 + $0x155c] ss:$136 sps:$4 sm:$0xff]  }
 0x1c8   : > { %13793 = vmatpush1.bf16.msra.mxu0 %v19406_v45  ;;  %v19478_v45 = vld [vmem:[%s22422_s27 + $0x458] ss:$136 sps:$4 sm:$0xff]  }
 0x1c9   : > { %13834 = vmatpush1.bf16.msra.mxu1 %v19409_v49  ;;  %13794 = vmatprep.subr.bf16.mxu0 %v19414_v50  ;;  %v19481_v49 = vld [vmem:[%s22422_s27 + $0x1558] ss:$136 sps:$4 sm:$0xff]   ;;  %v19486_v50 = vld [vmem:[%s22422_s27 + $0x34c] ss:$136 sps:$4 sm:$0xff]  }
 0x1ca   : > { %13835 = vmatprep.subr.bf16.mxu1 %v19417_v51  ;;  %v19489_v51 = vld [vmem:[%s22422_s27 + $0x144c] ss:$136 sps:$4 sm:$0xff]  }
 0x1cc   : > { %13795 = vmatpush2.bf16.msra.mxu0 %v19412_v53  ;;  %v19484_v53 = vld [vmem:[%s22422_s27 + $0x348] ss:$136 sps:$4 sm:$0xff]  }
 0x1cd   : > { %13836 = vmatpush2.bf16.msra.mxu1 %v19415_v54  ;;  %13796 = vmatprep.subr.bf16.mxu0 %v19420_v55  ;;  %v19487_v54 = vld [vmem:[%s22422_s27 + $0x1448] ss:$136 sps:$4 sm:$0xff]   ;;  %v19492_v55 = vld [vmem:[%s22422_s27 + $0x23c] ss:$136 sps:$4 sm:$0xff]  }
 0x1ce   : > { %13837 = vmatprep.subr.bf16.mxu1 %v19423_v56  ;;  %v19495_v56 = vld [vmem:[%s22422_s27 + $0x133c] ss:$136 sps:$4 sm:$0xff]  }
 0x1d0   : > { %13797 = vmatpush2.bf16.msra.mxu0 %v19418_v57  ;;  %v19490_v57 = vld [vmem:[%s22422_s27 + $0x238] ss:$136 sps:$4 sm:$0xff]  }
 0x1d1   : > { %13838 = vmatpush2.bf16.msra.mxu1 %v19421_v58  ;;  %13798 = vmatprep.subr.bf16.mxu0 %v19426_v59  ;;  %v19493_v58 = vld [vmem:[%s22422_s27 + $0x1338] ss:$136 sps:$4 sm:$0xff]   ;;  %v19498_v59 = vld [vmem:[%s22422_s27 + $0x12c] ss:$136 sps:$4 sm:$0xff]  }
 0x1d2   : > { %13839 = vmatprep.subr.bf16.mxu1 %v19429_v60  ;;  %v19501_v60 = vld [vmem:[%s22422_s27 + $0x122c] ss:$136 sps:$4 sm:$0xff]  }
 0x1d4   : > { %13799 = vmatpush2.bf16.msra.mxu0 %v19424_v61  ;;  %v19496_v61 = vld [vmem:[%s22422_s27 + $0x128] ss:$136 sps:$4 sm:$0xff]  }
 0x1d5   : > { %13840 = vmatpush2.bf16.msra.mxu1 %v19427_v62  ;;  %13800 = vmatprep.subr.bf16.mxu0 %v19432_v63  ;;  %v19499_v62 = vld [vmem:[%s22422_s27 + $0x1228] ss:$136 sps:$4 sm:$0xff]   ;;  %v19504_v63 = vld [vmem:[%s22422_s27 + $0x1c] ss:$136 sps:$4 sm:$0xff]  }
 0x1d6   : > { %13841 = vmatprep.subr.bf16.mxu1 %v19435_v0  ;;  %v19507_v0 = vld [vmem:[%s22422_s27 + $0x111c] ss:$136 sps:$4 sm:$0xff]  }
 0x1d8   : > { %13801 = vmatpush2.bf16.msra.mxu0 %v19430_v1  ;;  %v19502_v1 = vld [vmem:[%s22422_s27 + $0x18] ss:$136 sps:$4 sm:$0xff]  }
 0x1d9   : > { %13842 = vmatpush2.bf16.msra.mxu1 %v19433_v2  ;;  %13802 = vmatprep.subr.bf16.mxu0 %v19438_v3  ;;  %v19505_v2 = vld [vmem:[%s22422_s27 + $0x1118] ss:$136 sps:$4 sm:$0xff]   ;;  %v19510_v3 = vld [vmem:[%s22422_s27 + $0x100c] ss:$136 sps:$4 sm:$0xff]  }
 0x1da   : > { %13843 = vmatprep.subr.bf16.mxu1 %v19441_v4  ;;  %v19513_v4 = vld [vmem:[%s22422_s27 + $0x210c] ss:$136 sps:$4 sm:$0xff]  }
 0x1dc   : > { %13803 = vmatpush2.bf16.msra.mxu0 %v19436_v5  ;;  %v19508_v5 = vld [vmem:[%s22422_s27 + $0x1008] ss:$136 sps:$4 sm:$0xff]  }
 0x1dd   : > { %13844 = vmatpush2.bf16.msra.mxu1 %v19439_v6  ;;  %13804 = vmatprep.subr.bf16.mxu0 %v19444_v41  ;;  %v19511_v6 = vld [vmem:[%s22422_s27 + $0x2108] ss:$136 sps:$4 sm:$0xff]   ;;  %v19516_v41 = vld [vmem:[%s22422_s27 + $0xefc] ss:$136 sps:$4 sm:$0xff]  }
 0x1de   : > { %13845 = vmatprep.subr.bf16.mxu1 %v19447_v42  ;;  %v19519_v42 = vld [vmem:[%s22422_s27 + $0x1ffc] ss:$136 sps:$4 sm:$0xff]  }
 0x1e0   : > { %13805 = vmatpush2.bf16.msra.mxu0 %v19442_v9  ;;  %v19514_v9 = vld [vmem:[%s22422_s27 + $0xef8] ss:$136 sps:$4 sm:$0xff]  }
 0x1e1   : > { %13846 = vmatpush2.bf16.msra.mxu1 %v19445_v10  ;;  %13806 = vmatprep.subr.bf16.mxu0 %v19450_v11  ;;  %v19517_v10 = vld [vmem:[%s22422_s27 + $0x1ff8] ss:$136 sps:$4 sm:$0xff]   ;;  %v19522_v11 = vld [vmem:[%s22422_s27 + $0xdec] ss:$136 sps:$4 sm:$0xff]  }
 0x1e2   : > { %13847 = vmatprep.subr.bf16.mxu1 %v19453_v12  ;;  %v19525_v12 = vld [vmem:[%s22422_s27 + $0x1eec] ss:$136 sps:$4 sm:$0xff]  }
 0x1e4   : > { %13807 = vmatpush2.bf16.msra.mxu0 %v19448_v13  ;;  %v19520_v13 = vld [vmem:[%s22422_s27 + $0xde8] ss:$136 sps:$4 sm:$0xff]  }
 0x1e5   : > { %13848 = vmatpush2.bf16.msra.mxu1 %v19451_v14  ;;  %13808 = vmatprep.subr.bf16.mxu0 %v19456_v15  ;;  %v19523_v14 = vld [vmem:[%s22422_s27 + $0x1ee8] ss:$136 sps:$4 sm:$0xff]   ;;  %v19528_v15 = vld [vmem:[%s22422_s27 + $0xcdc] ss:$136 sps:$4 sm:$0xff]  }
 0x1e6   : > { %13849 = vmatprep.subr.bf16.mxu1 %v19459_v46  ;;  %v19531_v46 = vld [vmem:[%s22422_s27 + $0x1ddc] ss:$136 sps:$4 sm:$0xff]  }
 0x1e8   : > { %13809 = vmatpush2.bf16.msra.mxu0 %v19454_v47  ;;  %v19526_v47 = vld [vmem:[%s22422_s27 + $0xcd8] ss:$136 sps:$4 sm:$0xff]  }
 0x1e9   : > { %13850 = vmatpush2.bf16.msra.mxu1 %v19457_v16  ;;  %13860 = vmatprep.subr.bf16.mxu0 %v19462_v19  ;;  %v19529_v16 = vld [vmem:[%s22422_s27 + $0x1dd8] ss:$136 sps:$4 sm:$0xff]   ;;  %v19534_v19 = vld [vmem:[%s22422_s27 + $0xbcc] ss:$136 sps:$4 sm:$0xff]  }
 0x1ea   : > { %13901 = vmatprep.subr.bf16.mxu1 %v19465_v20  ;;  %v19537_v20 = vld [vmem:[%s22422_s27 + $0x1ccc] ss:$136 sps:$4 sm:$0xff]  }
 0x1eb   : > { %v22895_v27 = vpop.f32.mrf.mxu0  ;;  %13811 = vmatmul.mubr.bf16.vlgmr.msra.gmra.mxu0 %v22599_v17 }
 0x1ec   : > { %v22897_v28 = vpop.f32.mrf.mxu1  ;;  %13852 = vmatmul.mubr.bf16.vlgmr.msra.gmra.mxu1 %v22603_v18  ;;  %13861 = vmatpush1.bf16.msra.mxu0 %v19460_v21  ;;  %v19532_v21 = vld [vmem:[%s22422_s27 + $0xbc8] ss:$136 sps:$4 sm:$0xff]  }
 0x1ed   : > { %13902 = vmatpush1.bf16.msra.mxu1 %v19463_v22  ;;  %v22901_v29 = vpop.f32.mrf.mxu0  ;;  %13862 = vmatprep.subr.bf16.mxu0 %v19468_v23  ;;  %v19535_v22 = vld [vmem:[%s22422_s27 + $0x1cc8] ss:$136 sps:$4 sm:$0xff]   ;;  %v19540_v23 = vld [vmem:[%s22422_s27 + $0xabc] ss:$136 sps:$4 sm:$0xff]  }
 0x1ee   : > { %v22903_v30 = vpop.f32.mrf.mxu1  ;;  %13903 = vmatprep.subr.bf16.mxu1 %v19471_v24  ;;  %13892 = vmatprep.mubr.bf16.mxu0 %v22484_v48  ;;  %v19543_v24 = vld [vmem:[%s22422_s27 + $0x1bbc] ss:$136 sps:$4 sm:$0xff]  }
 0x1ef   : > { %13933 = vmatprep.mubr.bf16.mxu1 %v22489_v52  ;;  %v13570_v35 = vpop.f32.mrf.mxu0 }
 0x1f0   : > { %v13611_v36 = vpop.f32.mrf.mxu1  ;;  %13863 = vmatpush1.bf16.msra.mxu0 %v19466_v25  ;;  %v19538_v25 = vld [vmem:[%s22422_s27 + $0xab8] ss:$136 sps:$4 sm:$0xff]   ;;  %v19552_v35 = vld [vmem:[%s22422_s27 + $0x89c] ss:$136 sps:$4 sm:$0xff]  }
 0x1f1   : > { %13904 = vmatpush1.bf16.msra.mxu1 %v19469_v26  ;;  %v13571_v39 = vpop.f32.mrf.mxu0  ;;  %13864 = vmatprep.subr.bf16.mxu0 %v19474_v31  ;;  %v19541_v26 = vld [vmem:[%s22422_s27 + $0x1bb8] ss:$136 sps:$4 sm:$0xff]   ;;  %v19546_v31 = vld [vmem:[%s22422_s27 + $0x9ac] ss:$136 sps:$4 sm:$0xff]   ;;  %v19555_v36 = vld [vmem:[%s22422_s27 + $0x199c] ss:$136 sps:$4 sm:$0xff]  }
 0x1f2   : > { %v13612_v40 = vpop.f32.mrf.mxu1  ;;  %13905 = vmatprep.subr.bf16.mxu1 %v19477_v32  ;;  %v19549_v32 = vld [vmem:[%s22422_s27 + $0x1aac] ss:$136 sps:$4 sm:$0xff]   ;;  %v19550_v39 = vld [vmem:[%s22422_s27 + $0x898] ss:$136 sps:$4 sm:$0xff]  }
 0x1f3   : > { %v19553_v40 = vld [vmem:[%s22422_s27 + $0x1998] ss:$136 sps:$4 sm:$0xff]  }
 0x1f4   : > { %13865 = vmatpush1.bf16.msra.mxu0 %v19472_v33  ;;  %v19544_v33 = vld [vmem:[%s22422_s27 + $0x9a8] ss:$136 sps:$4 sm:$0xff]  }
 0x1f5   : > { %13906 = vmatpush1.bf16.msra.mxu1 %v19475_v34  ;;  %13866 = vmatprep.subr.bf16.mxu0 %v19480_v43  ;;  %v19547_v34 = vld [vmem:[%s22422_s27 + $0x1aa8] ss:$136 sps:$4 sm:$0xff]   ;;  %v19558_v43 = vld [vmem:[%s22422_s27 + $0x298c] ss:$136 sps:$4 sm:$0xff]  }
 0x1f6   : > { %13907 = vmatprep.subr.bf16.mxu1 %v19483_v44  ;;  %v19561_v44 = vld [vmem:[%s22422_s27 + $0x3a8c] ss:$136 sps:$4 sm:$0xff]  }
 0x1f8   : > { %13867 = vmatpush1.bf16.msra.mxu0 %v19478_v45  ;;  %v19556_v45 = vld [vmem:[%s22422_s27 + $0x2988] ss:$136 sps:$4 sm:$0xff]  }
 0x1f9   : > { %13908 = vmatpush1.bf16.msra.mxu1 %v19481_v49  ;;  %13868 = vmatprep.subr.bf16.mxu0 %v19486_v50  ;;  %v19559_v49 = vld [vmem:[%s22422_s27 + $0x3a88] ss:$136 sps:$4 sm:$0xff]   ;;  %v19564_v50 = vld [vmem:[%s22422_s27 + $0x287c] ss:$136 sps:$4 sm:$0xff]  }
 0x1fa   : > { %13909 = vmatprep.subr.bf16.mxu1 %v19489_v51  ;;  %v19567_v51 = vld [vmem:[%s22422_s27 + $0x397c] ss:$136 sps:$4 sm:$0xff]  }
 0x1fc   : > { %13869 = vmatpush1.bf16.msra.mxu0 %v19484_v53  ;;  %v13608_v53 = vadd.f32 %v22897_v28, %v22895_v27  ;;  %v253_v28 = vld [vmem:[#allocation2 + $0x48] sm:$0xff] }
 0x1fd   : > { %13910 = vmatpush1.bf16.msra.mxu1 %v19487_v54  ;;  %13870 = vmatprep.subr.bf16.mxu0 %v19492_v55  ;;  %v19562_v54 = vld [vmem:[%s22422_s27 + $0x2878] ss:$136 sps:$4 sm:$0xff]  }
 0x1fe   : > { %13911 = vmatprep.subr.bf16.mxu1 %v19495_v56  ;;  %v252_v56 = vld [vmem:[#allocation2 + $0x10] sm:$0xff] }
 0x200   : > { %13871 = vmatpush1.bf16.msra.mxu0 %v19490_v57 }
 0x201   : > { %13912 = vmatpush1.bf16.msra.mxu1 %v19493_v58  ;;  %13872 = vmatprep.subr.bf16.mxu0 %v19498_v59  ;;  %v13610_v58 = vadd.f32 %v22903_v30, %v22901_v29 }
 0x202   : > { %13913 = vmatprep.subr.bf16.mxu1 %v19501_v60  ;;  %v19565_v60 = vld [vmem:[%s22422_s27 + $0x3978] ss:$136 sps:$4 sm:$0xff]  }
 0x204   : > { %13873 = vmatpush1.bf16.msra.mxu0 %v19496_v61 }
 0x205   : > { %13914 = vmatpush1.bf16.msra.mxu1 %v19499_v62  ;;  %13874 = vmatprep.subr.bf16.mxu0 %v19504_v63  ;;  %v19570_v62 = vld [vmem:[%s22422_s27 + $0x276c] ss:$136 sps:$4 sm:$0xff]  }
 0x206   : > { %13915 = vmatprep.subr.bf16.mxu1 %v19507_v0  ;;  %v19573_v63 = vld [vmem:[%s22422_s27 + $0x386c] ss:$136 sps:$4 sm:$0xff]  }
 0x208   : > { %13875 = vmatpush1.bf16.msra.mxu0 %v19502_v1 }
 0x209   : > { %13916 = vmatpush1.bf16.msra.mxu1 %v19505_v2  ;;  %13876 = vmatprep.subr.bf16.mxu0 %v19510_v3  ;;  %v19568_v2 = vld [vmem:[%s22422_s27 + $0x2768] ss:$136 sps:$4 sm:$0xff]  }
 0x20a   : > { %13917 = vmatprep.subr.bf16.mxu1 %v19513_v4  ;;  %v19571_v3 = vld [vmem:[%s22422_s27 + $0x3868] ss:$136 sps:$4 sm:$0xff]  }
 0x20c   : > { %13877 = vmatpush2.bf16.msra.mxu0 %v19508_v5 }
 0x20d   : > { %13918 = vmatpush2.bf16.msra.mxu1 %v19511_v6  ;;  %13878 = vmatprep.subr.bf16.mxu0 %v19516_v41 }
 0x20e   : > { %13919 = vmatprep.subr.bf16.mxu1 %v19519_v42  ;;  %v19576_v42 = vld [vmem:[%s22422_s27 + $0x265c] ss:$136 sps:$4 sm:$0xff]  }
 0x210   : > { %13879 = vmatpush2.bf16.msra.mxu0 %v19514_v9  ;;  %v19579_v9 = vld [vmem:[%s22422_s27 + $0x375c] ss:$136 sps:$4 sm:$0xff]  }
 0x211   : > { %13920 = vmatpush2.bf16.msra.mxu1 %v19517_v10  ;;  %13880 = vmatprep.subr.bf16.mxu0 %v19522_v11  ;;  %v19574_v11 = vld [vmem:[%s22422_s27 + $0x2658] ss:$136 sps:$4 sm:$0xff]  }
 0x212   : > { %13921 = vmatprep.subr.bf16.mxu1 %v19525_v12  ;;  %v19577_v12 = vld [vmem:[%s22422_s27 + $0x3758] ss:$136 sps:$4 sm:$0xff]  }
 0x214   : > { %13881 = vmatpush2.bf16.msra.mxu0 %v19520_v13  ;;  %v19582_v13 = vld [vmem:[%s22422_s27 + $0x254c] ss:$136 sps:$4 sm:$0xff]  }
 0x215   : > { %13922 = vmatpush2.bf16.msra.mxu1 %v19523_v14  ;;  %13882 = vmatprep.subr.bf16.mxu0 %v19528_v15  ;;  %v19585_v14 = vld [vmem:[%s22422_s27 + $0x364c] ss:$136 sps:$4 sm:$0xff]   ;;  %v19580_v15 = vld [vmem:[%s22422_s27 + $0x2548] ss:$136 sps:$4 sm:$0xff]  }
 0x216   : > { %13923 = vmatprep.subr.bf16.mxu1 %v19531_v46  ;;  %v19583_v46 = vld [vmem:[%s22422_s27 + $0x3648] ss:$136 sps:$4 sm:$0xff]  }
 0x218   : > { %13883 = vmatpush2.bf16.msra.mxu0 %v19526_v47  ;;  %v19588_v47 = vld [vmem:[%s22422_s27 + $0x243c] ss:$136 sps:$4 sm:$0xff]  }
 0x219   : > { %13924 = vmatpush2.bf16.msra.mxu1 %v19529_v16  ;;  %13884 = vmatprep.subr.bf16.mxu0 %v19534_v19  ;;  %v19591_v16 = vld [vmem:[%s22422_s27 + $0x353c] ss:$136 sps:$4 sm:$0xff]   ;;  %v19586_v19 = vld [vmem:[%s22422_s27 + $0x2438] ss:$136 sps:$4 sm:$0xff]  }
 0x21a   : > { %13925 = vmatprep.subr.bf16.mxu1 %v19537_v20  ;;  %v19589_v20 = vld [vmem:[%s22422_s27 + $0x3538] ss:$136 sps:$4 sm:$0xff]  }
 0x21c   : > { %13885 = vmatpush2.bf16.msra.mxu0 %v19532_v21  ;;  %v19594_v21 = vld [vmem:[%s22422_s27 + $0x232c] ss:$136 sps:$4 sm:$0xff]  }
 0x21d   : > { %13926 = vmatpush2.bf16.msra.mxu1 %v19535_v22  ;;  %13886 = vmatprep.subr.bf16.mxu0 %v19540_v23  ;;  %v19597_v22 = vld [vmem:[%s22422_s27 + $0x342c] ss:$136 sps:$4 sm:$0xff]   ;;  %v19592_v23 = vld [vmem:[%s22422_s27 + $0x2328] ss:$136 sps:$4 sm:$0xff]  }
 0x21e   : > { %13927 = vmatprep.subr.bf16.mxu1 %v19543_v24  ;;  %v19595_v24 = vld [vmem:[%s22422_s27 + $0x3428] ss:$136 sps:$4 sm:$0xff]  }
 0x220   : > { %13887 = vmatpush2.bf16.msra.mxu0 %v19538_v25  ;;  %v19600_v25 = vld [vmem:[%s22422_s27 + $0x221c] ss:$136 sps:$4 sm:$0xff]  }
 0x221   : > { %13928 = vmatpush2.bf16.msra.mxu1 %v19541_v26  ;;  %13888 = vmatprep.subr.bf16.mxu0 %v19546_v31  ;;  %v19603_v26 = vld [vmem:[%s22422_s27 + $0x331c] ss:$136 sps:$4 sm:$0xff]   ;;  %v19598_v31 = vld [vmem:[%s22422_s27 + $0x2218] ss:$136 sps:$4 sm:$0xff]  }
 0x222   : > { %13929 = vmatprep.subr.bf16.mxu1 %v19549_v32  ;;  %v19601_v32 = vld [vmem:[%s22422_s27 + $0x3318] ss:$136 sps:$4 sm:$0xff]  }
 0x224   : > { %13889 = vmatpush2.bf16.msra.mxu0 %v19544_v33  ;;  %v19606_v33 = vld [vmem:[%s22422_s27 + $0x320c] ss:$136 sps:$4 sm:$0xff]  }
 0x225   : > { %13930 = vmatpush2.bf16.msra.mxu1 %v19547_v34  ;;  %13890 = vmatprep.subr.bf16.mxu0 %v19552_v35  ;;  %v19609_v34 = vld [vmem:[%s22422_s27 + $0x430c] ss:$136 sps:$4 sm:$0xff]   ;;  %v19604_v35 = vld [vmem:[%s22422_s27 + $0x3208] ss:$136 sps:$4 sm:$0xff]  }
 0x226   : > { %13931 = vmatprep.subr.bf16.mxu1 %v19555_v36  ;;  %v19607_v36 = vld [vmem:[%s22422_s27 + $0x4308] ss:$136 sps:$4 sm:$0xff]  }
 0x228   : > { %13891 = vmatpush2.bf16.msra.mxu0 %v19550_v39  ;;  %v19612_v39 = vld [vmem:[%s22422_s27 + $0x30fc] ss:$136 sps:$4 sm:$0xff]  }
 0x229   : > { %13932 = vmatpush2.bf16.msra.mxu1 %v19553_v40  ;;  %13942 = vmatprep.subr.bf16.mxu0 %v19558_v43  ;;  %v19615_v40 = vld [vmem:[%s22422_s27 + $0x41fc] ss:$136 sps:$4 sm:$0xff]   ;;  %v19610_v43 = vld [vmem:[%s22422_s27 + $0x30f8] ss:$136 sps:$4 sm:$0xff]  }
 0x22a   : > { %13983 = vmatprep.subr.bf16.mxu1 %v19561_v44  ;;  %v19613_v44 = vld [vmem:[%s22422_s27 + $0x41f8] ss:$136 sps:$4 sm:$0xff]  }
 0x22b   : > { %v13648_v55 = vpop.f32.mrf.mxu0  ;;  %13893 = vmatmul.mubr.bf16.vlgmr.msra.gmra.mxu0 %v22511_v7 }
 0x22c   : > { %v13689_v57 = vpop.f32.mrf.mxu1  ;;  %13934 = vmatmul.mubr.bf16.vlgmr.msra.gmra.mxu1 %v22513_v8  ;;  %v13649_v59 = vadd.f32 %v13648_v55, %v13608_v53  ;;  %13943 = vmatpush1.bf16.msra.mxu0 %v19556_v45  ;;  %v19618_v45 = vld [vmem:[%s22422_s27 + $0x2fec] ss:$136 sps:$4 sm:$0xff]   ;;  %v19624_v53 = vld [vmem:[%s22422_s27 + $0x2edc] ss:$136 sps:$4 sm:$0xff]   ;;  %v19622_v55 = vld [vmem:[%s22422_s27 + $0x2ed8] ss:$136 sps:$4 sm:$0xff]  }
 0x22d   : > { %13984 = vmatpush1.bf16.msra.mxu1 %v19559_v49  ;;  %v13650_v27 = vpop.f32.mrf.mxu0  ;;  %13944 = vmatprep.subr.bf16.mxu0 %v19564_v50  ;;  %v19621_v49 = vld [vmem:[%s22422_s27 + $0x40ec] ss:$136 sps:$4 sm:$0xff]   ;;  %v19616_v50 = vld [vmem:[%s22422_s27 + $0x2fe8] ss:$136 sps:$4 sm:$0xff]  }
 0x22e   : > { %v13691_v61 = vpop.f32.mrf.mxu1  ;;  %13985 = vmatprep.subr.bf16.mxu1 %v19567_v51  ;;  %v13690_v0 = vadd.f32 %v13689_v57, %v13649_v59  ;;  %v13651_v1 = vadd.f32 %v13650_v27, %v13610_v58  ;;  %13974 = vmatprep.mubr.bf16.mxu0 %v22551_v37  ;;  %v19619_v51 = vld [vmem:[%s22422_s27 + $0x40e8] ss:$136 sps:$4 sm:$0xff]   ;;  %v19630_v57 = vld [vmem:[%s22422_s27 + $0x2dcc] ss:$136 sps:$4 sm:$0xff]   ;;  %v19636_v27 = vld [vmem:[%s22422_s27 + $0x2cbc] ss:$136 sps:$4 sm:$0xff]  }
 0x22f   : > { %14015 = vmatprep.mubr.bf16.mxu1 %v22555_v38  ;;  %v13652_v29 = vpop.f32.mrf.mxu0  ;;  %v19633_v58 = vld [vmem:[%s22422_s27 + $0x3ecc] ss:$136 sps:$4 sm:$0xff]   ;;  %v19628_v59 = vld [vmem:[%s22422_s27 + $0x2dc8] ss:$136 sps:$4 sm:$0xff]  }
 0x230   : > { %v13693_v30 = vpop.f32.mrf.mxu1  ;;  %v16158_v4 = vadd.f32 %v13690_v0, %v252_v56  ;;  %v13692_v5 = vadd.f32 %v13691_v61, %v13651_v1  ;;  %13945 = vmatpush1.bf16.msra.mxu0 %v19562_v54  ;;  %v19627_v54 = vld [vmem:[%s22422_s27 + $0x3fdc] ss:$136 sps:$4 sm:$0xff]   ;;  %v19625_v56 = vld [vmem:[%s22422_s27 + $0x3fd8] ss:$136 sps:$4 sm:$0xff]   ;;  %v19645_v0 = vld [vmem:[%s22422_s27 + $0x3cac] ss:$136 sps:$4 sm:$0xff]  }
 0x231   : > { %13986 = vmatpush1.bf16.msra.mxu1 %v19565_v60  ;;  %v13653_v6 = vpop.f32.mrf.mxu0  ;;  %13946 = vmatprep.subr.bf16.mxu0 %v19570_v62  ;;  %v19631_v60 = vld [vmem:[%s22422_s27 + $0x3ec8] ss:$136 sps:$4 sm:$0xff]   ;;  %v19634_v61 = vld [vmem:[%s22422_s27 + $0x2cb8] ss:$136 sps:$4 sm:$0xff]   ;;  %v19651_v29 = vld [vmem:[%s22422_s27 + $0x3b9c] ss:$136 sps:$4 sm:$0xff]  }
 0x232   : > { %v13694_v41 = vpop.f32.mrf.mxu1  ;;  %13987 = vmatprep.subr.bf16.mxu1 %v19573_v63  ;;  %16192 = vst [vmem:[#allocation2 + $0x10] sm:$0xff] %v16158_v4  ;;  %v16159_v10 = vadd.f32 %v13692_v5, %v253_v28  ;;  %v19639_v28 = vld [vmem:[%s22422_s27 + $0x3dbc] ss:$136 sps:$4 sm:$0xff]   ;;  %v19637_v62 = vld [vmem:[%s22422_s27 + $0x3db8] ss:$136 sps:$4 sm:$0xff]  }
 0x233   : > { %v19642_v63 = vld [vmem:[%s22422_s27 + $0x2bac] ss:$136 sps:$4 sm:$0xff]   ;;  %v19640_v1 = vld [vmem:[%s22422_s27 + $0x2ba8] ss:$136 sps:$4 sm:$0xff]   ;;  %v19646_v30 = vld [vmem:[%s22422_s27 + $0x2a98] ss:$136 sps:$4 sm:$0xff]  }
 0x234   : > { %16193 = vst [vmem:[#allocation2 + $0x48] sm:$0xff] %v16159_v10  ;;  %13947 = vmatpush1.bf16.msra.mxu0 %v19568_v2  ;;  %v19643_v2 = vld [vmem:[%s22422_s27 + $0x3ca8] ss:$136 sps:$4 sm:$0xff]   ;;  %v19649_v4 = vld [vmem:[%s22422_s27 + $0x3b98] ss:$136 sps:$4 sm:$0xff]  }
 0x235   : > { %13988 = vmatpush1.bf16.msra.mxu1 %v19571_v3  ;;  %13948 = vmatprep.subr.bf16.mxu0 %v19576_v42  ;;  %v19648_v3 = vld [vmem:[%s22422_s27 + $0x2a9c] ss:$136 sps:$4 sm:$0xff]   ;;  %v19652_v41 = vld [vmem:[%s22422_s27 + $0x790] ss:$136 sps:$4 sm:$0xff]  }
 0x236   : > { %13989 = vmatprep.subr.bf16.mxu1 %v19579_v9  ;;  %v19654_v5 = vld [vmem:[%s22422_s27 + $0x794] ss:$136 sps:$4 sm:$0xff]   ;;  %v19655_v42 = vld [vmem:[%s22422_s27 + $0x1890] ss:$136 sps:$4 sm:$0xff]   ;;  %v19660_v9 = vld [vmem:[%s22422_s27 + $0x684] ss:$136 sps:$4 sm:$0xff]  }
 0x237   : > { %v19657_v6 = vld [vmem:[%s22422_s27 + $0x1894] ss:$136 sps:$4 sm:$0xff]   ;;  %v19663_v10 = vld [vmem:[%s22422_s27 + $0x1784] ss:$136 sps:$4 sm:$0xff]  }
 0x238   : > { %13949 = vmatpush1.bf16.msra.mxu0 %v19574_v11  ;;  %v19658_v11 = vld [vmem:[%s22422_s27 + $0x680] ss:$136 sps:$4 sm:$0xff]  }
 0x239   : > { %13990 = vmatpush1.bf16.msra.mxu1 %v19577_v12  ;;  %13950 = vmatprep.subr.bf16.mxu0 %v19582_v13  ;;  %v19661_v12 = vld [vmem:[%s22422_s27 + $0x1780] ss:$136 sps:$4 sm:$0xff]  }
 0x23a   : > { %13991 = vmatprep.subr.bf16.mxu1 %v19585_v14 }
 0x23c   : > { %13951 = vmatpush1.bf16.msra.mxu0 %v19580_v15 }
 0x23d   : > { %13992 = vmatpush1.bf16.msra.mxu1 %v19583_v46  ;;  %13952 = vmatprep.subr.bf16.mxu0 %v19588_v47  ;;  %v19666_v47 = vld [vmem:[%s22422_s27 + $0x574] ss:$136 sps:$4 sm:$0xff]  }
 0x23e   : > { %13993 = vmatprep.subr.bf16.mxu1 %v19591_v16  ;;  %v19669_v16 = vld [vmem:[%s22422_s27 + $0x1674] ss:$136 sps:$4 sm:$0xff]  }
 0x240   : > { %13953 = vmatpush1.bf16.msra.mxu0 %v19586_v19  ;;  %v19664_v19 = vld [vmem:[%s22422_s27 + $0x570] ss:$136 sps:$4 sm:$0xff]  }
 0x241   : > { %13994 = vmatpush1.bf16.msra.mxu1 %v19589_v20  ;;  %13954 = vmatprep.subr.bf16.mxu0 %v19594_v21  ;;  %v19667_v20 = vld [vmem:[%s22422_s27 + $0x1670] ss:$136 sps:$4 sm:$0xff]  }
 0x242   : > { %13995 = vmatprep.subr.bf16.mxu1 %v19597_v22 }
 0x244   : > { %13955 = vmatpush1.bf16.msra.mxu0 %v19592_v23 }
 0x245   : > { %13996 = vmatpush1.bf16.msra.mxu1 %v19595_v24  ;;  %13956 = vmatprep.subr.bf16.mxu0 %v19600_v25  ;;  %v19672_v25 = vld [vmem:[%s22422_s27 + $0x464] ss:$136 sps:$4 sm:$0xff]  }
 0x246   : > { %13997 = vmatprep.subr.bf16.mxu1 %v19603_v26  ;;  %v19675_v26 = vld [vmem:[%s22422_s27 + $0x1564] ss:$136 sps:$4 sm:$0xff]  }
 0x248   : > { %13957 = vmatpush1.bf16.msra.mxu0 %v19598_v31  ;;  %v19670_v31 = vld [vmem:[%s22422_s27 + $0x460] ss:$136 sps:$4 sm:$0xff]  }
 0x249   : > { %13998 = vmatpush1.bf16.msra.mxu1 %v19601_v32  ;;  %13958 = vmatprep.subr.bf16.mxu0 %v19606_v33  ;;  %v19673_v32 = vld [vmem:[%s22422_s27 + $0x1560] ss:$136 sps:$4 sm:$0xff]   ;;  %v19678_v33 = vld [vmem:[%s22422_s27 + $0x354] ss:$136 sps:$4 sm:$0xff]  }
 0x24a   : > { %13999 = vmatprep.subr.bf16.mxu1 %v19609_v34  ;;  %v19681_v34 = vld [vmem:[%s22422_s27 + $0x1454] ss:$136 sps:$4 sm:$0xff]  }
 0x24c   : > { %13959 = vmatpush2.bf16.msra.mxu0 %v19604_v35  ;;  %v19676_v35 = vld [vmem:[%s22422_s27 + $0x350] ss:$136 sps:$4 sm:$0xff]  }
 0x24d   : > { %14000 = vmatpush2.bf16.msra.mxu1 %v19607_v36  ;;  %13960 = vmatprep.subr.bf16.mxu0 %v19612_v39  ;;  %v19679_v36 = vld [vmem:[%s22422_s27 + $0x1450] ss:$136 sps:$4 sm:$0xff]   ;;  %v19684_v39 = vld [vmem:[%s22422_s27 + $0x244] ss:$136 sps:$4 sm:$0xff]  }
 0x24e   : > { %14001 = vmatprep.subr.bf16.mxu1 %v19615_v40  ;;  %v19687_v40 = vld [vmem:[%s22422_s27 + $0x1344] ss:$136 sps:$4 sm:$0xff]  }
 0x250   : > { %13961 = vmatpush2.bf16.msra.mxu0 %v19610_v43  ;;  %v19682_v43 = vld [vmem:[%s22422_s27 + $0x240] ss:$136 sps:$4 sm:$0xff]  }
 0x251   : > { %14002 = vmatpush2.bf16.msra.mxu1 %v19613_v44  ;;  %13962 = vmatprep.subr.bf16.mxu0 %v19618_v45  ;;  %v19685_v44 = vld [vmem:[%s22422_s27 + $0x1340] ss:$136 sps:$4 sm:$0xff]   ;;  %v19690_v45 = vld [vmem:[%s22422_s27 + $0x134] ss:$136 sps:$4 sm:$0xff]  }
 0x252   : > { %14003 = vmatprep.subr.bf16.mxu1 %v19621_v49  ;;  %v19693_v49 = vld [vmem:[%s22422_s27 + $0x1234] ss:$136 sps:$4 sm:$0xff]  }
 0x254   : > { %13963 = vmatpush2.bf16.msra.mxu0 %v19616_v50  ;;  %v19688_v50 = vld [vmem:[%s22422_s27 + $0x130] ss:$136 sps:$4 sm:$0xff]  }
 0x255   : > { %14004 = vmatpush2.bf16.msra.mxu1 %v19619_v51  ;;  %13964 = vmatprep.subr.bf16.mxu0 %v19624_v53  ;;  %v19691_v51 = vld [vmem:[%s22422_s27 + $0x1230] ss:$136 sps:$4 sm:$0xff]   ;;  %v19696_v53 = vld [vmem:[%s22422_s27 + $0x24] ss:$136 sps:$4 sm:$0xff]  }
 0x256   : > { %14005 = vmatprep.subr.bf16.mxu1 %v19627_v54  ;;  %v19699_v54 = vld [vmem:[%s22422_s27 + $0x1124] ss:$136 sps:$4 sm:$0xff]  }
 0x258   : > { %13965 = vmatpush2.bf16.msra.mxu0 %v19622_v55  ;;  %v19694_v55 = vld [vmem:[%s22422_s27 + $0x20] ss:$136 sps:$4 sm:$0xff]  }
 0x259   : > { %14006 = vmatpush2.bf16.msra.mxu1 %v19625_v56  ;;  %13966 = vmatprep.subr.bf16.mxu0 %v19630_v57  ;;  %v19697_v56 = vld [vmem:[%s22422_s27 + $0x1120] ss:$136 sps:$4 sm:$0xff]   ;;  %v19702_v57 = vld [vmem:[%s22422_s27 + $0x1014] ss:$136 sps:$4 sm:$0xff]  }
 0x25a   : > { %14007 = vmatprep.subr.bf16.mxu1 %v19633_v58  ;;  %v19705_v58 = vld [vmem:[%s22422_s27 + $0x2114] ss:$136 sps:$4 sm:$0xff]  }
 0x25c   : > { %13967 = vmatpush2.bf16.msra.mxu0 %v19628_v59  ;;  %v19700_v59 = vld [vmem:[%s22422_s27 + $0x1010] ss:$136 sps:$4 sm:$0xff]  }
 0x25d   : > { %14008 = vmatpush2.bf16.msra.mxu1 %v19631_v60  ;;  %13968 = vmatprep.subr.bf16.mxu0 %v19636_v27  ;;  %v19703_v60 = vld [vmem:[%s22422_s27 + $0x2110] ss:$136 sps:$4 sm:$0xff]   ;;  %v19708_v27 = vld [vmem:[%s22422_s27 + $0xf04] ss:$136 sps:$4 sm:$0xff]  }
 0x25e   : > { %14009 = vmatprep.subr.bf16.mxu1 %v19639_v28  ;;  %v19711_v28 = vld [vmem:[%s22422_s27 + $0x2004] ss:$136 sps:$4 sm:$0xff]  }
 0x260   : > { %13969 = vmatpush2.bf16.msra.mxu0 %v19634_v61  ;;  %v19706_v61 = vld [vmem:[%s22422_s27 + $0xf00] ss:$136 sps:$4 sm:$0xff]  }
 0x261   : > { %14010 = vmatpush2.bf16.msra.mxu1 %v19637_v62  ;;  %13970 = vmatprep.subr.bf16.mxu0 %v19642_v63  ;;  %v19709_v62 = vld [vmem:[%s22422_s27 + $0x2000] ss:$136 sps:$4 sm:$0xff]   ;;  %v19714_v63 = vld [vmem:[%s22422_s27 + $0xdf4] ss:$136 sps:$4 sm:$0xff]  }
 0x262   : > { %14011 = vmatprep.subr.bf16.mxu1 %v19645_v0  ;;  %v19717_v0 = vld [vmem:[%s22422_s27 + $0x1ef4] ss:$136 sps:$4 sm:$0xff]  }
 0x264   : > { %13971 = vmatpush2.bf16.msra.mxu0 %v19640_v1  ;;  %v19712_v1 = vld [vmem:[%s22422_s27 + $0xdf0] ss:$136 sps:$4 sm:$0xff]  }
 0x265   : > { %14012 = vmatpush2.bf16.msra.mxu1 %v19643_v2  ;;  %13972 = vmatprep.subr.bf16.mxu0 %v19648_v3  ;;  %v19715_v2 = vld [vmem:[%s22422_s27 + $0x1ef0] ss:$136 sps:$4 sm:$0xff]   ;;  %v19720_v3 = vld [vmem:[%s22422_s27 + $0xce4] ss:$136 sps:$4 sm:$0xff]  }
 0x266   : > { %14013 = vmatprep.subr.bf16.mxu1 %v19651_v29  ;;  %v19723_v29 = vld [vmem:[%s22422_s27 + $0x1de4] ss:$136 sps:$4 sm:$0xff]  }
 0x268   : > { %13973 = vmatpush2.bf16.msra.mxu0 %v19646_v30  ;;  %v19718_v30 = vld [vmem:[%s22422_s27 + $0xce0] ss:$136 sps:$4 sm:$0xff]  }
 0x269   : > { %14014 = vmatpush2.bf16.msra.mxu1 %v19649_v4  ;;  %14024 = vmatprep.subr.bf16.mxu0 %v19654_v5  ;;  %v19721_v4 = vld [vmem:[%s22422_s27 + $0x1de0] ss:$136 sps:$4 sm:$0xff]   ;;  %v19726_v5 = vld [vmem:[%s22422_s27 + $0xbd4] ss:$136 sps:$4 sm:$0xff]  }
 0x26a   : > { %14065 = vmatprep.subr.bf16.mxu1 %v19657_v6  ;;  %v19729_v6 = vld [vmem:[%s22422_s27 + $0x1cd4] ss:$136 sps:$4 sm:$0xff]  }
 0x26b   : > { %v23043_v13 = vpop.f32.mrf.mxu0  ;;  %13975 = vmatmul.mubr.bf16.vlgmr.msra.gmra.mxu0 %v22599_v17 }
 0x26c   : > { %v23045_v14 = vpop.f32.mrf.mxu1  ;;  %14016 = vmatmul.mubr.bf16.vlgmr.msra.gmra.mxu1 %v22603_v18  ;;  %14025 = vmatpush1.bf16.msra.mxu0 %v19652_v41  ;;  %v19724_v41 = vld [vmem:[%s22422_s27 + $0xbd0] ss:$136 sps:$4 sm:$0xff]  }
 0x26d   : > { %14066 = vmatpush1.bf16.msra.mxu1 %v19655_v42  ;;  %v23049_v15 = vpop.f32.mrf.mxu0  ;;  %14026 = vmatprep.subr.bf16.mxu0 %v19660_v9  ;;  %v19727_v42 = vld [vmem:[%s22422_s27 + $0x1cd0] ss:$136 sps:$4 sm:$0xff]   ;;  %v19732_v9 = vld [vmem:[%s22422_s27 + $0xac4] ss:$136 sps:$4 sm:$0xff]  }
 0x26e   : > { %v23051_v46 = vpop.f32.mrf.mxu1  ;;  %14067 = vmatprep.subr.bf16.mxu1 %v19663_v10  ;;  %14056 = vmatprep.mubr.bf16.mxu0 %v22484_v48  ;;  %v19735_v10 = vld [vmem:[%s22422_s27 + $0x1bc4] ss:$136 sps:$4 sm:$0xff]  }
 0x26f   : > { %14097 = vmatprep.mubr.bf16.mxu1 %v22489_v52  ;;  %v13734_v21 = vpop.f32.mrf.mxu0 }
 0x270   : > { %v13775_v22 = vpop.f32.mrf.mxu1  ;;  %14027 = vmatpush1.bf16.msra.mxu0 %v19658_v11  ;;  %v19730_v11 = vld [vmem:[%s22422_s27 + $0xac0] ss:$136 sps:$4 sm:$0xff]   ;;  %v19744_v21 = vld [vmem:[%s22422_s27 + $0x8a4] ss:$136 sps:$4 sm:$0xff]  }
 0x271   : > { %14068 = vmatpush1.bf16.msra.mxu1 %v19661_v12  ;;  %v13735_v23 = vpop.f32.mrf.mxu0  ;;  %14028 = vmatprep.subr.bf16.mxu0 %v19666_v47  ;;  %v19733_v12 = vld [vmem:[%s22422_s27 + $0x1bc0] ss:$136 sps:$4 sm:$0xff]   ;;  %v19738_v47 = vld [vmem:[%s22422_s27 + $0x9b4] ss:$136 sps:$4 sm:$0xff]   ;;  %v19747_v22 = vld [vmem:[%s22422_s27 + $0x19a4] ss:$136 sps:$4 sm:$0xff]  }
 0x272   : > { %v13776_v24 = vpop.f32.mrf.mxu1  ;;  %14069 = vmatprep.subr.bf16.mxu1 %v19669_v16  ;;  %v19741_v16 = vld [vmem:[%s22422_s27 + $0x1ab4] ss:$136 sps:$4 sm:$0xff]   ;;  %v19742_v23 = vld [vmem:[%s22422_s27 + $0x8a0] ss:$136 sps:$4 sm:$0xff]  }
 0x273   : > { %v19745_v24 = vld [vmem:[%s22422_s27 + $0x19a0] ss:$136 sps:$4 sm:$0xff]  }
 0x274   : > { %14029 = vmatpush1.bf16.msra.mxu0 %v19664_v19  ;;  %v19736_v19 = vld [vmem:[%s22422_s27 + $0x9b0] ss:$136 sps:$4 sm:$0xff]  }
 0x275   : > { %14070 = vmatpush1.bf16.msra.mxu1 %v19667_v20  ;;  %14030 = vmatprep.subr.bf16.mxu0 %v19672_v25  ;;  %v19739_v20 = vld [vmem:[%s22422_s27 + $0x1ab0] ss:$136 sps:$4 sm:$0xff]   ;;  %v19750_v25 = vld [vmem:[%s22422_s27 + $0x2994] ss:$136 sps:$4 sm:$0xff]  }
 0x276   : > { %14071 = vmatprep.subr.bf16.mxu1 %v19675_v26  ;;  %v19753_v26 = vld [vmem:[%s22422_s27 + $0x3a94] ss:$136 sps:$4 sm:$0xff]  }
 0x278   : > { %14031 = vmatpush1.bf16.msra.mxu0 %v19670_v31  ;;  %v19748_v31 = vld [vmem:[%s22422_s27 + $0x2990] ss:$136 sps:$4 sm:$0xff]  }
 0x279   : > { %14072 = vmatpush1.bf16.msra.mxu1 %v19673_v32  ;;  %14032 = vmatprep.subr.bf16.mxu0 %v19678_v33  ;;  %v19751_v32 = vld [vmem:[%s22422_s27 + $0x3a90] ss:$136 sps:$4 sm:$0xff]   ;;  %v19756_v33 = vld [vmem:[%s22422_s27 + $0x2884] ss:$136 sps:$4 sm:$0xff]  }
 0x27a   : > { %14073 = vmatprep.subr.bf16.mxu1 %v19681_v34  ;;  %v19759_v34 = vld [vmem:[%s22422_s27 + $0x3984] ss:$136 sps:$4 sm:$0xff]  }
 0x27c   : > { %14033 = vmatpush1.bf16.msra.mxu0 %v19676_v35  ;;  %v13772_v35 = vadd.f32 %v23045_v14, %v23043_v13  ;;  %v255_v14 = vld [vmem:[#allocation2 + $0x68] sm:$0xff] }
 0x27d   : > { %14074 = vmatpush1.bf16.msra.mxu1 %v19679_v36  ;;  %14034 = vmatprep.subr.bf16.mxu0 %v19684_v39  ;;  %v19754_v36 = vld [vmem:[%s22422_s27 + $0x2880] ss:$136 sps:$4 sm:$0xff]  }
 0x27e   : > { %14075 = vmatprep.subr.bf16.mxu1 %v19687_v40  ;;  %v254_v40 = vld [vmem:[#allocation2 + $0x108] sm:$0xff] }
 0x280   : > { %14035 = vmatpush1.bf16.msra.mxu0 %v19682_v43 }
 0x281   : > { %14076 = vmatpush1.bf16.msra.mxu1 %v19685_v44  ;;  %14036 = vmatprep.subr.bf16.mxu0 %v19690_v45  ;;  %v13774_v44 = vadd.f32 %v23051_v46, %v23049_v15 }
 0x282   : > { %14077 = vmatprep.subr.bf16.mxu1 %v19693_v49  ;;  %v19757_v49 = vld [vmem:[%s22422_s27 + $0x3980] ss:$136 sps:$4 sm:$0xff]  }
 0x284   : > { %14037 = vmatpush1.bf16.msra.mxu0 %v19688_v50 }
 0x285   : > { %14078 = vmatpush1.bf16.msra.mxu1 %v19691_v51  ;;  %14038 = vmatprep.subr.bf16.mxu0 %v19696_v53  ;;  %v19762_v51 = vld [vmem:[%s22422_s27 + $0x2774] ss:$136 sps:$4 sm:$0xff]  }
 0x286   : > { %14079 = vmatprep.subr.bf16.mxu1 %v19699_v54  ;;  %v19765_v53 = vld [vmem:[%s22422_s27 + $0x3874] ss:$136 sps:$4 sm:$0xff]  }
 0x288   : > { %14039 = vmatpush1.bf16.msra.mxu0 %v19694_v55 }
 0x289   : > { %14080 = vmatpush1.bf16.msra.mxu1 %v19697_v56  ;;  %14040 = vmatprep.subr.bf16.mxu0 %v19702_v57  ;;  %v19760_v56 = vld [vmem:[%s22422_s27 + $0x2770] ss:$136 sps:$4 sm:$0xff]  }
 0x28a   : > { %14081 = vmatprep.subr.bf16.mxu1 %v19705_v58  ;;  %v19763_v57 = vld [vmem:[%s22422_s27 + $0x3870] ss:$136 sps:$4 sm:$0xff]  }
 0x28c   : > { %14041 = vmatpush2.bf16.msra.mxu0 %v19700_v59 }
 0x28d   : > { %14082 = vmatpush2.bf16.msra.mxu1 %v19703_v60  ;;  %14042 = vmatprep.subr.bf16.mxu0 %v19708_v27 }
 0x28e   : > { %14083 = vmatprep.subr.bf16.mxu1 %v19711_v28  ;;  %v19768_v28 = vld [vmem:[%s22422_s27 + $0x2664] ss:$136 sps:$4 sm:$0xff]  }
 0x290   : > { %14043 = vmatpush2.bf16.msra.mxu0 %v19706_v61  ;;  %v19771_v61 = vld [vmem:[%s22422_s27 + $0x3764] ss:$136 sps:$4 sm:$0xff]  }
 0x291   : > { %14084 = vmatpush2.bf16.msra.mxu1 %v19709_v62  ;;  %14044 = vmatprep.subr.bf16.mxu0 %v19714_v63  ;;  %v19766_v63 = vld [vmem:[%s22422_s27 + $0x2660] ss:$136 sps:$4 sm:$0xff]  }
 0x292   : > { %14085 = vmatprep.subr.bf16.mxu1 %v19717_v0  ;;  %v19769_v0 = vld [vmem:[%s22422_s27 + $0x3760] ss:$136 sps:$4 sm:$0xff]  }
 0x294   : > { %14045 = vmatpush2.bf16.msra.mxu0 %v19712_v1  ;;  %v19774_v1 = vld [vmem:[%s22422_s27 + $0x2554] ss:$136 sps:$4 sm:$0xff]  }
 0x295   : > { %14086 = vmatpush2.bf16.msra.mxu1 %v19715_v2  ;;  %14046 = vmatprep.subr.bf16.mxu0 %v19720_v3  ;;  %v19777_v2 = vld [vmem:[%s22422_s27 + $0x3654] ss:$136 sps:$4 sm:$0xff]   ;;  %v19772_v3 = vld [vmem:[%s22422_s27 + $0x2550] ss:$136 sps:$4 sm:$0xff]  }
 0x296   : > { %14087 = vmatprep.subr.bf16.mxu1 %v19723_v29  ;;  %v19775_v29 = vld [vmem:[%s22422_s27 + $0x3650] ss:$136 sps:$4 sm:$0xff]  }
 0x298   : > { %14047 = vmatpush2.bf16.msra.mxu0 %v19718_v30  ;;  %v19780_v30 = vld [vmem:[%s22422_s27 + $0x2444] ss:$136 sps:$4 sm:$0xff]  }
 0x299   : > { %14088 = vmatpush2.bf16.msra.mxu1 %v19721_v4  ;;  %14048 = vmatprep.subr.bf16.mxu0 %v19726_v5  ;;  %v19783_v4 = vld [vmem:[%s22422_s27 + $0x3544] ss:$136 sps:$4 sm:$0xff]   ;;  %v19778_v5 = vld [vmem:[%s22422_s27 + $0x2440] ss:$136 sps:$4 sm:$0xff]  }
 0x29a   : > { %14089 = vmatprep.subr.bf16.mxu1 %v19729_v6  ;;  %v19781_v6 = vld [vmem:[%s22422_s27 + $0x3540] ss:$136 sps:$4 sm:$0xff]  }
 0x29c   : > { %14049 = vmatpush2.bf16.msra.mxu0 %v19724_v41  ;;  %v19786_v41 = vld [vmem:[%s22422_s27 + $0x2334] ss:$136 sps:$4 sm:$0xff]  }
 0x29d   : > { %14090 = vmatpush2.bf16.msra.mxu1 %v19727_v42  ;;  %14050 = vmatprep.subr.bf16.mxu0 %v19732_v9  ;;  %v19789_v42 = vld [vmem:[%s22422_s27 + $0x3434] ss:$136 sps:$4 sm:$0xff]   ;;  %v19784_v9 = vld [vmem:[%s22422_s27 + $0x2330] ss:$136 sps:$4 sm:$0xff]  }
 0x29e   : > { %14091 = vmatprep.subr.bf16.mxu1 %v19735_v10  ;;  %v19787_v10 = vld [vmem:[%s22422_s27 + $0x3430] ss:$136 sps:$4 sm:$0xff]  }
 0x2a0   : > { %14051 = vmatpush2.bf16.msra.mxu0 %v19730_v11  ;;  %v19792_v11 = vld [vmem:[%s22422_s27 + $0x2224] ss:$136 sps:$4 sm:$0xff]  }
 0x2a1   : > { %14092 = vmatpush2.bf16.msra.mxu1 %v19733_v12  ;;  %14052 = vmatprep.subr.bf16.mxu0 %v19738_v47  ;;  %v19795_v12 = vld [vmem:[%s22422_s27 + $0x3324] ss:$136 sps:$4 sm:$0xff]   ;;  %v19790_v47 = vld [vmem:[%s22422_s27 + $0x2220] ss:$136 sps:$4 sm:$0xff]  }
 0x2a2   : > { %14093 = vmatprep.subr.bf16.mxu1 %v19741_v16  ;;  %v19793_v16 = vld [vmem:[%s22422_s27 + $0x3320] ss:$136 sps:$4 sm:$0xff]  }
 0x2a4   : > { %14053 = vmatpush2.bf16.msra.mxu0 %v19736_v19  ;;  %v19798_v19 = vld [vmem:[%s22422_s27 + $0x3214] ss:$136 sps:$4 sm:$0xff]  }
 0x2a5   : > { %14094 = vmatpush2.bf16.msra.mxu1 %v19739_v20  ;;  %14054 = vmatprep.subr.bf16.mxu0 %v19744_v21  ;;  %v19801_v20 = vld [vmem:[%s22422_s27 + $0x4314] ss:$136 sps:$4 sm:$0xff]   ;;  %v19796_v21 = vld [vmem:[%s22422_s27 + $0x3210] ss:$136 sps:$4 sm:$0xff]  }
 0x2a6   : > { %14095 = vmatprep.subr.bf16.mxu1 %v19747_v22  ;;  %v19799_v22 = vld [vmem:[%s22422_s27 + $0x4310] ss:$136 sps:$4 sm:$0xff]  }
 0x2a8   : > { %14055 = vmatpush2.bf16.msra.mxu0 %v19742_v23  ;;  %v19804_v23 = vld [vmem:[%s22422_s27 + $0x3104] ss:$136 sps:$4 sm:$0xff]  }
 0x2a9   : > { %14096 = vmatpush2.bf16.msra.mxu1 %v19745_v24  ;;  %14106 = vmatprep.subr.bf16.mxu0 %v19750_v25  ;;  %v19807_v24 = vld [vmem:[%s22422_s27 + $0x4204] ss:$136 sps:$4 sm:$0xff]   ;;  %v19802_v25 = vld [vmem:[%s22422_s27 + $0x3100] ss:$136 sps:$4 sm:$0xff]  }
 0x2aa   : > { %14147 = vmatprep.subr.bf16.mxu1 %v19753_v26  ;;  %v19805_v26 = vld [vmem:[%s22422_s27 + $0x4200] ss:$136 sps:$4 sm:$0xff]  }
 0x2ab   : > { %v13812_v39 = vpop.f32.mrf.mxu0  ;;  %14057 = vmatmul.mubr.bf16.vlgmr.msra.gmra.mxu0 %v22511_v7 }
 0x2ac   : > { %v13853_v43 = vpop.f32.mrf.mxu1  ;;  %14098 = vmatmul.mubr.bf16.vlgmr.msra.gmra.mxu1 %v22513_v8  ;;  %v13813_v45 = vadd.f32 %v13812_v39, %v13772_v35  ;;  %14107 = vmatpush1.bf16.msra.mxu0 %v19748_v31  ;;  %v19810_v31 = vld [vmem:[%s22422_s27 + $0x2ff4] ss:$136 sps:$4 sm:$0xff]   ;;  %v19816_v35 = vld [vmem:[%s22422_s27 + $0x2ee4] ss:$136 sps:$4 sm:$0xff]   ;;  %v19814_v39 = vld [vmem:[%s22422_s27 + $0x2ee0] ss:$136 sps:$4 sm:$0xff]  }
 0x2ad   : > { %14148 = vmatpush1.bf16.msra.mxu1 %v19751_v32  ;;  %v13814_v13 = vpop.f32.mrf.mxu0  ;;  %14108 = vmatprep.subr.bf16.mxu0 %v19756_v33  ;;  %v19813_v32 = vld [vmem:[%s22422_s27 + $0x40f4] ss:$136 sps:$4 sm:$0xff]   ;;  %v19808_v33 = vld [vmem:[%s22422_s27 + $0x2ff0] ss:$136 sps:$4 sm:$0xff]  }
 0x2ae   : > { %v13855_v50 = vpop.f32.mrf.mxu1  ;;  %14149 = vmatprep.subr.bf16.mxu1 %v19759_v34  ;;  %v13854_v54 = vadd.f32 %v13853_v43, %v13813_v45  ;;  %v13815_v55 = vadd.f32 %v13814_v13, %v13774_v44  ;;  %14138 = vmatprep.mubr.bf16.mxu0 %v22551_v37  ;;  %v19811_v34 = vld [vmem:[%s22422_s27 + $0x40f0] ss:$136 sps:$4 sm:$0xff]   ;;  %v19822_v43 = vld [vmem:[%s22422_s27 + $0x2dd4] ss:$136 sps:$4 sm:$0xff]   ;;  %v19828_v13 = vld [vmem:[%s22422_s27 + $0x2cc4] ss:$136 sps:$4 sm:$0xff]  }
 0x2af   : > { %14179 = vmatprep.mubr.bf16.mxu1 %v22555_v38  ;;  %v13816_v15 = vpop.f32.mrf.mxu0  ;;  %v19825_v44 = vld [vmem:[%s22422_s27 + $0x3ed4] ss:$136 sps:$4 sm:$0xff]   ;;  %v19820_v45 = vld [vmem:[%s22422_s27 + $0x2dd0] ss:$136 sps:$4 sm:$0xff]  }
 0x2b0   : > { %v13857_v46 = vpop.f32.mrf.mxu1  ;;  %v16160_v58 = vadd.f32 %v13854_v54, %v254_v40  ;;  %v13856_v59 = vadd.f32 %v13855_v50, %v13815_v55  ;;  %14109 = vmatpush1.bf16.msra.mxu0 %v19754_v36  ;;  %v19819_v36 = vld [vmem:[%s22422_s27 + $0x3fe4] ss:$136 sps:$4 sm:$0xff]   ;;  %v19817_v40 = vld [vmem:[%s22422_s27 + $0x3fe0] ss:$136 sps:$4 sm:$0xff]   ;;  %v19837_v54 = vld [vmem:[%s22422_s27 + $0x3cb4] ss:$136 sps:$4 sm:$0xff]  }
 0x2b1   : > { %14150 = vmatpush1.bf16.msra.mxu1 %v19757_v49  ;;  %v13817_v60 = vpop.f32.mrf.mxu0  ;;  %14110 = vmatprep.subr.bf16.mxu0 %v19762_v51  ;;  %v19823_v49 = vld [vmem:[%s22422_s27 + $0x3ed0] ss:$136 sps:$4 sm:$0xff]   ;;  %v19826_v50 = vld [vmem:[%s22422_s27 + $0x2cc0] ss:$136 sps:$4 sm:$0xff]   ;;  %v19843_v15 = vld [vmem:[%s22422_s27 + $0x3ba4] ss:$136 sps:$4 sm:$0xff]  }
 0x2b2   : > { %v13858_v27 = vpop.f32.mrf.mxu1  ;;  %14151 = vmatprep.subr.bf16.mxu1 %v19765_v53  ;;  %16194 = vst [vmem:[#allocation2 + $0x108] sm:$0xff] %v16160_v58  ;;  %v16161_v62 = vadd.f32 %v13856_v59, %v255_v14  ;;  %v19831_v14 = vld [vmem:[%s22422_s27 + $0x3dc4] ss:$136 sps:$4 sm:$0xff]   ;;  %v19829_v51 = vld [vmem:[%s22422_s27 + $0x3dc0] ss:$136 sps:$4 sm:$0xff]  }
 0x2b3   : > { %v19834_v53 = vld [vmem:[%s22422_s27 + $0x2bb4] ss:$136 sps:$4 sm:$0xff]   ;;  %v19832_v55 = vld [vmem:[%s22422_s27 + $0x2bb0] ss:$136 sps:$4 sm:$0xff]   ;;  %v19838_v46 = vld [vmem:[%s22422_s27 + $0x2aa0] ss:$136 sps:$4 sm:$0xff]  }
 0x2b4   : > { %16195 = vst [vmem:[#allocation2 + $0x68] sm:$0xff] %v16161_v62  ;;  %14111 = vmatpush1.bf16.msra.mxu0 %v19760_v56  ;;  %v19835_v56 = vld [vmem:[%s22422_s27 + $0x3cb0] ss:$136 sps:$4 sm:$0xff]   ;;  %v19841_v58 = vld [vmem:[%s22422_s27 + $0x3ba0] ss:$136 sps:$4 sm:$0xff]  }
 0x2b5   : > { %14152 = vmatpush1.bf16.msra.mxu1 %v19763_v57  ;;  %14112 = vmatprep.subr.bf16.mxu0 %v19768_v28  ;;  %v19840_v57 = vld [vmem:[%s22422_s27 + $0x2aa4] ss:$136 sps:$4 sm:$0xff]   ;;  %v19844_v27 = vld [vmem:[%s22422_s27 + $0x798] ss:$136 sps:$4 sm:$0xff]  }
 0x2b6   : > { %14153 = vmatprep.subr.bf16.mxu1 %v19771_v61  ;;  %v19846_v59 = vld [vmem:[%s22422_s27 + $0x79c] ss:$136 sps:$4 sm:$0xff]   ;;  %v19847_v28 = vld [vmem:[%s22422_s27 + $0x1898] ss:$136 sps:$4 sm:$0xff]   ;;  %v19852_v61 = vld [vmem:[%s22422_s27 + $0x68c] ss:$136 sps:$4 sm:$0xff]  }
 0x2b7   : > { %v19849_v60 = vld [vmem:[%s22422_s27 + $0x189c] ss:$136 sps:$4 sm:$0xff]   ;;  %v19855_v62 = vld [vmem:[%s22422_s27 + $0x178c] ss:$136 sps:$4 sm:$0xff]  }
 0x2b8   : > { %14113 = vmatpush1.bf16.msra.mxu0 %v19766_v63  ;;  %v19850_v63 = vld [vmem:[%s22422_s27 + $0x688] ss:$136 sps:$4 sm:$0xff]  }
 0x2b9   : > { %14154 = vmatpush1.bf16.msra.mxu1 %v19769_v0  ;;  %14114 = vmatprep.subr.bf16.mxu0 %v19774_v1  ;;  %v19853_v0 = vld [vmem:[%s22422_s27 + $0x1788] ss:$136 sps:$4 sm:$0xff]  }
 0x2ba   : > { %14155 = vmatprep.subr.bf16.mxu1 %v19777_v2 }
 0x2bc   : > { %14115 = vmatpush1.bf16.msra.mxu0 %v19772_v3 }
 0x2bd   : > { %14156 = vmatpush1.bf16.msra.mxu1 %v19775_v29  ;;  %14116 = vmatprep.subr.bf16.mxu0 %v19780_v30  ;;  %v19858_v30 = vld [vmem:[%s22422_s27 + $0x57c] ss:$136 sps:$4 sm:$0xff]  }
 0x2be   : > { %14157 = vmatprep.subr.bf16.mxu1 %v19783_v4  ;;  %v19861_v4 = vld [vmem:[%s22422_s27 + $0x167c] ss:$136 sps:$4 sm:$0xff]  }
 0x2c0   : > { %14117 = vmatpush1.bf16.msra.mxu0 %v19778_v5  ;;  %v19856_v5 = vld [vmem:[%s22422_s27 + $0x578] ss:$136 sps:$4 sm:$0xff]  }
 0x2c1   : > { %14158 = vmatpush1.bf16.msra.mxu1 %v19781_v6  ;;  %14118 = vmatprep.subr.bf16.mxu0 %v19786_v41  ;;  %v19859_v6 = vld [vmem:[%s22422_s27 + $0x1678] ss:$136 sps:$4 sm:$0xff]  }
 0x2c2   : > { %14159 = vmatprep.subr.bf16.mxu1 %v19789_v42 }
 0x2c4   : > { %14119 = vmatpush1.bf16.msra.mxu0 %v19784_v9 }
 0x2c5   : > { %14160 = vmatpush1.bf16.msra.mxu1 %v19787_v10  ;;  %14120 = vmatprep.subr.bf16.mxu0 %v19792_v11  ;;  %v19864_v11 = vld [vmem:[%s22422_s27 + $0x46c] ss:$136 sps:$4 sm:$0xff]  }
 0x2c6   : > { %14161 = vmatprep.subr.bf16.mxu1 %v19795_v12  ;;  %v19867_v12 = vld [vmem:[%s22422_s27 + $0x156c] ss:$136 sps:$4 sm:$0xff]  }
 0x2c8   : > { %14121 = vmatpush1.bf16.msra.mxu0 %v19790_v47  ;;  %v19862_v47 = vld [vmem:[%s22422_s27 + $0x468] ss:$136 sps:$4 sm:$0xff]  }
 0x2c9   : > { %14162 = vmatpush1.bf16.msra.mxu1 %v19793_v16  ;;  %14122 = vmatprep.subr.bf16.mxu0 %v19798_v19  ;;  %v19865_v16 = vld [vmem:[%s22422_s27 + $0x1568] ss:$136 sps:$4 sm:$0xff]   ;;  %v19870_v19 = vld [vmem:[%s22422_s27 + $0x35c] ss:$136 sps:$4 sm:$0xff]  }
 0x2ca   : > { %14163 = vmatprep.subr.bf16.mxu1 %v19801_v20  ;;  %v19873_v20 = vld [vmem:[%s22422_s27 + $0x145c] ss:$136 sps:$4 sm:$0xff]  }
 0x2cc   : > { %14123 = vmatpush2.bf16.msra.mxu0 %v19796_v21  ;;  %v19868_v21 = vld [vmem:[%s22422_s27 + $0x358] ss:$136 sps:$4 sm:$0xff]  }
 0x2cd   : > { %14164 = vmatpush2.bf16.msra.mxu1 %v19799_v22  ;;  %14124 = vmatprep.subr.bf16.mxu0 %v19804_v23  ;;  %v19871_v22 = vld [vmem:[%s22422_s27 + $0x1458] ss:$136 sps:$4 sm:$0xff]   ;;  %v19876_v23 = vld [vmem:[%s22422_s27 + $0x24c] ss:$136 sps:$4 sm:$0xff]  }
 0x2ce   : > { %14165 = vmatprep.subr.bf16.mxu1 %v19807_v24  ;;  %v19879_v24 = vld [vmem:[%s22422_s27 + $0x134c] ss:$136 sps:$4 sm:$0xff]  }
 0x2d0   : > { %14125 = vmatpush2.bf16.msra.mxu0 %v19802_v25  ;;  %v19874_v25 = vld [vmem:[%s22422_s27 + $0x248] ss:$136 sps:$4 sm:$0xff]  }
 0x2d1   : > { %14166 = vmatpush2.bf16.msra.mxu1 %v19805_v26  ;;  %14126 = vmatprep.subr.bf16.mxu0 %v19810_v31  ;;  %v19877_v26 = vld [vmem:[%s22422_s27 + $0x1348] ss:$136 sps:$4 sm:$0xff]   ;;  %v19882_v31 = vld [vmem:[%s22422_s27 + $0x13c] ss:$136 sps:$4 sm:$0xff]  }
 0x2d2   : > { %14167 = vmatprep.subr.bf16.mxu1 %v19813_v32  ;;  %v19885_v32 = vld [vmem:[%s22422_s27 + $0x123c] ss:$136 sps:$4 sm:$0xff]  }
 0x2d4   : > { %14127 = vmatpush2.bf16.msra.mxu0 %v19808_v33  ;;  %v19880_v33 = vld [vmem:[%s22422_s27 + $0x138] ss:$136 sps:$4 sm:$0xff]  }
 0x2d5   : > { %14168 = vmatpush2.bf16.msra.mxu1 %v19811_v34  ;;  %14128 = vmatprep.subr.bf16.mxu0 %v19816_v35  ;;  %v19883_v34 = vld [vmem:[%s22422_s27 + $0x1238] ss:$136 sps:$4 sm:$0xff]   ;;  %v19888_v35 = vld [vmem:[%s22422_s27 + $0x2c] ss:$136 sps:$4 sm:$0xff]  }
 0x2d6   : > { %14169 = vmatprep.subr.bf16.mxu1 %v19819_v36  ;;  %v19891_v36 = vld [vmem:[%s22422_s27 + $0x112c] ss:$136 sps:$4 sm:$0xff]  }
 0x2d8   : > { %14129 = vmatpush2.bf16.msra.mxu0 %v19814_v39  ;;  %v19886_v39 = vld [vmem:[%s22422_s27 + $0x28] ss:$136 sps:$4 sm:$0xff]  }
 0x2d9   : > { %14170 = vmatpush2.bf16.msra.mxu1 %v19817_v40  ;;  %14130 = vmatprep.subr.bf16.mxu0 %v19822_v43  ;;  %v19889_v40 = vld [vmem:[%s22422_s27 + $0x1128] ss:$136 sps:$4 sm:$0xff]   ;;  %v19894_v43 = vld [vmem:[%s22422_s27 + $0x101c] ss:$136 sps:$4 sm:$0xff]  }
 0x2da   : > { %14171 = vmatprep.subr.bf16.mxu1 %v19825_v44  ;;  %v19897_v44 = vld [vmem:[%s22422_s27 + $0x211c] ss:$136 sps:$4 sm:$0xff]  }
 0x2dc   : > { %14131 = vmatpush2.bf16.msra.mxu0 %v19820_v45  ;;  %v19892_v45 = vld [vmem:[%s22422_s27 + $0x1018] ss:$136 sps:$4 sm:$0xff]  }
 0x2dd   : > { %14172 = vmatpush2.bf16.msra.mxu1 %v19823_v49  ;;  %14132 = vmatprep.subr.bf16.mxu0 %v19828_v13  ;;  %v19895_v49 = vld [vmem:[%s22422_s27 + $0x2118] ss:$136 sps:$4 sm:$0xff]   ;;  %v19900_v13 = vld [vmem:[%s22422_s27 + $0xf0c] ss:$136 sps:$4 sm:$0xff]  }
 0x2de   : > { %14173 = vmatprep.subr.bf16.mxu1 %v19831_v14  ;;  %v19903_v14 = vld [vmem:[%s22422_s27 + $0x200c] ss:$136 sps:$4 sm:$0xff]  }
 0x2e0   : > { %14133 = vmatpush2.bf16.msra.mxu0 %v19826_v50  ;;  %v19898_v50 = vld [vmem:[%s22422_s27 + $0xf08] ss:$136 sps:$4 sm:$0xff]  }
 0x2e1   : > { %14174 = vmatpush2.bf16.msra.mxu1 %v19829_v51  ;;  %14134 = vmatprep.subr.bf16.mxu0 %v19834_v53  ;;  %v19901_v51 = vld [vmem:[%s22422_s27 + $0x2008] ss:$136 sps:$4 sm:$0xff]   ;;  %v19906_v53 = vld [vmem:[%s22422_s27 + $0xdfc] ss:$136 sps:$4 sm:$0xff]  }
 0x2e2   : > { %14175 = vmatprep.subr.bf16.mxu1 %v19837_v54  ;;  %v19909_v54 = vld [vmem:[%s22422_s27 + $0x1efc] ss:$136 sps:$4 sm:$0xff]  }
 0x2e4   : > { %14135 = vmatpush2.bf16.msra.mxu0 %v19832_v55  ;;  %v19904_v55 = vld [vmem:[%s22422_s27 + $0xdf8] ss:$136 sps:$4 sm:$0xff]  }
 0x2e5   : > { %14176 = vmatpush2.bf16.msra.mxu1 %v19835_v56  ;;  %14136 = vmatprep.subr.bf16.mxu0 %v19840_v57  ;;  %v19907_v56 = vld [vmem:[%s22422_s27 + $0x1ef8] ss:$136 sps:$4 sm:$0xff]   ;;  %v19912_v57 = vld [vmem:[%s22422_s27 + $0xcec] ss:$136 sps:$4 sm:$0xff]  }
 0x2e6   : > { %14177 = vmatprep.subr.bf16.mxu1 %v19843_v15  ;;  %v19915_v15 = vld [vmem:[%s22422_s27 + $0x1dec] ss:$136 sps:$4 sm:$0xff]  }
 0x2e8   : > { %14137 = vmatpush2.bf16.msra.mxu0 %v19838_v46  ;;  %v19910_v46 = vld [vmem:[%s22422_s27 + $0xce8] ss:$136 sps:$4 sm:$0xff]  }
 0x2e9   : > { %14178 = vmatpush2.bf16.msra.mxu1 %v19841_v58  ;;  %14188 = vmatprep.subr.bf16.mxu0 %v19846_v59  ;;  %v19913_v58 = vld [vmem:[%s22422_s27 + $0x1de8] ss:$136 sps:$4 sm:$0xff]   ;;  %v19918_v59 = vld [vmem:[%s22422_s27 + $0xbdc] ss:$136 sps:$4 sm:$0xff]  }
 0x2ea   : > { %14229 = vmatprep.subr.bf16.mxu1 %v19849_v60  ;;  %v19921_v60 = vld [vmem:[%s22422_s27 + $0x1cdc] ss:$136 sps:$4 sm:$0xff]  }
 0x2eb   : > { %v23191_v1 = vpop.f32.mrf.mxu0  ;;  %14139 = vmatmul.mubr.bf16.vlgmr.msra.gmra.mxu0 %v22599_v17 }
 0x2ec   : > { %v23193_v2 = vpop.f32.mrf.mxu1  ;;  %14180 = vmatmul.mubr.bf16.vlgmr.msra.gmra.mxu1 %v22603_v18  ;;  %14189 = vmatpush1.bf16.msra.mxu0 %v19844_v27  ;;  %v19916_v27 = vld [vmem:[%s22422_s27 + $0xbd8] ss:$136 sps:$4 sm:$0xff]  }
 0x2ed   : > { %14230 = vmatpush1.bf16.msra.mxu1 %v19847_v28  ;;  %v23197_v3 = vpop.f32.mrf.mxu0  ;;  %14190 = vmatprep.subr.bf16.mxu0 %v19852_v61  ;;  %v19919_v28 = vld [vmem:[%s22422_s27 + $0x1cd8] ss:$136 sps:$4 sm:$0xff]   ;;  %v19924_v61 = vld [vmem:[%s22422_s27 + $0xacc] ss:$136 sps:$4 sm:$0xff]  }
 0x2ee   : > { %v23199_v29 = vpop.f32.mrf.mxu1  ;;  %14231 = vmatprep.subr.bf16.mxu1 %v19855_v62  ;;  %14220 = vmatprep.mubr.bf16.mxu0 %v22484_v48  ;;  %v19927_v62 = vld [vmem:[%s22422_s27 + $0x1bcc] ss:$136 sps:$4 sm:$0xff]  }
 0x2ef   : > { %14261 = vmatprep.mubr.bf16.mxu1 %v22489_v52  ;;  %v13898_v41 = vpop.f32.mrf.mxu0 }
 0x2f0   : > { %v13939_v42 = vpop.f32.mrf.mxu1  ;;  %14191 = vmatpush1.bf16.msra.mxu0 %v19850_v63  ;;  %v19922_v63 = vld [vmem:[%s22422_s27 + $0xac8] ss:$136 sps:$4 sm:$0xff]   ;;  %v19936_v41 = vld [vmem:[%s22422_s27 + $0x8ac] ss:$136 sps:$4 sm:$0xff]  }
 0x2f1   : > { %14232 = vmatpush1.bf16.msra.mxu1 %v19853_v0  ;;  %v13899_v9 = vpop.f32.mrf.mxu0  ;;  %14192 = vmatprep.subr.bf16.mxu0 %v19858_v30  ;;  %v19925_v0 = vld [vmem:[%s22422_s27 + $0x1bc8] ss:$136 sps:$4 sm:$0xff]   ;;  %v19930_v30 = vld [vmem:[%s22422_s27 + $0x9bc] ss:$136 sps:$4 sm:$0xff]   ;;  %v19939_v42 = vld [vmem:[%s22422_s27 + $0x19ac] ss:$136 sps:$4 sm:$0xff]  }
 0x2f2   : > { %v13940_v10 = vpop.f32.mrf.mxu1  ;;  %14233 = vmatprep.subr.bf16.mxu1 %v19861_v4  ;;  %v19933_v4 = vld [vmem:[%s22422_s27 + $0x1abc] ss:$136 sps:$4 sm:$0xff]   ;;  %v19934_v9 = vld [vmem:[%s22422_s27 + $0x8a8] ss:$136 sps:$4 sm:$0xff]  }
 0x2f3   : > { %v19937_v10 = vld [vmem:[%s22422_s27 + $0x19a8] ss:$136 sps:$4 sm:$0xff]  }
 0x2f4   : > { %14193 = vmatpush1.bf16.msra.mxu0 %v19856_v5  ;;  %v19928_v5 = vld [vmem:[%s22422_s27 + $0x9b8] ss:$136 sps:$4 sm:$0xff]  }
 0x2f5   : > { %14234 = vmatpush1.bf16.msra.mxu1 %v19859_v6  ;;  %14194 = vmatprep.subr.bf16.mxu0 %v19864_v11  ;;  %v19931_v6 = vld [vmem:[%s22422_s27 + $0x1ab8] ss:$136 sps:$4 sm:$0xff]   ;;  %v19942_v11 = vld [vmem:[%s22422_s27 + $0x299c] ss:$136 sps:$4 sm:$0xff]  }
 0x2f6   : > { %14235 = vmatprep.subr.bf16.mxu1 %v19867_v12  ;;  %v19945_v12 = vld [vmem:[%s22422_s27 + $0x3a9c] ss:$136 sps:$4 sm:$0xff]  }
 0x2f8   : > { %14195 = vmatpush1.bf16.msra.mxu0 %v19862_v47  ;;  %v19940_v47 = vld [vmem:[%s22422_s27 + $0x2998] ss:$136 sps:$4 sm:$0xff]  }
 0x2f9   : > { %14236 = vmatpush1.bf16.msra.mxu1 %v19865_v16  ;;  %14196 = vmatprep.subr.bf16.mxu0 %v19870_v19  ;;  %v19943_v16 = vld [vmem:[%s22422_s27 + $0x3a98] ss:$136 sps:$4 sm:$0xff]   ;;  %v19948_v19 = vld [vmem:[%s22422_s27 + $0x288c] ss:$136 sps:$4 sm:$0xff]  }
 0x2fa   : > { %14237 = vmatprep.subr.bf16.mxu1 %v19873_v20  ;;  %v19951_v20 = vld [vmem:[%s22422_s27 + $0x398c] ss:$136 sps:$4 sm:$0xff]  }
 0x2fc   : > { %14197 = vmatpush1.bf16.msra.mxu0 %v19868_v21  ;;  %v13936_v21 = vadd.f32 %v23193_v2, %v23191_v1  ;;  %v257_v2 = vld [vmem:[#allocation2 + $0x18] sm:$0xff] }
 0x2fd   : > { %14238 = vmatpush1.bf16.msra.mxu1 %v19871_v22  ;;  %14198 = vmatprep.subr.bf16.mxu0 %v19876_v23  ;;  %v19946_v22 = vld [vmem:[%s22422_s27 + $0x2888] ss:$136 sps:$4 sm:$0xff]  }
 0x2fe   : > { %14239 = vmatprep.subr.bf16.mxu1 %v19879_v24  ;;  %v256_v24 = vld [vmem:[#allocation2 + $0x30] sm:$0xff] }
 0x300   : > { %14199 = vmatpush1.bf16.msra.mxu0 %v19874_v25 }
 0x301   : > { %14240 = vmatpush1.bf16.msra.mxu1 %v19877_v26  ;;  %14200 = vmatprep.subr.bf16.mxu0 %v19882_v31  ;;  %v13938_v26 = vadd.f32 %v23199_v29, %v23197_v3 }
 0x302   : > { %14241 = vmatprep.subr.bf16.mxu1 %v19885_v32  ;;  %v19949_v32 = vld [vmem:[%s22422_s27 + $0x3988] ss:$136 sps:$4 sm:$0xff]  }
 0x304   : > { %14201 = vmatpush1.bf16.msra.mxu0 %v19880_v33 }
 0x305   : > { %14242 = vmatpush1.bf16.msra.mxu1 %v19883_v34  ;;  %14202 = vmatprep.subr.bf16.mxu0 %v19888_v35  ;;  %v19954_v34 = vld [vmem:[%s22422_s27 + $0x277c] ss:$136 sps:$4 sm:$0xff]  }
 0x306   : > { %14243 = vmatprep.subr.bf16.mxu1 %v19891_v36  ;;  %v19957_v35 = vld [vmem:[%s22422_s27 + $0x387c] ss:$136 sps:$4 sm:$0xff]  }
 0x308   : > { %14203 = vmatpush1.bf16.msra.mxu0 %v19886_v39 }
 0x309   : > { %14244 = vmatpush1.bf16.msra.mxu1 %v19889_v40  ;;  %14204 = vmatprep.subr.bf16.mxu0 %v19894_v43  ;;  %v19952_v40 = vld [vmem:[%s22422_s27 + $0x2778] ss:$136 sps:$4 sm:$0xff]  }
 0x30a   : > { %14245 = vmatprep.subr.bf16.mxu1 %v19897_v44  ;;  %v19955_v43 = vld [vmem:[%s22422_s27 + $0x3878] ss:$136 sps:$4 sm:$0xff]  }
 0x30c   : > { %14205 = vmatpush2.bf16.msra.mxu0 %v19892_v45 }
 0x30d   : > { %14246 = vmatpush2.bf16.msra.mxu1 %v19895_v49  ;;  %14206 = vmatprep.subr.bf16.mxu0 %v19900_v13 }
 0x30e   : > { %14247 = vmatprep.subr.bf16.mxu1 %v19903_v14  ;;  %v19960_v14 = vld [vmem:[%s22422_s27 + $0x266c] ss:$136 sps:$4 sm:$0xff]  }
 0x310   : > { %14207 = vmatpush2.bf16.msra.mxu0 %v19898_v50  ;;  %v19963_v50 = vld [vmem:[%s22422_s27 + $0x376c] ss:$136 sps:$4 sm:$0xff]  }
 0x311   : > { %14248 = vmatpush2.bf16.msra.mxu1 %v19901_v51  ;;  %14208 = vmatprep.subr.bf16.mxu0 %v19906_v53  ;;  %v19958_v53 = vld [vmem:[%s22422_s27 + $0x2668] ss:$136 sps:$4 sm:$0xff]  }
 0x312   : > { %14249 = vmatprep.subr.bf16.mxu1 %v19909_v54  ;;  %v19961_v54 = vld [vmem:[%s22422_s27 + $0x3768] ss:$136 sps:$4 sm:$0xff]  }
 0x314   : > { %14209 = vmatpush2.bf16.msra.mxu0 %v19904_v55  ;;  %v19966_v55 = vld [vmem:[%s22422_s27 + $0x255c] ss:$136 sps:$4 sm:$0xff]  }
 0x315   : > { %14250 = vmatpush2.bf16.msra.mxu1 %v19907_v56  ;;  %14210 = vmatprep.subr.bf16.mxu0 %v19912_v57  ;;  %v19969_v56 = vld [vmem:[%s22422_s27 + $0x365c] ss:$136 sps:$4 sm:$0xff]   ;;  %v19964_v57 = vld [vmem:[%s22422_s27 + $0x2558] ss:$136 sps:$4 sm:$0xff]  }
 0x316   : > { %14251 = vmatprep.subr.bf16.mxu1 %v19915_v15  ;;  %v19967_v15 = vld [vmem:[%s22422_s27 + $0x3658] ss:$136 sps:$4 sm:$0xff]  }
 0x318   : > { %14211 = vmatpush2.bf16.msra.mxu0 %v19910_v46  ;;  %v19972_v46 = vld [vmem:[%s22422_s27 + $0x244c] ss:$136 sps:$4 sm:$0xff]  }
 0x319   : > { %14252 = vmatpush2.bf16.msra.mxu1 %v19913_v58  ;;  %14212 = vmatprep.subr.bf16.mxu0 %v19918_v59  ;;  %v19975_v58 = vld [vmem:[%s22422_s27 + $0x354c] ss:$136 sps:$4 sm:$0xff]   ;;  %v19970_v59 = vld [vmem:[%s22422_s27 + $0x2448] ss:$136 sps:$4 sm:$0xff]  }
 0x31a   : > { %14253 = vmatprep.subr.bf16.mxu1 %v19921_v60  ;;  %v19973_v60 = vld [vmem:[%s22422_s27 + $0x3548] ss:$136 sps:$4 sm:$0xff]  }
 0x31c   : > { %14213 = vmatpush2.bf16.msra.mxu0 %v19916_v27  ;;  %v19978_v27 = vld [vmem:[%s22422_s27 + $0x233c] ss:$136 sps:$4 sm:$0xff]  }
 0x31d   : > { %14254 = vmatpush2.bf16.msra.mxu1 %v19919_v28  ;;  %14214 = vmatprep.subr.bf16.mxu0 %v19924_v61  ;;  %v19981_v28 = vld [vmem:[%s22422_s27 + $0x343c] ss:$136 sps:$4 sm:$0xff]   ;;  %v19976_v61 = vld [vmem:[%s22422_s27 + $0x2338] ss:$136 sps:$4 sm:$0xff]  }
 0x31e   : > { %14255 = vmatprep.subr.bf16.mxu1 %v19927_v62  ;;  %v19979_v62 = vld [vmem:[%s22422_s27 + $0x3438] ss:$136 sps:$4 sm:$0xff]  }
 0x320   : > { %14215 = vmatpush2.bf16.msra.mxu0 %v19922_v63  ;;  %v19984_v63 = vld [vmem:[%s22422_s27 + $0x222c] ss:$136 sps:$4 sm:$0xff]  }
 0x321   : > { %14256 = vmatpush2.bf16.msra.mxu1 %v19925_v0  ;;  %14216 = vmatprep.subr.bf16.mxu0 %v19930_v30  ;;  %v19987_v0 = vld [vmem:[%s22422_s27 + $0x332c] ss:$136 sps:$4 sm:$0xff]   ;;  %v19982_v30 = vld [vmem:[%s22422_s27 + $0x2228] ss:$136 sps:$4 sm:$0xff]  }
 0x322   : > { %14257 = vmatprep.subr.bf16.mxu1 %v19933_v4  ;;  %v19985_v4 = vld [vmem:[%s22422_s27 + $0x3328] ss:$136 sps:$4 sm:$0xff]  }
 0x324   : > { %14217 = vmatpush2.bf16.msra.mxu0 %v19928_v5  ;;  %v19990_v5 = vld [vmem:[%s22422_s27 + $0x321c] ss:$136 sps:$4 sm:$0xff]  }
 0x325   : > { %14258 = vmatpush2.bf16.msra.mxu1 %v19931_v6  ;;  %14218 = vmatprep.subr.bf16.mxu0 %v19936_v41  ;;  %v19993_v6 = vld [vmem:[%s22422_s27 + $0x431c] ss:$136 sps:$4 sm:$0xff]   ;;  %v19988_v41 = vld [vmem:[%s22422_s27 + $0x3218] ss:$136 sps:$4 sm:$0xff]  }
 0x326   : > { %14259 = vmatprep.subr.bf16.mxu1 %v19939_v42  ;;  %v19991_v42 = vld [vmem:[%s22422_s27 + $0x4318] ss:$136 sps:$4 sm:$0xff]  }
 0x328   : > { %14219 = vmatpush2.bf16.msra.mxu0 %v19934_v9  ;;  %v19996_v9 = vld [vmem:[%s22422_s27 + $0x310c] ss:$136 sps:$4 sm:$0xff]  }
 0x329   : > { %14260 = vmatpush2.bf16.msra.mxu1 %v19937_v10  ;;  %14270 = vmatprep.subr.bf16.mxu0 %v19942_v11  ;;  %v19999_v10 = vld [vmem:[%s22422_s27 + $0x420c] ss:$136 sps:$4 sm:$0xff]   ;;  %v19994_v11 = vld [vmem:[%s22422_s27 + $0x3108] ss:$136 sps:$4 sm:$0xff]  }
 0x32a   : > { %14311 = vmatprep.subr.bf16.mxu1 %v19945_v12  ;;  %v19997_v12 = vld [vmem:[%s22422_s27 + $0x4208] ss:$136 sps:$4 sm:$0xff]  }
 0x32b   : > { %v13976_v23 = vpop.f32.mrf.mxu0  ;;  %14221 = vmatmul.mubr.bf16.vlgmr.msra.gmra.mxu0 %v22511_v7 }
 0x32c   : > { %v14017_v25 = vpop.f32.mrf.mxu1  ;;  %14262 = vmatmul.mubr.bf16.vlgmr.msra.gmra.mxu1 %v22513_v8  ;;  %v13977_v31 = vadd.f32 %v13976_v23, %v13936_v21  ;;  %14271 = vmatpush1.bf16.msra.mxu0 %v19940_v47  ;;  %v20002_v47 = vld [vmem:[%s22422_s27 + $0x2ffc] ss:$136 sps:$4 sm:$0xff]   ;;  %v20008_v21 = vld [vmem:[%s22422_s27 + $0x2eec] ss:$136 sps:$4 sm:$0xff]   ;;  %v20006_v23 = vld [vmem:[%s22422_s27 + $0x2ee8] ss:$136 sps:$4 sm:$0xff]  }
 0x32d   : > { %14312 = vmatpush1.bf16.msra.mxu1 %v19943_v16  ;;  %v13978_v1 = vpop.f32.mrf.mxu0  ;;  %14272 = vmatprep.subr.bf16.mxu0 %v19948_v19  ;;  %v20005_v16 = vld [vmem:[%s22422_s27 + $0x40fc] ss:$136 sps:$4 sm:$0xff]   ;;  %v20000_v19 = vld [vmem:[%s22422_s27 + $0x2ff8] ss:$136 sps:$4 sm:$0xff]  }
 0x32e   : > { %v14019_v33 = vpop.f32.mrf.mxu1  ;;  %14313 = vmatprep.subr.bf16.mxu1 %v19951_v20  ;;  %v14018_v36 = vadd.f32 %v14017_v25, %v13977_v31  ;;  %v13979_v39 = vadd.f32 %v13978_v1, %v13938_v26  ;;  %14302 = vmatprep.mubr.bf16.mxu0 %v22551_v37  ;;  %v20003_v20 = vld [vmem:[%s22422_s27 + $0x40f8] ss:$136 sps:$4 sm:$0xff]   ;;  %v20014_v25 = vld [vmem:[%s22422_s27 + $0x2ddc] ss:$136 sps:$4 sm:$0xff]   ;;  %v20020_v1 = vld [vmem:[%s22422_s27 + $0x2ccc] ss:$136 sps:$4 sm:$0xff]  }
 0x32f   : > { %14343 = vmatprep.mubr.bf16.mxu1 %v22555_v38  ;;  %v13980_v3 = vpop.f32.mrf.mxu0  ;;  %v20017_v26 = vld [vmem:[%s22422_s27 + $0x3edc] ss:$136 sps:$4 sm:$0xff]   ;;  %v20012_v31 = vld [vmem:[%s22422_s27 + $0x2dd8] ss:$136 sps:$4 sm:$0xff]  }
 0x330   : > { %v14021_v29 = vpop.f32.mrf.mxu1  ;;  %v16162_v44 = vadd.f32 %v14018_v36, %v256_v24  ;;  %v14020_v45 = vadd.f32 %v14019_v33, %v13979_v39  ;;  %14273 = vmatpush1.bf16.msra.mxu0 %v19946_v22  ;;  %v20011_v22 = vld [vmem:[%s22422_s27 + $0x3fec] ss:$136 sps:$4 sm:$0xff]   ;;  %v20009_v24 = vld [vmem:[%s22422_s27 + $0x3fe8] ss:$136 sps:$4 sm:$0xff]   ;;  %v20029_v36 = vld [vmem:[%s22422_s27 + $0x3cbc] ss:$136 sps:$4 sm:$0xff]  }
 0x331   : > { %14314 = vmatpush1.bf16.msra.mxu1 %v19949_v32  ;;  %v13981_v49 = vpop.f32.mrf.mxu0  ;;  %14274 = vmatprep.subr.bf16.mxu0 %v19954_v34  ;;  %v20015_v32 = vld [vmem:[%s22422_s27 + $0x3ed8] ss:$136 sps:$4 sm:$0xff]   ;;  %v20018_v33 = vld [vmem:[%s22422_s27 + $0x2cc8] ss:$136 sps:$4 sm:$0xff]   ;;  %v20035_v3 = vld [vmem:[%s22422_s27 + $0x3bac] ss:$136 sps:$4 sm:$0xff]  }
 0x332   : > { %v14022_v13 = vpop.f32.mrf.mxu1  ;;  %14315 = vmatprep.subr.bf16.mxu1 %v19957_v35  ;;  %16196 = vst [vmem:[#allocation2 + $0x30] sm:$0xff] %v16162_v44  ;;  %v16163_v51 = vadd.f32 %v14020_v45, %v257_v2  ;;  %v20023_v2 = vld [vmem:[%s22422_s27 + $0x3dcc] ss:$136 sps:$4 sm:$0xff]   ;;  %v20021_v34 = vld [vmem:[%s22422_s27 + $0x3dc8] ss:$136 sps:$4 sm:$0xff]  }
 0x333   : > { %v20026_v35 = vld [vmem:[%s22422_s27 + $0x2bbc] ss:$136 sps:$4 sm:$0xff]   ;;  %v20024_v39 = vld [vmem:[%s22422_s27 + $0x2bb8] ss:$136 sps:$4 sm:$0xff]   ;;  %v20030_v29 = vld [vmem:[%s22422_s27 + $0x2aa8] ss:$136 sps:$4 sm:$0xff]  }
 0x334   : > { %16197 = vst [vmem:[#allocation2 + $0x18] sm:$0xff] %v16163_v51  ;;  %14275 = vmatpush1.bf16.msra.mxu0 %v19952_v40  ;;  %v20027_v40 = vld [vmem:[%s22422_s27 + $0x3cb8] ss:$136 sps:$4 sm:$0xff]   ;;  %v20033_v44 = vld [vmem:[%s22422_s27 + $0x3ba8] ss:$136 sps:$4 sm:$0xff]  }
 0x335   : > { %14316 = vmatpush1.bf16.msra.mxu1 %v19955_v43  ;;  %14276 = vmatprep.subr.bf16.mxu0 %v19960_v14  ;;  %v20032_v43 = vld [vmem:[%s22422_s27 + $0x2aac] ss:$136 sps:$4 sm:$0xff]   ;;  %v20036_v13 = vld [vmem:[%s22422_s27 + $0x7a0] ss:$136 sps:$4 sm:$0xff]  }
 0x336   : > { %14317 = vmatprep.subr.bf16.mxu1 %v19963_v50  ;;  %v20038_v45 = vld [vmem:[%s22422_s27 + $0x7a4] ss:$136 sps:$4 sm:$0xff]   ;;  %v20039_v14 = vld [vmem:[%s22422_s27 + $0x18a0] ss:$136 sps:$4 sm:$0xff]   ;;  %v20044_v50 = vld [vmem:[%s22422_s27 + $0x694] ss:$136 sps:$4 sm:$0xff]  }
 0x337   : > { %v20041_v49 = vld [vmem:[%s22422_s27 + $0x18a4] ss:$136 sps:$4 sm:$0xff]   ;;  %v20047_v51 = vld [vmem:[%s22422_s27 + $0x1794] ss:$136 sps:$4 sm:$0xff]  }
 0x338   : > { %14277 = vmatpush1.bf16.msra.mxu0 %v19958_v53  ;;  %v20042_v53 = vld [vmem:[%s22422_s27 + $0x690] ss:$136 sps:$4 sm:$0xff]  }
 0x339   : > { %14318 = vmatpush1.bf16.msra.mxu1 %v19961_v54  ;;  %14278 = vmatprep.subr.bf16.mxu0 %v19966_v55  ;;  %v20045_v54 = vld [vmem:[%s22422_s27 + $0x1790] ss:$136 sps:$4 sm:$0xff]  }
 0x33a   : > { %14319 = vmatprep.subr.bf16.mxu1 %v19969_v56 }
 0x33c   : > { %14279 = vmatpush1.bf16.msra.mxu0 %v19964_v57 }
 0x33d   : > { %14320 = vmatpush1.bf16.msra.mxu1 %v19967_v15  ;;  %14280 = vmatprep.subr.bf16.mxu0 %v19972_v46  ;;  %v20050_v46 = vld [vmem:[%s22422_s27 + $0x584] ss:$136 sps:$4 sm:$0xff]  }
 0x33e   : > { %14321 = vmatprep.subr.bf16.mxu1 %v19975_v58  ;;  %v20053_v58 = vld [vmem:[%s22422_s27 + $0x1684] ss:$136 sps:$4 sm:$0xff]  }
 0x340   : > { %14281 = vmatpush1.bf16.msra.mxu0 %v19970_v59  ;;  %v20048_v59 = vld [vmem:[%s22422_s27 + $0x580] ss:$136 sps:$4 sm:$0xff]  }
 0x341   : > { %14322 = vmatpush1.bf16.msra.mxu1 %v19973_v60  ;;  %14282 = vmatprep.subr.bf16.mxu0 %v19978_v27  ;;  %v20051_v60 = vld [vmem:[%s22422_s27 + $0x1680] ss:$136 sps:$4 sm:$0xff]  }
 0x342   : > { %14323 = vmatprep.subr.bf16.mxu1 %v19981_v28 }
 0x344   : > { %14283 = vmatpush1.bf16.msra.mxu0 %v19976_v61 }
 0x345   : > { %14324 = vmatpush1.bf16.msra.mxu1 %v19979_v62  ;;  %14284 = vmatprep.subr.bf16.mxu0 %v19984_v63  ;;  %v20056_v63 = vld [vmem:[%s22422_s27 + $0x474] ss:$136 sps:$4 sm:$0xff]  }
 0x346   : > { %14325 = vmatprep.subr.bf16.mxu1 %v19987_v0  ;;  %v20059_v0 = vld [vmem:[%s22422_s27 + $0x1574] ss:$136 sps:$4 sm:$0xff]  }
 0x348   : > { %14285 = vmatpush1.bf16.msra.mxu0 %v19982_v30  ;;  %v20054_v30 = vld [vmem:[%s22422_s27 + $0x470] ss:$136 sps:$4 sm:$0xff]  }
 0x349   : > { %14326 = vmatpush1.bf16.msra.mxu1 %v19985_v4  ;;  %14286 = vmatprep.subr.bf16.mxu0 %v19990_v5  ;;  %v20057_v4 = vld [vmem:[%s22422_s27 + $0x1570] ss:$136 sps:$4 sm:$0xff]   ;;  %v20062_v5 = vld [vmem:[%s22422_s27 + $0x364] ss:$136 sps:$4 sm:$0xff]  }
 0x34a   : > { %14327 = vmatprep.subr.bf16.mxu1 %v19993_v6  ;;  %v20065_v6 = vld [vmem:[%s22422_s27 + $0x1464] ss:$136 sps:$4 sm:$0xff]  }
 0x34c   : > { %14287 = vmatpush2.bf16.msra.mxu0 %v19988_v41  ;;  %v20060_v41 = vld [vmem:[%s22422_s27 + $0x360] ss:$136 sps:$4 sm:$0xff]  }
 0x34d   : > { %14328 = vmatpush2.bf16.msra.mxu1 %v19991_v42  ;;  %14288 = vmatprep.subr.bf16.mxu0 %v19996_v9  ;;  %v20063_v42 = vld [vmem:[%s22422_s27 + $0x1460] ss:$136 sps:$4 sm:$0xff]   ;;  %v20068_v9 = vld [vmem:[%s22422_s27 + $0x254] ss:$136 sps:$4 sm:$0xff]  }
 0x34e   : > { %14329 = vmatprep.subr.bf16.mxu1 %v19999_v10  ;;  %v20071_v10 = vld [vmem:[%s22422_s27 + $0x1354] ss:$136 sps:$4 sm:$0xff]  }
 0x350   : > { %14289 = vmatpush2.bf16.msra.mxu0 %v19994_v11  ;;  %v20066_v11 = vld [vmem:[%s22422_s27 + $0x250] ss:$136 sps:$4 sm:$0xff]  }
 0x351   : > { %14330 = vmatpush2.bf16.msra.mxu1 %v19997_v12  ;;  %14290 = vmatprep.subr.bf16.mxu0 %v20002_v47  ;;  %v20069_v12 = vld [vmem:[%s22422_s27 + $0x1350] ss:$136 sps:$4 sm:$0xff]   ;;  %v20074_v47 = vld [vmem:[%s22422_s27 + $0x144] ss:$136 sps:$4 sm:$0xff]  }
 0x352   : > { %14331 = vmatprep.subr.bf16.mxu1 %v20005_v16  ;;  %v20077_v16 = vld [vmem:[%s22422_s27 + $0x1244] ss:$136 sps:$4 sm:$0xff]  }
 0x354   : > { %14291 = vmatpush2.bf16.msra.mxu0 %v20000_v19  ;;  %v20072_v19 = vld [vmem:[%s22422_s27 + $0x140] ss:$136 sps:$4 sm:$0xff]  }
 0x355   : > { %14332 = vmatpush2.bf16.msra.mxu1 %v20003_v20  ;;  %14292 = vmatprep.subr.bf16.mxu0 %v20008_v21  ;;  %v20075_v20 = vld [vmem:[%s22422_s27 + $0x1240] ss:$136 sps:$4 sm:$0xff]   ;;  %v20080_v21 = vld [vmem:[%s22422_s27 + $0x34] ss:$136 sps:$4 sm:$0xff]  }
 0x356   : > { %14333 = vmatprep.subr.bf16.mxu1 %v20011_v22  ;;  %v20083_v22 = vld [vmem:[%s22422_s27 + $0x1134] ss:$136 sps:$4 sm:$0xff]  }
 0x358   : > { %14293 = vmatpush2.bf16.msra.mxu0 %v20006_v23  ;;  %v20078_v23 = vld [vmem:[%s22422_s27 + $0x30] ss:$136 sps:$4 sm:$0xff]  }
 0x359   : > { %14334 = vmatpush2.bf16.msra.mxu1 %v20009_v24  ;;  %14294 = vmatprep.subr.bf16.mxu0 %v20014_v25  ;;  %v20081_v24 = vld [vmem:[%s22422_s27 + $0x1130] ss:$136 sps:$4 sm:$0xff]   ;;  %v20086_v25 = vld [vmem:[%s22422_s27 + $0x1024] ss:$136 sps:$4 sm:$0xff]  }
 0x35a   : > { %14335 = vmatprep.subr.bf16.mxu1 %v20017_v26  ;;  %v20089_v26 = vld [vmem:[%s22422_s27 + $0x2124] ss:$136 sps:$4 sm:$0xff]  }
 0x35c   : > { %14295 = vmatpush2.bf16.msra.mxu0 %v20012_v31  ;;  %v20084_v31 = vld [vmem:[%s22422_s27 + $0x1020] ss:$136 sps:$4 sm:$0xff]  }
 0x35d   : > { %14336 = vmatpush2.bf16.msra.mxu1 %v20015_v32  ;;  %14296 = vmatprep.subr.bf16.mxu0 %v20020_v1  ;;  %v20087_v32 = vld [vmem:[%s22422_s27 + $0x2120] ss:$136 sps:$4 sm:$0xff]   ;;  %v20092_v1 = vld [vmem:[%s22422_s27 + $0xf14] ss:$136 sps:$4 sm:$0xff]  }
 0x35e   : > { %14337 = vmatprep.subr.bf16.mxu1 %v20023_v2  ;;  %v20095_v2 = vld [vmem:[%s22422_s27 + $0x2014] ss:$136 sps:$4 sm:$0xff]  }
 0x360   : > { %14297 = vmatpush2.bf16.msra.mxu0 %v20018_v33  ;;  %v20090_v33 = vld [vmem:[%s22422_s27 + $0xf10] ss:$136 sps:$4 sm:$0xff]  }
 0x361   : > { %14338 = vmatpush2.bf16.msra.mxu1 %v20021_v34  ;;  %14298 = vmatprep.subr.bf16.mxu0 %v20026_v35  ;;  %v20093_v34 = vld [vmem:[%s22422_s27 + $0x2010] ss:$136 sps:$4 sm:$0xff]   ;;  %v20098_v35 = vld [vmem:[%s22422_s27 + $0xe04] ss:$136 sps:$4 sm:$0xff]  }
 0x362   : > { %14339 = vmatprep.subr.bf16.mxu1 %v20029_v36  ;;  %v20101_v36 = vld [vmem:[%s22422_s27 + $0x1f04] ss:$136 sps:$4 sm:$0xff]  }
 0x364   : > { %14299 = vmatpush2.bf16.msra.mxu0 %v20024_v39  ;;  %v20096_v39 = vld [vmem:[%s22422_s27 + $0xe00] ss:$136 sps:$4 sm:$0xff]  }
 0x365   : > { %14340 = vmatpush2.bf16.msra.mxu1 %v20027_v40  ;;  %14300 = vmatprep.subr.bf16.mxu0 %v20032_v43  ;;  %v20099_v40 = vld [vmem:[%s22422_s27 + $0x1f00] ss:$136 sps:$4 sm:$0xff]   ;;  %v20104_v43 = vld [vmem:[%s22422_s27 + $0xcf4] ss:$136 sps:$4 sm:$0xff]  }
 0x366   : > { %14341 = vmatprep.subr.bf16.mxu1 %v20035_v3  ;;  %v20107_v3 = vld [vmem:[%s22422_s27 + $0x1df4] ss:$136 sps:$4 sm:$0xff]  }
 0x368   : > { %14301 = vmatpush2.bf16.msra.mxu0 %v20030_v29  ;;  %v20102_v29 = vld [vmem:[%s22422_s27 + $0xcf0] ss:$136 sps:$4 sm:$0xff]  }
 0x369   : > { %14342 = vmatpush2.bf16.msra.mxu1 %v20033_v44  ;;  %14352 = vmatprep.subr.bf16.mxu0 %v20038_v45  ;;  %v20105_v44 = vld [vmem:[%s22422_s27 + $0x1df0] ss:$136 sps:$4 sm:$0xff]   ;;  %v20110_v45 = vld [vmem:[%s22422_s27 + $0xbe4] ss:$136 sps:$4 sm:$0xff]  }
 0x36a   : > { %14393 = vmatprep.subr.bf16.mxu1 %v20041_v49  ;;  %v20113_v49 = vld [vmem:[%s22422_s27 + $0x1ce4] ss:$136 sps:$4 sm:$0xff]  }
 0x36b   : > { %v23339_v55 = vpop.f32.mrf.mxu0  ;;  %14303 = vmatmul.mubr.bf16.vlgmr.msra.gmra.mxu0 %v22599_v17 }
 0x36c   : > { %v23341_v56 = vpop.f32.mrf.mxu1  ;;  %14344 = vmatmul.mubr.bf16.vlgmr.msra.gmra.mxu1 %v22603_v18  ;;  %14353 = vmatpush1.bf16.msra.mxu0 %v20036_v13  ;;  %v20108_v13 = vld [vmem:[%s22422_s27 + $0xbe0] ss:$136 sps:$4 sm:$0xff]  }
 0x36d   : > { %14394 = vmatpush1.bf16.msra.mxu1 %v20039_v14  ;;  %v23345_v57 = vpop.f32.mrf.mxu0  ;;  %14354 = vmatprep.subr.bf16.mxu0 %v20044_v50  ;;  %v20111_v14 = vld [vmem:[%s22422_s27 + $0x1ce0] ss:$136 sps:$4 sm:$0xff]   ;;  %v20116_v50 = vld [vmem:[%s22422_s27 + $0xad4] ss:$136 sps:$4 sm:$0xff]  }
 0x36e   : > { %v23347_v15 = vpop.f32.mrf.mxu1  ;;  %14395 = vmatprep.subr.bf16.mxu1 %v20047_v51  ;;  %14384 = vmatprep.mubr.bf16.mxu0 %v22484_v48  ;;  %v20119_v51 = vld [vmem:[%s22422_s27 + $0x1bd4] ss:$136 sps:$4 sm:$0xff]  }
 0x36f   : > { %14425 = vmatprep.mubr.bf16.mxu1 %v22489_v52  ;;  %v14062_v27 = vpop.f32.mrf.mxu0 }
 0x370   : > { %v14103_v28 = vpop.f32.mrf.mxu1  ;;  %14355 = vmatpush1.bf16.msra.mxu0 %v20042_v53  ;;  %v20114_v53 = vld [vmem:[%s22422_s27 + $0xad0] ss:$136 sps:$4 sm:$0xff]   ;;  %v20128_v27 = vld [vmem:[%s22422_s27 + $0x8b4] ss:$136 sps:$4 sm:$0xff]  }
 0x371   : > { %14396 = vmatpush1.bf16.msra.mxu1 %v20045_v54  ;;  %v14063_v61 = vpop.f32.mrf.mxu0  ;;  %14356 = vmatprep.subr.bf16.mxu0 %v20050_v46  ;;  %v20117_v54 = vld [vmem:[%s22422_s27 + $0x1bd0] ss:$136 sps:$4 sm:$0xff]   ;;  %v20122_v46 = vld [vmem:[%s22422_s27 + $0x9c4] ss:$136 sps:$4 sm:$0xff]   ;;  %v20131_v28 = vld [vmem:[%s22422_s27 + $0x19b4] ss:$136 sps:$4 sm:$0xff]  }
 0x372   : > { %v14104_v62 = vpop.f32.mrf.mxu1  ;;  %14397 = vmatprep.subr.bf16.mxu1 %v20053_v58  ;;  %v20125_v58 = vld [vmem:[%s22422_s27 + $0x1ac4] ss:$136 sps:$4 sm:$0xff]   ;;  %v20126_v61 = vld [vmem:[%s22422_s27 + $0x8b0] ss:$136 sps:$4 sm:$0xff]  }
 0x373   : > { %v20129_v62 = vld [vmem:[%s22422_s27 + $0x19b0] ss:$136 sps:$4 sm:$0xff]  }
 0x374   : > { %14357 = vmatpush1.bf16.msra.mxu0 %v20048_v59  ;;  %v20120_v59 = vld [vmem:[%s22422_s27 + $0x9c0] ss:$136 sps:$4 sm:$0xff]  }
 0x375   : > { %14398 = vmatpush1.bf16.msra.mxu1 %v20051_v60  ;;  %14358 = vmatprep.subr.bf16.mxu0 %v20056_v63  ;;  %v20123_v60 = vld [vmem:[%s22422_s27 + $0x1ac0] ss:$136 sps:$4 sm:$0xff]   ;;  %v20134_v63 = vld [vmem:[%s22422_s27 + $0x29a4] ss:$136 sps:$4 sm:$0xff]  }
 0x376   : > { %14399 = vmatprep.subr.bf16.mxu1 %v20059_v0  ;;  %v20137_v0 = vld [vmem:[%s22422_s27 + $0x3aa4] ss:$136 sps:$4 sm:$0xff]  }
 0x378   : > { %14359 = vmatpush1.bf16.msra.mxu0 %v20054_v30  ;;  %v20132_v30 = vld [vmem:[%s22422_s27 + $0x29a0] ss:$136 sps:$4 sm:$0xff]  }
 0x379   : > { %14400 = vmatpush1.bf16.msra.mxu1 %v20057_v4  ;;  %14360 = vmatprep.subr.bf16.mxu0 %v20062_v5  ;;  %v20135_v4 = vld [vmem:[%s22422_s27 + $0x3aa0] ss:$136 sps:$4 sm:$0xff]   ;;  %v20140_v5 = vld [vmem:[%s22422_s27 + $0x2894] ss:$136 sps:$4 sm:$0xff]  }
 0x37a   : > { %14401 = vmatprep.subr.bf16.mxu1 %v20065_v6  ;;  %v20143_v6 = vld [vmem:[%s22422_s27 + $0x3994] ss:$136 sps:$4 sm:$0xff]  }
 0x37c   : > { %14361 = vmatpush1.bf16.msra.mxu0 %v20060_v41  ;;  %v14100_v41 = vadd.f32 %v23341_v56, %v23339_v55  ;;  %v259_v56 = vld [vmem:[#allocation2 + $0x88] sm:$0xff] }
 0x37d   : > { %14402 = vmatpush1.bf16.msra.mxu1 %v20063_v42  ;;  %14362 = vmatprep.subr.bf16.mxu0 %v20068_v9  ;;  %v20138_v42 = vld [vmem:[%s22422_s27 + $0x2890] ss:$136 sps:$4 sm:$0xff]  }
 0x37e   : > { %14403 = vmatprep.subr.bf16.mxu1 %v20071_v10  ;;  %v258_v10 = vld [vmem:[#allocation2 + $0x80] sm:$0xff] }
 0x380   : > { %14363 = vmatpush1.bf16.msra.mxu0 %v20066_v11 }
 0x381   : > { %14404 = vmatpush1.bf16.msra.mxu1 %v20069_v12  ;;  %14364 = vmatprep.subr.bf16.mxu0 %v20074_v47  ;;  %v14102_v12 = vadd.f32 %v23347_v15, %v23345_v57 }
 0x382   : > { %14405 = vmatprep.subr.bf16.mxu1 %v20077_v16  ;;  %v20141_v16 = vld [vmem:[%s22422_s27 + $0x3990] ss:$136 sps:$4 sm:$0xff]  }
 0x384   : > { %14365 = vmatpush1.bf16.msra.mxu0 %v20072_v19 }
 0x385   : > { %14406 = vmatpush1.bf16.msra.mxu1 %v20075_v20  ;;  %14366 = vmatprep.subr.bf16.mxu0 %v20080_v21  ;;  %v20146_v20 = vld [vmem:[%s22422_s27 + $0x2784] ss:$136 sps:$4 sm:$0xff]  }
 0x386   : > { %14407 = vmatprep.subr.bf16.mxu1 %v20083_v22  ;;  %v20149_v21 = vld [vmem:[%s22422_s27 + $0x3884] ss:$136 sps:$4 sm:$0xff]  }
 0x388   : > { %14367 = vmatpush1.bf16.msra.mxu0 %v20078_v23 }
 0x389   : > { %14408 = vmatpush1.bf16.msra.mxu1 %v20081_v24  ;;  %14368 = vmatprep.subr.bf16.mxu0 %v20086_v25  ;;  %v20144_v24 = vld [vmem:[%s22422_s27 + $0x2780] ss:$136 sps:$4 sm:$0xff]  }
 0x38a   : > { %14409 = vmatprep.subr.bf16.mxu1 %v20089_v26  ;;  %v20147_v25 = vld [vmem:[%s22422_s27 + $0x3880] ss:$136 sps:$4 sm:$0xff]  }
 0x38c   : > { %14369 = vmatpush2.bf16.msra.mxu0 %v20084_v31 }
 0x38d   : > { %14410 = vmatpush2.bf16.msra.mxu1 %v20087_v32  ;;  %14370 = vmatprep.subr.bf16.mxu0 %v20092_v1 }
 0x38e   : > { %14411 = vmatprep.subr.bf16.mxu1 %v20095_v2  ;;  %v20152_v2 = vld [vmem:[%s22422_s27 + $0x2674] ss:$136 sps:$4 sm:$0xff]  }
 0x390   : > { %14371 = vmatpush2.bf16.msra.mxu0 %v20090_v33  ;;  %v20155_v33 = vld [vmem:[%s22422_s27 + $0x3774] ss:$136 sps:$4 sm:$0xff]  }
 0x391   : > { %14412 = vmatpush2.bf16.msra.mxu1 %v20093_v34  ;;  %14372 = vmatprep.subr.bf16.mxu0 %v20098_v35  ;;  %v20150_v35 = vld [vmem:[%s22422_s27 + $0x2670] ss:$136 sps:$4 sm:$0xff]  }
 0x392   : > { %14413 = vmatprep.subr.bf16.mxu1 %v20101_v36  ;;  %v20153_v36 = vld [vmem:[%s22422_s27 + $0x3770] ss:$136 sps:$4 sm:$0xff]  }
 0x394   : > { %14373 = vmatpush2.bf16.msra.mxu0 %v20096_v39  ;;  %v20158_v39 = vld [vmem:[%s22422_s27 + $0x2564] ss:$136 sps:$4 sm:$0xff]  }
 0x395   : > { %14414 = vmatpush2.bf16.msra.mxu1 %v20099_v40  ;;  %14374 = vmatprep.subr.bf16.mxu0 %v20104_v43  ;;  %v20161_v40 = vld [vmem:[%s22422_s27 + $0x3664] ss:$136 sps:$4 sm:$0xff]   ;;  %v20156_v43 = vld [vmem:[%s22422_s27 + $0x2560] ss:$136 sps:$4 sm:$0xff]  }
 0x396   : > { %14415 = vmatprep.subr.bf16.mxu1 %v20107_v3  ;;  %v20159_v3 = vld [vmem:[%s22422_s27 + $0x3660] ss:$136 sps:$4 sm:$0xff]  }
 0x398   : > { %14375 = vmatpush2.bf16.msra.mxu0 %v20102_v29  ;;  %v20164_v29 = vld [vmem:[%s22422_s27 + $0x2454] ss:$136 sps:$4 sm:$0xff]  }
 0x399   : > { %14416 = vmatpush2.bf16.msra.mxu1 %v20105_v44  ;;  %14376 = vmatprep.subr.bf16.mxu0 %v20110_v45  ;;  %v20167_v44 = vld [vmem:[%s22422_s27 + $0x3554] ss:$136 sps:$4 sm:$0xff]   ;;  %v20162_v45 = vld [vmem:[%s22422_s27 + $0x2450] ss:$136 sps:$4 sm:$0xff]  }
 0x39a   : > { %14417 = vmatprep.subr.bf16.mxu1 %v20113_v49  ;;  %v20165_v49 = vld [vmem:[%s22422_s27 + $0x3550] ss:$136 sps:$4 sm:$0xff]  }
 0x39c   : > { %14377 = vmatpush2.bf16.msra.mxu0 %v20108_v13  ;;  %v20170_v13 = vld [vmem:[%s22422_s27 + $0x2344] ss:$136 sps:$4 sm:$0xff]  }
 0x39d   : > { %14418 = vmatpush2.bf16.msra.mxu1 %v20111_v14  ;;  %14378 = vmatprep.subr.bf16.mxu0 %v20116_v50  ;;  %v20173_v14 = vld [vmem:[%s22422_s27 + $0x3444] ss:$136 sps:$4 sm:$0xff]   ;;  %v20168_v50 = vld [vmem:[%s22422_s27 + $0x2340] ss:$136 sps:$4 sm:$0xff]  }
 0x39e   : > { %14419 = vmatprep.subr.bf16.mxu1 %v20119_v51  ;;  %v20171_v51 = vld [vmem:[%s22422_s27 + $0x3440] ss:$136 sps:$4 sm:$0xff]  }
 0x3a0   : > { %14379 = vmatpush2.bf16.msra.mxu0 %v20114_v53  ;;  %v20176_v53 = vld [vmem:[%s22422_s27 + $0x2234] ss:$136 sps:$4 sm:$0xff]  }
 0x3a1   : > { %14420 = vmatpush2.bf16.msra.mxu1 %v20117_v54  ;;  %14380 = vmatprep.subr.bf16.mxu0 %v20122_v46  ;;  %v20179_v54 = vld [vmem:[%s22422_s27 + $0x3334] ss:$136 sps:$4 sm:$0xff]   ;;  %v20174_v46 = vld [vmem:[%s22422_s27 + $0x2230] ss:$136 sps:$4 sm:$0xff]  }
 0x3a2   : > { %14421 = vmatprep.subr.bf16.mxu1 %v20125_v58  ;;  %v20177_v58 = vld [vmem:[%s22422_s27 + $0x3330] ss:$136 sps:$4 sm:$0xff]  }
 0x3a4   : > { %14381 = vmatpush2.bf16.msra.mxu0 %v20120_v59  ;;  %v20182_v59 = vld [vmem:[%s22422_s27 + $0x3224] ss:$136 sps:$4 sm:$0xff]  }
 0x3a5   : > { %14422 = vmatpush2.bf16.msra.mxu1 %v20123_v60  ;;  %14382 = vmatprep.subr.bf16.mxu0 %v20128_v27  ;;  %v20185_v60 = vld [vmem:[%s22422_s27 + $0x4324] ss:$136 sps:$4 sm:$0xff]   ;;  %v20180_v27 = vld [vmem:[%s22422_s27 + $0x3220] ss:$136 sps:$4 sm:$0xff]  }
 0x3a6   : > { %14423 = vmatprep.subr.bf16.mxu1 %v20131_v28  ;;  %v20183_v28 = vld [vmem:[%s22422_s27 + $0x4320] ss:$136 sps:$4 sm:$0xff]  }
 0x3a8   : > { %14383 = vmatpush2.bf16.msra.mxu0 %v20126_v61  ;;  %v20188_v61 = vld [vmem:[%s22422_s27 + $0x3114] ss:$136 sps:$4 sm:$0xff]  }
 0x3a9   : > { %14424 = vmatpush2.bf16.msra.mxu1 %v20129_v62  ;;  %14434 = vmatprep.subr.bf16.mxu0 %v20134_v63  ;;  %v20191_v62 = vld [vmem:[%s22422_s27 + $0x4214] ss:$136 sps:$4 sm:$0xff]   ;;  %v20186_v63 = vld [vmem:[%s22422_s27 + $0x3110] ss:$136 sps:$4 sm:$0xff]  }
 0x3aa   : > { %14475 = vmatprep.subr.bf16.mxu1 %v20137_v0  ;;  %v20189_v0 = vld [vmem:[%s22422_s27 + $0x4210] ss:$136 sps:$4 sm:$0xff]  }
 0x3ab   : > { %v14140_v9 = vpop.f32.mrf.mxu0  ;;  %14385 = vmatmul.mubr.bf16.vlgmr.msra.gmra.mxu0 %v22511_v7 }
 0x3ac   : > { %v14181_v11 = vpop.f32.mrf.mxu1  ;;  %14426 = vmatmul.mubr.bf16.vlgmr.msra.gmra.mxu1 %v22513_v8  ;;  %v14141_v47 = vadd.f32 %v14140_v9, %v14100_v41  ;;  %14435 = vmatpush1.bf16.msra.mxu0 %v20132_v30  ;;  %v20194_v30 = vld [vmem:[%s22422_s27 + $0x3004] ss:$136 sps:$4 sm:$0xff]   ;;  %v20200_v41 = vld [vmem:[%s22422_s27 + $0x2ef4] ss:$136 sps:$4 sm:$0xff]   ;;  %v20198_v9 = vld [vmem:[%s22422_s27 + $0x2ef0] ss:$136 sps:$4 sm:$0xff]  }
 0x3ad   : > { %14476 = vmatpush1.bf16.msra.mxu1 %v20135_v4  ;;  %v14142_v55 = vpop.f32.mrf.mxu0  ;;  %14436 = vmatprep.subr.bf16.mxu0 %v20140_v5  ;;  %v20197_v4 = vld [vmem:[%s22422_s27 + $0x4104] ss:$136 sps:$4 sm:$0xff]   ;;  %v20192_v5 = vld [vmem:[%s22422_s27 + $0x3000] ss:$136 sps:$4 sm:$0xff]  }
 0x3ae   : > { %v14183_v19 = vpop.f32.mrf.mxu1  ;;  %14477 = vmatprep.subr.bf16.mxu1 %v20143_v6  ;;  %v14182_v22 = vadd.f32 %v14181_v11, %v14141_v47  ;;  %v14143_v23 = vadd.f32 %v14142_v55, %v14102_v12  ;;  %14466 = vmatprep.mubr.bf16.mxu0 %v22551_v37  ;;  %v20195_v6 = vld [vmem:[%s22422_s27 + $0x4100] ss:$136 sps:$4 sm:$0xff]   ;;  %v20206_v11 = vld [vmem:[%s22422_s27 + $0x2de4] ss:$136 sps:$4 sm:$0xff]   ;;  %v20212_v55 = vld [vmem:[%s22422_s27 + $0x2cd4] ss:$136 sps:$4 sm:$0xff]  }
 0x3af   : > { %14507 = vmatprep.mubr.bf16.mxu1 %v22555_v38  ;;  %v14144_v57 = vpop.f32.mrf.mxu0  ;;  %v20209_v12 = vld [vmem:[%s22422_s27 + $0x3ee4] ss:$136 sps:$4 sm:$0xff]   ;;  %v20204_v47 = vld [vmem:[%s22422_s27 + $0x2de0] ss:$136 sps:$4 sm:$0xff]  }
 0x3b0   : > { %v14185_v15 = vpop.f32.mrf.mxu1  ;;  %v16164_v26 = vadd.f32 %v14182_v22, %v258_v10  ;;  %v14184_v31 = vadd.f32 %v14183_v19, %v14143_v23  ;;  %14437 = vmatpush1.bf16.msra.mxu0 %v20138_v42  ;;  %v20203_v42 = vld [vmem:[%s22422_s27 + $0x3ff4] ss:$136 sps:$4 sm:$0xff]   ;;  %v20201_v10 = vld [vmem:[%s22422_s27 + $0x3ff0] ss:$136 sps:$4 sm:$0xff]   ;;  %v20221_v22 = vld [vmem:[%s22422_s27 + $0x3cc4] ss:$136 sps:$4 sm:$0xff]  }
 0x3b1   : > { %14478 = vmatpush1.bf16.msra.mxu1 %v20141_v16  ;;  %v14145_v32 = vpop.f32.mrf.mxu0  ;;  %14438 = vmatprep.subr.bf16.mxu0 %v20146_v20  ;;  %v20207_v16 = vld [vmem:[%s22422_s27 + $0x3ee0] ss:$136 sps:$4 sm:$0xff]   ;;  %v20210_v19 = vld [vmem:[%s22422_s27 + $0x2cd0] ss:$136 sps:$4 sm:$0xff]   ;;  %v20227_v57 = vld [vmem:[%s22422_s27 + $0x3bb4] ss:$136 sps:$4 sm:$0xff]  }
 0x3b2   : > { %v14186_v1 = vpop.f32.mrf.mxu1  ;;  %14479 = vmatprep.subr.bf16.mxu1 %v20149_v21  ;;  %16198 = vst [vmem:[#allocation2 + $0x80] sm:$0xff] %v16164_v26  ;;  %v16165_v34 = vadd.f32 %v14184_v31, %v259_v56  ;;  %v20215_v56 = vld [vmem:[%s22422_s27 + $0x3dd4] ss:$136 sps:$4 sm:$0xff]   ;;  %v20213_v20 = vld [vmem:[%s22422_s27 + $0x3dd0] ss:$136 sps:$4 sm:$0xff]  }
 0x3b3   : > { %v20218_v21 = vld [vmem:[%s22422_s27 + $0x2bc4] ss:$136 sps:$4 sm:$0xff]   ;;  %v20216_v23 = vld [vmem:[%s22422_s27 + $0x2bc0] ss:$136 sps:$4 sm:$0xff]   ;;  %v20222_v15 = vld [vmem:[%s22422_s27 + $0x2ab0] ss:$136 sps:$4 sm:$0xff]  }
 0x3b4   : > { %16199 = vst [vmem:[#allocation2 + $0x88] sm:$0xff] %v16165_v34  ;;  %14439 = vmatpush1.bf16.msra.mxu0 %v20144_v24  ;;  %v20219_v24 = vld [vmem:[%s22422_s27 + $0x3cc0] ss:$136 sps:$4 sm:$0xff]   ;;  %v20225_v26 = vld [vmem:[%s22422_s27 + $0x3bb0] ss:$136 sps:$4 sm:$0xff]  }
 0x3b5   : > { %14480 = vmatpush1.bf16.msra.mxu1 %v20147_v25  ;;  %14440 = vmatprep.subr.bf16.mxu0 %v20152_v2  ;;  %v20224_v25 = vld [vmem:[%s22422_s27 + $0x2ab4] ss:$136 sps:$4 sm:$0xff]   ;;  %v20228_v1 = vld [vmem:[%s22422_s27 + $0x7a8] ss:$136 sps:$4 sm:$0xff]  }
 0x3b6   : > { %14481 = vmatprep.subr.bf16.mxu1 %v20155_v33  ;;  %v20230_v31 = vld [vmem:[%s22422_s27 + $0x7ac] ss:$136 sps:$4 sm:$0xff]   ;;  %v20231_v2 = vld [vmem:[%s22422_s27 + $0x18a8] ss:$136 sps:$4 sm:$0xff]   ;;  %v20236_v33 = vld [vmem:[%s22422_s27 + $0x69c] ss:$136 sps:$4 sm:$0xff]  }
 0x3b7   : > { %v20233_v32 = vld [vmem:[%s22422_s27 + $0x18ac] ss:$136 sps:$4 sm:$0xff]   ;;  %v20239_v34 = vld [vmem:[%s22422_s27 + $0x179c] ss:$136 sps:$4 sm:$0xff]  }
 0x3b8   : > { %14441 = vmatpush1.bf16.msra.mxu0 %v20150_v35  ;;  %v20234_v35 = vld [vmem:[%s22422_s27 + $0x698] ss:$136 sps:$4 sm:$0xff]  }
 0x3b9   : > { %14482 = vmatpush1.bf16.msra.mxu1 %v20153_v36  ;;  %14442 = vmatprep.subr.bf16.mxu0 %v20158_v39  ;;  %v20237_v36 = vld [vmem:[%s22422_s27 + $0x1798] ss:$136 sps:$4 sm:$0xff]  }
 0x3ba   : > { %14483 = vmatprep.subr.bf16.mxu1 %v20161_v40 }
 0x3bc   : > { %14443 = vmatpush1.bf16.msra.mxu0 %v20156_v43 }
 0x3bd   : > { %14484 = vmatpush1.bf16.msra.mxu1 %v20159_v3  ;;  %14444 = vmatprep.subr.bf16.mxu0 %v20164_v29  ;;  %v20242_v29 = vld [vmem:[%s22422_s27 + $0x58c] ss:$136 sps:$4 sm:$0xff]  }
 0x3be   : > { %14485 = vmatprep.subr.bf16.mxu1 %v20167_v44  ;;  %v20245_v44 = vld [vmem:[%s22422_s27 + $0x168c] ss:$136 sps:$4 sm:$0xff]  }
 0x3c0   : > { %14445 = vmatpush1.bf16.msra.mxu0 %v20162_v45  ;;  %v20240_v45 = vld [vmem:[%s22422_s27 + $0x588] ss:$136 sps:$4 sm:$0xff]  }
 0x3c1   : > { %14486 = vmatpush1.bf16.msra.mxu1 %v20165_v49  ;;  %14446 = vmatprep.subr.bf16.mxu0 %v20170_v13  ;;  %v20243_v49 = vld [vmem:[%s22422_s27 + $0x1688] ss:$136 sps:$4 sm:$0xff]  }
 0x3c2   : > { %14487 = vmatprep.subr.bf16.mxu1 %v20173_v14 }
 0x3c4   : > { %14447 = vmatpush1.bf16.msra.mxu0 %v20168_v50 }
 0x3c5   : > { %14488 = vmatpush1.bf16.msra.mxu1 %v20171_v51  ;;  %14448 = vmatprep.subr.bf16.mxu0 %v20176_v53  ;;  %v20248_v53 = vld [vmem:[%s22422_s27 + $0x47c] ss:$136 sps:$4 sm:$0xff]  }
 0x3c6   : > { %14489 = vmatprep.subr.bf16.mxu1 %v20179_v54  ;;  %v20251_v54 = vld [vmem:[%s22422_s27 + $0x157c] ss:$136 sps:$4 sm:$0xff]  }
 0x3c8   : > { %14449 = vmatpush1.bf16.msra.mxu0 %v20174_v46  ;;  %v20246_v46 = vld [vmem:[%s22422_s27 + $0x478] ss:$136 sps:$4 sm:$0xff]  }
 0x3c9   : > { %14490 = vmatpush1.bf16.msra.mxu1 %v20177_v58  ;;  %14450 = vmatprep.subr.bf16.mxu0 %v20182_v59  ;;  %v20249_v58 = vld [vmem:[%s22422_s27 + $0x1578] ss:$136 sps:$4 sm:$0xff]   ;;  %v20254_v59 = vld [vmem:[%s22422_s27 + $0x36c] ss:$136 sps:$4 sm:$0xff]  }
 0x3ca   : > { %14491 = vmatprep.subr.bf16.mxu1 %v20185_v60  ;;  %v20257_v60 = vld [vmem:[%s22422_s27 + $0x146c] ss:$136 sps:$4 sm:$0xff]  }
 0x3cc   : > { %14451 = vmatpush2.bf16.msra.mxu0 %v20180_v27  ;;  %v20252_v27 = vld [vmem:[%s22422_s27 + $0x368] ss:$136 sps:$4 sm:$0xff]  }
 0x3cd   : > { %14492 = vmatpush2.bf16.msra.mxu1 %v20183_v28  ;;  %14452 = vmatprep.subr.bf16.mxu0 %v20188_v61  ;;  %v20255_v28 = vld [vmem:[%s22422_s27 + $0x1468] ss:$136 sps:$4 sm:$0xff]   ;;  %v20260_v61 = vld [vmem:[%s22422_s27 + $0x25c] ss:$136 sps:$4 sm:$0xff]  }
 0x3ce   : > { %14493 = vmatprep.subr.bf16.mxu1 %v20191_v62  ;;  %v20263_v62 = vld [vmem:[%s22422_s27 + $0x135c] ss:$136 sps:$4 sm:$0xff]  }
 0x3d0   : > { %14453 = vmatpush2.bf16.msra.mxu0 %v20186_v63  ;;  %v20258_v63 = vld [vmem:[%s22422_s27 + $0x258] ss:$136 sps:$4 sm:$0xff]  }
 0x3d1   : > { %14494 = vmatpush2.bf16.msra.mxu1 %v20189_v0  ;;  %14454 = vmatprep.subr.bf16.mxu0 %v20194_v30  ;;  %v20261_v0 = vld [vmem:[%s22422_s27 + $0x1358] ss:$136 sps:$4 sm:$0xff]   ;;  %v20266_v30 = vld [vmem:[%s22422_s27 + $0x14c] ss:$136 sps:$4 sm:$0xff]  }
 0x3d2   : > { %14495 = vmatprep.subr.bf16.mxu1 %v20197_v4  ;;  %v20269_v4 = vld [vmem:[%s22422_s27 + $0x124c] ss:$136 sps:$4 sm:$0xff]  }
 0x3d4   : > { %14455 = vmatpush2.bf16.msra.mxu0 %v20192_v5  ;;  %v20264_v5 = vld [vmem:[%s22422_s27 + $0x148] ss:$136 sps:$4 sm:$0xff]  }
 0x3d5   : > { %14496 = vmatpush2.bf16.msra.mxu1 %v20195_v6  ;;  %14456 = vmatprep.subr.bf16.mxu0 %v20200_v41  ;;  %v20267_v6 = vld [vmem:[%s22422_s27 + $0x1248] ss:$136 sps:$4 sm:$0xff]   ;;  %v20272_v41 = vld [vmem:[%s22422_s27 + $0x3c] ss:$136 sps:$4 sm:$0xff]  }
 0x3d6   : > { %14497 = vmatprep.subr.bf16.mxu1 %v20203_v42  ;;  %v20275_v42 = vld [vmem:[%s22422_s27 + $0x113c] ss:$136 sps:$4 sm:$0xff]  }
 0x3d8   : > { %14457 = vmatpush2.bf16.msra.mxu0 %v20198_v9  ;;  %v20270_v9 = vld [vmem:[%s22422_s27 + $0x38] ss:$136 sps:$4 sm:$0xff]  }
 0x3d9   : > { %14498 = vmatpush2.bf16.msra.mxu1 %v20201_v10  ;;  %14458 = vmatprep.subr.bf16.mxu0 %v20206_v11  ;;  %v20273_v10 = vld [vmem:[%s22422_s27 + $0x1138] ss:$136 sps:$4 sm:$0xff]   ;;  %v20278_v11 = vld [vmem:[%s22422_s27 + $0x102c] ss:$136 sps:$4 sm:$0xff]  }
 0x3da   : > { %14499 = vmatprep.subr.bf16.mxu1 %v20209_v12  ;;  %v20281_v12 = vld [vmem:[%s22422_s27 + $0x212c] ss:$136 sps:$4 sm:$0xff]  }
 0x3dc   : > { %14459 = vmatpush2.bf16.msra.mxu0 %v20204_v47  ;;  %v20276_v47 = vld [vmem:[%s22422_s27 + $0x1028] ss:$136 sps:$4 sm:$0xff]  }
 0x3dd   : > { %14500 = vmatpush2.bf16.msra.mxu1 %v20207_v16  ;;  %14460 = vmatprep.subr.bf16.mxu0 %v20212_v55  ;;  %v20279_v16 = vld [vmem:[%s22422_s27 + $0x2128] ss:$136 sps:$4 sm:$0xff]   ;;  %v20284_v55 = vld [vmem:[%s22422_s27 + $0xf1c] ss:$136 sps:$4 sm:$0xff]  }
 0x3de   : > { %14501 = vmatprep.subr.bf16.mxu1 %v20215_v56  ;;  %v20287_v56 = vld [vmem:[%s22422_s27 + $0x201c] ss:$136 sps:$4 sm:$0xff]  }
 0x3e0   : > { %14461 = vmatpush2.bf16.msra.mxu0 %v20210_v19  ;;  %v20282_v19 = vld [vmem:[%s22422_s27 + $0xf18] ss:$136 sps:$4 sm:$0xff]  }
 0x3e1   : > { %14502 = vmatpush2.bf16.msra.mxu1 %v20213_v20  ;;  %14462 = vmatprep.subr.bf16.mxu0 %v20218_v21  ;;  %v20285_v20 = vld [vmem:[%s22422_s27 + $0x2018] ss:$136 sps:$4 sm:$0xff]   ;;  %v20290_v21 = vld [vmem:[%s22422_s27 + $0xe0c] ss:$136 sps:$4 sm:$0xff]  }
 0x3e2   : > { %14503 = vmatprep.subr.bf16.mxu1 %v20221_v22  ;;  %v20293_v22 = vld [vmem:[%s22422_s27 + $0x1f0c] ss:$136 sps:$4 sm:$0xff]  }
 0x3e4   : > { %14463 = vmatpush2.bf16.msra.mxu0 %v20216_v23  ;;  %v20288_v23 = vld [vmem:[%s22422_s27 + $0xe08] ss:$136 sps:$4 sm:$0xff]  }
 0x3e5   : > { %14504 = vmatpush2.bf16.msra.mxu1 %v20219_v24  ;;  %14464 = vmatprep.subr.bf16.mxu0 %v20224_v25  ;;  %v20291_v24 = vld [vmem:[%s22422_s27 + $0x1f08] ss:$136 sps:$4 sm:$0xff]   ;;  %v20296_v25 = vld [vmem:[%s22422_s27 + $0xcfc] ss:$136 sps:$4 sm:$0xff]  }
 0x3e6   : > { %14505 = vmatprep.subr.bf16.mxu1 %v20227_v57  ;;  %v20299_v57 = vld [vmem:[%s22422_s27 + $0x1dfc] ss:$136 sps:$4 sm:$0xff]  }
 0x3e8   : > { %14465 = vmatpush2.bf16.msra.mxu0 %v20222_v15  ;;  %v20294_v15 = vld [vmem:[%s22422_s27 + $0xcf8] ss:$136 sps:$4 sm:$0xff]  }
 0x3e9   : > { %14506 = vmatpush2.bf16.msra.mxu1 %v20225_v26  ;;  %14516 = vmatprep.subr.bf16.mxu0 %v20230_v31  ;;  %v20297_v26 = vld [vmem:[%s22422_s27 + $0x1df8] ss:$136 sps:$4 sm:$0xff]   ;;  %v20302_v31 = vld [vmem:[%s22422_s27 + $0xbec] ss:$136 sps:$4 sm:$0xff]  }
 0x3ea   : > { %14557 = vmatprep.subr.bf16.mxu1 %v20233_v32  ;;  %v20305_v32 = vld [vmem:[%s22422_s27 + $0x1cec] ss:$136 sps:$4 sm:$0xff]  }
 0x3eb   : > { %v23487_v39 = vpop.f32.mrf.mxu0  ;;  %14467 = vmatmul.mubr.bf16.vlgmr.msra.gmra.mxu0 %v22599_v17 }
 0x3ec   : > { %v23489_v40 = vpop.f32.mrf.mxu1  ;;  %14508 = vmatmul.mubr.bf16.vlgmr.msra.gmra.mxu1 %v22603_v18  ;;  %14517 = vmatpush1.bf16.msra.mxu0 %v20228_v1  ;;  %v20300_v1 = vld [vmem:[%s22422_s27 + $0xbe8] ss:$136 sps:$4 sm:$0xff]  }
 0x3ed   : > { %14558 = vmatpush1.bf16.msra.mxu1 %v20231_v2  ;;  %v23493_v43 = vpop.f32.mrf.mxu0  ;;  %14518 = vmatprep.subr.bf16.mxu0 %v20236_v33  ;;  %v20303_v2 = vld [vmem:[%s22422_s27 + $0x1ce8] ss:$136 sps:$4 sm:$0xff]   ;;  %v20308_v33 = vld [vmem:[%s22422_s27 + $0xadc] ss:$136 sps:$4 sm:$0xff]  }
 0x3ee   : > { %v23495_v3 = vpop.f32.mrf.mxu1  ;;  %14559 = vmatprep.subr.bf16.mxu1 %v20239_v34  ;;  %14548 = vmatprep.mubr.bf16.mxu0 %v22484_v48  ;;  %v20311_v34 = vld [vmem:[%s22422_s27 + $0x1bdc] ss:$136 sps:$4 sm:$0xff]  }
 0x3ef   : > { %14589 = vmatprep.mubr.bf16.mxu1 %v22489_v52  ;;  %v14226_v13 = vpop.f32.mrf.mxu0 }
 0x3f0   : > { %v14267_v14 = vpop.f32.mrf.mxu1  ;;  %14519 = vmatpush1.bf16.msra.mxu0 %v20234_v35  ;;  %v20306_v35 = vld [vmem:[%s22422_s27 + $0xad8] ss:$136 sps:$4 sm:$0xff]   ;;  %v20320_v13 = vld [vmem:[%s22422_s27 + $0x8bc] ss:$136 sps:$4 sm:$0xff]  }
 0x3f1   : > { %14560 = vmatpush1.bf16.msra.mxu1 %v20237_v36  ;;  %v14227_v50 = vpop.f32.mrf.mxu0  ;;  %14520 = vmatprep.subr.bf16.mxu0 %v20242_v29  ;;  %v20309_v36 = vld [vmem:[%s22422_s27 + $0x1bd8] ss:$136 sps:$4 sm:$0xff]   ;;  %v20314_v29 = vld [vmem:[%s22422_s27 + $0x9cc] ss:$136 sps:$4 sm:$0xff]   ;;  %v20323_v14 = vld [vmem:[%s22422_s27 + $0x19bc] ss:$136 sps:$4 sm:$0xff]  }
 0x3f2   : > { %v14268_v51 = vpop.f32.mrf.mxu1  ;;  %14561 = vmatprep.subr.bf16.mxu1 %v20245_v44  ;;  %v20317_v44 = vld [vmem:[%s22422_s27 + $0x1acc] ss:$136 sps:$4 sm:$0xff]   ;;  %v20318_v50 = vld [vmem:[%s22422_s27 + $0x8b8] ss:$136 sps:$4 sm:$0xff]  }
 0x3f3   : > { %v20321_v51 = vld [vmem:[%s22422_s27 + $0x19b8] ss:$136 sps:$4 sm:$0xff]  }
 0x3f4   : > { %14521 = vmatpush1.bf16.msra.mxu0 %v20240_v45  ;;  %v20312_v45 = vld [vmem:[%s22422_s27 + $0x9c8] ss:$136 sps:$4 sm:$0xff]  }
 0x3f5   : > { %14562 = vmatpush1.bf16.msra.mxu1 %v20243_v49  ;;  %14522 = vmatprep.subr.bf16.mxu0 %v20248_v53  ;;  %v20315_v49 = vld [vmem:[%s22422_s27 + $0x1ac8] ss:$136 sps:$4 sm:$0xff]   ;;  %v20326_v53 = vld [vmem:[%s22422_s27 + $0x29ac] ss:$136 sps:$4 sm:$0xff]  }
 0x3f6   : > { %14563 = vmatprep.subr.bf16.mxu1 %v20251_v54  ;;  %v20329_v54 = vld [vmem:[%s22422_s27 + $0x3aac] ss:$136 sps:$4 sm:$0xff]  }
 0x3f8   : > { %14523 = vmatpush1.bf16.msra.mxu0 %v20246_v46  ;;  %v20324_v46 = vld [vmem:[%s22422_s27 + $0x29a8] ss:$136 sps:$4 sm:$0xff]  }
 0x3f9   : > { %14564 = vmatpush1.bf16.msra.mxu1 %v20249_v58  ;;  %14524 = vmatprep.subr.bf16.mxu0 %v20254_v59  ;;  %v20327_v58 = vld [vmem:[%s22422_s27 + $0x3aa8] ss:$136 sps:$4 sm:$0xff]   ;;  %v20332_v59 = vld [vmem:[%s22422_s27 + $0x289c] ss:$136 sps:$4 sm:$0xff]  }
 0x3fa   : > { %14565 = vmatprep.subr.bf16.mxu1 %v20257_v60  ;;  %v20335_v60 = vld [vmem:[%s22422_s27 + $0x399c] ss:$136 sps:$4 sm:$0xff]  }
 0x3fc   : > { %14525 = vmatpush1.bf16.msra.mxu0 %v20252_v27  ;;  %v14264_v27 = vadd.f32 %v23489_v40, %v23487_v39  ;;  %v261_v40 = vld [vmem:[#allocation2 + $0x100] sm:$0xff] }
 0x3fd   : > { %14566 = vmatpush1.bf16.msra.mxu1 %v20255_v28  ;;  %14526 = vmatprep.subr.bf16.mxu0 %v20260_v61  ;;  %v20330_v28 = vld [vmem:[%s22422_s27 + $0x2898] ss:$136 sps:$4 sm:$0xff]  }
 0x3fe   : > { %14567 = vmatprep.subr.bf16.mxu1 %v20263_v62  ;;  %v260_v62 = vld [vmem:[#allocation2 + $0xe8] sm:$0xff] }
 0x400   : > { %14527 = vmatpush1.bf16.msra.mxu0 %v20258_v63 }
 0x401   : > { %14568 = vmatpush1.bf16.msra.mxu1 %v20261_v0  ;;  %14528 = vmatprep.subr.bf16.mxu0 %v20266_v30  ;;  %v14266_v0 = vadd.f32 %v23495_v3, %v23493_v43 }
 0x402   : > { %14569 = vmatprep.subr.bf16.mxu1 %v20269_v4  ;;  %v20333_v4 = vld [vmem:[%s22422_s27 + $0x3998] ss:$136 sps:$4 sm:$0xff]  }
 0x404   : > { %14529 = vmatpush1.bf16.msra.mxu0 %v20264_v5 }
 0x405   : > { %14570 = vmatpush1.bf16.msra.mxu1 %v20267_v6  ;;  %14530 = vmatprep.subr.bf16.mxu0 %v20272_v41  ;;  %v20338_v6 = vld [vmem:[%s22422_s27 + $0x278c] ss:$136 sps:$4 sm:$0xff]  }
 0x406   : > { %14571 = vmatprep.subr.bf16.mxu1 %v20275_v42  ;;  %v20341_v41 = vld [vmem:[%s22422_s27 + $0x388c] ss:$136 sps:$4 sm:$0xff]  }
 0x408   : > { %14531 = vmatpush1.bf16.msra.mxu0 %v20270_v9 }
 0x409   : > { %14572 = vmatpush1.bf16.msra.mxu1 %v20273_v10  ;;  %14532 = vmatprep.subr.bf16.mxu0 %v20278_v11  ;;  %v20336_v10 = vld [vmem:[%s22422_s27 + $0x2788] ss:$136 sps:$4 sm:$0xff]  }
 0x40a   : > { %14573 = vmatprep.subr.bf16.mxu1 %v20281_v12  ;;  %v20339_v11 = vld [vmem:[%s22422_s27 + $0x3888] ss:$136 sps:$4 sm:$0xff]  }
 0x40c   : > { %14533 = vmatpush2.bf16.msra.mxu0 %v20276_v47 }
 0x40d   : > { %14574 = vmatpush2.bf16.msra.mxu1 %v20279_v16  ;;  %14534 = vmatprep.subr.bf16.mxu0 %v20284_v55 }
 0x40e   : > { %14575 = vmatprep.subr.bf16.mxu1 %v20287_v56  ;;  %v20344_v56 = vld [vmem:[%s22422_s27 + $0x267c] ss:$136 sps:$4 sm:$0xff]  }
 0x410   : > { %14535 = vmatpush2.bf16.msra.mxu0 %v20282_v19  ;;  %v20347_v19 = vld [vmem:[%s22422_s27 + $0x377c] ss:$136 sps:$4 sm:$0xff]  }
 0x411   : > { %14576 = vmatpush2.bf16.msra.mxu1 %v20285_v20  ;;  %14536 = vmatprep.subr.bf16.mxu0 %v20290_v21  ;;  %v20342_v21 = vld [vmem:[%s22422_s27 + $0x2678] ss:$136 sps:$4 sm:$0xff]  }
 0x412   : > { %14577 = vmatprep.subr.bf16.mxu1 %v20293_v22  ;;  %v20345_v22 = vld [vmem:[%s22422_s27 + $0x3778] ss:$136 sps:$4 sm:$0xff]  }
 0x414   : > { %14537 = vmatpush2.bf16.msra.mxu0 %v20288_v23  ;;  %v20350_v23 = vld [vmem:[%s22422_s27 + $0x256c] ss:$136 sps:$4 sm:$0xff]  }
 0x415   : > { %14578 = vmatpush2.bf16.msra.mxu1 %v20291_v24  ;;  %14538 = vmatprep.subr.bf16.mxu0 %v20296_v25  ;;  %v20353_v24 = vld [vmem:[%s22422_s27 + $0x366c] ss:$136 sps:$4 sm:$0xff]   ;;  %v20348_v25 = vld [vmem:[%s22422_s27 + $0x2568] ss:$136 sps:$4 sm:$0xff]  }
 0x416   : > { %14579 = vmatprep.subr.bf16.mxu1 %v20299_v57  ;;  %v20351_v57 = vld [vmem:[%s22422_s27 + $0x3668] ss:$136 sps:$4 sm:$0xff]  }
 0x418   : > { %14539 = vmatpush2.bf16.msra.mxu0 %v20294_v15  ;;  %v20356_v15 = vld [vmem:[%s22422_s27 + $0x245c] ss:$136 sps:$4 sm:$0xff]  }
 0x419   : > { %14580 = vmatpush2.bf16.msra.mxu1 %v20297_v26  ;;  %14540 = vmatprep.subr.bf16.mxu0 %v20302_v31  ;;  %v20359_v26 = vld [vmem:[%s22422_s27 + $0x355c] ss:$136 sps:$4 sm:$0xff]   ;;  %v20354_v31 = vld [vmem:[%s22422_s27 + $0x2458] ss:$136 sps:$4 sm:$0xff]  }
 0x41a   : > { %14581 = vmatprep.subr.bf16.mxu1 %v20305_v32  ;;  %v20357_v32 = vld [vmem:[%s22422_s27 + $0x3558] ss:$136 sps:$4 sm:$0xff]  }
 0x41c   : > { %14541 = vmatpush2.bf16.msra.mxu0 %v20300_v1  ;;  %v20362_v1 = vld [vmem:[%s22422_s27 + $0x234c] ss:$136 sps:$4 sm:$0xff]  }
 0x41d   : > { %14582 = vmatpush2.bf16.msra.mxu1 %v20303_v2  ;;  %14542 = vmatprep.subr.bf16.mxu0 %v20308_v33  ;;  %v20365_v2 = vld [vmem:[%s22422_s27 + $0x344c] ss:$136 sps:$4 sm:$0xff]   ;;  %v20360_v33 = vld [vmem:[%s22422_s27 + $0x2348] ss:$136 sps:$4 sm:$0xff]  }
 0x41e   : > { %14583 = vmatprep.subr.bf16.mxu1 %v20311_v34  ;;  %v20363_v34 = vld [vmem:[%s22422_s27 + $0x3448] ss:$136 sps:$4 sm:$0xff]  }
 0x420   : > { %14543 = vmatpush2.bf16.msra.mxu0 %v20306_v35  ;;  %v20368_v35 = vld [vmem:[%s22422_s27 + $0x223c] ss:$136 sps:$4 sm:$0xff]  }
 0x421   : > { %14584 = vmatpush2.bf16.msra.mxu1 %v20309_v36  ;;  %14544 = vmatprep.subr.bf16.mxu0 %v20314_v29  ;;  %v20371_v36 = vld [vmem:[%s22422_s27 + $0x333c] ss:$136 sps:$4 sm:$0xff]   ;;  %v20366_v29 = vld [vmem:[%s22422_s27 + $0x2238] ss:$136 sps:$4 sm:$0xff]  }
 0x422   : > { %14585 = vmatprep.subr.bf16.mxu1 %v20317_v44  ;;  %v20369_v44 = vld [vmem:[%s22422_s27 + $0x3338] ss:$136 sps:$4 sm:$0xff]  }
 0x424   : > { %14545 = vmatpush2.bf16.msra.mxu0 %v20312_v45  ;;  %v20374_v45 = vld [vmem:[%s22422_s27 + $0x322c] ss:$136 sps:$4 sm:$0xff]  }
 0x425   : > { %14586 = vmatpush2.bf16.msra.mxu1 %v20315_v49  ;;  %14546 = vmatprep.subr.bf16.mxu0 %v20320_v13  ;;  %v20377_v49 = vld [vmem:[%s22422_s27 + $0x432c] ss:$136 sps:$4 sm:$0xff]   ;;  %v20372_v13 = vld [vmem:[%s22422_s27 + $0x3228] ss:$136 sps:$4 sm:$0xff]  }
 0x426   : > { %14587 = vmatprep.subr.bf16.mxu1 %v20323_v14  ;;  %v20375_v14 = vld [vmem:[%s22422_s27 + $0x4328] ss:$136 sps:$4 sm:$0xff]  }
 0x428   : > { %14547 = vmatpush2.bf16.msra.mxu0 %v20318_v50  ;;  %v20380_v50 = vld [vmem:[%s22422_s27 + $0x311c] ss:$136 sps:$4 sm:$0xff]  }
 0x429   : > { %14588 = vmatpush2.bf16.msra.mxu1 %v20321_v51  ;;  %14598 = vmatprep.subr.bf16.mxu0 %v20326_v53  ;;  %v20383_v51 = vld [vmem:[%s22422_s27 + $0x421c] ss:$136 sps:$4 sm:$0xff]   ;;  %v20378_v53 = vld [vmem:[%s22422_s27 + $0x3118] ss:$136 sps:$4 sm:$0xff]  }
 0x42a   : > { %14639 = vmatprep.subr.bf16.mxu1 %v20329_v54  ;;  %v20381_v54 = vld [vmem:[%s22422_s27 + $0x4218] ss:$136 sps:$4 sm:$0xff]  }
 0x42b   : > { %v14304_v61 = vpop.f32.mrf.mxu0  ;;  %14549 = vmatmul.mubr.bf16.vlgmr.msra.gmra.mxu0 %v22511_v7 }
 0x42c   : > { %v14345_v63 = vpop.f32.mrf.mxu1  ;;  %14590 = vmatmul.mubr.bf16.vlgmr.msra.gmra.mxu1 %v22513_v8  ;;  %v14305_v30 = vadd.f32 %v14304_v61, %v14264_v27  ;;  %14599 = vmatpush1.bf16.msra.mxu0 %v20324_v46  ;;  %v20386_v46 = vld [vmem:[%s22422_s27 + $0x300c] ss:$136 sps:$4 sm:$0xff]   ;;  %v20392_v27 = vld [vmem:[%s22422_s27 + $0x2efc] ss:$136 sps:$4 sm:$0xff]   ;;  %v20390_v61 = vld [vmem:[%s22422_s27 + $0x2ef8] ss:$136 sps:$4 sm:$0xff]  }
 0x42d   : > { %14640 = vmatpush1.bf16.msra.mxu1 %v20327_v58  ;;  %v14306_v39 = vpop.f32.mrf.mxu0  ;;  %14600 = vmatprep.subr.bf16.mxu0 %v20332_v59  ;;  %v20389_v58 = vld [vmem:[%s22422_s27 + $0x410c] ss:$136 sps:$4 sm:$0xff]   ;;  %v20384_v59 = vld [vmem:[%s22422_s27 + $0x3008] ss:$136 sps:$4 sm:$0xff]  }
 0x42e   : > { %v14347_v5 = vpop.f32.mrf.mxu1  ;;  %14641 = vmatprep.subr.bf16.mxu1 %v20335_v60  ;;  %v14346_v42 = vadd.f32 %v14345_v63, %v14305_v30  ;;  %v14307_v9 = vadd.f32 %v14306_v39, %v14266_v0  ;;  %14630 = vmatprep.mubr.bf16.mxu0 %v22551_v37  ;;  %v20387_v60 = vld [vmem:[%s22422_s27 + $0x4108] ss:$136 sps:$4 sm:$0xff]   ;;  %v20398_v63 = vld [vmem:[%s22422_s27 + $0x2dec] ss:$136 sps:$4 sm:$0xff]   ;;  %v20404_v39 = vld [vmem:[%s22422_s27 + $0x2cdc] ss:$136 sps:$4 sm:$0xff]  }
 0x42f   : > { %14671 = vmatprep.mubr.bf16.mxu1 %v22555_v38  ;;  %v14308_v43 = vpop.f32.mrf.mxu0  ;;  %v20401_v0 = vld [vmem:[%s22422_s27 + $0x3eec] ss:$136 sps:$4 sm:$0xff]   ;;  %v20396_v30 = vld [vmem:[%s22422_s27 + $0x2de8] ss:$136 sps:$4 sm:$0xff]  }
 0x430   : > { %v14349_v3 = vpop.f32.mrf.mxu1  ;;  %v16166_v12 = vadd.f32 %v14346_v42, %v260_v62  ;;  %v14348_v47 = vadd.f32 %v14347_v5, %v14307_v9  ;;  %14601 = vmatpush1.bf16.msra.mxu0 %v20330_v28  ;;  %v20395_v28 = vld [vmem:[%s22422_s27 + $0x3ffc] ss:$136 sps:$4 sm:$0xff]   ;;  %v20393_v62 = vld [vmem:[%s22422_s27 + $0x3ff8] ss:$136 sps:$4 sm:$0xff]   ;;  %v20413_v42 = vld [vmem:[%s22422_s27 + $0x3ccc] ss:$136 sps:$4 sm:$0xff]  }
 0x431   : > { %14642 = vmatpush1.bf16.msra.mxu1 %v20333_v4  ;;  %v14309_v16 = vpop.f32.mrf.mxu0  ;;  %14602 = vmatprep.subr.bf16.mxu0 %v20338_v6  ;;  %v20399_v4 = vld [vmem:[%s22422_s27 + $0x3ee8] ss:$136 sps:$4 sm:$0xff]   ;;  %v20402_v5 = vld [vmem:[%s22422_s27 + $0x2cd8] ss:$136 sps:$4 sm:$0xff]   ;;  %v20419_v43 = vld [vmem:[%s22422_s27 + $0x3bbc] ss:$136 sps:$4 sm:$0xff]  }
 0x432   : > { %v14350_v55 = vpop.f32.mrf.mxu1  ;;  %14643 = vmatprep.subr.bf16.mxu1 %v20341_v41  ;;  %16200 = vst [vmem:[#allocation2 + $0xe8] sm:$0xff] %v16166_v12  ;;  %v16167_v20 = vadd.f32 %v14348_v47, %v261_v40  ;;  %v20407_v40 = vld [vmem:[%s22422_s27 + $0x3ddc] ss:$136 sps:$4 sm:$0xff]   ;;  %v20405_v6 = vld [vmem:[%s22422_s27 + $0x3dd8] ss:$136 sps:$4 sm:$0xff]  }
 0x433   : > { %v20410_v41 = vld [vmem:[%s22422_s27 + $0x2bcc] ss:$136 sps:$4 sm:$0xff]   ;;  %v20408_v9 = vld [vmem:[%s22422_s27 + $0x2bc8] ss:$136 sps:$4 sm:$0xff]   ;;  %v20414_v3 = vld [vmem:[%s22422_s27 + $0x2ab8] ss:$136 sps:$4 sm:$0xff]  }
 0x434   : > { %16201 = vst [vmem:[#allocation2 + $0x100] sm:$0xff] %v16167_v20  ;;  %14603 = vmatpush1.bf16.msra.mxu0 %v20336_v10  ;;  %v20411_v10 = vld [vmem:[%s22422_s27 + $0x3cc8] ss:$136 sps:$4 sm:$0xff]   ;;  %v20417_v12 = vld [vmem:[%s22422_s27 + $0x3bb8] ss:$136 sps:$4 sm:$0xff]  }
 0x435   : > { %14644 = vmatpush1.bf16.msra.mxu1 %v20339_v11  ;;  %14604 = vmatprep.subr.bf16.mxu0 %v20344_v56  ;;  %v20416_v11 = vld [vmem:[%s22422_s27 + $0x2abc] ss:$136 sps:$4 sm:$0xff]   ;;  %v20420_v55 = vld [vmem:[%s22422_s27 + $0x7b0] ss:$136 sps:$4 sm:$0xff]  }
 0x436   : > { %14645 = vmatprep.subr.bf16.mxu1 %v20347_v19  ;;  %v20422_v47 = vld [vmem:[%s22422_s27 + $0x7b4] ss:$136 sps:$4 sm:$0xff]   ;;  %v20423_v56 = vld [vmem:[%s22422_s27 + $0x18b0] ss:$136 sps:$4 sm:$0xff]   ;;  %v20428_v19 = vld [vmem:[%s22422_s27 + $0x6a4] ss:$136 sps:$4 sm:$0xff]  }
 0x437   : > { %v20425_v16 = vld [vmem:[%s22422_s27 + $0x18b4] ss:$136 sps:$4 sm:$0xff]   ;;  %v20431_v20 = vld [vmem:[%s22422_s27 + $0x17a4] ss:$136 sps:$4 sm:$0xff]  }
 0x438   : > { %14605 = vmatpush1.bf16.msra.mxu0 %v20342_v21  ;;  %v20426_v21 = vld [vmem:[%s22422_s27 + $0x6a0] ss:$136 sps:$4 sm:$0xff]  }
 0x439   : > { %14646 = vmatpush1.bf16.msra.mxu1 %v20345_v22  ;;  %14606 = vmatprep.subr.bf16.mxu0 %v20350_v23  ;;  %v20429_v22 = vld [vmem:[%s22422_s27 + $0x17a0] ss:$136 sps:$4 sm:$0xff]  }
 0x43a   : > { %14647 = vmatprep.subr.bf16.mxu1 %v20353_v24 }
 0x43c   : > { %14607 = vmatpush1.bf16.msra.mxu0 %v20348_v25 }
 0x43d   : > { %14648 = vmatpush1.bf16.msra.mxu1 %v20351_v57  ;;  %14608 = vmatprep.subr.bf16.mxu0 %v20356_v15  ;;  %v20434_v15 = vld [vmem:[%s22422_s27 + $0x594] ss:$136 sps:$4 sm:$0xff]  }
 0x43e   : > { %14649 = vmatprep.subr.bf16.mxu1 %v20359_v26  ;;  %v20437_v26 = vld [vmem:[%s22422_s27 + $0x1694] ss:$136 sps:$4 sm:$0xff]  }
 0x440   : > { %14609 = vmatpush1.bf16.msra.mxu0 %v20354_v31  ;;  %v20432_v31 = vld [vmem:[%s22422_s27 + $0x590] ss:$136 sps:$4 sm:$0xff]  }
 0x441   : > { %14650 = vmatpush1.bf16.msra.mxu1 %v20357_v32  ;;  %14610 = vmatprep.subr.bf16.mxu0 %v20362_v1  ;;  %v20435_v32 = vld [vmem:[%s22422_s27 + $0x1690] ss:$136 sps:$4 sm:$0xff]  }
 0x442   : > { %14651 = vmatprep.subr.bf16.mxu1 %v20365_v2 }
 0x444   : > { %14611 = vmatpush1.bf16.msra.mxu0 %v20360_v33 }
 0x445   : > { %14652 = vmatpush1.bf16.msra.mxu1 %v20363_v34  ;;  %14612 = vmatprep.subr.bf16.mxu0 %v20368_v35  ;;  %v20440_v35 = vld [vmem:[%s22422_s27 + $0x484] ss:$136 sps:$4 sm:$0xff]  }
 0x446   : > { %14653 = vmatprep.subr.bf16.mxu1 %v20371_v36  ;;  %v20443_v36 = vld [vmem:[%s22422_s27 + $0x1584] ss:$136 sps:$4 sm:$0xff]  }
 0x448   : > { %14613 = vmatpush1.bf16.msra.mxu0 %v20366_v29  ;;  %v20438_v29 = vld [vmem:[%s22422_s27 + $0x480] ss:$136 sps:$4 sm:$0xff]  }
 0x449   : > { %14654 = vmatpush1.bf16.msra.mxu1 %v20369_v44  ;;  %14614 = vmatprep.subr.bf16.mxu0 %v20374_v45  ;;  %v20441_v44 = vld [vmem:[%s22422_s27 + $0x1580] ss:$136 sps:$4 sm:$0xff]   ;;  %v20446_v45 = vld [vmem:[%s22422_s27 + $0x374] ss:$136 sps:$4 sm:$0xff]  }
 0x44a   : > { %14655 = vmatprep.subr.bf16.mxu1 %v20377_v49  ;;  %v20449_v49 = vld [vmem:[%s22422_s27 + $0x1474] ss:$136 sps:$4 sm:$0xff]  }
 0x44c   : > { %14615 = vmatpush2.bf16.msra.mxu0 %v20372_v13  ;;  %v20444_v13 = vld [vmem:[%s22422_s27 + $0x370] ss:$136 sps:$4 sm:$0xff]  }
 0x44d   : > { %14656 = vmatpush2.bf16.msra.mxu1 %v20375_v14  ;;  %14616 = vmatprep.subr.bf16.mxu0 %v20380_v50  ;;  %v20447_v14 = vld [vmem:[%s22422_s27 + $0x1470] ss:$136 sps:$4 sm:$0xff]   ;;  %v20452_v50 = vld [vmem:[%s22422_s27 + $0x264] ss:$136 sps:$4 sm:$0xff]  }
 0x44e   : > { %14657 = vmatprep.subr.bf16.mxu1 %v20383_v51  ;;  %v20455_v51 = vld [vmem:[%s22422_s27 + $0x1364] ss:$136 sps:$4 sm:$0xff]  }
 0x450   : > { %14617 = vmatpush2.bf16.msra.mxu0 %v20378_v53  ;;  %v20450_v53 = vld [vmem:[%s22422_s27 + $0x260] ss:$136 sps:$4 sm:$0xff]  }
 0x451   : > { %14658 = vmatpush2.bf16.msra.mxu1 %v20381_v54  ;;  %14618 = vmatprep.subr.bf16.mxu0 %v20386_v46  ;;  %v20453_v54 = vld [vmem:[%s22422_s27 + $0x1360] ss:$136 sps:$4 sm:$0xff]   ;;  %v20458_v46 = vld [vmem:[%s22422_s27 + $0x154] ss:$136 sps:$4 sm:$0xff]  }
 0x452   : > { %14659 = vmatprep.subr.bf16.mxu1 %v20389_v58  ;;  %v20461_v58 = vld [vmem:[%s22422_s27 + $0x1254] ss:$136 sps:$4 sm:$0xff]  }
 0x454   : > { %14619 = vmatpush2.bf16.msra.mxu0 %v20384_v59  ;;  %v20456_v59 = vld [vmem:[%s22422_s27 + $0x150] ss:$136 sps:$4 sm:$0xff]  }
 0x455   : > { %14660 = vmatpush2.bf16.msra.mxu1 %v20387_v60  ;;  %14620 = vmatprep.subr.bf16.mxu0 %v20392_v27  ;;  %v20459_v60 = vld [vmem:[%s22422_s27 + $0x1250] ss:$136 sps:$4 sm:$0xff]   ;;  %v20464_v27 = vld [vmem:[%s22422_s27 + $0x44] ss:$136 sps:$4 sm:$0xff]  }
 0x456   : > { %14661 = vmatprep.subr.bf16.mxu1 %v20395_v28  ;;  %v20467_v28 = vld [vmem:[%s22422_s27 + $0x1144] ss:$136 sps:$4 sm:$0xff]  }
 0x458   : > { %14621 = vmatpush2.bf16.msra.mxu0 %v20390_v61  ;;  %v20462_v61 = vld [vmem:[%s22422_s27 + $0x40] ss:$136 sps:$4 sm:$0xff]  }
 0x459   : > { %14662 = vmatpush2.bf16.msra.mxu1 %v20393_v62  ;;  %14622 = vmatprep.subr.bf16.mxu0 %v20398_v63  ;;  %v20465_v62 = vld [vmem:[%s22422_s27 + $0x1140] ss:$136 sps:$4 sm:$0xff]   ;;  %v20470_v63 = vld [vmem:[%s22422_s27 + $0x1034] ss:$136 sps:$4 sm:$0xff]  }
 0x45a   : > { %14663 = vmatprep.subr.bf16.mxu1 %v20401_v0  ;;  %v20473_v0 = vld [vmem:[%s22422_s27 + $0x2134] ss:$136 sps:$4 sm:$0xff]  }
 0x45c   : > { %14623 = vmatpush2.bf16.msra.mxu0 %v20396_v30  ;;  %v20468_v30 = vld [vmem:[%s22422_s27 + $0x1030] ss:$136 sps:$4 sm:$0xff]  }
 0x45d   : > { %14664 = vmatpush2.bf16.msra.mxu1 %v20399_v4  ;;  %14624 = vmatprep.subr.bf16.mxu0 %v20404_v39  ;;  %v20471_v4 = vld [vmem:[%s22422_s27 + $0x2130] ss:$136 sps:$4 sm:$0xff]   ;;  %v20476_v39 = vld [vmem:[%s22422_s27 + $0xf24] ss:$136 sps:$4 sm:$0xff]  }
 0x45e   : > { %14665 = vmatprep.subr.bf16.mxu1 %v20407_v40  ;;  %v20479_v40 = vld [vmem:[%s22422_s27 + $0x2024] ss:$136 sps:$4 sm:$0xff]  }
 0x460   : > { %14625 = vmatpush2.bf16.msra.mxu0 %v20402_v5  ;;  %v20474_v5 = vld [vmem:[%s22422_s27 + $0xf20] ss:$136 sps:$4 sm:$0xff]  }
 0x461   : > { %14666 = vmatpush2.bf16.msra.mxu1 %v20405_v6  ;;  %14626 = vmatprep.subr.bf16.mxu0 %v20410_v41  ;;  %v20477_v6 = vld [vmem:[%s22422_s27 + $0x2020] ss:$136 sps:$4 sm:$0xff]   ;;  %v20482_v41 = vld [vmem:[%s22422_s27 + $0xe14] ss:$136 sps:$4 sm:$0xff]  }
 0x462   : > { %14667 = vmatprep.subr.bf16.mxu1 %v20413_v42  ;;  %v20485_v42 = vld [vmem:[%s22422_s27 + $0x1f14] ss:$136 sps:$4 sm:$0xff]  }
 0x464   : > { %14627 = vmatpush2.bf16.msra.mxu0 %v20408_v9  ;;  %v20480_v9 = vld [vmem:[%s22422_s27 + $0xe10] ss:$136 sps:$4 sm:$0xff]  }
 0x465   : > { %14668 = vmatpush2.bf16.msra.mxu1 %v20411_v10  ;;  %14628 = vmatprep.subr.bf16.mxu0 %v20416_v11  ;;  %v20483_v10 = vld [vmem:[%s22422_s27 + $0x1f10] ss:$136 sps:$4 sm:$0xff]   ;;  %v20488_v11 = vld [vmem:[%s22422_s27 + $0xd04] ss:$136 sps:$4 sm:$0xff]  }
 0x466   : > { %14669 = vmatprep.subr.bf16.mxu1 %v20419_v43  ;;  %v20491_v43 = vld [vmem:[%s22422_s27 + $0x1e04] ss:$136 sps:$4 sm:$0xff]  }
 0x468   : > { %14629 = vmatpush2.bf16.msra.mxu0 %v20414_v3  ;;  %v20486_v3 = vld [vmem:[%s22422_s27 + $0xd00] ss:$136 sps:$4 sm:$0xff]  }
 0x469   : > { %14670 = vmatpush2.bf16.msra.mxu1 %v20417_v12  ;;  %14680 = vmatprep.subr.bf16.mxu0 %v20422_v47  ;;  %v20489_v12 = vld [vmem:[%s22422_s27 + $0x1e00] ss:$136 sps:$4 sm:$0xff]   ;;  %v20494_v47 = vld [vmem:[%s22422_s27 + $0xbf4] ss:$136 sps:$4 sm:$0xff]  }
 0x46a   : > { %14721 = vmatprep.subr.bf16.mxu1 %v20425_v16  ;;  %v20497_v16 = vld [vmem:[%s22422_s27 + $0x1cf4] ss:$136 sps:$4 sm:$0xff]  }
 0x46b   : > { %v23635_v23 = vpop.f32.mrf.mxu0  ;;  %14631 = vmatmul.mubr.bf16.vlgmr.msra.gmra.mxu0 %v22599_v17 }
 0x46c   : > { %v23637_v24 = vpop.f32.mrf.mxu1  ;;  %14672 = vmatmul.mubr.bf16.vlgmr.msra.gmra.mxu1 %v22603_v18  ;;  %14681 = vmatpush1.bf16.msra.mxu0 %v20420_v55  ;;  %v20492_v55 = vld [vmem:[%s22422_s27 + $0xbf0] ss:$136 sps:$4 sm:$0xff]  }
 0x46d   : > { %14722 = vmatpush1.bf16.msra.mxu1 %v20423_v56  ;;  %v23641_v25 = vpop.f32.mrf.mxu0  ;;  %14682 = vmatprep.subr.bf16.mxu0 %v20428_v19  ;;  %v20495_v56 = vld [vmem:[%s22422_s27 + $0x1cf0] ss:$136 sps:$4 sm:$0xff]   ;;  %v20500_v19 = vld [vmem:[%s22422_s27 + $0xae4] ss:$136 sps:$4 sm:$0xff]  }
 0x46e   : > { %v23643_v57 = vpop.f32.mrf.mxu1  ;;  %14723 = vmatprep.subr.bf16.mxu1 %v20431_v20  ;;  %14712 = vmatprep.mubr.bf16.mxu0 %v22484_v48  ;;  %v20503_v20 = vld [vmem:[%s22422_s27 + $0x1be4] ss:$136 sps:$4 sm:$0xff]  }
 0x46f   : > { %14753 = vmatprep.mubr.bf16.mxu1 %v22489_v52  ;;  %v14390_v1 = vpop.f32.mrf.mxu0 }
 0x470   : > { %v14431_v2 = vpop.f32.mrf.mxu1  ;;  %14683 = vmatpush1.bf16.msra.mxu0 %v20426_v21  ;;  %v20498_v21 = vld [vmem:[%s22422_s27 + $0xae0] ss:$136 sps:$4 sm:$0xff]   ;;  %v20512_v1 = vld [vmem:[%s22422_s27 + $0x8c4] ss:$136 sps:$4 sm:$0xff]  }
 0x471   : > { %14724 = vmatpush1.bf16.msra.mxu1 %v20429_v22  ;;  %v14391_v33 = vpop.f32.mrf.mxu0  ;;  %14684 = vmatprep.subr.bf16.mxu0 %v20434_v15  ;;  %v20501_v22 = vld [vmem:[%s22422_s27 + $0x1be0] ss:$136 sps:$4 sm:$0xff]   ;;  %v20506_v15 = vld [vmem:[%s22422_s27 + $0x9d4] ss:$136 sps:$4 sm:$0xff]   ;;  %v20515_v2 = vld [vmem:[%s22422_s27 + $0x19c4] ss:$136 sps:$4 sm:$0xff]  }
 0x472   : > { %v14432_v34 = vpop.f32.mrf.mxu1  ;;  %14725 = vmatprep.subr.bf16.mxu1 %v20437_v26  ;;  %v20509_v26 = vld [vmem:[%s22422_s27 + $0x1ad4] ss:$136 sps:$4 sm:$0xff]   ;;  %v20510_v33 = vld [vmem:[%s22422_s27 + $0x8c0] ss:$136 sps:$4 sm:$0xff]  }
 0x473   : > { %v20513_v34 = vld [vmem:[%s22422_s27 + $0x19c0] ss:$136 sps:$4 sm:$0xff]  }
 0x474   : > { %14685 = vmatpush1.bf16.msra.mxu0 %v20432_v31  ;;  %v20504_v31 = vld [vmem:[%s22422_s27 + $0x9d0] ss:$136 sps:$4 sm:$0xff]  }
 0x475   : > { %14726 = vmatpush1.bf16.msra.mxu1 %v20435_v32  ;;  %14686 = vmatprep.subr.bf16.mxu0 %v20440_v35  ;;  %v20507_v32 = vld [vmem:[%s22422_s27 + $0x1ad0] ss:$136 sps:$4 sm:$0xff]   ;;  %v20518_v35 = vld [vmem:[%s22422_s27 + $0x29b4] ss:$136 sps:$4 sm:$0xff]  }
 0x476   : > { %14727 = vmatprep.subr.bf16.mxu1 %v20443_v36  ;;  %v20521_v36 = vld [vmem:[%s22422_s27 + $0x3ab4] ss:$136 sps:$4 sm:$0xff]  }
 0x478   : > { %14687 = vmatpush1.bf16.msra.mxu0 %v20438_v29  ;;  %v20516_v29 = vld [vmem:[%s22422_s27 + $0x29b0] ss:$136 sps:$4 sm:$0xff]  }
 0x479   : > { %14728 = vmatpush1.bf16.msra.mxu1 %v20441_v44  ;;  %14688 = vmatprep.subr.bf16.mxu0 %v20446_v45  ;;  %v20519_v44 = vld [vmem:[%s22422_s27 + $0x3ab0] ss:$136 sps:$4 sm:$0xff]   ;;  %v20524_v45 = vld [vmem:[%s22422_s27 + $0x28a4] ss:$136 sps:$4 sm:$0xff]  }
 0x47a   : > { %14729 = vmatprep.subr.bf16.mxu1 %v20449_v49  ;;  %v20527_v49 = vld [vmem:[%s22422_s27 + $0x39a4] ss:$136 sps:$4 sm:$0xff]  }
 0x47c   : > { %14689 = vmatpush1.bf16.msra.mxu0 %v20444_v13  ;;  %v14428_v13 = vadd.f32 %v23637_v24, %v23635_v23  ;;  %v263_v24 = vld [vmem:[#allocation2 + $0x28] sm:$0xff] }
 0x47d   : > { %14730 = vmatpush1.bf16.msra.mxu1 %v20447_v14  ;;  %14690 = vmatprep.subr.bf16.mxu0 %v20452_v50  ;;  %v20522_v14 = vld [vmem:[%s22422_s27 + $0x28a0] ss:$136 sps:$4 sm:$0xff]  }
 0x47e   : > { %14731 = vmatprep.subr.bf16.mxu1 %v20455_v51  ;;  %v262_v51 = vld [vmem:[#allocation2 + $0xc0] sm:$0xff] }
 0x480   : > { %14691 = vmatpush1.bf16.msra.mxu0 %v20450_v53 }
 0x481   : > { %14732 = vmatpush1.bf16.msra.mxu1 %v20453_v54  ;;  %14692 = vmatprep.subr.bf16.mxu0 %v20458_v46  ;;  %v14430_v54 = vadd.f32 %v23643_v57, %v23641_v25 }
 0x482   : > { %14733 = vmatprep.subr.bf16.mxu1 %v20461_v58  ;;  %v20525_v58 = vld [vmem:[%s22422_s27 + $0x39a0] ss:$136 sps:$4 sm:$0xff]  }
 0x484   : > { %14693 = vmatpush1.bf16.msra.mxu0 %v20456_v59 }
 0x485   : > { %14734 = vmatpush1.bf16.msra.mxu1 %v20459_v60  ;;  %14694 = vmatprep.subr.bf16.mxu0 %v20464_v27  ;;  %v20530_v60 = vld [vmem:[%s22422_s27 + $0x2794] ss:$136 sps:$4 sm:$0xff]  }
 0x486   : > { %14735 = vmatprep.subr.bf16.mxu1 %v20467_v28  ;;  %v20533_v27 = vld [vmem:[%s22422_s27 + $0x3894] ss:$136 sps:$4 sm:$0xff]  }
 0x488   : > { %14695 = vmatpush1.bf16.msra.mxu0 %v20462_v61 }
 0x489   : > { %14736 = vmatpush1.bf16.msra.mxu1 %v20465_v62  ;;  %14696 = vmatprep.subr.bf16.mxu0 %v20470_v63  ;;  %v20528_v62 = vld [vmem:[%s22422_s27 + $0x2790] ss:$136 sps:$4 sm:$0xff]  }
 0x48a   : > { %14737 = vmatprep.subr.bf16.mxu1 %v20473_v0  ;;  %v20531_v63 = vld [vmem:[%s22422_s27 + $0x3890] ss:$136 sps:$4 sm:$0xff]  }
 0x48c   : > { %14697 = vmatpush2.bf16.msra.mxu0 %v20468_v30 }
 0x48d   : > { %14738 = vmatpush2.bf16.msra.mxu1 %v20471_v4  ;;  %14698 = vmatprep.subr.bf16.mxu0 %v20476_v39 }
 0x48e   : > { %14739 = vmatprep.subr.bf16.mxu1 %v20479_v40  ;;  %v20536_v40 = vld [vmem:[%s22422_s27 + $0x2684] ss:$136 sps:$4 sm:$0xff]  }
 0x490   : > { %14699 = vmatpush2.bf16.msra.mxu0 %v20474_v5  ;;  %v20539_v5 = vld [vmem:[%s22422_s27 + $0x3784] ss:$136 sps:$4 sm:$0xff]  }
 0x491   : > { %14740 = vmatpush2.bf16.msra.mxu1 %v20477_v6  ;;  %14700 = vmatprep.subr.bf16.mxu0 %v20482_v41  ;;  %v20534_v41 = vld [vmem:[%s22422_s27 + $0x2680] ss:$136 sps:$4 sm:$0xff]  }
 0x492   : > { %14741 = vmatprep.subr.bf16.mxu1 %v20485_v42  ;;  %v20537_v42 = vld [vmem:[%s22422_s27 + $0x3780] ss:$136 sps:$4 sm:$0xff]  }
 0x494   : > { %14701 = vmatpush2.bf16.msra.mxu0 %v20480_v9  ;;  %v20542_v9 = vld [vmem:[%s22422_s27 + $0x2574] ss:$136 sps:$4 sm:$0xff]  }
 0x495   : > { %14742 = vmatpush2.bf16.msra.mxu1 %v20483_v10  ;;  %14702 = vmatprep.subr.bf16.mxu0 %v20488_v11  ;;  %v20545_v10 = vld [vmem:[%s22422_s27 + $0x3674] ss:$136 sps:$4 sm:$0xff]   ;;  %v20540_v11 = vld [vmem:[%s22422_s27 + $0x2570] ss:$136 sps:$4 sm:$0xff]  }
 0x496   : > { %14743 = vmatprep.subr.bf16.mxu1 %v20491_v43  ;;  %v20543_v43 = vld [vmem:[%s22422_s27 + $0x3670] ss:$136 sps:$4 sm:$0xff]  }
 0x498   : > { %14703 = vmatpush2.bf16.msra.mxu0 %v20486_v3  ;;  %v20548_v3 = vld [vmem:[%s22422_s27 + $0x2464] ss:$136 sps:$4 sm:$0xff]  }
 0x499   : > { %14744 = vmatpush2.bf16.msra.mxu1 %v20489_v12  ;;  %14704 = vmatprep.subr.bf16.mxu0 %v20494_v47  ;;  %v20551_v12 = vld [vmem:[%s22422_s27 + $0x3564] ss:$136 sps:$4 sm:$0xff]   ;;  %v20546_v47 = vld [vmem:[%s22422_s27 + $0x2460] ss:$136 sps:$4 sm:$0xff]  }
 0x49a   : > { %14745 = vmatprep.subr.bf16.mxu1 %v20497_v16  ;;  %v20549_v16 = vld [vmem:[%s22422_s27 + $0x3560] ss:$136 sps:$4 sm:$0xff]  }
 0x49c   : > { %14705 = vmatpush2.bf16.msra.mxu0 %v20492_v55  ;;  %v20554_v55 = vld [vmem:[%s22422_s27 + $0x2354] ss:$136 sps:$4 sm:$0xff]  }
 0x49d   : > { %14746 = vmatpush2.bf16.msra.mxu1 %v20495_v56  ;;  %14706 = vmatprep.subr.bf16.mxu0 %v20500_v19  ;;  %v20557_v56 = vld [vmem:[%s22422_s27 + $0x3454] ss:$136 sps:$4 sm:$0xff]   ;;  %v20552_v19 = vld [vmem:[%s22422_s27 + $0x2350] ss:$136 sps:$4 sm:$0xff]  }
 0x49e   : > { %14747 = vmatprep.subr.bf16.mxu1 %v20503_v20  ;;  %v20555_v20 = vld [vmem:[%s22422_s27 + $0x3450] ss:$136 sps:$4 sm:$0xff]  }
 0x4a0   : > { %14707 = vmatpush2.bf16.msra.mxu0 %v20498_v21  ;;  %v20560_v21 = vld [vmem:[%s22422_s27 + $0x2244] ss:$136 sps:$4 sm:$0xff]  }
 0x4a1   : > { %14748 = vmatpush2.bf16.msra.mxu1 %v20501_v22  ;;  %14708 = vmatprep.subr.bf16.mxu0 %v20506_v15  ;;  %v20563_v22 = vld [vmem:[%s22422_s27 + $0x3344] ss:$136 sps:$4 sm:$0xff]   ;;  %v20558_v15 = vld [vmem:[%s22422_s27 + $0x2240] ss:$136 sps:$4 sm:$0xff]  }
 0x4a2   : > { %14749 = vmatprep.subr.bf16.mxu1 %v20509_v26  ;;  %v20561_v26 = vld [vmem:[%s22422_s27 + $0x3340] ss:$136 sps:$4 sm:$0xff]  }
 0x4a4   : > { %14709 = vmatpush2.bf16.msra.mxu0 %v20504_v31  ;;  %v20566_v31 = vld [vmem:[%s22422_s27 + $0x3234] ss:$136 sps:$4 sm:$0xff]  }
 0x4a5   : > { %14750 = vmatpush2.bf16.msra.mxu1 %v20507_v32  ;;  %14710 = vmatprep.subr.bf16.mxu0 %v20512_v1  ;;  %v20569_v32 = vld [vmem:[%s22422_s27 + $0x4334] ss:$136 sps:$4 sm:$0xff]   ;;  %v20564_v1 = vld [vmem:[%s22422_s27 + $0x3230] ss:$136 sps:$4 sm:$0xff]  }
 0x4a6   : > { %14751 = vmatprep.subr.bf16.mxu1 %v20515_v2  ;;  %v20567_v2 = vld [vmem:[%s22422_s27 + $0x4330] ss:$136 sps:$4 sm:$0xff]  }
 0x4a8   : > { %14711 = vmatpush2.bf16.msra.mxu0 %v20510_v33  ;;  %v20572_v33 = vld [vmem:[%s22422_s27 + $0x3124] ss:$136 sps:$4 sm:$0xff]  }
 0x4a9   : > { %14752 = vmatpush2.bf16.msra.mxu1 %v20513_v34  ;;  %14762 = vmatprep.subr.bf16.mxu0 %v20518_v35  ;;  %v20575_v34 = vld [vmem:[%s22422_s27 + $0x4224] ss:$136 sps:$4 sm:$0xff]   ;;  %v20570_v35 = vld [vmem:[%s22422_s27 + $0x3120] ss:$136 sps:$4 sm:$0xff]  }
 0x4aa   : > { %14803 = vmatprep.subr.bf16.mxu1 %v20521_v36  ;;  %v20573_v36 = vld [vmem:[%s22422_s27 + $0x4220] ss:$136 sps:$4 sm:$0xff]  }
 0x4ab   : > { %v14468_v50 = vpop.f32.mrf.mxu0  ;;  %14713 = vmatmul.mubr.bf16.vlgmr.msra.gmra.mxu0 %v22511_v7 }
 0x4ac   : > { %v14509_v53 = vpop.f32.mrf.mxu1  ;;  %14754 = vmatmul.mubr.bf16.vlgmr.msra.gmra.mxu1 %v22513_v8  ;;  %v14469_v46 = vadd.f32 %v14468_v50, %v14428_v13  ;;  %14763 = vmatpush1.bf16.msra.mxu0 %v20516_v29  ;;  %v20578_v29 = vld [vmem:[%s22422_s27 + $0x3014] ss:$136 sps:$4 sm:$0xff]   ;;  %v20584_v13 = vld [vmem:[%s22422_s27 + $0x2f04] ss:$136 sps:$4 sm:$0xff]   ;;  %v20582_v50 = vld [vmem:[%s22422_s27 + $0x2f00] ss:$136 sps:$4 sm:$0xff]  }
 0x4ad   : > { %14804 = vmatpush1.bf16.msra.mxu1 %v20519_v44  ;;  %v14470_v23 = vpop.f32.mrf.mxu0  ;;  %14764 = vmatprep.subr.bf16.mxu0 %v20524_v45  ;;  %v20581_v44 = vld [vmem:[%s22422_s27 + $0x4114] ss:$136 sps:$4 sm:$0xff]   ;;  %v20576_v45 = vld [vmem:[%s22422_s27 + $0x3010] ss:$136 sps:$4 sm:$0xff]  }
 0x4ae   : > { %v14511_v59 = vpop.f32.mrf.mxu1  ;;  %14805 = vmatprep.subr.bf16.mxu1 %v20527_v49  ;;  %v14510_v28 = vadd.f32 %v14509_v53, %v14469_v46  ;;  %v14471_v61 = vadd.f32 %v14470_v23, %v14430_v54  ;;  %14794 = vmatprep.mubr.bf16.mxu0 %v22551_v37  ;;  %v20579_v49 = vld [vmem:[%s22422_s27 + $0x4110] ss:$136 sps:$4 sm:$0xff]   ;;  %v20590_v53 = vld [vmem:[%s22422_s27 + $0x2df4] ss:$136 sps:$4 sm:$0xff]   ;;  %v20596_v23 = vld [vmem:[%s22422_s27 + $0x2ce4] ss:$136 sps:$4 sm:$0xff]  }
 0x4af   : > { %14835 = vmatprep.mubr.bf16.mxu1 %v22555_v38  ;;  %v14472_v25 = vpop.f32.mrf.mxu0  ;;  %v20593_v54 = vld [vmem:[%s22422_s27 + $0x3ef4] ss:$136 sps:$4 sm:$0xff]   ;;  %v20588_v46 = vld [vmem:[%s22422_s27 + $0x2df0] ss:$136 sps:$4 sm:$0xff]  }
 0x4b0   : > { %v14513_v57 = vpop.f32.mrf.mxu1  ;;  %v16168_v0 = vadd.f32 %v14510_v28, %v262_v51  ;;  %v14512_v30 = vadd.f32 %v14511_v59, %v14471_v61  ;;  %14765 = vmatpush1.bf16.msra.mxu0 %v20522_v14  ;;  %v20587_v14 = vld [vmem:[%s22422_s27 + $0x4004] ss:$136 sps:$4 sm:$0xff]   ;;  %v20585_v51 = vld [vmem:[%s22422_s27 + $0x4000] ss:$136 sps:$4 sm:$0xff]   ;;  %v20605_v28 = vld [vmem:[%s22422_s27 + $0x3cd4] ss:$136 sps:$4 sm:$0xff]  }
 0x4b1   : > { %14806 = vmatpush1.bf16.msra.mxu1 %v20525_v58  ;;  %v14473_v4 = vpop.f32.mrf.mxu0  ;;  %14766 = vmatprep.subr.bf16.mxu0 %v20530_v60  ;;  %v20591_v58 = vld [vmem:[%s22422_s27 + $0x3ef0] ss:$136 sps:$4 sm:$0xff]   ;;  %v20594_v59 = vld [vmem:[%s22422_s27 + $0x2ce0] ss:$136 sps:$4 sm:$0xff]   ;;  %v20611_v25 = vld [vmem:[%s22422_s27 + $0x3bc4] ss:$136 sps:$4 sm:$0xff]  }
 0x4b2   : > { %v14514_v39 = vpop.f32.mrf.mxu1  ;;  %14807 = vmatprep.subr.bf16.mxu1 %v20533_v27  ;;  %16202 = vst [vmem:[#allocation2 + $0xc0] sm:$0xff] %v16168_v0  ;;  %v16169_v6 = vadd.f32 %v14512_v30, %v263_v24  ;;  %v20599_v24 = vld [vmem:[%s22422_s27 + $0x3de4] ss:$136 sps:$4 sm:$0xff]   ;;  %v20597_v60 = vld [vmem:[%s22422_s27 + $0x3de0] ss:$136 sps:$4 sm:$0xff]  }
 0x4b3   : > { %v20602_v27 = vld [vmem:[%s22422_s27 + $0x2bd4] ss:$136 sps:$4 sm:$0xff]   ;;  %v20600_v61 = vld [vmem:[%s22422_s27 + $0x2bd0] ss:$136 sps:$4 sm:$0xff]   ;;  %v20606_v57 = vld [vmem:[%s22422_s27 + $0x2ac0] ss:$136 sps:$4 sm:$0xff]  }
 0x4b4   : > { %16203 = vst [vmem:[#allocation2 + $0x28] sm:$0xff] %v16169_v6  ;;  %14767 = vmatpush1.bf16.msra.mxu0 %v20528_v62  ;;  %v20603_v62 = vld [vmem:[%s22422_s27 + $0x3cd0] ss:$136 sps:$4 sm:$0xff]   ;;  %v20609_v0 = vld [vmem:[%s22422_s27 + $0x3bc0] ss:$136 sps:$4 sm:$0xff]  }
 0x4b5   : > { %14808 = vmatpush1.bf16.msra.mxu1 %v20531_v63  ;;  %14768 = vmatprep.subr.bf16.mxu0 %v20536_v40  ;;  %v20608_v63 = vld [vmem:[%s22422_s27 + $0x2ac4] ss:$136 sps:$4 sm:$0xff]   ;;  %v20612_v39 = vld [vmem:[%s22422_s27 + $0x7b8] ss:$136 sps:$4 sm:$0xff]  }
 0x4b6   : > { %14809 = vmatprep.subr.bf16.mxu1 %v20539_v5  ;;  %v20614_v30 = vld [vmem:[%s22422_s27 + $0x7bc] ss:$136 sps:$4 sm:$0xff]   ;;  %v20615_v40 = vld [vmem:[%s22422_s27 + $0x18b8] ss:$136 sps:$4 sm:$0xff]   ;;  %v20620_v5 = vld [vmem:[%s22422_s27 + $0x6ac] ss:$136 sps:$4 sm:$0xff]  }
 0x4b7   : > { %v20617_v4 = vld [vmem:[%s22422_s27 + $0x18bc] ss:$136 sps:$4 sm:$0xff]   ;;  %v20623_v6 = vld [vmem:[%s22422_s27 + $0x17ac] ss:$136 sps:$4 sm:$0xff]  }
 0x4b8   : > { %14769 = vmatpush1.bf16.msra.mxu0 %v20534_v41  ;;  %v20618_v41 = vld [vmem:[%s22422_s27 + $0x6a8] ss:$136 sps:$4 sm:$0xff]  }
 0x4b9   : > { %14810 = vmatpush1.bf16.msra.mxu1 %v20537_v42  ;;  %14770 = vmatprep.subr.bf16.mxu0 %v20542_v9  ;;  %v20621_v42 = vld [vmem:[%s22422_s27 + $0x17a8] ss:$136 sps:$4 sm:$0xff]  }
 0x4ba   : > { %14811 = vmatprep.subr.bf16.mxu1 %v20545_v10 }
 0x4bc   : > { %14771 = vmatpush1.bf16.msra.mxu0 %v20540_v11 }
 0x4bd   : > { %14812 = vmatpush1.bf16.msra.mxu1 %v20543_v43  ;;  %14772 = vmatprep.subr.bf16.mxu0 %v20548_v3  ;;  %v20626_v3 = vld [vmem:[%s22422_s27 + $0x59c] ss:$136 sps:$4 sm:$0xff]  }
 0x4be   : > { %14813 = vmatprep.subr.bf16.mxu1 %v20551_v12  ;;  %v20629_v12 = vld [vmem:[%s22422_s27 + $0x169c] ss:$136 sps:$4 sm:$0xff]  }
 0x4c0   : > { %14773 = vmatpush1.bf16.msra.mxu0 %v20546_v47  ;;  %v20624_v47 = vld [vmem:[%s22422_s27 + $0x598] ss:$136 sps:$4 sm:$0xff]  }
 0x4c1   : > { %14814 = vmatpush1.bf16.msra.mxu1 %v20549_v16  ;;  %14774 = vmatprep.subr.bf16.mxu0 %v20554_v55  ;;  %v20627_v16 = vld [vmem:[%s22422_s27 + $0x1698] ss:$136 sps:$4 sm:$0xff]  }
 0x4c2   : > { %14815 = vmatprep.subr.bf16.mxu1 %v20557_v56 }
 0x4c4   : > { %14775 = vmatpush1.bf16.msra.mxu0 %v20552_v19 }
 0x4c5   : > { %14816 = vmatpush1.bf16.msra.mxu1 %v20555_v20  ;;  %14776 = vmatprep.subr.bf16.mxu0 %v20560_v21  ;;  %v20632_v21 = vld [vmem:[%s22422_s27 + $0x48c] ss:$136 sps:$4 sm:$0xff]  }
 0x4c6   : > { %14817 = vmatprep.subr.bf16.mxu1 %v20563_v22  ;;  %v20635_v22 = vld [vmem:[%s22422_s27 + $0x158c] ss:$136 sps:$4 sm:$0xff]  }
 0x4c8   : > { %14777 = vmatpush1.bf16.msra.mxu0 %v20558_v15  ;;  %v20630_v15 = vld [vmem:[%s22422_s27 + $0x488] ss:$136 sps:$4 sm:$0xff]  }
 0x4c9   : > { %14818 = vmatpush1.bf16.msra.mxu1 %v20561_v26  ;;  %14778 = vmatprep.subr.bf16.mxu0 %v20566_v31  ;;  %v20633_v26 = vld [vmem:[%s22422_s27 + $0x1588] ss:$136 sps:$4 sm:$0xff]   ;;  %v20638_v31 = vld [vmem:[%s22422_s27 + $0x37c] ss:$136 sps:$4 sm:$0xff]  }
 0x4ca   : > { %14819 = vmatprep.subr.bf16.mxu1 %v20569_v32  ;;  %v20641_v32 = vld [vmem:[%s22422_s27 + $0x147c] ss:$136 sps:$4 sm:$0xff]  }
 0x4cc   : > { %14779 = vmatpush2.bf16.msra.mxu0 %v20564_v1  ;;  %v20636_v1 = vld [vmem:[%s22422_s27 + $0x378] ss:$136 sps:$4 sm:$0xff]  }
 0x4cd   : > { %14820 = vmatpush2.bf16.msra.mxu1 %v20567_v2  ;;  %14780 = vmatprep.subr.bf16.mxu0 %v20572_v33  ;;  %v20639_v2 = vld [vmem:[%s22422_s27 + $0x1478] ss:$136 sps:$4 sm:$0xff]   ;;  %v20644_v33 = vld [vmem:[%s22422_s27 + $0x26c] ss:$136 sps:$4 sm:$0xff]  }
 0x4ce   : > { %14821 = vmatprep.subr.bf16.mxu1 %v20575_v34  ;;  %v20647_v34 = vld [vmem:[%s22422_s27 + $0x136c] ss:$136 sps:$4 sm:$0xff]  }
 0x4d0   : > { %14781 = vmatpush2.bf16.msra.mxu0 %v20570_v35  ;;  %v20642_v35 = vld [vmem:[%s22422_s27 + $0x268] ss:$136 sps:$4 sm:$0xff]  }
 0x4d1   : > { %14822 = vmatpush2.bf16.msra.mxu1 %v20573_v36  ;;  %14782 = vmatprep.subr.bf16.mxu0 %v20578_v29  ;;  %v20645_v36 = vld [vmem:[%s22422_s27 + $0x1368] ss:$136 sps:$4 sm:$0xff]   ;;  %v20650_v29 = vld [vmem:[%s22422_s27 + $0x15c] ss:$136 sps:$4 sm:$0xff]  }
 0x4d2   : > { %14823 = vmatprep.subr.bf16.mxu1 %v20581_v44  ;;  %v20653_v44 = vld [vmem:[%s22422_s27 + $0x125c] ss:$136 sps:$4 sm:$0xff]  }
 0x4d4   : > { %14783 = vmatpush2.bf16.msra.mxu0 %v20576_v45  ;;  %v20648_v45 = vld [vmem:[%s22422_s27 + $0x158] ss:$136 sps:$4 sm:$0xff]  }
 0x4d5   : > { %14824 = vmatpush2.bf16.msra.mxu1 %v20579_v49  ;;  %14784 = vmatprep.subr.bf16.mxu0 %v20584_v13  ;;  %v20651_v49 = vld [vmem:[%s22422_s27 + $0x1258] ss:$136 sps:$4 sm:$0xff]   ;;  %v20656_v13 = vld [vmem:[%s22422_s27 + $0x4c] ss:$136 sps:$4 sm:$0xff]  }
 0x4d6   : > { %14825 = vmatprep.subr.bf16.mxu1 %v20587_v14  ;;  %v20659_v14 = vld [vmem:[%s22422_s27 + $0x114c] ss:$136 sps:$4 sm:$0xff]  }
 0x4d8   : > { %14785 = vmatpush2.bf16.msra.mxu0 %v20582_v50  ;;  %v20654_v50 = vld [vmem:[%s22422_s27 + $0x48] ss:$136 sps:$4 sm:$0xff]  }
 0x4d9   : > { %14826 = vmatpush2.bf16.msra.mxu1 %v20585_v51  ;;  %14786 = vmatprep.subr.bf16.mxu0 %v20590_v53  ;;  %v20657_v51 = vld [vmem:[%s22422_s27 + $0x1148] ss:$136 sps:$4 sm:$0xff]   ;;  %v20662_v53 = vld [vmem:[%s22422_s27 + $0x103c] ss:$136 sps:$4 sm:$0xff]  }
 0x4da   : > { %14827 = vmatprep.subr.bf16.mxu1 %v20593_v54  ;;  %v20665_v54 = vld [vmem:[%s22422_s27 + $0x213c] ss:$136 sps:$4 sm:$0xff]  }
 0x4dc   : > { %14787 = vmatpush2.bf16.msra.mxu0 %v20588_v46  ;;  %v20660_v46 = vld [vmem:[%s22422_s27 + $0x1038] ss:$136 sps:$4 sm:$0xff]  }
 0x4dd   : > { %14828 = vmatpush2.bf16.msra.mxu1 %v20591_v58  ;;  %14788 = vmatprep.subr.bf16.mxu0 %v20596_v23  ;;  %v20663_v58 = vld [vmem:[%s22422_s27 + $0x2138] ss:$136 sps:$4 sm:$0xff]   ;;  %v20668_v23 = vld [vmem:[%s22422_s27 + $0xf2c] ss:$136 sps:$4 sm:$0xff]  }
 0x4de   : > { %14829 = vmatprep.subr.bf16.mxu1 %v20599_v24  ;;  %v20671_v24 = vld [vmem:[%s22422_s27 + $0x202c] ss:$136 sps:$4 sm:$0xff]  }
 0x4e0   : > { %14789 = vmatpush2.bf16.msra.mxu0 %v20594_v59  ;;  %v20666_v59 = vld [vmem:[%s22422_s27 + $0xf28] ss:$136 sps:$4 sm:$0xff]  }
 0x4e1   : > { %14830 = vmatpush2.bf16.msra.mxu1 %v20597_v60  ;;  %14790 = vmatprep.subr.bf16.mxu0 %v20602_v27  ;;  %v20669_v60 = vld [vmem:[%s22422_s27 + $0x2028] ss:$136 sps:$4 sm:$0xff]   ;;  %v20674_v27 = vld [vmem:[%s22422_s27 + $0xe1c] ss:$136 sps:$4 sm:$0xff]  }
 0x4e2   : > { %14831 = vmatprep.subr.bf16.mxu1 %v20605_v28  ;;  %v20677_v28 = vld [vmem:[%s22422_s27 + $0x1f1c] ss:$136 sps:$4 sm:$0xff]  }
 0x4e4   : > { %14791 = vmatpush2.bf16.msra.mxu0 %v20600_v61  ;;  %v20672_v61 = vld [vmem:[%s22422_s27 + $0xe18] ss:$136 sps:$4 sm:$0xff]  }
 0x4e5   : > { %14832 = vmatpush2.bf16.msra.mxu1 %v20603_v62  ;;  %14792 = vmatprep.subr.bf16.mxu0 %v20608_v63  ;;  %v20675_v62 = vld [vmem:[%s22422_s27 + $0x1f18] ss:$136 sps:$4 sm:$0xff]   ;;  %v20680_v63 = vld [vmem:[%s22422_s27 + $0xd0c] ss:$136 sps:$4 sm:$0xff]  }
 0x4e6   : > { %14833 = vmatprep.subr.bf16.mxu1 %v20611_v25  ;;  %v20683_v25 = vld [vmem:[%s22422_s27 + $0x1e0c] ss:$136 sps:$4 sm:$0xff]  }
 0x4e8   : > { %14793 = vmatpush2.bf16.msra.mxu0 %v20606_v57  ;;  %v20678_v57 = vld [vmem:[%s22422_s27 + $0xd08] ss:$136 sps:$4 sm:$0xff]  }
 0x4e9   : > { %14834 = vmatpush2.bf16.msra.mxu1 %v20609_v0  ;;  %14844 = vmatprep.subr.bf16.mxu0 %v20614_v30  ;;  %v20681_v0 = vld [vmem:[%s22422_s27 + $0x1e08] ss:$136 sps:$4 sm:$0xff]   ;;  %v20686_v30 = vld [vmem:[%s22422_s27 + $0xbfc] ss:$136 sps:$4 sm:$0xff]  }
 0x4ea   : > { %14885 = vmatprep.subr.bf16.mxu1 %v20617_v4  ;;  %v20689_v4 = vld [vmem:[%s22422_s27 + $0x1cfc] ss:$136 sps:$4 sm:$0xff]  }
 0x4eb   : > { %v23783_v9 = vpop.f32.mrf.mxu0  ;;  %14795 = vmatmul.mubr.bf16.vlgmr.msra.gmra.mxu0 %v22599_v17 }
 0x4ec   : > { %v23785_v10 = vpop.f32.mrf.mxu1  ;;  %14836 = vmatmul.mubr.bf16.vlgmr.msra.gmra.mxu1 %v22603_v18  ;;  %14845 = vmatpush1.bf16.msra.mxu0 %v20612_v39  ;;  %v20684_v39 = vld [vmem:[%s22422_s27 + $0xbf8] ss:$136 sps:$4 sm:$0xff]  }
 0x4ed   : > { %14886 = vmatpush1.bf16.msra.mxu1 %v20615_v40  ;;  %v23789_v11 = vpop.f32.mrf.mxu0  ;;  %14846 = vmatprep.subr.bf16.mxu0 %v20620_v5  ;;  %v20687_v40 = vld [vmem:[%s22422_s27 + $0x1cf8] ss:$136 sps:$4 sm:$0xff]   ;;  %v20692_v5 = vld [vmem:[%s22422_s27 + $0xaec] ss:$136 sps:$4 sm:$0xff]  }
 0x4ee   : > { %v23791_v43 = vpop.f32.mrf.mxu1  ;;  %14887 = vmatprep.subr.bf16.mxu1 %v20623_v6  ;;  %14876 = vmatprep.mubr.bf16.mxu0 %v22484_v48  ;;  %v20695_v6 = vld [vmem:[%s22422_s27 + $0x1bec] ss:$136 sps:$4 sm:$0xff]  }
 0x4ef   : > { %14917 = vmatprep.mubr.bf16.mxu1 %v22489_v52  ;;  %v14554_v55 = vpop.f32.mrf.mxu0 }
 0x4f0   : > { %v14595_v56 = vpop.f32.mrf.mxu1  ;;  %14847 = vmatpush1.bf16.msra.mxu0 %v20618_v41  ;;  %v20690_v41 = vld [vmem:[%s22422_s27 + $0xae8] ss:$136 sps:$4 sm:$0xff]   ;;  %v20704_v55 = vld [vmem:[%s22422_s27 + $0x8cc] ss:$136 sps:$4 sm:$0xff]  }
 0x4f1   : > { %14888 = vmatpush1.bf16.msra.mxu1 %v20621_v42  ;;  %v14555_v19 = vpop.f32.mrf.mxu0  ;;  %14848 = vmatprep.subr.bf16.mxu0 %v20626_v3  ;;  %v20693_v42 = vld [vmem:[%s22422_s27 + $0x1be8] ss:$136 sps:$4 sm:$0xff]   ;;  %v20698_v3 = vld [vmem:[%s22422_s27 + $0x9dc] ss:$136 sps:$4 sm:$0xff]   ;;  %v20707_v56 = vld [vmem:[%s22422_s27 + $0x19cc] ss:$136 sps:$4 sm:$0xff]  }
 0x4f2   : > { %v14596_v20 = vpop.f32.mrf.mxu1  ;;  %14889 = vmatprep.subr.bf16.mxu1 %v20629_v12  ;;  %v20701_v12 = vld [vmem:[%s22422_s27 + $0x1adc] ss:$136 sps:$4 sm:$0xff]   ;;  %v20702_v19 = vld [vmem:[%s22422_s27 + $0x8c8] ss:$136 sps:$4 sm:$0xff]  }
 0x4f3   : > { %v20705_v20 = vld [vmem:[%s22422_s27 + $0x19c8] ss:$136 sps:$4 sm:$0xff]  }
 0x4f4   : > { %14849 = vmatpush1.bf16.msra.mxu0 %v20624_v47  ;;  %v20696_v47 = vld [vmem:[%s22422_s27 + $0x9d8] ss:$136 sps:$4 sm:$0xff]  }
 0x4f5   : > { %14890 = vmatpush1.bf16.msra.mxu1 %v20627_v16  ;;  %14850 = vmatprep.subr.bf16.mxu0 %v20632_v21  ;;  %v20699_v16 = vld [vmem:[%s22422_s27 + $0x1ad8] ss:$136 sps:$4 sm:$0xff]   ;;  %v20710_v21 = vld [vmem:[%s22422_s27 + $0x29bc] ss:$136 sps:$4 sm:$0xff]  }
 0x4f6   : > { %14891 = vmatprep.subr.bf16.mxu1 %v20635_v22  ;;  %v20713_v22 = vld [vmem:[%s22422_s27 + $0x3abc] ss:$136 sps:$4 sm:$0xff]  }
 0x4f8   : > { %14851 = vmatpush1.bf16.msra.mxu0 %v20630_v15  ;;  %v20708_v15 = vld [vmem:[%s22422_s27 + $0x29b8] ss:$136 sps:$4 sm:$0xff]  }
 0x4f9   : > { %14892 = vmatpush1.bf16.msra.mxu1 %v20633_v26  ;;  %14852 = vmatprep.subr.bf16.mxu0 %v20638_v31  ;;  %v20711_v26 = vld [vmem:[%s22422_s27 + $0x3ab8] ss:$136 sps:$4 sm:$0xff]   ;;  %v20716_v31 = vld [vmem:[%s22422_s27 + $0x28ac] ss:$136 sps:$4 sm:$0xff]  }
 0x4fa   : > { %14893 = vmatprep.subr.bf16.mxu1 %v20641_v32  ;;  %v20719_v32 = vld [vmem:[%s22422_s27 + $0x39ac] ss:$136 sps:$4 sm:$0xff]  }
 0x4fc   : > { %14853 = vmatpush1.bf16.msra.mxu0 %v20636_v1  ;;  %v14592_v1 = vadd.f32 %v23785_v10, %v23783_v9  ;;  %v20722_v9 = vld [vmem:[%s22422_s27 + $0x279c] ss:$136 sps:$4 sm:$0xff]  }
 0x4fd   : > { %14894 = vmatpush1.bf16.msra.mxu1 %v20639_v2  ;;  %14854 = vmatprep.subr.bf16.mxu0 %v20644_v33  ;;  %v20725_v10 = vld [vmem:[%s22422_s27 + $0x389c] ss:$136 sps:$4 sm:$0xff]  }
 0x4fe   : > { %14895 = vmatprep.subr.bf16.mxu1 %v20647_v34  ;;  %v14594_v34 = vadd.f32 %v23791_v43, %v23789_v11  ;;  %v265_v11 = vld [vmem:[#allocation2 + $0xb8] sm:$0xff] }
 0x500   : > { %14855 = vmatpush1.bf16.msra.mxu0 %v20642_v35 }
 0x501   : > { %14896 = vmatpush1.bf16.msra.mxu1 %v20645_v36  ;;  %14856 = vmatprep.subr.bf16.mxu0 %v20650_v29  ;;  %v20714_v36 = vld [vmem:[%s22422_s27 + $0x28a8] ss:$136 sps:$4 sm:$0xff]  }
 0x502   : > { %14897 = vmatprep.subr.bf16.mxu1 %v20653_v44  ;;  %v20717_v29 = vld [vmem:[%s22422_s27 + $0x39a8] ss:$136 sps:$4 sm:$0xff]  }
 0x503   : > { %v264_v44 = vld [vmem:[#allocation2 + $0xf8] sm:$0xff] }
 0x504   : > { %14857 = vmatpush1.bf16.msra.mxu0 %v20648_v45 }
 0x505   : > { %14898 = vmatpush1.bf16.msra.mxu1 %v20651_v49  ;;  %14858 = vmatprep.subr.bf16.mxu0 %v20656_v13 }
 0x506   : > { %14899 = vmatprep.subr.bf16.mxu1 %v20659_v14 }
 0x508   : > { %14859 = vmatpush1.bf16.msra.mxu0 %v20654_v50 }
 0x509   : > { %14900 = vmatpush1.bf16.msra.mxu1 %v20657_v51  ;;  %14860 = vmatprep.subr.bf16.mxu0 %v20662_v53 }
 0x50a   : > { %14901 = vmatprep.subr.bf16.mxu1 %v20665_v54  ;;  %v20720_v54 = vld [vmem:[%s22422_s27 + $0x2798] ss:$136 sps:$4 sm:$0xff]  }
 0x50c   : > { %14861 = vmatpush2.bf16.msra.mxu0 %v20660_v46  ;;  %v20723_v46 = vld [vmem:[%s22422_s27 + $0x3898] ss:$136 sps:$4 sm:$0xff]  }
 0x50d   : > { %14902 = vmatpush2.bf16.msra.mxu1 %v20663_v58  ;;  %14862 = vmatprep.subr.bf16.mxu0 %v20668_v23 }
 0x50e   : > { %14903 = vmatprep.subr.bf16.mxu1 %v20671_v24  ;;  %v20728_v24 = vld [vmem:[%s22422_s27 + $0x268c] ss:$136 sps:$4 sm:$0xff]  }
 0x510   : > { %14863 = vmatpush2.bf16.msra.mxu0 %v20666_v59  ;;  %v20731_v59 = vld [vmem:[%s22422_s27 + $0x378c] ss:$136 sps:$4 sm:$0xff]  }
 0x511   : > { %14904 = vmatpush2.bf16.msra.mxu1 %v20669_v60  ;;  %14864 = vmatprep.subr.bf16.mxu0 %v20674_v27  ;;  %v20726_v27 = vld [vmem:[%s22422_s27 + $0x2688] ss:$136 sps:$4 sm:$0xff]  }
 0x512   : > { %14905 = vmatprep.subr.bf16.mxu1 %v20677_v28  ;;  %v20729_v28 = vld [vmem:[%s22422_s27 + $0x3788] ss:$136 sps:$4 sm:$0xff]  }
 0x514   : > { %14865 = vmatpush2.bf16.msra.mxu0 %v20672_v61  ;;  %v20734_v61 = vld [vmem:[%s22422_s27 + $0x257c] ss:$136 sps:$4 sm:$0xff]  }
 0x515   : > { %14906 = vmatpush2.bf16.msra.mxu1 %v20675_v62  ;;  %14866 = vmatprep.subr.bf16.mxu0 %v20680_v63  ;;  %v20737_v62 = vld [vmem:[%s22422_s27 + $0x367c] ss:$136 sps:$4 sm:$0xff]   ;;  %v20732_v63 = vld [vmem:[%s22422_s27 + $0x2578] ss:$136 sps:$4 sm:$0xff]  }
 0x516   : > { %14907 = vmatprep.subr.bf16.mxu1 %v20683_v25  ;;  %v20735_v25 = vld [vmem:[%s22422_s27 + $0x3678] ss:$136 sps:$4 sm:$0xff]  }
 0x518   : > { %14867 = vmatpush2.bf16.msra.mxu0 %v20678_v57  ;;  %v20740_v57 = vld [vmem:[%s22422_s27 + $0x246c] ss:$136 sps:$4 sm:$0xff]  }
 0x519   : > { %14908 = vmatpush2.bf16.msra.mxu1 %v20681_v0  ;;  %14868 = vmatprep.subr.bf16.mxu0 %v20686_v30  ;;  %v20743_v0 = vld [vmem:[%s22422_s27 + $0x356c] ss:$136 sps:$4 sm:$0xff]   ;;  %v20738_v30 = vld [vmem:[%s22422_s27 + $0x2468] ss:$136 sps:$4 sm:$0xff]  }
 0x51a   : > { %14909 = vmatprep.subr.bf16.mxu1 %v20689_v4  ;;  %v20741_v4 = vld [vmem:[%s22422_s27 + $0x3568] ss:$136 sps:$4 sm:$0xff]  }
 0x51c   : > { %14869 = vmatpush2.bf16.msra.mxu0 %v20684_v39  ;;  %v20746_v39 = vld [vmem:[%s22422_s27 + $0x235c] ss:$136 sps:$4 sm:$0xff]  }
 0x51d   : > { %14910 = vmatpush2.bf16.msra.mxu1 %v20687_v40  ;;  %14870 = vmatprep.subr.bf16.mxu0 %v20692_v5  ;;  %v20749_v40 = vld [vmem:[%s22422_s27 + $0x345c] ss:$136 sps:$4 sm:$0xff]   ;;  %v20744_v5 = vld [vmem:[%s22422_s27 + $0x2358] ss:$136 sps:$4 sm:$0xff]  }
 0x51e   : > { %14911 = vmatprep.subr.bf16.mxu1 %v20695_v6  ;;  %v20747_v6 = vld [vmem:[%s22422_s27 + $0x3458] ss:$136 sps:$4 sm:$0xff]  }
 0x520   : > { %14871 = vmatpush2.bf16.msra.mxu0 %v20690_v41  ;;  %v20752_v41 = vld [vmem:[%s22422_s27 + $0x224c] ss:$136 sps:$4 sm:$0xff]  }
 0x521   : > { %14912 = vmatpush2.bf16.msra.mxu1 %v20693_v42  ;;  %14872 = vmatprep.subr.bf16.mxu0 %v20698_v3  ;;  %v20755_v42 = vld [vmem:[%s22422_s27 + $0x334c] ss:$136 sps:$4 sm:$0xff]   ;;  %v20750_v3 = vld [vmem:[%s22422_s27 + $0x2248] ss:$136 sps:$4 sm:$0xff]  }
 0x522   : > { %14913 = vmatprep.subr.bf16.mxu1 %v20701_v12  ;;  %v20753_v12 = vld [vmem:[%s22422_s27 + $0x3348] ss:$136 sps:$4 sm:$0xff]  }
 0x524   : > { %14873 = vmatpush2.bf16.msra.mxu0 %v20696_v47  ;;  %v20758_v47 = vld [vmem:[%s22422_s27 + $0x323c] ss:$136 sps:$4 sm:$0xff]  }
 0x525   : > { %14914 = vmatpush2.bf16.msra.mxu1 %v20699_v16  ;;  %14874 = vmatprep.subr.bf16.mxu0 %v20704_v55  ;;  %v20761_v16 = vld [vmem:[%s22422_s27 + $0x433c] ss:$136 sps:$4 sm:$0xff]   ;;  %v20756_v55 = vld [vmem:[%s22422_s27 + $0x3238] ss:$136 sps:$4 sm:$0xff]  }
 0x526   : > { %14915 = vmatprep.subr.bf16.mxu1 %v20707_v56  ;;  %v20759_v56 = vld [vmem:[%s22422_s27 + $0x4338] ss:$136 sps:$4 sm:$0xff]  }
 0x528   : > { %14875 = vmatpush2.bf16.msra.mxu0 %v20702_v19  ;;  %v20764_v19 = vld [vmem:[%s22422_s27 + $0x312c] ss:$136 sps:$4 sm:$0xff]  }
 0x529   : > { %14916 = vmatpush2.bf16.msra.mxu1 %v20705_v20  ;;  %14926 = vmatprep.subr.bf16.mxu0 %v20710_v21  ;;  %v20767_v20 = vld [vmem:[%s22422_s27 + $0x422c] ss:$136 sps:$4 sm:$0xff]   ;;  %v20762_v21 = vld [vmem:[%s22422_s27 + $0x3128] ss:$136 sps:$4 sm:$0xff]  }
 0x52a   : > { %14967 = vmatprep.subr.bf16.mxu1 %v20713_v22  ;;  %v20765_v22 = vld [vmem:[%s22422_s27 + $0x4228] ss:$136 sps:$4 sm:$0xff]  }
 0x52b   : > { %v14632_v2 = vpop.f32.mrf.mxu0  ;;  %14877 = vmatmul.mubr.bf16.vlgmr.msra.gmra.mxu0 %v22511_v7 }
 0x52c   : > { %v14673_v33 = vpop.f32.mrf.mxu1  ;;  %14918 = vmatmul.mubr.bf16.vlgmr.msra.gmra.mxu1 %v22513_v8  ;;  %v14633_v35 = vadd.f32 %v14632_v2, %v14592_v1  ;;  %14927 = vmatpush1.bf16.msra.mxu0 %v20708_v15  ;;  %v20770_v15 = vld [vmem:[%s22422_s27 + $0x301c] ss:$136 sps:$4 sm:$0xff]   ;;  %v20776_v1 = vld [vmem:[%s22422_s27 + $0x2f0c] ss:$136 sps:$4 sm:$0xff]  }
 0x52d   : > { %14968 = vmatpush1.bf16.msra.mxu1 %v20711_v26  ;;  %v14634_v45 = vpop.f32.mrf.mxu0  ;;  %14928 = vmatprep.subr.bf16.mxu0 %v20716_v31  ;;  %v20773_v26 = vld [vmem:[%s22422_s27 + $0x411c] ss:$136 sps:$4 sm:$0xff]   ;;  %v20768_v31 = vld [vmem:[%s22422_s27 + $0x3018] ss:$136 sps:$4 sm:$0xff]   ;;  %v20779_v2 = vld [vmem:[%s22422_s27 + $0x400c] ss:$136 sps:$4 sm:$0xff]  }
 0x52e   : > { %v14675_v49 = vpop.f32.mrf.mxu1  ;;  %14969 = vmatprep.subr.bf16.mxu1 %v20719_v32  ;;  %v14674_v13 = vadd.f32 %v14673_v33, %v14633_v35  ;;  %v14635_v14 = vadd.f32 %v14634_v45, %v14594_v34  ;;  %14958 = vmatprep.mubr.bf16.mxu0 %v22551_v37  ;;  %v20771_v32 = vld [vmem:[%s22422_s27 + $0x4118] ss:$136 sps:$4 sm:$0xff]   ;;  %v20774_v33 = vld [vmem:[%s22422_s27 + $0x2f08] ss:$136 sps:$4 sm:$0xff]   ;;  %v20782_v35 = vld [vmem:[%s22422_s27 + $0x2dfc] ss:$136 sps:$4 sm:$0xff]  }
 0x52f   : > { %14999 = vmatprep.mubr.bf16.mxu1 %v22555_v38  ;;  %v14636_v43 = vpop.f32.mrf.mxu0  ;;  %v20777_v34 = vld [vmem:[%s22422_s27 + $0x4008] ss:$136 sps:$4 sm:$0xff]   ;;  %v20788_v45 = vld [vmem:[%s22422_s27 + $0x2cec] ss:$136 sps:$4 sm:$0xff]  }
 0x530   : > { %v14677_v50 = vpop.f32.mrf.mxu1  ;;  %v16170_v51 = vadd.f32 %v14674_v13, %v264_v44  ;;  %v14676_v53 = vadd.f32 %v14675_v49, %v14635_v14  ;;  %14929 = vmatpush1.bf16.msra.mxu0 %v20714_v36  ;;  %v20785_v36 = vld [vmem:[%s22422_s27 + $0x3efc] ss:$136 sps:$4 sm:$0xff]   ;;  %v20783_v44 = vld [vmem:[%s22422_s27 + $0x3ef8] ss:$136 sps:$4 sm:$0xff]   ;;  %v20791_v49 = vld [vmem:[%s22422_s27 + $0x3dec] ss:$136 sps:$4 sm:$0xff]  }
 0x531   : > { %14970 = vmatpush1.bf16.msra.mxu1 %v20717_v29  ;;  %v14637_v58 = vpop.f32.mrf.mxu0  ;;  %14930 = vmatprep.subr.bf16.mxu0 %v20722_v9  ;;  %v20780_v29 = vld [vmem:[%s22422_s27 + $0x2df8] ss:$136 sps:$4 sm:$0xff]   ;;  %v20786_v9 = vld [vmem:[%s22422_s27 + $0x2ce8] ss:$136 sps:$4 sm:$0xff]   ;;  %v20794_v13 = vld [vmem:[%s22422_s27 + $0x2bdc] ss:$136 sps:$4 sm:$0xff]  }
 0x532   : > { %v14678_v23 = vpop.f32.mrf.mxu1  ;;  %14971 = vmatprep.subr.bf16.mxu1 %v20725_v10  ;;  %16204 = vst [vmem:[#allocation2 + $0xf8] sm:$0xff] %v16170_v51  ;;  %v16171_v60 = vadd.f32 %v14676_v53, %v265_v11  ;;  %v20789_v10 = vld [vmem:[%s22422_s27 + $0x3de8] ss:$136 sps:$4 sm:$0xff]   ;;  %v20797_v14 = vld [vmem:[%s22422_s27 + $0x3cdc] ss:$136 sps:$4 sm:$0xff]  }
 0x533   : > { %v20792_v11 = vld [vmem:[%s22422_s27 + $0x2bd8] ss:$136 sps:$4 sm:$0xff]   ;;  %v20800_v50 = vld [vmem:[%s22422_s27 + $0x2acc] ss:$136 sps:$4 sm:$0xff]   ;;  %v20798_v53 = vld [vmem:[%s22422_s27 + $0x2ac8] ss:$136 sps:$4 sm:$0xff]  }
 0x534   : > { %16205 = vst [vmem:[#allocation2 + $0xb8] sm:$0xff] %v16171_v60  ;;  %14931 = vmatpush1.bf16.msra.mxu0 %v20720_v54  ;;  %v20795_v43 = vld [vmem:[%s22422_s27 + $0x3cd8] ss:$136 sps:$4 sm:$0xff]   ;;  %v20803_v51 = vld [vmem:[%s22422_s27 + $0x3bcc] ss:$136 sps:$4 sm:$0xff]  }
 0x535   : > { %14972 = vmatpush1.bf16.msra.mxu1 %v20723_v46  ;;  %14932 = vmatprep.subr.bf16.mxu0 %v20728_v24  ;;  %v20801_v54 = vld [vmem:[%s22422_s27 + $0x3bc8] ss:$136 sps:$4 sm:$0xff]   ;;  %v20806_v46 = vld [vmem:[%s22422_s27 + $0x7c4] ss:$136 sps:$4 sm:$0xff]   ;;  %v20815_v60 = vld [vmem:[%s22422_s27 + $0x17b4] ss:$136 sps:$4 sm:$0xff]  }
 0x536   : > { %14973 = vmatprep.subr.bf16.mxu1 %v20731_v59  ;;  %v20809_v58 = vld [vmem:[%s22422_s27 + $0x18c4] ss:$136 sps:$4 sm:$0xff]   ;;  %v20804_v23 = vld [vmem:[%s22422_s27 + $0x7c0] ss:$136 sps:$4 sm:$0xff]   ;;  %v20812_v59 = vld [vmem:[%s22422_s27 + $0x6b4] ss:$136 sps:$4 sm:$0xff]  }
 0x537   : > { %v20807_v24 = vld [vmem:[%s22422_s27 + $0x18c0] ss:$136 sps:$4 sm:$0xff]  }
 0x538   : > { %14933 = vmatpush1.bf16.msra.mxu0 %v20726_v27 }
 0x539   : > { %14974 = vmatpush1.bf16.msra.mxu1 %v20729_v28  ;;  %14934 = vmatprep.subr.bf16.mxu0 %v20734_v61  ;;  %v20810_v61 = vld [vmem:[%s22422_s27 + $0x6b0] ss:$136 sps:$4 sm:$0xff]  }
 0x53a   : > { %14975 = vmatprep.subr.bf16.mxu1 %v20737_v62  ;;  %v20813_v62 = vld [vmem:[%s22422_s27 + $0x17b0] ss:$136 sps:$4 sm:$0xff]  }
 0x53c   : > { %14935 = vmatpush1.bf16.msra.mxu0 %v20732_v63 }
 0x53d   : > { %14976 = vmatpush1.bf16.msra.mxu1 %v20735_v25  ;;  %14936 = vmatprep.subr.bf16.mxu0 %v20740_v57  ;;  %v20818_v57 = vld [vmem:[%s22422_s27 + $0x5a4] ss:$136 sps:$4 sm:$0xff]  }
 0x53e   : > { %14977 = vmatprep.subr.bf16.mxu1 %v20743_v0  ;;  %v20821_v0 = vld [vmem:[%s22422_s27 + $0x16a4] ss:$136 sps:$4 sm:$0xff]  }
 0x540   : > { %14937 = vmatpush1.bf16.msra.mxu0 %v20738_v30 }
 0x541   : > { %14978 = vmatpush1.bf16.msra.mxu1 %v20741_v4  ;;  %14938 = vmatprep.subr.bf16.mxu0 %v20746_v39  ;;  %v20816_v39 = vld [vmem:[%s22422_s27 + $0x5a0] ss:$136 sps:$4 sm:$0xff]  }
 0x542   : > { %14979 = vmatprep.subr.bf16.mxu1 %v20749_v40  ;;  %v20819_v40 = vld [vmem:[%s22422_s27 + $0x16a0] ss:$136 sps:$4 sm:$0xff]  }
 0x544   : > { %14939 = vmatpush1.bf16.msra.mxu0 %v20744_v5 }
 0x545   : > { %14980 = vmatpush1.bf16.msra.mxu1 %v20747_v6  ;;  %14940 = vmatprep.subr.bf16.mxu0 %v20752_v41  ;;  %v20824_v41 = vld [vmem:[%s22422_s27 + $0x494] ss:$136 sps:$4 sm:$0xff]  }
 0x546   : > { %14981 = vmatprep.subr.bf16.mxu1 %v20755_v42  ;;  %v20827_v42 = vld [vmem:[%s22422_s27 + $0x1594] ss:$136 sps:$4 sm:$0xff]  }
 0x548   : > { %14941 = vmatpush1.bf16.msra.mxu0 %v20750_v3  ;;  %v20822_v3 = vld [vmem:[%s22422_s27 + $0x490] ss:$136 sps:$4 sm:$0xff]  }
 0x549   : > { %14982 = vmatpush1.bf16.msra.mxu1 %v20753_v12  ;;  %14942 = vmatprep.subr.bf16.mxu0 %v20758_v47  ;;  %v20825_v12 = vld [vmem:[%s22422_s27 + $0x1590] ss:$136 sps:$4 sm:$0xff]   ;;  %v20830_v47 = vld [vmem:[%s22422_s27 + $0x384] ss:$136 sps:$4 sm:$0xff]  }
 0x54a   : > { %14983 = vmatprep.subr.bf16.mxu1 %v20761_v16  ;;  %v20833_v16 = vld [vmem:[%s22422_s27 + $0x1484] ss:$136 sps:$4 sm:$0xff]  }
 0x54c   : > { %14943 = vmatpush2.bf16.msra.mxu0 %v20756_v55  ;;  %v20828_v55 = vld [vmem:[%s22422_s27 + $0x380] ss:$136 sps:$4 sm:$0xff]  }
 0x54d   : > { %14984 = vmatpush2.bf16.msra.mxu1 %v20759_v56  ;;  %14944 = vmatprep.subr.bf16.mxu0 %v20764_v19  ;;  %v20831_v56 = vld [vmem:[%s22422_s27 + $0x1480] ss:$136 sps:$4 sm:$0xff]   ;;  %v20836_v19 = vld [vmem:[%s22422_s27 + $0x274] ss:$136 sps:$4 sm:$0xff]  }
 0x54e   : > { %14985 = vmatprep.subr.bf16.mxu1 %v20767_v20  ;;  %v20839_v20 = vld [vmem:[%s22422_s27 + $0x1374] ss:$136 sps:$4 sm:$0xff]  }
 0x550   : > { %14945 = vmatpush2.bf16.msra.mxu0 %v20762_v21  ;;  %v20834_v21 = vld [vmem:[%s22422_s27 + $0x270] ss:$136 sps:$4 sm:$0xff]  }
 0x551   : > { %14986 = vmatpush2.bf16.msra.mxu1 %v20765_v22  ;;  %14946 = vmatprep.subr.bf16.mxu0 %v20770_v15  ;;  %v20837_v22 = vld [vmem:[%s22422_s27 + $0x1370] ss:$136 sps:$4 sm:$0xff]   ;;  %v20842_v15 = vld [vmem:[%s22422_s27 + $0x164] ss:$136 sps:$4 sm:$0xff]  }
 0x552   : > { %14987 = vmatprep.subr.bf16.mxu1 %v20773_v26  ;;  %v20845_v26 = vld [vmem:[%s22422_s27 + $0x1264] ss:$136 sps:$4 sm:$0xff]  }
 0x554   : > { %14947 = vmatpush2.bf16.msra.mxu0 %v20768_v31  ;;  %v20840_v31 = vld [vmem:[%s22422_s27 + $0x160] ss:$136 sps:$4 sm:$0xff]  }
 0x555   : > { %14988 = vmatpush2.bf16.msra.mxu1 %v20771_v32  ;;  %14948 = vmatprep.subr.bf16.mxu0 %v20776_v1  ;;  %v20843_v32 = vld [vmem:[%s22422_s27 + $0x1260] ss:$136 sps:$4 sm:$0xff]   ;;  %v20848_v1 = vld [vmem:[%s22422_s27 + $0x54] ss:$136 sps:$4 sm:$0xff]  }
 0x556   : > { %14989 = vmatprep.subr.bf16.mxu1 %v20779_v2  ;;  %v20851_v2 = vld [vmem:[%s22422_s27 + $0x1154] ss:$136 sps:$4 sm:$0xff]  }
 0x558   : > { %14949 = vmatpush2.bf16.msra.mxu0 %v20774_v33  ;;  %v20846_v33 = vld [vmem:[%s22422_s27 + $0x50] ss:$136 sps:$4 sm:$0xff]  }
 0x559   : > { %14990 = vmatpush2.bf16.msra.mxu1 %v20777_v34  ;;  %14950 = vmatprep.subr.bf16.mxu0 %v20782_v35  ;;  %v20849_v34 = vld [vmem:[%s22422_s27 + $0x1150] ss:$136 sps:$4 sm:$0xff]   ;;  %v20854_v35 = vld [vmem:[%s22422_s27 + $0x1044] ss:$136 sps:$4 sm:$0xff]  }
 0x55a   : > { %14991 = vmatprep.subr.bf16.mxu1 %v20785_v36  ;;  %v20857_v36 = vld [vmem:[%s22422_s27 + $0x2144] ss:$136 sps:$4 sm:$0xff]  }
 0x55c   : > { %14951 = vmatpush2.bf16.msra.mxu0 %v20780_v29  ;;  %v20852_v29 = vld [vmem:[%s22422_s27 + $0x1040] ss:$136 sps:$4 sm:$0xff]  }
 0x55d   : > { %14992 = vmatpush2.bf16.msra.mxu1 %v20783_v44  ;;  %14952 = vmatprep.subr.bf16.mxu0 %v20788_v45  ;;  %v20855_v44 = vld [vmem:[%s22422_s27 + $0x2140] ss:$136 sps:$4 sm:$0xff]   ;;  %v20860_v45 = vld [vmem:[%s22422_s27 + $0xf34] ss:$136 sps:$4 sm:$0xff]  }
 0x55e   : > { %14993 = vmatprep.subr.bf16.mxu1 %v20791_v49  ;;  %v20863_v49 = vld [vmem:[%s22422_s27 + $0x2034] ss:$136 sps:$4 sm:$0xff]  }
 0x560   : > { %14953 = vmatpush2.bf16.msra.mxu0 %v20786_v9  ;;  %v20858_v9 = vld [vmem:[%s22422_s27 + $0xf30] ss:$136 sps:$4 sm:$0xff]  }
 0x561   : > { %14994 = vmatpush2.bf16.msra.mxu1 %v20789_v10  ;;  %14954 = vmatprep.subr.bf16.mxu0 %v20794_v13  ;;  %v20861_v10 = vld [vmem:[%s22422_s27 + $0x2030] ss:$136 sps:$4 sm:$0xff]   ;;  %v20866_v13 = vld [vmem:[%s22422_s27 + $0xe24] ss:$136 sps:$4 sm:$0xff]  }
 0x562   : > { %14995 = vmatprep.subr.bf16.mxu1 %v20797_v14  ;;  %v20869_v14 = vld [vmem:[%s22422_s27 + $0x1f24] ss:$136 sps:$4 sm:$0xff]  }
 0x564   : > { %14955 = vmatpush2.bf16.msra.mxu0 %v20792_v11  ;;  %v20864_v11 = vld [vmem:[%s22422_s27 + $0xe20] ss:$136 sps:$4 sm:$0xff]  }
 0x565   : > { %14996 = vmatpush2.bf16.msra.mxu1 %v20795_v43  ;;  %14956 = vmatprep.subr.bf16.mxu0 %v20800_v50  ;;  %v20867_v43 = vld [vmem:[%s22422_s27 + $0x1f20] ss:$136 sps:$4 sm:$0xff]   ;;  %v20872_v50 = vld [vmem:[%s22422_s27 + $0xd14] ss:$136 sps:$4 sm:$0xff]  }
 0x566   : > { %14997 = vmatprep.subr.bf16.mxu1 %v20803_v51  ;;  %v20875_v51 = vld [vmem:[%s22422_s27 + $0x1e14] ss:$136 sps:$4 sm:$0xff]  }
 0x568   : > { %14957 = vmatpush2.bf16.msra.mxu0 %v20798_v53  ;;  %v20870_v53 = vld [vmem:[%s22422_s27 + $0xd10] ss:$136 sps:$4 sm:$0xff]  }
 0x569   : > { %14998 = vmatpush2.bf16.msra.mxu1 %v20801_v54  ;;  %15008 = vmatprep.subr.bf16.mxu0 %v20806_v46  ;;  %v20873_v54 = vld [vmem:[%s22422_s27 + $0x1e10] ss:$136 sps:$4 sm:$0xff]   ;;  %v20878_v46 = vld [vmem:[%s22422_s27 + $0xc04] ss:$136 sps:$4 sm:$0xff]  }
 0x56a   : > { %15049 = vmatprep.subr.bf16.mxu1 %v20809_v58  ;;  %v20881_v58 = vld [vmem:[%s22422_s27 + $0x1d04] ss:$136 sps:$4 sm:$0xff]  }
 0x56b   : > { %v23929_v27 = vpop.f32.mrf.mxu0  ;;  %14959 = vmatmul.mubr.bf16.vlgmr.msra.gmra.mxu0 %v22599_v17 }
 0x56c   : > { %v23931_v28 = vpop.f32.mrf.mxu1  ;;  %15000 = vmatmul.mubr.bf16.vlgmr.msra.gmra.mxu1 %v22603_v18  ;;  %15009 = vmatpush1.bf16.msra.mxu0 %v20804_v23  ;;  %v20876_v23 = vld [vmem:[%s22422_s27 + $0xc00] ss:$136 sps:$4 sm:$0xff]  }
 0x56d   : > { %15050 = vmatpush1.bf16.msra.mxu1 %v20807_v24  ;;  %v23937_v63 = vpop.f32.mrf.mxu0  ;;  %15010 = vmatprep.subr.bf16.mxu0 %v20812_v59  ;;  %v20879_v24 = vld [vmem:[%s22422_s27 + $0x1d00] ss:$136 sps:$4 sm:$0xff]   ;;  %v20884_v59 = vld [vmem:[%s22422_s27 + $0xaf4] ss:$136 sps:$4 sm:$0xff]  }
 0x56e   : > { %v23939_v25 = vpop.f32.mrf.mxu1  ;;  %15051 = vmatprep.subr.bf16.mxu1 %v20815_v60  ;;  %15040 = vmatprep.mubr.bf16.mxu0 %v22484_v48  ;;  %v20887_v60 = vld [vmem:[%s22422_s27 + $0x1bf4] ss:$136 sps:$4 sm:$0xff]  }
 0x56f   : > { %15081 = vmatprep.mubr.bf16.mxu1 %v22489_v52  ;;  %v14718_v30 = vpop.f32.mrf.mxu0 }
 0x570   : > { %v14759_v4 = vpop.f32.mrf.mxu1  ;;  %15011 = vmatpush1.bf16.msra.mxu0 %v20810_v61  ;;  %v20882_v61 = vld [vmem:[%s22422_s27 + $0xaf0] ss:$136 sps:$4 sm:$0xff]   ;;  %v20888_v30 = vld [vmem:[%s22422_s27 + $0x9e0] ss:$136 sps:$4 sm:$0xff]  }
 0x571   : > { %15052 = vmatpush1.bf16.msra.mxu1 %v20813_v62  ;;  %v14719_v5 = vpop.f32.mrf.mxu0  ;;  %15012 = vmatprep.subr.bf16.mxu0 %v20818_v57  ;;  %v20885_v62 = vld [vmem:[%s22422_s27 + $0x1bf0] ss:$136 sps:$4 sm:$0xff]   ;;  %v20890_v57 = vld [vmem:[%s22422_s27 + $0x9e4] ss:$136 sps:$4 sm:$0xff]   ;;  %v20891_v4 = vld [vmem:[%s22422_s27 + $0x1ae0] ss:$136 sps:$4 sm:$0xff]  }
 0x572   : > { %v14760_v6 = vpop.f32.mrf.mxu1  ;;  %15053 = vmatprep.subr.bf16.mxu1 %v20821_v0  ;;  %v20893_v0 = vld [vmem:[%s22422_s27 + $0x1ae4] ss:$136 sps:$4 sm:$0xff]   ;;  %v20894_v5 = vld [vmem:[%s22422_s27 + $0x8d0] ss:$136 sps:$4 sm:$0xff]  }
 0x573   : > { %v20897_v6 = vld [vmem:[%s22422_s27 + $0x19d0] ss:$136 sps:$4 sm:$0xff]  }
 0x574   : > { %15013 = vmatpush1.bf16.msra.mxu0 %v20816_v39  ;;  %v20896_v39 = vld [vmem:[%s22422_s27 + $0x8d4] ss:$136 sps:$4 sm:$0xff]  }
 0x575   : > { %15054 = vmatpush1.bf16.msra.mxu1 %v20819_v40  ;;  %15014 = vmatprep.subr.bf16.mxu0 %v20824_v41  ;;  %v20899_v40 = vld [vmem:[%s22422_s27 + $0x19d4] ss:$136 sps:$4 sm:$0xff]   ;;  %v20902_v41 = vld [vmem:[%s22422_s27 + $0x29c4] ss:$136 sps:$4 sm:$0xff]  }
 0x576   : > { %15055 = vmatprep.subr.bf16.mxu1 %v20827_v42  ;;  %v20905_v42 = vld [vmem:[%s22422_s27 + $0x3ac4] ss:$136 sps:$4 sm:$0xff]  }
 0x578   : > { %15015 = vmatpush1.bf16.msra.mxu0 %v20822_v3  ;;  %v20900_v3 = vld [vmem:[%s22422_s27 + $0x29c0] ss:$136 sps:$4 sm:$0xff]  }
 0x579   : > { %15056 = vmatpush1.bf16.msra.mxu1 %v20825_v12  ;;  %15016 = vmatprep.subr.bf16.mxu0 %v20830_v47  ;;  %v20903_v12 = vld [vmem:[%s22422_s27 + $0x3ac0] ss:$136 sps:$4 sm:$0xff]   ;;  %v20908_v47 = vld [vmem:[%s22422_s27 + $0x28b4] ss:$136 sps:$4 sm:$0xff]  }
 0x57a   : > { %15057 = vmatprep.subr.bf16.mxu1 %v20833_v16  ;;  %v20911_v16 = vld [vmem:[%s22422_s27 + $0x39b4] ss:$136 sps:$4 sm:$0xff]  }
 0x57c   : > { %15017 = vmatpush1.bf16.msra.mxu0 %v20828_v55  ;;  %v14756_v55 = vadd.f32 %v23931_v28, %v23929_v27  ;;  %v20914_v27 = vld [vmem:[%s22422_s27 + $0x27a4] ss:$136 sps:$4 sm:$0xff]  }
 0x57d   : > { %15058 = vmatpush1.bf16.msra.mxu1 %v20831_v56  ;;  %15018 = vmatprep.subr.bf16.mxu0 %v20836_v19  ;;  %v20917_v28 = vld [vmem:[%s22422_s27 + $0x38a4] ss:$136 sps:$4 sm:$0xff]  }
 0x57e   : > { %15059 = vmatprep.subr.bf16.mxu1 %v20839_v20  ;;  %v14758_v20 = vadd.f32 %v23939_v25, %v23937_v63  ;;  %v267_v63 = vld [vmem:[#allocation2 + $0x90] sm:$0xff] }
 0x580   : > { %15019 = vmatpush1.bf16.msra.mxu0 %v20834_v21 }
 0x581   : > { %15060 = vmatpush1.bf16.msra.mxu1 %v20837_v22  ;;  %15020 = vmatprep.subr.bf16.mxu0 %v20842_v15  ;;  %v20906_v22 = vld [vmem:[%s22422_s27 + $0x28b0] ss:$136 sps:$4 sm:$0xff]  }
 0x582   : > { %15061 = vmatprep.subr.bf16.mxu1 %v20845_v26  ;;  %v20909_v15 = vld [vmem:[%s22422_s27 + $0x39b0] ss:$136 sps:$4 sm:$0xff]  }
 0x583   : > { %v266_v26 = vld [vmem:[#allocation2 + $0x40] sm:$0xff] }
 0x584   : > { %15021 = vmatpush1.bf16.msra.mxu0 %v20840_v31 }
 0x585   : > { %15062 = vmatpush1.bf16.msra.mxu1 %v20843_v32  ;;  %15022 = vmatprep.subr.bf16.mxu0 %v20848_v1 }
 0x586   : > { %15063 = vmatprep.subr.bf16.mxu1 %v20851_v2 }
 0x588   : > { %15023 = vmatpush1.bf16.msra.mxu0 %v20846_v33 }
 0x589   : > { %15064 = vmatpush1.bf16.msra.mxu1 %v20849_v34  ;;  %15024 = vmatprep.subr.bf16.mxu0 %v20854_v35 }
 0x58a   : > { %15065 = vmatprep.subr.bf16.mxu1 %v20857_v36  ;;  %v20912_v36 = vld [vmem:[%s22422_s27 + $0x27a0] ss:$136 sps:$4 sm:$0xff]  }
 0x58c   : > { %15025 = vmatpush2.bf16.msra.mxu0 %v20852_v29  ;;  %v20915_v29 = vld [vmem:[%s22422_s27 + $0x38a0] ss:$136 sps:$4 sm:$0xff]  }
 0x58d   : > { %15066 = vmatpush2.bf16.msra.mxu1 %v20855_v44  ;;  %15026 = vmatprep.subr.bf16.mxu0 %v20860_v45 }
 0x58e   : > { %15067 = vmatprep.subr.bf16.mxu1 %v20863_v49  ;;  %v20920_v49 = vld [vmem:[%s22422_s27 + $0x2694] ss:$136 sps:$4 sm:$0xff]  }
 0x590   : > { %15027 = vmatpush2.bf16.msra.mxu0 %v20858_v9  ;;  %v20923_v9 = vld [vmem:[%s22422_s27 + $0x3794] ss:$136 sps:$4 sm:$0xff]  }
 0x591   : > { %15068 = vmatpush2.bf16.msra.mxu1 %v20861_v10  ;;  %15028 = vmatprep.subr.bf16.mxu0 %v20866_v13  ;;  %v20918_v13 = vld [vmem:[%s22422_s27 + $0x2690] ss:$136 sps:$4 sm:$0xff]  }
 0x592   : > { %15069 = vmatprep.subr.bf16.mxu1 %v20869_v14  ;;  %v20921_v14 = vld [vmem:[%s22422_s27 + $0x3790] ss:$136 sps:$4 sm:$0xff]  }
 0x594   : > { %15029 = vmatpush2.bf16.msra.mxu0 %v20864_v11  ;;  %v20926_v11 = vld [vmem:[%s22422_s27 + $0x2584] ss:$136 sps:$4 sm:$0xff]  }
 0x595   : > { %15070 = vmatpush2.bf16.msra.mxu1 %v20867_v43  ;;  %15030 = vmatprep.subr.bf16.mxu0 %v20872_v50  ;;  %v20929_v43 = vld [vmem:[%s22422_s27 + $0x3684] ss:$136 sps:$4 sm:$0xff]   ;;  %v20924_v50 = vld [vmem:[%s22422_s27 + $0x2580] ss:$136 sps:$4 sm:$0xff]  }
 0x596   : > { %15071 = vmatprep.subr.bf16.mxu1 %v20875_v51  ;;  %v20927_v51 = vld [vmem:[%s22422_s27 + $0x3680] ss:$136 sps:$4 sm:$0xff]  }
 0x598   : > { %15031 = vmatpush2.bf16.msra.mxu0 %v20870_v53  ;;  %v20932_v53 = vld [vmem:[%s22422_s27 + $0x2474] ss:$136 sps:$4 sm:$0xff]  }
 0x599   : > { %15072 = vmatpush2.bf16.msra.mxu1 %v20873_v54  ;;  %15032 = vmatprep.subr.bf16.mxu0 %v20878_v46  ;;  %v20935_v54 = vld [vmem:[%s22422_s27 + $0x3574] ss:$136 sps:$4 sm:$0xff]   ;;  %v20930_v46 = vld [vmem:[%s22422_s27 + $0x2470] ss:$136 sps:$4 sm:$0xff]  }
 0x59a   : > { %15073 = vmatprep.subr.bf16.mxu1 %v20881_v58  ;;  %v20933_v58 = vld [vmem:[%s22422_s27 + $0x3570] ss:$136 sps:$4 sm:$0xff]  }
 0x59c   : > { %15033 = vmatpush2.bf16.msra.mxu0 %v20876_v23  ;;  %v20938_v23 = vld [vmem:[%s22422_s27 + $0x2364] ss:$136 sps:$4 sm:$0xff]  }
 0x59d   : > { %15074 = vmatpush2.bf16.msra.mxu1 %v20879_v24  ;;  %15034 = vmatprep.subr.bf16.mxu0 %v20884_v59  ;;  %v20941_v24 = vld [vmem:[%s22422_s27 + $0x3464] ss:$136 sps:$4 sm:$0xff]   ;;  %v20936_v59 = vld [vmem:[%s22422_s27 + $0x2360] ss:$136 sps:$4 sm:$0xff]  }
 0x59e   : > { %15075 = vmatprep.subr.bf16.mxu1 %v20887_v60  ;;  %v20939_v60 = vld [vmem:[%s22422_s27 + $0x3460] ss:$136 sps:$4 sm:$0xff]  }
 0x5a0   : > { %15035 = vmatpush2.bf16.msra.mxu0 %v20882_v61  ;;  %v20944_v61 = vld [vmem:[%s22422_s27 + $0x2254] ss:$136 sps:$4 sm:$0xff]  }
 0x5a1   : > { %15076 = vmatpush2.bf16.msra.mxu1 %v20885_v62  ;;  %15036 = vmatprep.subr.bf16.mxu0 %v20890_v57  ;;  %v20947_v62 = vld [vmem:[%s22422_s27 + $0x3354] ss:$136 sps:$4 sm:$0xff]   ;;  %v20942_v57 = vld [vmem:[%s22422_s27 + $0x2250] ss:$136 sps:$4 sm:$0xff]  }
 0x5a2   : > { %15077 = vmatprep.subr.bf16.mxu1 %v20893_v0  ;;  %v20945_v0 = vld [vmem:[%s22422_s27 + $0x3350] ss:$136 sps:$4 sm:$0xff]  }
 0x5a4   : > { %15037 = vmatpush2.bf16.msra.mxu0 %v20888_v30  ;;  %v20950_v30 = vld [vmem:[%s22422_s27 + $0x3244] ss:$136 sps:$4 sm:$0xff]  }
 0x5a5   : > { %15078 = vmatpush2.bf16.msra.mxu1 %v20891_v4  ;;  %15038 = vmatprep.subr.bf16.mxu0 %v20896_v39  ;;  %v20953_v4 = vld [vmem:[%s22422_s27 + $0x4344] ss:$136 sps:$4 sm:$0xff]   ;;  %v20948_v39 = vld [vmem:[%s22422_s27 + $0x3240] ss:$136 sps:$4 sm:$0xff]  }
 0x5a6   : > { %15079 = vmatprep.subr.bf16.mxu1 %v20899_v40  ;;  %v20951_v40 = vld [vmem:[%s22422_s27 + $0x4340] ss:$136 sps:$4 sm:$0xff]  }
 0x5a8   : > { %15039 = vmatpush2.bf16.msra.mxu0 %v20894_v5  ;;  %v20956_v5 = vld [vmem:[%s22422_s27 + $0x3134] ss:$136 sps:$4 sm:$0xff]  }
 0x5a9   : > { %15080 = vmatpush2.bf16.msra.mxu1 %v20897_v6  ;;  %15090 = vmatprep.subr.bf16.mxu0 %v20902_v41  ;;  %v20959_v6 = vld [vmem:[%s22422_s27 + $0x4234] ss:$136 sps:$4 sm:$0xff]   ;;  %v20954_v41 = vld [vmem:[%s22422_s27 + $0x3130] ss:$136 sps:$4 sm:$0xff]  }
 0x5aa   : > { %15131 = vmatprep.subr.bf16.mxu1 %v20905_v42  ;;  %v20957_v42 = vld [vmem:[%s22422_s27 + $0x4230] ss:$136 sps:$4 sm:$0xff]  }
 0x5ab   : > { %v14796_v56 = vpop.f32.mrf.mxu0  ;;  %15041 = vmatmul.mubr.bf16.vlgmr.msra.gmra.mxu0 %v22511_v7 }
 0x5ac   : > { %v14837_v19 = vpop.f32.mrf.mxu1  ;;  %15082 = vmatmul.mubr.bf16.vlgmr.msra.gmra.mxu1 %v22513_v8  ;;  %v14797_v21 = vadd.f32 %v14796_v56, %v14756_v55  ;;  %15091 = vmatpush1.bf16.msra.mxu0 %v20900_v3  ;;  %v20962_v3 = vld [vmem:[%s22422_s27 + $0x3024] ss:$136 sps:$4 sm:$0xff]   ;;  %v20968_v55 = vld [vmem:[%s22422_s27 + $0x2f14] ss:$136 sps:$4 sm:$0xff]  }
 0x5ad   : > { %15132 = vmatpush1.bf16.msra.mxu1 %v20903_v12  ;;  %v14798_v31 = vpop.f32.mrf.mxu0  ;;  %15092 = vmatprep.subr.bf16.mxu0 %v20908_v47  ;;  %v20965_v12 = vld [vmem:[%s22422_s27 + $0x4124] ss:$136 sps:$4 sm:$0xff]   ;;  %v20960_v47 = vld [vmem:[%s22422_s27 + $0x3020] ss:$136 sps:$4 sm:$0xff]   ;;  %v20971_v56 = vld [vmem:[%s22422_s27 + $0x4014] ss:$136 sps:$4 sm:$0xff]  }
 0x5ae   : > { %v14839_v32 = vpop.f32.mrf.mxu1  ;;  %15133 = vmatprep.subr.bf16.mxu1 %v20911_v16  ;;  %v14838_v1 = vadd.f32 %v14837_v19, %v14797_v21  ;;  %v14799_v2 = vadd.f32 %v14798_v31, %v14758_v20  ;;  %15122 = vmatprep.mubr.bf16.mxu0 %v22551_v37  ;;  %v20963_v16 = vld [vmem:[%s22422_s27 + $0x4120] ss:$136 sps:$4 sm:$0xff]   ;;  %v20966_v19 = vld [vmem:[%s22422_s27 + $0x2f10] ss:$136 sps:$4 sm:$0xff]   ;;  %v20974_v21 = vld [vmem:[%s22422_s27 + $0x2e04] ss:$136 sps:$4 sm:$0xff]  }
 0x5af   : > { %15163 = vmatprep.mubr.bf16.mxu1 %v22555_v38  ;;  %v14800_v25 = vpop.f32.mrf.mxu0  ;;  %v20969_v20 = vld [vmem:[%s22422_s27 + $0x4010] ss:$136 sps:$4 sm:$0xff]   ;;  %v20980_v31 = vld [vmem:[%s22422_s27 + $0x2cf4] ss:$136 sps:$4 sm:$0xff]  }
 0x5b0   : > { %v14841_v33 = vpop.f32.mrf.mxu1  ;;  %v16172_v34 = vadd.f32 %v14838_v1, %v266_v26  ;;  %v14840_v35 = vadd.f32 %v14839_v32, %v14799_v2  ;;  %15093 = vmatpush1.bf16.msra.mxu0 %v20906_v22  ;;  %v20977_v22 = vld [vmem:[%s22422_s27 + $0x3f04] ss:$136 sps:$4 sm:$0xff]   ;;  %v20975_v26 = vld [vmem:[%s22422_s27 + $0x3f00] ss:$136 sps:$4 sm:$0xff]   ;;  %v20983_v32 = vld [vmem:[%s22422_s27 + $0x3df4] ss:$136 sps:$4 sm:$0xff]  }
 0x5b1   : > { %15134 = vmatpush1.bf16.msra.mxu1 %v20909_v15  ;;  %v14801_v44 = vpop.f32.mrf.mxu0  ;;  %15094 = vmatprep.subr.bf16.mxu0 %v20914_v27  ;;  %v20972_v15 = vld [vmem:[%s22422_s27 + $0x2e00] ss:$136 sps:$4 sm:$0xff]   ;;  %v20978_v27 = vld [vmem:[%s22422_s27 + $0x2cf0] ss:$136 sps:$4 sm:$0xff]   ;;  %v20986_v1 = vld [vmem:[%s22422_s27 + $0x2be4] ss:$136 sps:$4 sm:$0xff]  }
 0x5b2   : > { %v14842_v45 = vpop.f32.mrf.mxu1  ;;  %15135 = vmatprep.subr.bf16.mxu1 %v20917_v28  ;;  %16206 = vst [vmem:[#allocation2 + $0x40] sm:$0xff] %v16172_v34  ;;  %v16173_v10 = vadd.f32 %v14840_v35, %v267_v63  ;;  %v20981_v28 = vld [vmem:[%s22422_s27 + $0x3df0] ss:$136 sps:$4 sm:$0xff]   ;;  %v20989_v2 = vld [vmem:[%s22422_s27 + $0x3ce4] ss:$136 sps:$4 sm:$0xff]  }
 0x5b3   : > { %v20984_v63 = vld [vmem:[%s22422_s27 + $0x2be0] ss:$136 sps:$4 sm:$0xff]   ;;  %v20992_v33 = vld [vmem:[%s22422_s27 + $0x2ad4] ss:$136 sps:$4 sm:$0xff]   ;;  %v20990_v35 = vld [vmem:[%s22422_s27 + $0x2ad0] ss:$136 sps:$4 sm:$0xff]  }
 0x5b4   : > { %16207 = vst [vmem:[#allocation2 + $0x90] sm:$0xff] %v16173_v10  ;;  %15095 = vmatpush1.bf16.msra.mxu0 %v20912_v36  ;;  %v20987_v25 = vld [vmem:[%s22422_s27 + $0x3ce0] ss:$136 sps:$4 sm:$0xff]   ;;  %v20995_v34 = vld [vmem:[%s22422_s27 + $0x3bd4] ss:$136 sps:$4 sm:$0xff]  }
 0x5b5   : > { %15136 = vmatpush1.bf16.msra.mxu1 %v20915_v29  ;;  %15096 = vmatprep.subr.bf16.mxu0 %v20920_v49  ;;  %v20993_v36 = vld [vmem:[%s22422_s27 + $0x3bd0] ss:$136 sps:$4 sm:$0xff]   ;;  %v20998_v29 = vld [vmem:[%s22422_s27 + $0x7cc] ss:$136 sps:$4 sm:$0xff]   ;;  %v21007_v10 = vld [vmem:[%s22422_s27 + $0x17bc] ss:$136 sps:$4 sm:$0xff]  }
 0x5b6   : > { %15137 = vmatprep.subr.bf16.mxu1 %v20923_v9  ;;  %v21001_v44 = vld [vmem:[%s22422_s27 + $0x18cc] ss:$136 sps:$4 sm:$0xff]   ;;  %v20996_v45 = vld [vmem:[%s22422_s27 + $0x7c8] ss:$136 sps:$4 sm:$0xff]   ;;  %v21004_v9 = vld [vmem:[%s22422_s27 + $0x6bc] ss:$136 sps:$4 sm:$0xff]  }
 0x5b7   : > { %v20999_v49 = vld [vmem:[%s22422_s27 + $0x18c8] ss:$136 sps:$4 sm:$0xff]  }
 0x5b8   : > { %15097 = vmatpush1.bf16.msra.mxu0 %v20918_v13 }
 0x5b9   : > { %15138 = vmatpush1.bf16.msra.mxu1 %v20921_v14  ;;  %15098 = vmatprep.subr.bf16.mxu0 %v20926_v11  ;;  %v21002_v11 = vld [vmem:[%s22422_s27 + $0x6b8] ss:$136 sps:$4 sm:$0xff]  }
 0x5ba   : > { %15139 = vmatprep.subr.bf16.mxu1 %v20929_v43  ;;  %v21005_v43 = vld [vmem:[%s22422_s27 + $0x17b8] ss:$136 sps:$4 sm:$0xff]  }
 0x5bc   : > { %15099 = vmatpush1.bf16.msra.mxu0 %v20924_v50 }
 0x5bd   : > { %15140 = vmatpush1.bf16.msra.mxu1 %v20927_v51  ;;  %15100 = vmatprep.subr.bf16.mxu0 %v20932_v53  ;;  %v21010_v53 = vld [vmem:[%s22422_s27 + $0x5ac] ss:$136 sps:$4 sm:$0xff]  }
 0x5be   : > { %15141 = vmatprep.subr.bf16.mxu1 %v20935_v54  ;;  %v21013_v54 = vld [vmem:[%s22422_s27 + $0x16ac] ss:$136 sps:$4 sm:$0xff]  }
 0x5c0   : > { %15101 = vmatpush1.bf16.msra.mxu0 %v20930_v46 }
 0x5c1   : > { %15142 = vmatpush1.bf16.msra.mxu1 %v20933_v58  ;;  %15102 = vmatprep.subr.bf16.mxu0 %v20938_v23  ;;  %v21008_v23 = vld [vmem:[%s22422_s27 + $0x5a8] ss:$136 sps:$4 sm:$0xff]  }
 0x5c2   : > { %15143 = vmatprep.subr.bf16.mxu1 %v20941_v24  ;;  %v21011_v24 = vld [vmem:[%s22422_s27 + $0x16a8] ss:$136 sps:$4 sm:$0xff]  }
 0x5c4   : > { %15103 = vmatpush1.bf16.msra.mxu0 %v20936_v59 }
 0x5c5   : > { %15144 = vmatpush1.bf16.msra.mxu1 %v20939_v60  ;;  %15104 = vmatprep.subr.bf16.mxu0 %v20944_v61  ;;  %v21016_v61 = vld [vmem:[%s22422_s27 + $0x49c] ss:$136 sps:$4 sm:$0xff]  }
 0x5c6   : > { %15145 = vmatprep.subr.bf16.mxu1 %v20947_v62  ;;  %v21019_v62 = vld [vmem:[%s22422_s27 + $0x159c] ss:$136 sps:$4 sm:$0xff]  }
 0x5c8   : > { %15105 = vmatpush1.bf16.msra.mxu0 %v20942_v57  ;;  %v21014_v57 = vld [vmem:[%s22422_s27 + $0x498] ss:$136 sps:$4 sm:$0xff]  }
 0x5c9   : > { %15146 = vmatpush1.bf16.msra.mxu1 %v20945_v0  ;;  %15106 = vmatprep.subr.bf16.mxu0 %v20950_v30  ;;  %v21017_v0 = vld [vmem:[%s22422_s27 + $0x1598] ss:$136 sps:$4 sm:$0xff]   ;;  %v21022_v30 = vld [vmem:[%s22422_s27 + $0x38c] ss:$136 sps:$4 sm:$0xff]  }
 0x5ca   : > { %15147 = vmatprep.subr.bf16.mxu1 %v20953_v4  ;;  %v21025_v4 = vld [vmem:[%s22422_s27 + $0x148c] ss:$136 sps:$4 sm:$0xff]  }
 0x5cc   : > { %15107 = vmatpush2.bf16.msra.mxu0 %v20948_v39  ;;  %v21020_v39 = vld [vmem:[%s22422_s27 + $0x388] ss:$136 sps:$4 sm:$0xff]  }
 0x5cd   : > { %15148 = vmatpush2.bf16.msra.mxu1 %v20951_v40  ;;  %15108 = vmatprep.subr.bf16.mxu0 %v20956_v5  ;;  %v21023_v40 = vld [vmem:[%s22422_s27 + $0x1488] ss:$136 sps:$4 sm:$0xff]   ;;  %v21028_v5 = vld [vmem:[%s22422_s27 + $0x27c] ss:$136 sps:$4 sm:$0xff]  }
 0x5ce   : > { %15149 = vmatprep.subr.bf16.mxu1 %v20959_v6  ;;  %v21031_v6 = vld [vmem:[%s22422_s27 + $0x137c] ss:$136 sps:$4 sm:$0xff]  }
 0x5d0   : > { %15109 = vmatpush2.bf16.msra.mxu0 %v20954_v41  ;;  %v21026_v41 = vld [vmem:[%s22422_s27 + $0x278] ss:$136 sps:$4 sm:$0xff]  }
 0x5d1   : > { %15150 = vmatpush2.bf16.msra.mxu1 %v20957_v42  ;;  %15110 = vmatprep.subr.bf16.mxu0 %v20962_v3  ;;  %v21029_v42 = vld [vmem:[%s22422_s27 + $0x1378] ss:$136 sps:$4 sm:$0xff]   ;;  %v21034_v3 = vld [vmem:[%s22422_s27 + $0x16c] ss:$136 sps:$4 sm:$0xff]  }
 0x5d2   : > { %15151 = vmatprep.subr.bf16.mxu1 %v20965_v12  ;;  %v21037_v12 = vld [vmem:[%s22422_s27 + $0x126c] ss:$136 sps:$4 sm:$0xff]  }
 0x5d4   : > { %15111 = vmatpush2.bf16.msra.mxu0 %v20960_v47  ;;  %v21032_v47 = vld [vmem:[%s22422_s27 + $0x168] ss:$136 sps:$4 sm:$0xff]  }
 0x5d5   : > { %15152 = vmatpush2.bf16.msra.mxu1 %v20963_v16  ;;  %15112 = vmatprep.subr.bf16.mxu0 %v20968_v55  ;;  %v21035_v16 = vld [vmem:[%s22422_s27 + $0x1268] ss:$136 sps:$4 sm:$0xff]   ;;  %v21040_v55 = vld [vmem:[%s22422_s27 + $0x5c] ss:$136 sps:$4 sm:$0xff]  }
 0x5d6   : > { %15153 = vmatprep.subr.bf16.mxu1 %v20971_v56  ;;  %v21043_v56 = vld [vmem:[%s22422_s27 + $0x115c] ss:$136 sps:$4 sm:$0xff]  }
 0x5d8   : > { %15113 = vmatpush2.bf16.msra.mxu0 %v20966_v19  ;;  %v21038_v19 = vld [vmem:[%s22422_s27 + $0x58] ss:$136 sps:$4 sm:$0xff]  }
 0x5d9   : > { %15154 = vmatpush2.bf16.msra.mxu1 %v20969_v20  ;;  %15114 = vmatprep.subr.bf16.mxu0 %v20974_v21  ;;  %v21041_v20 = vld [vmem:[%s22422_s27 + $0x1158] ss:$136 sps:$4 sm:$0xff]   ;;  %v21046_v21 = vld [vmem:[%s22422_s27 + $0x104c] ss:$136 sps:$4 sm:$0xff]  }
 0x5da   : > { %15155 = vmatprep.subr.bf16.mxu1 %v20977_v22  ;;  %v21049_v22 = vld [vmem:[%s22422_s27 + $0x214c] ss:$136 sps:$4 sm:$0xff]  }
 0x5dc   : > { %15115 = vmatpush2.bf16.msra.mxu0 %v20972_v15  ;;  %v21044_v15 = vld [vmem:[%s22422_s27 + $0x1048] ss:$136 sps:$4 sm:$0xff]  }
 0x5dd   : > { %15156 = vmatpush2.bf16.msra.mxu1 %v20975_v26  ;;  %15116 = vmatprep.subr.bf16.mxu0 %v20980_v31  ;;  %v21047_v26 = vld [vmem:[%s22422_s27 + $0x2148] ss:$136 sps:$4 sm:$0xff]   ;;  %v21052_v31 = vld [vmem:[%s22422_s27 + $0xf3c] ss:$136 sps:$4 sm:$0xff]  }
 0x5de   : > { %15157 = vmatprep.subr.bf16.mxu1 %v20983_v32  ;;  %v21055_v32 = vld [vmem:[%s22422_s27 + $0x203c] ss:$136 sps:$4 sm:$0xff]  }
 0x5e0   : > { %15117 = vmatpush2.bf16.msra.mxu0 %v20978_v27  ;;  %v21050_v27 = vld [vmem:[%s22422_s27 + $0xf38] ss:$136 sps:$4 sm:$0xff]  }
 0x5e1   : > { %15158 = vmatpush2.bf16.msra.mxu1 %v20981_v28  ;;  %15118 = vmatprep.subr.bf16.mxu0 %v20986_v1  ;;  %v21053_v28 = vld [vmem:[%s22422_s27 + $0x2038] ss:$136 sps:$4 sm:$0xff]   ;;  %v21058_v1 = vld [vmem:[%s22422_s27 + $0xe2c] ss:$136 sps:$4 sm:$0xff]  }
 0x5e2   : > { %15159 = vmatprep.subr.bf16.mxu1 %v20989_v2  ;;  %v21061_v2 = vld [vmem:[%s22422_s27 + $0x1f2c] ss:$136 sps:$4 sm:$0xff]  }
 0x5e4   : > { %15119 = vmatpush2.bf16.msra.mxu0 %v20984_v63  ;;  %v21056_v63 = vld [vmem:[%s22422_s27 + $0xe28] ss:$136 sps:$4 sm:$0xff]  }
 0x5e5   : > { %15160 = vmatpush2.bf16.msra.mxu1 %v20987_v25  ;;  %15120 = vmatprep.subr.bf16.mxu0 %v20992_v33  ;;  %v21059_v25 = vld [vmem:[%s22422_s27 + $0x1f28] ss:$136 sps:$4 sm:$0xff]   ;;  %v21064_v33 = vld [vmem:[%s22422_s27 + $0xd1c] ss:$136 sps:$4 sm:$0xff]  }
 0x5e6   : > { %15161 = vmatprep.subr.bf16.mxu1 %v20995_v34  ;;  %v21067_v34 = vld [vmem:[%s22422_s27 + $0x1e1c] ss:$136 sps:$4 sm:$0xff]  }
 0x5e8   : > { %15121 = vmatpush2.bf16.msra.mxu0 %v20990_v35  ;;  %v21062_v35 = vld [vmem:[%s22422_s27 + $0xd18] ss:$136 sps:$4 sm:$0xff]  }
 0x5e9   : > { %15162 = vmatpush2.bf16.msra.mxu1 %v20993_v36  ;;  %15172 = vmatprep.subr.bf16.mxu0 %v20998_v29  ;;  %v21065_v36 = vld [vmem:[%s22422_s27 + $0x1e18] ss:$136 sps:$4 sm:$0xff]   ;;  %v21070_v29 = vld [vmem:[%s22422_s27 + $0xc0c] ss:$136 sps:$4 sm:$0xff]  }
 0x5ea   : > { %15213 = vmatprep.subr.bf16.mxu1 %v21001_v44  ;;  %v21073_v44 = vld [vmem:[%s22422_s27 + $0x1d0c] ss:$136 sps:$4 sm:$0xff]  }
 0x5eb   : > { %v24077_v13 = vpop.f32.mrf.mxu0  ;;  %15123 = vmatmul.mubr.bf16.vlgmr.msra.gmra.mxu0 %v22599_v17 }
 0x5ec   : > { %v24079_v14 = vpop.f32.mrf.mxu1  ;;  %15164 = vmatmul.mubr.bf16.vlgmr.msra.gmra.mxu1 %v22603_v18  ;;  %15173 = vmatpush1.bf16.msra.mxu0 %v20996_v45  ;;  %v21068_v45 = vld [vmem:[%s22422_s27 + $0xc08] ss:$136 sps:$4 sm:$0xff]  }
 0x5ed   : > { %15214 = vmatpush1.bf16.msra.mxu1 %v20999_v49  ;;  %v24085_v50 = vpop.f32.mrf.mxu0  ;;  %15174 = vmatprep.subr.bf16.mxu0 %v21004_v9  ;;  %v21071_v49 = vld [vmem:[%s22422_s27 + $0x1d08] ss:$136 sps:$4 sm:$0xff]   ;;  %v21076_v9 = vld [vmem:[%s22422_s27 + $0xafc] ss:$136 sps:$4 sm:$0xff]  }
 0x5ee   : > { %v24087_v51 = vpop.f32.mrf.mxu1  ;;  %15215 = vmatprep.subr.bf16.mxu1 %v21007_v10  ;;  %15204 = vmatprep.mubr.bf16.mxu0 %v22484_v48  ;;  %v21079_v10 = vld [vmem:[%s22422_s27 + $0x1bfc] ss:$136 sps:$4 sm:$0xff]  }
 0x5ef   : > { %15245 = vmatprep.mubr.bf16.mxu1 %v22489_v52  ;;  %v14882_v46 = vpop.f32.mrf.mxu0 }
 0x5f0   : > { %v14923_v58 = vpop.f32.mrf.mxu1  ;;  %15175 = vmatpush1.bf16.msra.mxu0 %v21002_v11  ;;  %v21074_v11 = vld [vmem:[%s22422_s27 + $0xaf8] ss:$136 sps:$4 sm:$0xff]   ;;  %v21080_v46 = vld [vmem:[%s22422_s27 + $0x9e8] ss:$136 sps:$4 sm:$0xff]  }
 0x5f1   : > { %15216 = vmatpush1.bf16.msra.mxu1 %v21005_v43  ;;  %v14883_v59 = vpop.f32.mrf.mxu0  ;;  %15176 = vmatprep.subr.bf16.mxu0 %v21010_v53  ;;  %v21077_v43 = vld [vmem:[%s22422_s27 + $0x1bf8] ss:$136 sps:$4 sm:$0xff]   ;;  %v21082_v53 = vld [vmem:[%s22422_s27 + $0x9ec] ss:$136 sps:$4 sm:$0xff]   ;;  %v21083_v58 = vld [vmem:[%s22422_s27 + $0x1ae8] ss:$136 sps:$4 sm:$0xff]  }
 0x5f2   : > { %v14924_v60 = vpop.f32.mrf.mxu1  ;;  %15217 = vmatprep.subr.bf16.mxu1 %v21013_v54  ;;  %v21085_v54 = vld [vmem:[%s22422_s27 + $0x1aec] ss:$136 sps:$4 sm:$0xff]   ;;  %v21086_v59 = vld [vmem:[%s22422_s27 + $0x8d8] ss:$136 sps:$4 sm:$0xff]  }
 0x5f3   : > { %v21089_v60 = vld [vmem:[%s22422_s27 + $0x19d8] ss:$136 sps:$4 sm:$0xff]  }
 0x5f4   : > { %15177 = vmatpush1.bf16.msra.mxu0 %v21008_v23  ;;  %v21088_v23 = vld [vmem:[%s22422_s27 + $0x8dc] ss:$136 sps:$4 sm:$0xff]  }
 0x5f5   : > { %15218 = vmatpush1.bf16.msra.mxu1 %v21011_v24  ;;  %15178 = vmatprep.subr.bf16.mxu0 %v21016_v61  ;;  %v21091_v24 = vld [vmem:[%s22422_s27 + $0x19dc] ss:$136 sps:$4 sm:$0xff]   ;;  %v21094_v61 = vld [vmem:[%s22422_s27 + $0x29cc] ss:$136 sps:$4 sm:$0xff]  }
 0x5f6   : > { %15219 = vmatprep.subr.bf16.mxu1 %v21019_v62  ;;  %v21097_v62 = vld [vmem:[%s22422_s27 + $0x3acc] ss:$136 sps:$4 sm:$0xff]  }
 0x5f8   : > { %15179 = vmatpush1.bf16.msra.mxu0 %v21014_v57  ;;  %v21092_v57 = vld [vmem:[%s22422_s27 + $0x29c8] ss:$136 sps:$4 sm:$0xff]  }
 0x5f9   : > { %15220 = vmatpush1.bf16.msra.mxu1 %v21017_v0  ;;  %15180 = vmatprep.subr.bf16.mxu0 %v21022_v30  ;;  %v21095_v0 = vld [vmem:[%s22422_s27 + $0x3ac8] ss:$136 sps:$4 sm:$0xff]   ;;  %v21100_v30 = vld [vmem:[%s22422_s27 + $0x28bc] ss:$136 sps:$4 sm:$0xff]  }
 0x5fa   : > { %15221 = vmatprep.subr.bf16.mxu1 %v21025_v4  ;;  %v21103_v4 = vld [vmem:[%s22422_s27 + $0x39bc] ss:$136 sps:$4 sm:$0xff]  }
 0x5fc   : > { %15181 = vmatpush1.bf16.msra.mxu0 %v21020_v39  ;;  %v14920_v39 = vadd.f32 %v24079_v14, %v24077_v13  ;;  %v21106_v13 = vld [vmem:[%s22422_s27 + $0x27ac] ss:$136 sps:$4 sm:$0xff]  }
 0x5fd   : > { %15222 = vmatpush1.bf16.msra.mxu1 %v21023_v40  ;;  %15182 = vmatprep.subr.bf16.mxu0 %v21028_v5  ;;  %v21109_v14 = vld [vmem:[%s22422_s27 + $0x38ac] ss:$136 sps:$4 sm:$0xff]  }
 0x5fe   : > { %15223 = vmatprep.subr.bf16.mxu1 %v21031_v6  ;;  %v14922_v6 = vadd.f32 %v24087_v51, %v24085_v50  ;;  %v269_v50 = vld [vmem:[#allocation2 + $0x38] sm:$0xff] }
 0x600   : > { %15183 = vmatpush1.bf16.msra.mxu0 %v21026_v41 }
 0x601   : > { %15224 = vmatpush1.bf16.msra.mxu1 %v21029_v42  ;;  %15184 = vmatprep.subr.bf16.mxu0 %v21034_v3  ;;  %v21098_v42 = vld [vmem:[%s22422_s27 + $0x28b8] ss:$136 sps:$4 sm:$0xff]  }
 0x602   : > { %15225 = vmatprep.subr.bf16.mxu1 %v21037_v12  ;;  %v21101_v3 = vld [vmem:[%s22422_s27 + $0x39b8] ss:$136 sps:$4 sm:$0xff]   ;;  %v268_v12 = vld [vmem:[#allocation2 + $0x60] sm:$0xff] }
 0x604   : > { %15185 = vmatpush1.bf16.msra.mxu0 %v21032_v47 }
 0x605   : > { %15226 = vmatpush1.bf16.msra.mxu1 %v21035_v16  ;;  %15186 = vmatprep.subr.bf16.mxu0 %v21040_v55 }
 0x606   : > { %15227 = vmatprep.subr.bf16.mxu1 %v21043_v56 }
 0x608   : > { %15187 = vmatpush1.bf16.msra.mxu0 %v21038_v19 }
 0x609   : > { %15228 = vmatpush1.bf16.msra.mxu1 %v21041_v20  ;;  %15188 = vmatprep.subr.bf16.mxu0 %v21046_v21 }
 0x60a   : > { %15229 = vmatprep.subr.bf16.mxu1 %v21049_v22  ;;  %v21104_v22 = vld [vmem:[%s22422_s27 + $0x27a8] ss:$136 sps:$4 sm:$0xff]  }
 0x60c   : > { %15189 = vmatpush2.bf16.msra.mxu0 %v21044_v15  ;;  %v21107_v15 = vld [vmem:[%s22422_s27 + $0x38a8] ss:$136 sps:$4 sm:$0xff]  }
 0x60d   : > { %15230 = vmatpush2.bf16.msra.mxu1 %v21047_v26  ;;  %15190 = vmatprep.subr.bf16.mxu0 %v21052_v31 }
 0x60e   : > { %15231 = vmatprep.subr.bf16.mxu1 %v21055_v32  ;;  %v21112_v32 = vld [vmem:[%s22422_s27 + $0x269c] ss:$136 sps:$4 sm:$0xff]  }
 0x610   : > { %15191 = vmatpush2.bf16.msra.mxu0 %v21050_v27  ;;  %v21115_v27 = vld [vmem:[%s22422_s27 + $0x379c] ss:$136 sps:$4 sm:$0xff]  }
 0x611   : > { %15232 = vmatpush2.bf16.msra.mxu1 %v21053_v28  ;;  %15192 = vmatprep.subr.bf16.mxu0 %v21058_v1  ;;  %v21110_v1 = vld [vmem:[%s22422_s27 + $0x2698] ss:$136 sps:$4 sm:$0xff]  }
 0x612   : > { %15233 = vmatprep.subr.bf16.mxu1 %v21061_v2  ;;  %v21113_v2 = vld [vmem:[%s22422_s27 + $0x3798] ss:$136 sps:$4 sm:$0xff]  }
 0x614   : > { %15193 = vmatpush2.bf16.msra.mxu0 %v21056_v63  ;;  %v21118_v63 = vld [vmem:[%s22422_s27 + $0x258c] ss:$136 sps:$4 sm:$0xff]  }
 0x615   : > { %15234 = vmatpush2.bf16.msra.mxu1 %v21059_v25  ;;  %15194 = vmatprep.subr.bf16.mxu0 %v21064_v33  ;;  %v21121_v25 = vld [vmem:[%s22422_s27 + $0x368c] ss:$136 sps:$4 sm:$0xff]   ;;  %v21116_v33 = vld [vmem:[%s22422_s27 + $0x2588] ss:$136 sps:$4 sm:$0xff]  }
 0x616   : > { %15235 = vmatprep.subr.bf16.mxu1 %v21067_v34  ;;  %v21119_v34 = vld [vmem:[%s22422_s27 + $0x3688] ss:$136 sps:$4 sm:$0xff]  }
 0x618   : > { %15195 = vmatpush2.bf16.msra.mxu0 %v21062_v35  ;;  %v21124_v35 = vld [vmem:[%s22422_s27 + $0x247c] ss:$136 sps:$4 sm:$0xff]  }
 0x619   : > { %15236 = vmatpush2.bf16.msra.mxu1 %v21065_v36  ;;  %15196 = vmatprep.subr.bf16.mxu0 %v21070_v29  ;;  %v21127_v36 = vld [vmem:[%s22422_s27 + $0x357c] ss:$136 sps:$4 sm:$0xff]   ;;  %v21122_v29 = vld [vmem:[%s22422_s27 + $0x2478] ss:$136 sps:$4 sm:$0xff]  }
 0x61a   : > { %15237 = vmatprep.subr.bf16.mxu1 %v21073_v44  ;;  %v21125_v44 = vld [vmem:[%s22422_s27 + $0x3578] ss:$136 sps:$4 sm:$0xff]  }
 0x61c   : > { %15197 = vmatpush2.bf16.msra.mxu0 %v21068_v45  ;;  %v21130_v45 = vld [vmem:[%s22422_s27 + $0x236c] ss:$136 sps:$4 sm:$0xff]  }
 0x61d   : > { %15238 = vmatpush2.bf16.msra.mxu1 %v21071_v49  ;;  %15198 = vmatprep.subr.bf16.mxu0 %v21076_v9  ;;  %v21133_v49 = vld [vmem:[%s22422_s27 + $0x346c] ss:$136 sps:$4 sm:$0xff]   ;;  %v21128_v9 = vld [vmem:[%s22422_s27 + $0x2368] ss:$136 sps:$4 sm:$0xff]  }
 0x61e   : > { %15239 = vmatprep.subr.bf16.mxu1 %v21079_v10  ;;  %v21131_v10 = vld [vmem:[%s22422_s27 + $0x3468] ss:$136 sps:$4 sm:$0xff]  }
 0x620   : > { %15199 = vmatpush2.bf16.msra.mxu0 %v21074_v11  ;;  %v21136_v11 = vld [vmem:[%s22422_s27 + $0x225c] ss:$136 sps:$4 sm:$0xff]  }
 0x621   : > { %15240 = vmatpush2.bf16.msra.mxu1 %v21077_v43  ;;  %15200 = vmatprep.subr.bf16.mxu0 %v21082_v53  ;;  %v21139_v43 = vld [vmem:[%s22422_s27 + $0x335c] ss:$136 sps:$4 sm:$0xff]   ;;  %v21134_v53 = vld [vmem:[%s22422_s27 + $0x2258] ss:$136 sps:$4 sm:$0xff]  }
 0x622   : > { %15241 = vmatprep.subr.bf16.mxu1 %v21085_v54  ;;  %v21137_v54 = vld [vmem:[%s22422_s27 + $0x3358] ss:$136 sps:$4 sm:$0xff]  }
 0x624   : > { %15201 = vmatpush2.bf16.msra.mxu0 %v21080_v46  ;;  %v21142_v46 = vld [vmem:[%s22422_s27 + $0x324c] ss:$136 sps:$4 sm:$0xff]  }
 0x625   : > { %15242 = vmatpush2.bf16.msra.mxu1 %v21083_v58  ;;  %15202 = vmatprep.subr.bf16.mxu0 %v21088_v23  ;;  %v21145_v58 = vld [vmem:[%s22422_s27 + $0x434c] ss:$136 sps:$4 sm:$0xff]   ;;  %v21140_v23 = vld [vmem:[%s22422_s27 + $0x3248] ss:$136 sps:$4 sm:$0xff]  }
 0x626   : > { %15243 = vmatprep.subr.bf16.mxu1 %v21091_v24  ;;  %v21143_v24 = vld [vmem:[%s22422_s27 + $0x4348] ss:$136 sps:$4 sm:$0xff]  }
 0x628   : > { %15203 = vmatpush2.bf16.msra.mxu0 %v21086_v59  ;;  %v21148_v59 = vld [vmem:[%s22422_s27 + $0x313c] ss:$136 sps:$4 sm:$0xff]  }
 0x629   : > { %15244 = vmatpush2.bf16.msra.mxu1 %v21089_v60  ;;  %15254 = vmatprep.subr.bf16.mxu0 %v21094_v61  ;;  %v21151_v60 = vld [vmem:[%s22422_s27 + $0x423c] ss:$136 sps:$4 sm:$0xff]   ;;  %v21146_v61 = vld [vmem:[%s22422_s27 + $0x3138] ss:$136 sps:$4 sm:$0xff]  }
 0x62a   : > { %15295 = vmatprep.subr.bf16.mxu1 %v21097_v62  ;;  %v21149_v62 = vld [vmem:[%s22422_s27 + $0x4238] ss:$136 sps:$4 sm:$0xff]  }
 0x62b   : > { %v14960_v40 = vpop.f32.mrf.mxu0  ;;  %15205 = vmatmul.mubr.bf16.vlgmr.msra.gmra.mxu0 %v22511_v7 }
 0x62c   : > { %v15001_v5 = vpop.f32.mrf.mxu1  ;;  %15246 = vmatmul.mubr.bf16.vlgmr.msra.gmra.mxu1 %v22513_v8  ;;  %v14961_v41 = vadd.f32 %v14960_v40, %v14920_v39  ;;  %15255 = vmatpush1.bf16.msra.mxu0 %v21092_v57  ;;  %v21154_v57 = vld [vmem:[%s22422_s27 + $0x302c] ss:$136 sps:$4 sm:$0xff]   ;;  %v21160_v39 = vld [vmem:[%s22422_s27 + $0x2f1c] ss:$136 sps:$4 sm:$0xff]  }
 0x62d   : > { %15296 = vmatpush1.bf16.msra.mxu1 %v21095_v0  ;;  %v14962_v47 = vpop.f32.mrf.mxu0  ;;  %15256 = vmatprep.subr.bf16.mxu0 %v21100_v30  ;;  %v21157_v0 = vld [vmem:[%s22422_s27 + $0x412c] ss:$136 sps:$4 sm:$0xff]   ;;  %v21152_v30 = vld [vmem:[%s22422_s27 + $0x3028] ss:$136 sps:$4 sm:$0xff]   ;;  %v21163_v40 = vld [vmem:[%s22422_s27 + $0x401c] ss:$136 sps:$4 sm:$0xff]  }
 0x62e   : > { %v15003_v16 = vpop.f32.mrf.mxu1  ;;  %15297 = vmatprep.subr.bf16.mxu1 %v21103_v4  ;;  %v15002_v55 = vadd.f32 %v15001_v5, %v14961_v41  ;;  %v14963_v56 = vadd.f32 %v14962_v47, %v14922_v6  ;;  %15286 = vmatprep.mubr.bf16.mxu0 %v22551_v37  ;;  %v21155_v4 = vld [vmem:[%s22422_s27 + $0x4128] ss:$136 sps:$4 sm:$0xff]   ;;  %v21158_v5 = vld [vmem:[%s22422_s27 + $0x2f18] ss:$136 sps:$4 sm:$0xff]   ;;  %v21166_v41 = vld [vmem:[%s22422_s27 + $0x2e0c] ss:$136 sps:$4 sm:$0xff]  }
 0x62f   : > { %15327 = vmatprep.mubr.bf16.mxu1 %v22555_v38  ;;  %v14964_v51 = vpop.f32.mrf.mxu0  ;;  %v21161_v6 = vld [vmem:[%s22422_s27 + $0x4018] ss:$136 sps:$4 sm:$0xff]   ;;  %v21172_v47 = vld [vmem:[%s22422_s27 + $0x2cfc] ss:$136 sps:$4 sm:$0xff]  }
 0x630   : > { %v15005_v19 = vpop.f32.mrf.mxu1  ;;  %v16174_v20 = vadd.f32 %v15002_v55, %v268_v12  ;;  %v15004_v21 = vadd.f32 %v15003_v16, %v14963_v56  ;;  %15257 = vmatpush1.bf16.msra.mxu0 %v21098_v42  ;;  %v21169_v42 = vld [vmem:[%s22422_s27 + $0x3f0c] ss:$136 sps:$4 sm:$0xff]   ;;  %v21167_v12 = vld [vmem:[%s22422_s27 + $0x3f08] ss:$136 sps:$4 sm:$0xff]   ;;  %v21175_v16 = vld [vmem:[%s22422_s27 + $0x3dfc] ss:$136 sps:$4 sm:$0xff]  }
 0x631   : > { %15298 = vmatpush1.bf16.msra.mxu1 %v21101_v3  ;;  %v14965_v26 = vpop.f32.mrf.mxu0  ;;  %15258 = vmatprep.subr.bf16.mxu0 %v21106_v13  ;;  %v21164_v3 = vld [vmem:[%s22422_s27 + $0x2e08] ss:$136 sps:$4 sm:$0xff]   ;;  %v21170_v13 = vld [vmem:[%s22422_s27 + $0x2cf8] ss:$136 sps:$4 sm:$0xff]   ;;  %v21178_v55 = vld [vmem:[%s22422_s27 + $0x2bec] ss:$136 sps:$4 sm:$0xff]  }
 0x632   : > { %v15006_v31 = vpop.f32.mrf.mxu1  ;;  %15299 = vmatprep.subr.bf16.mxu1 %v21109_v14  ;;  %16208 = vst [vmem:[#allocation2 + $0x60] sm:$0xff] %v16174_v20  ;;  %v16175_v28 = vadd.f32 %v15004_v21, %v269_v50  ;;  %v21173_v14 = vld [vmem:[%s22422_s27 + $0x3df8] ss:$136 sps:$4 sm:$0xff]   ;;  %v21181_v56 = vld [vmem:[%s22422_s27 + $0x3cec] ss:$136 sps:$4 sm:$0xff]  }
 0x633   : > { %v21176_v50 = vld [vmem:[%s22422_s27 + $0x2be8] ss:$136 sps:$4 sm:$0xff]   ;;  %v21184_v19 = vld [vmem:[%s22422_s27 + $0x2adc] ss:$136 sps:$4 sm:$0xff]   ;;  %v21182_v21 = vld [vmem:[%s22422_s27 + $0x2ad8] ss:$136 sps:$4 sm:$0xff]  }
 0x634   : > { %16209 = vst [vmem:[#allocation2 + $0x38] sm:$0xff] %v16175_v28  ;;  %15259 = vmatpush1.bf16.msra.mxu0 %v21104_v22  ;;  %v21179_v51 = vld [vmem:[%s22422_s27 + $0x3ce8] ss:$136 sps:$4 sm:$0xff]   ;;  %v21187_v20 = vld [vmem:[%s22422_s27 + $0x3bdc] ss:$136 sps:$4 sm:$0xff]  }
 0x635   : > { %15300 = vmatpush1.bf16.msra.mxu1 %v21107_v15  ;;  %15260 = vmatprep.subr.bf16.mxu0 %v21112_v32  ;;  %v21185_v22 = vld [vmem:[%s22422_s27 + $0x3bd8] ss:$136 sps:$4 sm:$0xff]   ;;  %v21190_v15 = vld [vmem:[%s22422_s27 + $0x7d4] ss:$136 sps:$4 sm:$0xff]   ;;  %v21199_v28 = vld [vmem:[%s22422_s27 + $0x17c4] ss:$136 sps:$4 sm:$0xff]  }
 0x636   : > { %15301 = vmatprep.subr.bf16.mxu1 %v21115_v27  ;;  %v21193_v26 = vld [vmem:[%s22422_s27 + $0x18d4] ss:$136 sps:$4 sm:$0xff]   ;;  %v21188_v31 = vld [vmem:[%s22422_s27 + $0x7d0] ss:$136 sps:$4 sm:$0xff]   ;;  %v21196_v27 = vld [vmem:[%s22422_s27 + $0x6c4] ss:$136 sps:$4 sm:$0xff]  }
 0x637   : > { %v21191_v32 = vld [vmem:[%s22422_s27 + $0x18d0] ss:$136 sps:$4 sm:$0xff]  }
 0x638   : > { %15261 = vmatpush1.bf16.msra.mxu0 %v21110_v1 }
 0x639   : > { %15302 = vmatpush1.bf16.msra.mxu1 %v21113_v2  ;;  %15262 = vmatprep.subr.bf16.mxu0 %v21118_v63  ;;  %v21194_v63 = vld [vmem:[%s22422_s27 + $0x6c0] ss:$136 sps:$4 sm:$0xff]  }
 0x63a   : > { %15303 = vmatprep.subr.bf16.mxu1 %v21121_v25  ;;  %v21197_v25 = vld [vmem:[%s22422_s27 + $0x17c0] ss:$136 sps:$4 sm:$0xff]  }
 0x63c   : > { %15263 = vmatpush1.bf16.msra.mxu0 %v21116_v33 }
 0x63d   : > { %15304 = vmatpush1.bf16.msra.mxu1 %v21119_v34  ;;  %15264 = vmatprep.subr.bf16.mxu0 %v21124_v35  ;;  %v21202_v35 = vld [vmem:[%s22422_s27 + $0x5b4] ss:$136 sps:$4 sm:$0xff]  }
 0x63e   : > { %15305 = vmatprep.subr.bf16.mxu1 %v21127_v36  ;;  %v21205_v36 = vld [vmem:[%s22422_s27 + $0x16b4] ss:$136 sps:$4 sm:$0xff]  }
 0x640   : > { %15265 = vmatpush1.bf16.msra.mxu0 %v21122_v29 }
 0x641   : > { %15306 = vmatpush1.bf16.msra.mxu1 %v21125_v44  ;;  %15266 = vmatprep.subr.bf16.mxu0 %v21130_v45  ;;  %v21200_v45 = vld [vmem:[%s22422_s27 + $0x5b0] ss:$136 sps:$4 sm:$0xff]  }
 0x642   : > { %15307 = vmatprep.subr.bf16.mxu1 %v21133_v49  ;;  %v21203_v49 = vld [vmem:[%s22422_s27 + $0x16b0] ss:$136 sps:$4 sm:$0xff]  }
 0x644   : > { %15267 = vmatpush1.bf16.msra.mxu0 %v21128_v9 }
 0x645   : > { %15308 = vmatpush1.bf16.msra.mxu1 %v21131_v10  ;;  %15268 = vmatprep.subr.bf16.mxu0 %v21136_v11  ;;  %v21208_v11 = vld [vmem:[%s22422_s27 + $0x4a4] ss:$136 sps:$4 sm:$0xff]  }
 0x646   : > { %15309 = vmatprep.subr.bf16.mxu1 %v21139_v43  ;;  %v21211_v43 = vld [vmem:[%s22422_s27 + $0x15a4] ss:$136 sps:$4 sm:$0xff]  }
 0x648   : > { %15269 = vmatpush1.bf16.msra.mxu0 %v21134_v53  ;;  %v21206_v53 = vld [vmem:[%s22422_s27 + $0x4a0] ss:$136 sps:$4 sm:$0xff]  }
 0x649   : > { %15310 = vmatpush1.bf16.msra.mxu1 %v21137_v54  ;;  %15270 = vmatprep.subr.bf16.mxu0 %v21142_v46  ;;  %v21209_v54 = vld [vmem:[%s22422_s27 + $0x15a0] ss:$136 sps:$4 sm:$0xff]   ;;  %v21214_v46 = vld [vmem:[%s22422_s27 + $0x394] ss:$136 sps:$4 sm:$0xff]  }
 0x64a   : > { %15311 = vmatprep.subr.bf16.mxu1 %v21145_v58  ;;  %v21217_v58 = vld [vmem:[%s22422_s27 + $0x1494] ss:$136 sps:$4 sm:$0xff]  }
 0x64c   : > { %15271 = vmatpush2.bf16.msra.mxu0 %v21140_v23  ;;  %v21212_v23 = vld [vmem:[%s22422_s27 + $0x390] ss:$136 sps:$4 sm:$0xff]  }
 0x64d   : > { %15312 = vmatpush2.bf16.msra.mxu1 %v21143_v24  ;;  %15272 = vmatprep.subr.bf16.mxu0 %v21148_v59  ;;  %v21215_v24 = vld [vmem:[%s22422_s27 + $0x1490] ss:$136 sps:$4 sm:$0xff]   ;;  %v21220_v59 = vld [vmem:[%s22422_s27 + $0x284] ss:$136 sps:$4 sm:$0xff]  }
 0x64e   : > { %15313 = vmatprep.subr.bf16.mxu1 %v21151_v60  ;;  %v21223_v60 = vld [vmem:[%s22422_s27 + $0x1384] ss:$136 sps:$4 sm:$0xff]  }
 0x650   : > { %15273 = vmatpush2.bf16.msra.mxu0 %v21146_v61  ;;  %v21218_v61 = vld [vmem:[%s22422_s27 + $0x280] ss:$136 sps:$4 sm:$0xff]  }
 0x651   : > { %15314 = vmatpush2.bf16.msra.mxu1 %v21149_v62  ;;  %15274 = vmatprep.subr.bf16.mxu0 %v21154_v57  ;;  %v21221_v62 = vld [vmem:[%s22422_s27 + $0x1380] ss:$136 sps:$4 sm:$0xff]   ;;  %v21226_v57 = vld [vmem:[%s22422_s27 + $0x174] ss:$136 sps:$4 sm:$0xff]  }
 0x652   : > { %15315 = vmatprep.subr.bf16.mxu1 %v21157_v0  ;;  %v21229_v0 = vld [vmem:[%s22422_s27 + $0x1274] ss:$136 sps:$4 sm:$0xff]  }
 0x654   : > { %15275 = vmatpush2.bf16.msra.mxu0 %v21152_v30  ;;  %v21224_v30 = vld [vmem:[%s22422_s27 + $0x170] ss:$136 sps:$4 sm:$0xff]  }
 0x655   : > { %15316 = vmatpush2.bf16.msra.mxu1 %v21155_v4  ;;  %15276 = vmatprep.subr.bf16.mxu0 %v21160_v39  ;;  %v21227_v4 = vld [vmem:[%s22422_s27 + $0x1270] ss:$136 sps:$4 sm:$0xff]   ;;  %v21232_v39 = vld [vmem:[%s22422_s27 + $0x64] ss:$136 sps:$4 sm:$0xff]  }
 0x656   : > { %15317 = vmatprep.subr.bf16.mxu1 %v21163_v40  ;;  %v21235_v40 = vld [vmem:[%s22422_s27 + $0x1164] ss:$136 sps:$4 sm:$0xff]  }
 0x658   : > { %15277 = vmatpush2.bf16.msra.mxu0 %v21158_v5  ;;  %v21230_v5 = vld [vmem:[%s22422_s27 + $0x60] ss:$136 sps:$4 sm:$0xff]  }
 0x659   : > { %15318 = vmatpush2.bf16.msra.mxu1 %v21161_v6  ;;  %15278 = vmatprep.subr.bf16.mxu0 %v21166_v41  ;;  %v21233_v6 = vld [vmem:[%s22422_s27 + $0x1160] ss:$136 sps:$4 sm:$0xff]   ;;  %v21238_v41 = vld [vmem:[%s22422_s27 + $0x1054] ss:$136 sps:$4 sm:$0xff]  }
 0x65a   : > { %15319 = vmatprep.subr.bf16.mxu1 %v21169_v42  ;;  %v21241_v42 = vld [vmem:[%s22422_s27 + $0x2154] ss:$136 sps:$4 sm:$0xff]  }
 0x65c   : > { %15279 = vmatpush2.bf16.msra.mxu0 %v21164_v3  ;;  %v21236_v3 = vld [vmem:[%s22422_s27 + $0x1050] ss:$136 sps:$4 sm:$0xff]  }
 0x65d   : > { %15320 = vmatpush2.bf16.msra.mxu1 %v21167_v12  ;;  %15280 = vmatprep.subr.bf16.mxu0 %v21172_v47  ;;  %v21239_v12 = vld [vmem:[%s22422_s27 + $0x2150] ss:$136 sps:$4 sm:$0xff]   ;;  %v21244_v47 = vld [vmem:[%s22422_s27 + $0xf44] ss:$136 sps:$4 sm:$0xff]  }
 0x65e   : > { %15321 = vmatprep.subr.bf16.mxu1 %v21175_v16  ;;  %v21247_v16 = vld [vmem:[%s22422_s27 + $0x2044] ss:$136 sps:$4 sm:$0xff]  }
 0x660   : > { %15281 = vmatpush2.bf16.msra.mxu0 %v21170_v13  ;;  %v21242_v13 = vld [vmem:[%s22422_s27 + $0xf40] ss:$136 sps:$4 sm:$0xff]  }
 0x661   : > { %15322 = vmatpush2.bf16.msra.mxu1 %v21173_v14  ;;  %15282 = vmatprep.subr.bf16.mxu0 %v21178_v55  ;;  %v21245_v14 = vld [vmem:[%s22422_s27 + $0x2040] ss:$136 sps:$4 sm:$0xff]   ;;  %v21250_v55 = vld [vmem:[%s22422_s27 + $0xe34] ss:$136 sps:$4 sm:$0xff]  }
 0x662   : > { %15323 = vmatprep.subr.bf16.mxu1 %v21181_v56  ;;  %v21253_v56 = vld [vmem:[%s22422_s27 + $0x1f34] ss:$136 sps:$4 sm:$0xff]  }
 0x664   : > { %15283 = vmatpush2.bf16.msra.mxu0 %v21176_v50  ;;  %v21248_v50 = vld [vmem:[%s22422_s27 + $0xe30] ss:$136 sps:$4 sm:$0xff]  }
 0x665   : > { %15324 = vmatpush2.bf16.msra.mxu1 %v21179_v51  ;;  %15284 = vmatprep.subr.bf16.mxu0 %v21184_v19  ;;  %v21251_v51 = vld [vmem:[%s22422_s27 + $0x1f30] ss:$136 sps:$4 sm:$0xff]   ;;  %v21256_v19 = vld [vmem:[%s22422_s27 + $0xd24] ss:$136 sps:$4 sm:$0xff]  }
 0x666   : > { %15325 = vmatprep.subr.bf16.mxu1 %v21187_v20  ;;  %v21259_v20 = vld [vmem:[%s22422_s27 + $0x1e24] ss:$136 sps:$4 sm:$0xff]  }
 0x668   : > { %15285 = vmatpush2.bf16.msra.mxu0 %v21182_v21  ;;  %v21254_v21 = vld [vmem:[%s22422_s27 + $0xd20] ss:$136 sps:$4 sm:$0xff]  }
 0x669   : > { %15326 = vmatpush2.bf16.msra.mxu1 %v21185_v22  ;;  %15336 = vmatprep.subr.bf16.mxu0 %v21190_v15  ;;  %v21257_v22 = vld [vmem:[%s22422_s27 + $0x1e20] ss:$136 sps:$4 sm:$0xff]   ;;  %v21262_v15 = vld [vmem:[%s22422_s27 + $0xc14] ss:$136 sps:$4 sm:$0xff]  }
 0x66a   : > { %15377 = vmatprep.subr.bf16.mxu1 %v21193_v26  ;;  %v21265_v26 = vld [vmem:[%s22422_s27 + $0x1d14] ss:$136 sps:$4 sm:$0xff]  }
 0x66b   : > { %v24225_v1 = vpop.f32.mrf.mxu0  ;;  %15287 = vmatmul.mubr.bf16.vlgmr.msra.gmra.mxu0 %v22599_v17 }
 0x66c   : > { %v24227_v2 = vpop.f32.mrf.mxu1  ;;  %15328 = vmatmul.mubr.bf16.vlgmr.msra.gmra.mxu1 %v22603_v18  ;;  %15337 = vmatpush1.bf16.msra.mxu0 %v21188_v31  ;;  %v21260_v31 = vld [vmem:[%s22422_s27 + $0xc10] ss:$136 sps:$4 sm:$0xff]  }
 0x66d   : > { %15378 = vmatpush1.bf16.msra.mxu1 %v21191_v32  ;;  %v24233_v33 = vpop.f32.mrf.mxu0  ;;  %15338 = vmatprep.subr.bf16.mxu0 %v21196_v27  ;;  %v21263_v32 = vld [vmem:[%s22422_s27 + $0x1d10] ss:$136 sps:$4 sm:$0xff]   ;;  %v21268_v27 = vld [vmem:[%s22422_s27 + $0xb04] ss:$136 sps:$4 sm:$0xff]  }
 0x66e   : > { %v24235_v34 = vpop.f32.mrf.mxu1  ;;  %15379 = vmatprep.subr.bf16.mxu1 %v21199_v28  ;;  %15368 = vmatprep.mubr.bf16.mxu0 %v22484_v48  ;;  %v21271_v28 = vld [vmem:[%s22422_s27 + $0x1c04] ss:$136 sps:$4 sm:$0xff]  }
 0x66f   : > { %15409 = vmatprep.mubr.bf16.mxu1 %v22489_v52  ;;  %v15046_v29 = vpop.f32.mrf.mxu0 }
 0x670   : > { %v15087_v44 = vpop.f32.mrf.mxu1  ;;  %15339 = vmatpush1.bf16.msra.mxu0 %v21194_v63  ;;  %v21266_v63 = vld [vmem:[%s22422_s27 + $0xb00] ss:$136 sps:$4 sm:$0xff]   ;;  %v21272_v29 = vld [vmem:[%s22422_s27 + $0x9f0] ss:$136 sps:$4 sm:$0xff]  }
 0x671   : > { %15380 = vmatpush1.bf16.msra.mxu1 %v21197_v25  ;;  %v15047_v9 = vpop.f32.mrf.mxu0  ;;  %15340 = vmatprep.subr.bf16.mxu0 %v21202_v35  ;;  %v21269_v25 = vld [vmem:[%s22422_s27 + $0x1c00] ss:$136 sps:$4 sm:$0xff]   ;;  %v21274_v35 = vld [vmem:[%s22422_s27 + $0x9f4] ss:$136 sps:$4 sm:$0xff]   ;;  %v21275_v44 = vld [vmem:[%s22422_s27 + $0x1af0] ss:$136 sps:$4 sm:$0xff]  }
 0x672   : > { %v15088_v10 = vpop.f32.mrf.mxu1  ;;  %15381 = vmatprep.subr.bf16.mxu1 %v21205_v36  ;;  %v21277_v36 = vld [vmem:[%s22422_s27 + $0x1af4] ss:$136 sps:$4 sm:$0xff]   ;;  %v21278_v9 = vld [vmem:[%s22422_s27 + $0x8e0] ss:$136 sps:$4 sm:$0xff]  }
 0x673   : > { %v21281_v10 = vld [vmem:[%s22422_s27 + $0x19e0] ss:$136 sps:$4 sm:$0xff]  }
 0x674   : > { %15341 = vmatpush1.bf16.msra.mxu0 %v21200_v45  ;;  %v21280_v45 = vld [vmem:[%s22422_s27 + $0x8e4] ss:$136 sps:$4 sm:$0xff]  }
 0x675   : > { %15382 = vmatpush1.bf16.msra.mxu1 %v21203_v49  ;;  %15342 = vmatprep.subr.bf16.mxu0 %v21208_v11  ;;  %v21283_v49 = vld [vmem:[%s22422_s27 + $0x19e4] ss:$136 sps:$4 sm:$0xff]   ;;  %v21286_v11 = vld [vmem:[%s22422_s27 + $0x29d4] ss:$136 sps:$4 sm:$0xff]  }
 0x676   : > { %15383 = vmatprep.subr.bf16.mxu1 %v21211_v43  ;;  %v21289_v43 = vld [vmem:[%s22422_s27 + $0x3ad4] ss:$136 sps:$4 sm:$0xff]  }
 0x678   : > { %15343 = vmatpush1.bf16.msra.mxu0 %v21206_v53  ;;  %v21284_v53 = vld [vmem:[%s22422_s27 + $0x29d0] ss:$136 sps:$4 sm:$0xff]  }
 0x679   : > { %15384 = vmatpush1.bf16.msra.mxu1 %v21209_v54  ;;  %15344 = vmatprep.subr.bf16.mxu0 %v21214_v46  ;;  %v21287_v54 = vld [vmem:[%s22422_s27 + $0x3ad0] ss:$136 sps:$4 sm:$0xff]   ;;  %v21292_v46 = vld [vmem:[%s22422_s27 + $0x28c4] ss:$136 sps:$4 sm:$0xff]  }
 0x67a   : > { %15385 = vmatprep.subr.bf16.mxu1 %v21217_v58  ;;  %v21295_v58 = vld [vmem:[%s22422_s27 + $0x39c4] ss:$136 sps:$4 sm:$0xff]  }
 0x67c   : > { %15345 = vmatpush1.bf16.msra.mxu0 %v21212_v23  ;;  %v15084_v23 = vadd.f32 %v24227_v2, %v24225_v1  ;;  %v21298_v1 = vld [vmem:[%s22422_s27 + $0x27b4] ss:$136 sps:$4 sm:$0xff]  }
 0x67d   : > { %15386 = vmatpush1.bf16.msra.mxu1 %v21215_v24  ;;  %15346 = vmatprep.subr.bf16.mxu0 %v21220_v59  ;;  %v21301_v2 = vld [vmem:[%s22422_s27 + $0x38b4] ss:$136 sps:$4 sm:$0xff]  }
 0x67e   : > { %15387 = vmatprep.subr.bf16.mxu1 %v21223_v60  ;;  %v15086_v60 = vadd.f32 %v24235_v34, %v24233_v33  ;;  %v271_v33 = vld [vmem:[#allocation2 + $0x50] sm:$0xff] }
 0x680   : > { %15347 = vmatpush1.bf16.msra.mxu0 %v21218_v61 }
 0x681   : > { %15388 = vmatpush1.bf16.msra.mxu1 %v21221_v62  ;;  %15348 = vmatprep.subr.bf16.mxu0 %v21226_v57  ;;  %v21290_v62 = vld [vmem:[%s22422_s27 + $0x28c0] ss:$136 sps:$4 sm:$0xff]  }
 0x682   : > { %15389 = vmatprep.subr.bf16.mxu1 %v21229_v0  ;;  %v21293_v57 = vld [vmem:[%s22422_s27 + $0x39c0] ss:$136 sps:$4 sm:$0xff]   ;;  %v270_v0 = vld [vmem:[#allocation2 + $0x8] sm:$0xff] }
 0x684   : > { %15349 = vmatpush1.bf16.msra.mxu0 %v21224_v30 }
 0x685   : > { %15390 = vmatpush1.bf16.msra.mxu1 %v21227_v4  ;;  %15350 = vmatprep.subr.bf16.mxu0 %v21232_v39 }
 0x686   : > { %15391 = vmatprep.subr.bf16.mxu1 %v21235_v40 }
 0x688   : > { %15351 = vmatpush1.bf16.msra.mxu0 %v21230_v5 }
 0x689   : > { %15392 = vmatpush1.bf16.msra.mxu1 %v21233_v6  ;;  %15352 = vmatprep.subr.bf16.mxu0 %v21238_v41 }
 0x68a   : > { %15393 = vmatprep.subr.bf16.mxu1 %v21241_v42  ;;  %v21296_v42 = vld [vmem:[%s22422_s27 + $0x27b0] ss:$136 sps:$4 sm:$0xff]  }
 0x68c   : > { %15353 = vmatpush2.bf16.msra.mxu0 %v21236_v3  ;;  %v21299_v3 = vld [vmem:[%s22422_s27 + $0x38b0] ss:$136 sps:$4 sm:$0xff]  }
 0x68d   : > { %15394 = vmatpush2.bf16.msra.mxu1 %v21239_v12  ;;  %15354 = vmatprep.subr.bf16.mxu0 %v21244_v47 }
 0x68e   : > { %15395 = vmatprep.subr.bf16.mxu1 %v21247_v16  ;;  %v21304_v16 = vld [vmem:[%s22422_s27 + $0x26a4] ss:$136 sps:$4 sm:$0xff]  }
 0x690   : > { %15355 = vmatpush2.bf16.msra.mxu0 %v21242_v13  ;;  %v21307_v13 = vld [vmem:[%s22422_s27 + $0x37a4] ss:$136 sps:$4 sm:$0xff]  }
 0x691   : > { %15396 = vmatpush2.bf16.msra.mxu1 %v21245_v14  ;;  %15356 = vmatprep.subr.bf16.mxu0 %v21250_v55  ;;  %v21302_v55 = vld [vmem:[%s22422_s27 + $0x26a0] ss:$136 sps:$4 sm:$0xff]  }
 0x692   : > { %15397 = vmatprep.subr.bf16.mxu1 %v21253_v56  ;;  %v21305_v56 = vld [vmem:[%s22422_s27 + $0x37a0] ss:$136 sps:$4 sm:$0xff]  }
 0x694   : > { %15357 = vmatpush2.bf16.msra.mxu0 %v21248_v50  ;;  %v21310_v50 = vld [vmem:[%s22422_s27 + $0x2594] ss:$136 sps:$4 sm:$0xff]  }
 0x695   : > { %15398 = vmatpush2.bf16.msra.mxu1 %v21251_v51  ;;  %15358 = vmatprep.subr.bf16.mxu0 %v21256_v19  ;;  %v21313_v51 = vld [vmem:[%s22422_s27 + $0x3694] ss:$136 sps:$4 sm:$0xff]   ;;  %v21308_v19 = vld [vmem:[%s22422_s27 + $0x2590] ss:$136 sps:$4 sm:$0xff]  }
 0x696   : > { %15399 = vmatprep.subr.bf16.mxu1 %v21259_v20  ;;  %v21311_v20 = vld [vmem:[%s22422_s27 + $0x3690] ss:$136 sps:$4 sm:$0xff]  }
 0x698   : > { %15359 = vmatpush2.bf16.msra.mxu0 %v21254_v21  ;;  %v21316_v21 = vld [vmem:[%s22422_s27 + $0x2484] ss:$136 sps:$4 sm:$0xff]  }
 0x699   : > { %15400 = vmatpush2.bf16.msra.mxu1 %v21257_v22  ;;  %15360 = vmatprep.subr.bf16.mxu0 %v21262_v15  ;;  %v21319_v22 = vld [vmem:[%s22422_s27 + $0x3584] ss:$136 sps:$4 sm:$0xff]   ;;  %v21314_v15 = vld [vmem:[%s22422_s27 + $0x2480] ss:$136 sps:$4 sm:$0xff]  }
 0x69a   : > { %15401 = vmatprep.subr.bf16.mxu1 %v21265_v26  ;;  %v21317_v26 = vld [vmem:[%s22422_s27 + $0x3580] ss:$136 sps:$4 sm:$0xff]  }
 0x69c   : > { %15361 = vmatpush2.bf16.msra.mxu0 %v21260_v31  ;;  %v21322_v31 = vld [vmem:[%s22422_s27 + $0x2374] ss:$136 sps:$4 sm:$0xff]  }
 0x69d   : > { %15402 = vmatpush2.bf16.msra.mxu1 %v21263_v32  ;;  %15362 = vmatprep.subr.bf16.mxu0 %v21268_v27  ;;  %v21325_v32 = vld [vmem:[%s22422_s27 + $0x3474] ss:$136 sps:$4 sm:$0xff]   ;;  %v21320_v27 = vld [vmem:[%s22422_s27 + $0x2370] ss:$136 sps:$4 sm:$0xff]  }
 0x69e   : > { %15403 = vmatprep.subr.bf16.mxu1 %v21271_v28  ;;  %v21323_v28 = vld [vmem:[%s22422_s27 + $0x3470] ss:$136 sps:$4 sm:$0xff]  }
 0x6a0   : > { %15363 = vmatpush2.bf16.msra.mxu0 %v21266_v63  ;;  %v21328_v63 = vld [vmem:[%s22422_s27 + $0x2264] ss:$136 sps:$4 sm:$0xff]  }
 0x6a1   : > { %15404 = vmatpush2.bf16.msra.mxu1 %v21269_v25  ;;  %15364 = vmatprep.subr.bf16.mxu0 %v21274_v35  ;;  %v21331_v25 = vld [vmem:[%s22422_s27 + $0x3364] ss:$136 sps:$4 sm:$0xff]   ;;  %v21326_v35 = vld [vmem:[%s22422_s27 + $0x2260] ss:$136 sps:$4 sm:$0xff]  }
 0x6a2   : > { %15405 = vmatprep.subr.bf16.mxu1 %v21277_v36  ;;  %v21329_v36 = vld [vmem:[%s22422_s27 + $0x3360] ss:$136 sps:$4 sm:$0xff]  }
 0x6a4   : > { %15365 = vmatpush2.bf16.msra.mxu0 %v21272_v29  ;;  %v21334_v29 = vld [vmem:[%s22422_s27 + $0x3254] ss:$136 sps:$4 sm:$0xff]  }
 0x6a5   : > { %15406 = vmatpush2.bf16.msra.mxu1 %v21275_v44  ;;  %15366 = vmatprep.subr.bf16.mxu0 %v21280_v45  ;;  %v21337_v44 = vld [vmem:[%s22422_s27 + $0x4354] ss:$136 sps:$4 sm:$0xff]   ;;  %v21332_v45 = vld [vmem:[%s22422_s27 + $0x3250] ss:$136 sps:$4 sm:$0xff]  }
 0x6a6   : > { %15407 = vmatprep.subr.bf16.mxu1 %v21283_v49  ;;  %v21335_v49 = vld [vmem:[%s22422_s27 + $0x4350] ss:$136 sps:$4 sm:$0xff]  }
 0x6a8   : > { %15367 = vmatpush2.bf16.msra.mxu0 %v21278_v9  ;;  %v21340_v9 = vld [vmem:[%s22422_s27 + $0x3144] ss:$136 sps:$4 sm:$0xff]  }
 0x6a9   : > { %15408 = vmatpush2.bf16.msra.mxu1 %v21281_v10  ;;  %15418 = vmatprep.subr.bf16.mxu0 %v21286_v11  ;;  %v21343_v10 = vld [vmem:[%s22422_s27 + $0x4244] ss:$136 sps:$4 sm:$0xff]   ;;  %v21338_v11 = vld [vmem:[%s22422_s27 + $0x3140] ss:$136 sps:$4 sm:$0xff]  }
 0x6aa   : > { %15459 = vmatprep.subr.bf16.mxu1 %v21289_v43  ;;  %v21341_v43 = vld [vmem:[%s22422_s27 + $0x4240] ss:$136 sps:$4 sm:$0xff]  }
 0x6ab   : > { %v15124_v24 = vpop.f32.mrf.mxu0  ;;  %15369 = vmatmul.mubr.bf16.vlgmr.msra.gmra.mxu0 %v22511_v7 }
 0x6ac   : > { %v15165_v59 = vpop.f32.mrf.mxu1  ;;  %15410 = vmatmul.mubr.bf16.vlgmr.msra.gmra.mxu1 %v22513_v8  ;;  %v15125_v61 = vadd.f32 %v15124_v24, %v15084_v23  ;;  %15419 = vmatpush1.bf16.msra.mxu0 %v21284_v53  ;;  %v21346_v53 = vld [vmem:[%s22422_s27 + $0x3034] ss:$136 sps:$4 sm:$0xff]   ;;  %v21352_v23 = vld [vmem:[%s22422_s27 + $0x2f24] ss:$136 sps:$4 sm:$0xff]  }
 0x6ad   : > { %15460 = vmatpush1.bf16.msra.mxu1 %v21287_v54  ;;  %v15126_v30 = vpop.f32.mrf.mxu0  ;;  %15420 = vmatprep.subr.bf16.mxu0 %v21292_v46  ;;  %v21349_v54 = vld [vmem:[%s22422_s27 + $0x4134] ss:$136 sps:$4 sm:$0xff]   ;;  %v21344_v46 = vld [vmem:[%s22422_s27 + $0x3030] ss:$136 sps:$4 sm:$0xff]   ;;  %v21355_v24 = vld [vmem:[%s22422_s27 + $0x4024] ss:$136 sps:$4 sm:$0xff]  }
 0x6ae   : > { %v15167_v4 = vpop.f32.mrf.mxu1  ;;  %15461 = vmatprep.subr.bf16.mxu1 %v21295_v58  ;;  %v15166_v39 = vadd.f32 %v15165_v59, %v15125_v61  ;;  %v15127_v40 = vadd.f32 %v15126_v30, %v15086_v60  ;;  %15450 = vmatprep.mubr.bf16.mxu0 %v22551_v37  ;;  %v21347_v58 = vld [vmem:[%s22422_s27 + $0x4130] ss:$136 sps:$4 sm:$0xff]   ;;  %v21350_v59 = vld [vmem:[%s22422_s27 + $0x2f20] ss:$136 sps:$4 sm:$0xff]   ;;  %v21358_v61 = vld [vmem:[%s22422_s27 + $0x2e14] ss:$136 sps:$4 sm:$0xff]  }
 0x6af   : > { %15491 = vmatprep.mubr.bf16.mxu1 %v22555_v38  ;;  %v15128_v34 = vpop.f32.mrf.mxu0  ;;  %v21353_v60 = vld [vmem:[%s22422_s27 + $0x4020] ss:$136 sps:$4 sm:$0xff]   ;;  %v21364_v30 = vld [vmem:[%s22422_s27 + $0x2d04] ss:$136 sps:$4 sm:$0xff]  }
 0x6b0   : > { %v15169_v5 = vpop.f32.mrf.mxu1  ;;  %v16176_v6 = vadd.f32 %v15166_v39, %v270_v0  ;;  %v15168_v41 = vadd.f32 %v15167_v4, %v15127_v40  ;;  %15421 = vmatpush1.bf16.msra.mxu0 %v21290_v62  ;;  %v21361_v62 = vld [vmem:[%s22422_s27 + $0x3f14] ss:$136 sps:$4 sm:$0xff]   ;;  %v21359_v0 = vld [vmem:[%s22422_s27 + $0x3f10] ss:$136 sps:$4 sm:$0xff]   ;;  %v21367_v4 = vld [vmem:[%s22422_s27 + $0x3e04] ss:$136 sps:$4 sm:$0xff]  }
 0x6b1   : > { %15462 = vmatpush1.bf16.msra.mxu1 %v21293_v57  ;;  %v15129_v12 = vpop.f32.mrf.mxu0  ;;  %15422 = vmatprep.subr.bf16.mxu0 %v21298_v1  ;;  %v21356_v57 = vld [vmem:[%s22422_s27 + $0x2e10] ss:$136 sps:$4 sm:$0xff]   ;;  %v21362_v1 = vld [vmem:[%s22422_s27 + $0x2d00] ss:$136 sps:$4 sm:$0xff]   ;;  %v21370_v39 = vld [vmem:[%s22422_s27 + $0x2bf4] ss:$136 sps:$4 sm:$0xff]  }
 0x6b2   : > { %v15170_v47 = vpop.f32.mrf.mxu1  ;;  %15463 = vmatprep.subr.bf16.mxu1 %v21301_v2  ;;  %16210 = vst [vmem:[#allocation2 + $0x8] sm:$0xff] %v16176_v6  ;;  %v16177_v14 = vadd.f32 %v15168_v41, %v271_v33  ;;  %v21365_v2 = vld [vmem:[%s22422_s27 + $0x3e00] ss:$136 sps:$4 sm:$0xff]   ;;  %v21373_v40 = vld [vmem:[%s22422_s27 + $0x3cf4] ss:$136 sps:$4 sm:$0xff]  }
 0x6b3   : > { %v21368_v33 = vld [vmem:[%s22422_s27 + $0x2bf0] ss:$136 sps:$4 sm:$0xff]   ;;  %v21376_v5 = vld [vmem:[%s22422_s27 + $0x2ae4] ss:$136 sps:$4 sm:$0xff]   ;;  %v21374_v41 = vld [vmem:[%s22422_s27 + $0x2ae0] ss:$136 sps:$4 sm:$0xff]  }
 0x6b4   : > { %16211 = vst [vmem:[#allocation2 + $0x50] sm:$0xff] %v16177_v14  ;;  %15423 = vmatpush1.bf16.msra.mxu0 %v21296_v42  ;;  %v21371_v34 = vld [vmem:[%s22422_s27 + $0x3cf0] ss:$136 sps:$4 sm:$0xff]   ;;  %v21379_v6 = vld [vmem:[%s22422_s27 + $0x3be4] ss:$136 sps:$4 sm:$0xff]  }
 0x6b5   : > { %15464 = vmatpush1.bf16.msra.mxu1 %v21299_v3  ;;  %15424 = vmatprep.subr.bf16.mxu0 %v21304_v16  ;;  %v21377_v42 = vld [vmem:[%s22422_s27 + $0x3be0] ss:$136 sps:$4 sm:$0xff]   ;;  %v21382_v3 = vld [vmem:[%s22422_s27 + $0x7dc] ss:$136 sps:$4 sm:$0xff]   ;;  %v21391_v14 = vld [vmem:[%s22422_s27 + $0x17cc] ss:$136 sps:$4 sm:$0xff]  }
 0x6b6   : > { %15465 = vmatprep.subr.bf16.mxu1 %v21307_v13  ;;  %v21385_v12 = vld [vmem:[%s22422_s27 + $0x18dc] ss:$136 sps:$4 sm:$0xff]   ;;  %v21380_v47 = vld [vmem:[%s22422_s27 + $0x7d8] ss:$136 sps:$4 sm:$0xff]   ;;  %v21388_v13 = vld [vmem:[%s22422_s27 + $0x6cc] ss:$136 sps:$4 sm:$0xff]  }
 0x6b7   : > { %v21383_v16 = vld [vmem:[%s22422_s27 + $0x18d8] ss:$136 sps:$4 sm:$0xff]  }
 0x6b8   : > { %15425 = vmatpush1.bf16.msra.mxu0 %v21302_v55 }
 0x6b9   : > { %15466 = vmatpush1.bf16.msra.mxu1 %v21305_v56  ;;  %15426 = vmatprep.subr.bf16.mxu0 %v21310_v50  ;;  %v21386_v50 = vld [vmem:[%s22422_s27 + $0x6c8] ss:$136 sps:$4 sm:$0xff]  }
 0x6ba   : > { %15467 = vmatprep.subr.bf16.mxu1 %v21313_v51  ;;  %v21389_v51 = vld [vmem:[%s22422_s27 + $0x17c8] ss:$136 sps:$4 sm:$0xff]  }
 0x6bc   : > { %15427 = vmatpush1.bf16.msra.mxu0 %v21308_v19 }
 0x6bd   : > { %15468 = vmatpush1.bf16.msra.mxu1 %v21311_v20  ;;  %15428 = vmatprep.subr.bf16.mxu0 %v21316_v21  ;;  %v21394_v21 = vld [vmem:[%s22422_s27 + $0x5bc] ss:$136 sps:$4 sm:$0xff]  }
 0x6be   : > { %15469 = vmatprep.subr.bf16.mxu1 %v21319_v22  ;;  %v21397_v22 = vld [vmem:[%s22422_s27 + $0x16bc] ss:$136 sps:$4 sm:$0xff]  }
 0x6c0   : > { %15429 = vmatpush1.bf16.msra.mxu0 %v21314_v15 }
 0x6c1   : > { %15470 = vmatpush1.bf16.msra.mxu1 %v21317_v26  ;;  %15430 = vmatprep.subr.bf16.mxu0 %v21322_v31  ;;  %v21392_v31 = vld [vmem:[%s22422_s27 + $0x5b8] ss:$136 sps:$4 sm:$0xff]  }
 0x6c2   : > { %15471 = vmatprep.subr.bf16.mxu1 %v21325_v32  ;;  %v21395_v32 = vld [vmem:[%s22422_s27 + $0x16b8] ss:$136 sps:$4 sm:$0xff]  }
 0x6c4   : > { %15431 = vmatpush1.bf16.msra.mxu0 %v21320_v27 }
 0x6c5   : > { %15472 = vmatpush1.bf16.msra.mxu1 %v21323_v28  ;;  %15432 = vmatprep.subr.bf16.mxu0 %v21328_v63  ;;  %v21400_v63 = vld [vmem:[%s22422_s27 + $0x4ac] ss:$136 sps:$4 sm:$0xff]  }
 0x6c6   : > { %15473 = vmatprep.subr.bf16.mxu1 %v21331_v25  ;;  %v21403_v25 = vld [vmem:[%s22422_s27 + $0x15ac] ss:$136 sps:$4 sm:$0xff]  }
 0x6c8   : > { %15433 = vmatpush1.bf16.msra.mxu0 %v21326_v35  ;;  %v21398_v35 = vld [vmem:[%s22422_s27 + $0x4a8] ss:$136 sps:$4 sm:$0xff]  }
 0x6c9   : > { %15474 = vmatpush1.bf16.msra.mxu1 %v21329_v36  ;;  %15434 = vmatprep.subr.bf16.mxu0 %v21334_v29  ;;  %v21401_v36 = vld [vmem:[%s22422_s27 + $0x15a8] ss:$136 sps:$4 sm:$0xff]   ;;  %v21406_v29 = vld [vmem:[%s22422_s27 + $0x39c] ss:$136 sps:$4 sm:$0xff]  }
 0x6ca   : > { %15475 = vmatprep.subr.bf16.mxu1 %v21337_v44  ;;  %v21409_v44 = vld [vmem:[%s22422_s27 + $0x149c] ss:$136 sps:$4 sm:$0xff]  }
 0x6cc   : > { %15435 = vmatpush2.bf16.msra.mxu0 %v21332_v45  ;;  %v21404_v45 = vld [vmem:[%s22422_s27 + $0x398] ss:$136 sps:$4 sm:$0xff]  }
 0x6cd   : > { %15476 = vmatpush2.bf16.msra.mxu1 %v21335_v49  ;;  %15436 = vmatprep.subr.bf16.mxu0 %v21340_v9  ;;  %v21407_v49 = vld [vmem:[%s22422_s27 + $0x1498] ss:$136 sps:$4 sm:$0xff]   ;;  %v21412_v9 = vld [vmem:[%s22422_s27 + $0x28c] ss:$136 sps:$4 sm:$0xff]  }
 0x6ce   : > { %15477 = vmatprep.subr.bf16.mxu1 %v21343_v10  ;;  %v21415_v10 = vld [vmem:[%s22422_s27 + $0x138c] ss:$136 sps:$4 sm:$0xff]  }
 0x6d0   : > { %15437 = vmatpush2.bf16.msra.mxu0 %v21338_v11  ;;  %v21410_v11 = vld [vmem:[%s22422_s27 + $0x288] ss:$136 sps:$4 sm:$0xff]  }
 0x6d1   : > { %15478 = vmatpush2.bf16.msra.mxu1 %v21341_v43  ;;  %15438 = vmatprep.subr.bf16.mxu0 %v21346_v53  ;;  %v21413_v43 = vld [vmem:[%s22422_s27 + $0x1388] ss:$136 sps:$4 sm:$0xff]   ;;  %v21418_v53 = vld [vmem:[%s22422_s27 + $0x17c] ss:$136 sps:$4 sm:$0xff]  }
 0x6d2   : > { %15479 = vmatprep.subr.bf16.mxu1 %v21349_v54  ;;  %v21421_v54 = vld [vmem:[%s22422_s27 + $0x127c] ss:$136 sps:$4 sm:$0xff]  }
 0x6d4   : > { %15439 = vmatpush2.bf16.msra.mxu0 %v21344_v46  ;;  %v21416_v46 = vld [vmem:[%s22422_s27 + $0x178] ss:$136 sps:$4 sm:$0xff]  }
 0x6d5   : > { %15480 = vmatpush2.bf16.msra.mxu1 %v21347_v58  ;;  %15440 = vmatprep.subr.bf16.mxu0 %v21352_v23  ;;  %v21419_v58 = vld [vmem:[%s22422_s27 + $0x1278] ss:$136 sps:$4 sm:$0xff]   ;;  %v21424_v23 = vld [vmem:[%s22422_s27 + $0x6c] ss:$136 sps:$4 sm:$0xff]  }
 0x6d6   : > { %15481 = vmatprep.subr.bf16.mxu1 %v21355_v24  ;;  %v21427_v24 = vld [vmem:[%s22422_s27 + $0x116c] ss:$136 sps:$4 sm:$0xff]  }
 0x6d8   : > { %15441 = vmatpush2.bf16.msra.mxu0 %v21350_v59  ;;  %v21422_v59 = vld [vmem:[%s22422_s27 + $0x68] ss:$136 sps:$4 sm:$0xff]  }
 0x6d9   : > { %15482 = vmatpush2.bf16.msra.mxu1 %v21353_v60  ;;  %15442 = vmatprep.subr.bf16.mxu0 %v21358_v61  ;;  %v21425_v60 = vld [vmem:[%s22422_s27 + $0x1168] ss:$136 sps:$4 sm:$0xff]   ;;  %v21430_v61 = vld [vmem:[%s22422_s27 + $0x105c] ss:$136 sps:$4 sm:$0xff]  }
 0x6da   : > { %15483 = vmatprep.subr.bf16.mxu1 %v21361_v62  ;;  %v21433_v62 = vld [vmem:[%s22422_s27 + $0x215c] ss:$136 sps:$4 sm:$0xff]  }
 0x6dc   : > { %15443 = vmatpush2.bf16.msra.mxu0 %v21356_v57  ;;  %v21428_v57 = vld [vmem:[%s22422_s27 + $0x1058] ss:$136 sps:$4 sm:$0xff]  }
 0x6dd   : > { %15484 = vmatpush2.bf16.msra.mxu1 %v21359_v0  ;;  %15444 = vmatprep.subr.bf16.mxu0 %v21364_v30  ;;  %v21431_v0 = vld [vmem:[%s22422_s27 + $0x2158] ss:$136 sps:$4 sm:$0xff]   ;;  %v21436_v30 = vld [vmem:[%s22422_s27 + $0xf4c] ss:$136 sps:$4 sm:$0xff]  }
 0x6de   : > { %15485 = vmatprep.subr.bf16.mxu1 %v21367_v4  ;;  %v21439_v4 = vld [vmem:[%s22422_s27 + $0x204c] ss:$136 sps:$4 sm:$0xff]  }
 0x6e0   : > { %15445 = vmatpush2.bf16.msra.mxu0 %v21362_v1  ;;  %v21434_v1 = vld [vmem:[%s22422_s27 + $0xf48] ss:$136 sps:$4 sm:$0xff]  }
 0x6e1   : > { %15486 = vmatpush2.bf16.msra.mxu1 %v21365_v2  ;;  %15446 = vmatprep.subr.bf16.mxu0 %v21370_v39  ;;  %v21437_v2 = vld [vmem:[%s22422_s27 + $0x2048] ss:$136 sps:$4 sm:$0xff]   ;;  %v21442_v39 = vld [vmem:[%s22422_s27 + $0xe3c] ss:$136 sps:$4 sm:$0xff]  }
 0x6e2   : > { %15487 = vmatprep.subr.bf16.mxu1 %v21373_v40  ;;  %v21445_v40 = vld [vmem:[%s22422_s27 + $0x1f3c] ss:$136 sps:$4 sm:$0xff]  }
 0x6e4   : > { %15447 = vmatpush2.bf16.msra.mxu0 %v21368_v33  ;;  %v21440_v33 = vld [vmem:[%s22422_s27 + $0xe38] ss:$136 sps:$4 sm:$0xff]  }
 0x6e5   : > { %15488 = vmatpush2.bf16.msra.mxu1 %v21371_v34  ;;  %15448 = vmatprep.subr.bf16.mxu0 %v21376_v5  ;;  %v21443_v34 = vld [vmem:[%s22422_s27 + $0x1f38] ss:$136 sps:$4 sm:$0xff]   ;;  %v21448_v5 = vld [vmem:[%s22422_s27 + $0xd2c] ss:$136 sps:$4 sm:$0xff]  }
 0x6e6   : > { %15489 = vmatprep.subr.bf16.mxu1 %v21379_v6  ;;  %v21451_v6 = vld [vmem:[%s22422_s27 + $0x1e2c] ss:$136 sps:$4 sm:$0xff]  }
 0x6e8   : > { %15449 = vmatpush2.bf16.msra.mxu0 %v21374_v41  ;;  %v21446_v41 = vld [vmem:[%s22422_s27 + $0xd28] ss:$136 sps:$4 sm:$0xff]  }
 0x6e9   : > { %15490 = vmatpush2.bf16.msra.mxu1 %v21377_v42  ;;  %15500 = vmatprep.subr.bf16.mxu0 %v21382_v3  ;;  %v21449_v42 = vld [vmem:[%s22422_s27 + $0x1e28] ss:$136 sps:$4 sm:$0xff]   ;;  %v21454_v3 = vld [vmem:[%s22422_s27 + $0xc1c] ss:$136 sps:$4 sm:$0xff]  }
 0x6ea   : > { %15541 = vmatprep.subr.bf16.mxu1 %v21385_v12  ;;  %v21457_v12 = vld [vmem:[%s22422_s27 + $0x1d1c] ss:$136 sps:$4 sm:$0xff]  }
 0x6eb   : > { %v24373_v55 = vpop.f32.mrf.mxu0  ;;  %15451 = vmatmul.mubr.bf16.vlgmr.msra.gmra.mxu0 %v22599_v17 }
 0x6ec   : > { %v24375_v56 = vpop.f32.mrf.mxu1  ;;  %15492 = vmatmul.mubr.bf16.vlgmr.msra.gmra.mxu1 %v22603_v18  ;;  %15501 = vmatpush1.bf16.msra.mxu0 %v21380_v47  ;;  %v21452_v47 = vld [vmem:[%s22422_s27 + $0xc18] ss:$136 sps:$4 sm:$0xff]  }
 0x6ed   : > { %15542 = vmatpush1.bf16.msra.mxu1 %v21383_v16  ;;  %v24381_v19 = vpop.f32.mrf.mxu0  ;;  %15502 = vmatprep.subr.bf16.mxu0 %v21388_v13  ;;  %v21455_v16 = vld [vmem:[%s22422_s27 + $0x1d18] ss:$136 sps:$4 sm:$0xff]   ;;  %v21460_v13 = vld [vmem:[%s22422_s27 + $0xb0c] ss:$136 sps:$4 sm:$0xff]  }
 0x6ee   : > { %v24383_v20 = vpop.f32.mrf.mxu1  ;;  %15543 = vmatprep.subr.bf16.mxu1 %v21391_v14  ;;  %15532 = vmatprep.mubr.bf16.mxu0 %v22484_v48  ;;  %v21463_v14 = vld [vmem:[%s22422_s27 + $0x1c0c] ss:$136 sps:$4 sm:$0xff]  }
 0x6ef   : > { %15573 = vmatprep.mubr.bf16.mxu1 %v22489_v52  ;;  %v15210_v15 = vpop.f32.mrf.mxu0 }
 0x6f0   : > { %v15251_v26 = vpop.f32.mrf.mxu1  ;;  %15503 = vmatpush1.bf16.msra.mxu0 %v21386_v50  ;;  %v21458_v50 = vld [vmem:[%s22422_s27 + $0xb08] ss:$136 sps:$4 sm:$0xff]   ;;  %v21464_v15 = vld [vmem:[%s22422_s27 + $0x9f8] ss:$136 sps:$4 sm:$0xff]  }
 0x6f1   : > { %15544 = vmatpush1.bf16.msra.mxu1 %v21389_v51  ;;  %v15211_v27 = vpop.f32.mrf.mxu0  ;;  %15504 = vmatprep.subr.bf16.mxu0 %v21394_v21  ;;  %v21461_v51 = vld [vmem:[%s22422_s27 + $0x1c08] ss:$136 sps:$4 sm:$0xff]   ;;  %v21466_v21 = vld [vmem:[%s22422_s27 + $0x9fc] ss:$136 sps:$4 sm:$0xff]   ;;  %v21467_v26 = vld [vmem:[%s22422_s27 + $0x1af8] ss:$136 sps:$4 sm:$0xff]  }
 0x6f2   : > { %v15252_v28 = vpop.f32.mrf.mxu1  ;;  %15545 = vmatprep.subr.bf16.mxu1 %v21397_v22  ;;  %v21469_v22 = vld [vmem:[%s22422_s27 + $0x1afc] ss:$136 sps:$4 sm:$0xff]   ;;  %v21470_v27 = vld [vmem:[%s22422_s27 + $0x8e8] ss:$136 sps:$4 sm:$0xff]  }
 0x6f3   : > { %v21473_v28 = vld [vmem:[%s22422_s27 + $0x19e8] ss:$136 sps:$4 sm:$0xff]  }
 0x6f4   : > { %15505 = vmatpush1.bf16.msra.mxu0 %v21392_v31  ;;  %v21472_v31 = vld [vmem:[%s22422_s27 + $0x8ec] ss:$136 sps:$4 sm:$0xff]  }
 0x6f5   : > { %15546 = vmatpush1.bf16.msra.mxu1 %v21395_v32  ;;  %15506 = vmatprep.subr.bf16.mxu0 %v21400_v63  ;;  %v21475_v32 = vld [vmem:[%s22422_s27 + $0x19ec] ss:$136 sps:$4 sm:$0xff]   ;;  %v21478_v63 = vld [vmem:[%s22422_s27 + $0x29dc] ss:$136 sps:$4 sm:$0xff]  }
 0x6f6   : > { %15547 = vmatprep.subr.bf16.mxu1 %v21403_v25  ;;  %v21481_v25 = vld [vmem:[%s22422_s27 + $0x3adc] ss:$136 sps:$4 sm:$0xff]  }
 0x6f8   : > { %15507 = vmatpush1.bf16.msra.mxu0 %v21398_v35  ;;  %v21476_v35 = vld [vmem:[%s22422_s27 + $0x29d8] ss:$136 sps:$4 sm:$0xff]  }
 0x6f9   : > { %15548 = vmatpush1.bf16.msra.mxu1 %v21401_v36  ;;  %15508 = vmatprep.subr.bf16.mxu0 %v21406_v29  ;;  %v21479_v36 = vld [vmem:[%s22422_s27 + $0x3ad8] ss:$136 sps:$4 sm:$0xff]   ;;  %v21484_v29 = vld [vmem:[%s22422_s27 + $0x28cc] ss:$136 sps:$4 sm:$0xff]  }
 0x6fa   : > { %15549 = vmatprep.subr.bf16.mxu1 %v21409_v44  ;;  %v21487_v44 = vld [vmem:[%s22422_s27 + $0x39cc] ss:$136 sps:$4 sm:$0xff]  }
 0x6fc   : > { %15509 = vmatpush1.bf16.msra.mxu0 %v21404_v45  ;;  %v15248_v45 = vadd.f32 %v24375_v56, %v24373_v55  ;;  %v21490_v55 = vld [vmem:[%s22422_s27 + $0x27bc] ss:$136 sps:$4 sm:$0xff]  }
 0x6fd   : > { %15550 = vmatpush1.bf16.msra.mxu1 %v21407_v49  ;;  %15510 = vmatprep.subr.bf16.mxu0 %v21412_v9  ;;  %v21493_v56 = vld [vmem:[%s22422_s27 + $0x38bc] ss:$136 sps:$4 sm:$0xff]  }
 0x6fe   : > { %15551 = vmatprep.subr.bf16.mxu1 %v21415_v10  ;;  %v15250_v10 = vadd.f32 %v24383_v20, %v24381_v19  ;;  %v273_v19 = vld [vmem:[#allocation2 + $0x78] sm:$0xff] }
 0x700   : > { %15511 = vmatpush1.bf16.msra.mxu0 %v21410_v11 }
 0x701   : > { %15552 = vmatpush1.bf16.msra.mxu1 %v21413_v43  ;;  %15512 = vmatprep.subr.bf16.mxu0 %v21418_v53  ;;  %v21482_v43 = vld [vmem:[%s22422_s27 + $0x28c8] ss:$136 sps:$4 sm:$0xff]  }
 0x702   : > { %15553 = vmatprep.subr.bf16.mxu1 %v21421_v54  ;;  %v21485_v53 = vld [vmem:[%s22422_s27 + $0x39c8] ss:$136 sps:$4 sm:$0xff]  }
 0x703   : > { %v272_v54 = vld [vmem:[#allocation2 + $0x98] sm:$0xff] }
 0x704   : > { %15513 = vmatpush1.bf16.msra.mxu0 %v21416_v46 }
 0x705   : > { %15554 = vmatpush1.bf16.msra.mxu1 %v21419_v58  ;;  %15514 = vmatprep.subr.bf16.mxu0 %v21424_v23 }
 0x706   : > { %15555 = vmatprep.subr.bf16.mxu1 %v21427_v24 }
 0x708   : > { %15515 = vmatpush1.bf16.msra.mxu0 %v21422_v59 }
 0x709   : > { %15556 = vmatpush1.bf16.msra.mxu1 %v21425_v60  ;;  %15516 = vmatprep.subr.bf16.mxu0 %v21430_v61 }
 0x70a   : > { %15557 = vmatprep.subr.bf16.mxu1 %v21433_v62  ;;  %v21488_v62 = vld [vmem:[%s22422_s27 + $0x27b8] ss:$136 sps:$4 sm:$0xff]  }
 0x70c   : > { %15517 = vmatpush2.bf16.msra.mxu0 %v21428_v57  ;;  %v21491_v57 = vld [vmem:[%s22422_s27 + $0x38b8] ss:$136 sps:$4 sm:$0xff]  }
 0x70d   : > { %15558 = vmatpush2.bf16.msra.mxu1 %v21431_v0  ;;  %15518 = vmatprep.subr.bf16.mxu0 %v21436_v30 }
 0x70e   : > { %15559 = vmatprep.subr.bf16.mxu1 %v21439_v4  ;;  %v21496_v4 = vld [vmem:[%s22422_s27 + $0x26ac] ss:$136 sps:$4 sm:$0xff]  }
 0x710   : > { %15519 = vmatpush2.bf16.msra.mxu0 %v21434_v1  ;;  %v21499_v1 = vld [vmem:[%s22422_s27 + $0x37ac] ss:$136 sps:$4 sm:$0xff]  }
 0x711   : > { %15560 = vmatpush2.bf16.msra.mxu1 %v21437_v2  ;;  %15520 = vmatprep.subr.bf16.mxu0 %v21442_v39  ;;  %v21494_v39 = vld [vmem:[%s22422_s27 + $0x26a8] ss:$136 sps:$4 sm:$0xff]  }
 0x712   : > { %15561 = vmatprep.subr.bf16.mxu1 %v21445_v40  ;;  %v21497_v40 = vld [vmem:[%s22422_s27 + $0x37a8] ss:$136 sps:$4 sm:$0xff]  }
 0x714   : > { %15521 = vmatpush2.bf16.msra.mxu0 %v21440_v33  ;;  %v21502_v33 = vld [vmem:[%s22422_s27 + $0x259c] ss:$136 sps:$4 sm:$0xff]  }
 0x715   : > { %15562 = vmatpush2.bf16.msra.mxu1 %v21443_v34  ;;  %15522 = vmatprep.subr.bf16.mxu0 %v21448_v5  ;;  %v21505_v34 = vld [vmem:[%s22422_s27 + $0x369c] ss:$136 sps:$4 sm:$0xff]   ;;  %v21500_v5 = vld [vmem:[%s22422_s27 + $0x2598] ss:$136 sps:$4 sm:$0xff]  }
 0x716   : > { %15563 = vmatprep.subr.bf16.mxu1 %v21451_v6  ;;  %v21503_v6 = vld [vmem:[%s22422_s27 + $0x3698] ss:$136 sps:$4 sm:$0xff]  }
 0x718   : > { %15523 = vmatpush2.bf16.msra.mxu0 %v21446_v41  ;;  %v21508_v41 = vld [vmem:[%s22422_s27 + $0x248c] ss:$136 sps:$4 sm:$0xff]  }
 0x719   : > { %15564 = vmatpush2.bf16.msra.mxu1 %v21449_v42  ;;  %15524 = vmatprep.subr.bf16.mxu0 %v21454_v3  ;;  %v21511_v42 = vld [vmem:[%s22422_s27 + $0x358c] ss:$136 sps:$4 sm:$0xff]   ;;  %v21506_v3 = vld [vmem:[%s22422_s27 + $0x2488] ss:$136 sps:$4 sm:$0xff]  }
 0x71a   : > { %15565 = vmatprep.subr.bf16.mxu1 %v21457_v12  ;;  %v21509_v12 = vld [vmem:[%s22422_s27 + $0x3588] ss:$136 sps:$4 sm:$0xff]  }
 0x71c   : > { %15525 = vmatpush2.bf16.msra.mxu0 %v21452_v47  ;;  %v21514_v47 = vld [vmem:[%s22422_s27 + $0x237c] ss:$136 sps:$4 sm:$0xff]  }
 0x71d   : > { %15566 = vmatpush2.bf16.msra.mxu1 %v21455_v16  ;;  %15526 = vmatprep.subr.bf16.mxu0 %v21460_v13  ;;  %v21517_v16 = vld [vmem:[%s22422_s27 + $0x347c] ss:$136 sps:$4 sm:$0xff]   ;;  %v21512_v13 = vld [vmem:[%s22422_s27 + $0x2378] ss:$136 sps:$4 sm:$0xff]  }
 0x71e   : > { %15567 = vmatprep.subr.bf16.mxu1 %v21463_v14  ;;  %v21515_v14 = vld [vmem:[%s22422_s27 + $0x3478] ss:$136 sps:$4 sm:$0xff]  }
 0x720   : > { %15527 = vmatpush2.bf16.msra.mxu0 %v21458_v50  ;;  %v21520_v50 = vld [vmem:[%s22422_s27 + $0x226c] ss:$136 sps:$4 sm:$0xff]  }
 0x721   : > { %15568 = vmatpush2.bf16.msra.mxu1 %v21461_v51  ;;  %15528 = vmatprep.subr.bf16.mxu0 %v21466_v21  ;;  %v21523_v51 = vld [vmem:[%s22422_s27 + $0x336c] ss:$136 sps:$4 sm:$0xff]   ;;  %v21518_v21 = vld [vmem:[%s22422_s27 + $0x2268] ss:$136 sps:$4 sm:$0xff]  }
 0x722   : > { %15569 = vmatprep.subr.bf16.mxu1 %v21469_v22  ;;  %v21521_v22 = vld [vmem:[%s22422_s27 + $0x3368] ss:$136 sps:$4 sm:$0xff]  }
 0x724   : > { %15529 = vmatpush2.bf16.msra.mxu0 %v21464_v15  ;;  %v21526_v15 = vld [vmem:[%s22422_s27 + $0x325c] ss:$136 sps:$4 sm:$0xff]  }
 0x725   : > { %15570 = vmatpush2.bf16.msra.mxu1 %v21467_v26  ;;  %15530 = vmatprep.subr.bf16.mxu0 %v21472_v31  ;;  %v21529_v26 = vld [vmem:[%s22422_s27 + $0x435c] ss:$136 sps:$4 sm:$0xff]   ;;  %v21524_v31 = vld [vmem:[%s22422_s27 + $0x3258] ss:$136 sps:$4 sm:$0xff]  }
 0x726   : > { %15571 = vmatprep.subr.bf16.mxu1 %v21475_v32  ;;  %v21527_v32 = vld [vmem:[%s22422_s27 + $0x4358] ss:$136 sps:$4 sm:$0xff]  }
 0x728   : > { %15531 = vmatpush2.bf16.msra.mxu0 %v21470_v27  ;;  %v21532_v27 = vld [vmem:[%s22422_s27 + $0x314c] ss:$136 sps:$4 sm:$0xff]  }
 0x729   : > { %15572 = vmatpush2.bf16.msra.mxu1 %v21473_v28  ;;  %15582 = vmatprep.subr.bf16.mxu0 %v21478_v63  ;;  %v21535_v28 = vld [vmem:[%s22422_s27 + $0x424c] ss:$136 sps:$4 sm:$0xff]   ;;  %v21530_v63 = vld [vmem:[%s22422_s27 + $0x3148] ss:$136 sps:$4 sm:$0xff]  }
 0x72a   : > { %15623 = vmatprep.subr.bf16.mxu1 %v21481_v25  ;;  %v21533_v25 = vld [vmem:[%s22422_s27 + $0x4248] ss:$136 sps:$4 sm:$0xff]  }
 0x72b   : > { %v15288_v49 = vpop.f32.mrf.mxu0  ;;  %15533 = vmatmul.mubr.bf16.vlgmr.msra.gmra.mxu0 %v22511_v7 }
 0x72c   : > { %v15329_v9 = vpop.f32.mrf.mxu1  ;;  %15574 = vmatmul.mubr.bf16.vlgmr.msra.gmra.mxu1 %v22513_v8  ;;  %v15289_v11 = vadd.f32 %v15288_v49, %v15248_v45  ;;  %15583 = vmatpush1.bf16.msra.mxu0 %v21476_v35  ;;  %v21538_v35 = vld [vmem:[%s22422_s27 + $0x303c] ss:$136 sps:$4 sm:$0xff]   ;;  %v21544_v45 = vld [vmem:[%s22422_s27 + $0x2f2c] ss:$136 sps:$4 sm:$0xff]  }
 0x72d   : > { %15624 = vmatpush1.bf16.msra.mxu1 %v21479_v36  ;;  %v15290_v46 = vpop.f32.mrf.mxu0  ;;  %15584 = vmatprep.subr.bf16.mxu0 %v21484_v29  ;;  %v21541_v36 = vld [vmem:[%s22422_s27 + $0x413c] ss:$136 sps:$4 sm:$0xff]   ;;  %v21536_v29 = vld [vmem:[%s22422_s27 + $0x3038] ss:$136 sps:$4 sm:$0xff]   ;;  %v21547_v49 = vld [vmem:[%s22422_s27 + $0x402c] ss:$136 sps:$4 sm:$0xff]  }
 0x72e   : > { %v15331_v58 = vpop.f32.mrf.mxu1  ;;  %15625 = vmatprep.subr.bf16.mxu1 %v21487_v44  ;;  %v15330_v23 = vadd.f32 %v15329_v9, %v15289_v11  ;;  %v15291_v24 = vadd.f32 %v15290_v46, %v15250_v10  ;;  %15614 = vmatprep.mubr.bf16.mxu0 %v22551_v37  ;;  %v21539_v44 = vld [vmem:[%s22422_s27 + $0x4138] ss:$136 sps:$4 sm:$0xff]   ;;  %v21542_v9 = vld [vmem:[%s22422_s27 + $0x2f28] ss:$136 sps:$4 sm:$0xff]   ;;  %v21550_v11 = vld [vmem:[%s22422_s27 + $0x2e1c] ss:$136 sps:$4 sm:$0xff]  }
 0x72f   : > { %15655 = vmatprep.mubr.bf16.mxu1 %v22555_v38  ;;  %v15292_v20 = vpop.f32.mrf.mxu0  ;;  %v21545_v10 = vld [vmem:[%s22422_s27 + $0x4028] ss:$136 sps:$4 sm:$0xff]   ;;  %v21556_v46 = vld [vmem:[%s22422_s27 + $0x2d0c] ss:$136 sps:$4 sm:$0xff]  }
 0x730   : > { %v15333_v59 = vpop.f32.mrf.mxu1  ;;  %v16178_v60 = vadd.f32 %v15330_v23, %v272_v54  ;;  %v15332_v61 = vadd.f32 %v15331_v58, %v15291_v24  ;;  %15585 = vmatpush1.bf16.msra.mxu0 %v21482_v43  ;;  %v21553_v43 = vld [vmem:[%s22422_s27 + $0x3f1c] ss:$136 sps:$4 sm:$0xff]   ;;  %v21551_v54 = vld [vmem:[%s22422_s27 + $0x3f18] ss:$136 sps:$4 sm:$0xff]   ;;  %v21559_v58 = vld [vmem:[%s22422_s27 + $0x3e0c] ss:$136 sps:$4 sm:$0xff]  }
 0x731   : > { %15626 = vmatpush1.bf16.msra.mxu1 %v21485_v53  ;;  %v15293_v0 = vpop.f32.mrf.mxu0  ;;  %15586 = vmatprep.subr.bf16.mxu0 %v21490_v55  ;;  %v21548_v53 = vld [vmem:[%s22422_s27 + $0x2e18] ss:$136 sps:$4 sm:$0xff]   ;;  %v21554_v55 = vld [vmem:[%s22422_s27 + $0x2d08] ss:$136 sps:$4 sm:$0xff]   ;;  %v21562_v23 = vld [vmem:[%s22422_s27 + $0x2bfc] ss:$136 sps:$4 sm:$0xff]  }
 0x732   : > { %v15334_v30 = vpop.f32.mrf.mxu1  ;;  %15627 = vmatprep.subr.bf16.mxu1 %v21493_v56  ;;  %16212 = vst [vmem:[#allocation2 + $0x98] sm:$0xff] %v16178_v60  ;;  %v16179_v2 = vadd.f32 %v15332_v61, %v273_v19  ;;  %v21557_v56 = vld [vmem:[%s22422_s27 + $0x3e08] ss:$136 sps:$4 sm:$0xff]   ;;  %v21565_v24 = vld [vmem:[%s22422_s27 + $0x3cfc] ss:$136 sps:$4 sm:$0xff]  }
 0x733   : > { %v21560_v19 = vld [vmem:[%s22422_s27 + $0x2bf8] ss:$136 sps:$4 sm:$0xff]   ;;  %v21568_v59 = vld [vmem:[%s22422_s27 + $0x2aec] ss:$136 sps:$4 sm:$0xff]   ;;  %v21566_v61 = vld [vmem:[%s22422_s27 + $0x2ae8] ss:$136 sps:$4 sm:$0xff]  }
 0x734   : > { %16213 = vst [vmem:[#allocation2 + $0x78] sm:$0xff] %v16179_v2  ;;  %15587 = vmatpush1.bf16.msra.mxu0 %v21488_v62  ;;  %v21563_v20 = vld [vmem:[%s22422_s27 + $0x3cf8] ss:$136 sps:$4 sm:$0xff]   ;;  %v21571_v60 = vld [vmem:[%s22422_s27 + $0x3bec] ss:$136 sps:$4 sm:$0xff]  }
 0x735   : > { %15628 = vmatpush1.bf16.msra.mxu1 %v21491_v57  ;;  %15588 = vmatprep.subr.bf16.mxu0 %v21496_v4  ;;  %v21569_v62 = vld [vmem:[%s22422_s27 + $0x3be8] ss:$136 sps:$4 sm:$0xff]   ;;  %v21574_v57 = vld [vmem:[%s22422_s27 + $0x7e4] ss:$136 sps:$4 sm:$0xff]   ;;  %v21583_v2 = vld [vmem:[%s22422_s27 + $0x17d4] ss:$136 sps:$4 sm:$0xff]  }
 0x736   : > { %15629 = vmatprep.subr.bf16.mxu1 %v21499_v1  ;;  %v21577_v0 = vld [vmem:[%s22422_s27 + $0x18e4] ss:$136 sps:$4 sm:$0xff]   ;;  %v21572_v30 = vld [vmem:[%s22422_s27 + $0x7e0] ss:$136 sps:$4 sm:$0xff]   ;;  %v21580_v1 = vld [vmem:[%s22422_s27 + $0x6d4] ss:$136 sps:$4 sm:$0xff]  }
 0x737   : > { %v21575_v4 = vld [vmem:[%s22422_s27 + $0x18e0] ss:$136 sps:$4 sm:$0xff]  }
 0x738   : > { %15589 = vmatpush1.bf16.msra.mxu0 %v21494_v39 }
 0x739   : > { %15630 = vmatpush1.bf16.msra.mxu1 %v21497_v40  ;;  %15590 = vmatprep.subr.bf16.mxu0 %v21502_v33  ;;  %v21578_v33 = vld [vmem:[%s22422_s27 + $0x6d0] ss:$136 sps:$4 sm:$0xff]  }
 0x73a   : > { %15631 = vmatprep.subr.bf16.mxu1 %v21505_v34  ;;  %v21581_v34 = vld [vmem:[%s22422_s27 + $0x17d0] ss:$136 sps:$4 sm:$0xff]  }
 0x73c   : > { %15591 = vmatpush1.bf16.msra.mxu0 %v21500_v5 }
 0x73d   : > { %15632 = vmatpush1.bf16.msra.mxu1 %v21503_v6  ;;  %15592 = vmatprep.subr.bf16.mxu0 %v21508_v41  ;;  %v21586_v41 = vld [vmem:[%s22422_s27 + $0x5c4] ss:$136 sps:$4 sm:$0xff]  }
 0x73e   : > { %15633 = vmatprep.subr.bf16.mxu1 %v21511_v42  ;;  %v21589_v42 = vld [vmem:[%s22422_s27 + $0x16c4] ss:$136 sps:$4 sm:$0xff]  }
 0x740   : > { %15593 = vmatpush1.bf16.msra.mxu0 %v21506_v3 }
 0x741   : > { %15634 = vmatpush1.bf16.msra.mxu1 %v21509_v12  ;;  %15594 = vmatprep.subr.bf16.mxu0 %v21514_v47  ;;  %v21584_v47 = vld [vmem:[%s22422_s27 + $0x5c0] ss:$136 sps:$4 sm:$0xff]  }
 0x742   : > { %15635 = vmatprep.subr.bf16.mxu1 %v21517_v16  ;;  %v21587_v16 = vld [vmem:[%s22422_s27 + $0x16c0] ss:$136 sps:$4 sm:$0xff]  }
 0x744   : > { %15595 = vmatpush1.bf16.msra.mxu0 %v21512_v13 }
 0x745   : > { %15636 = vmatpush1.bf16.msra.mxu1 %v21515_v14  ;;  %15596 = vmatprep.subr.bf16.mxu0 %v21520_v50  ;;  %v21592_v50 = vld [vmem:[%s22422_s27 + $0x4b4] ss:$136 sps:$4 sm:$0xff]  }
 0x746   : > { %15637 = vmatprep.subr.bf16.mxu1 %v21523_v51  ;;  %v21595_v51 = vld [vmem:[%s22422_s27 + $0x15b4] ss:$136 sps:$4 sm:$0xff]  }
 0x748   : > { %15597 = vmatpush1.bf16.msra.mxu0 %v21518_v21  ;;  %v21590_v21 = vld [vmem:[%s22422_s27 + $0x4b0] ss:$136 sps:$4 sm:$0xff]  }
 0x749   : > { %15638 = vmatpush1.bf16.msra.mxu1 %v21521_v22  ;;  %15598 = vmatprep.subr.bf16.mxu0 %v21526_v15  ;;  %v21593_v22 = vld [vmem:[%s22422_s27 + $0x15b0] ss:$136 sps:$4 sm:$0xff]   ;;  %v21598_v15 = vld [vmem:[%s22422_s27 + $0x3a4] ss:$136 sps:$4 sm:$0xff]  }
 0x74a   : > { %15639 = vmatprep.subr.bf16.mxu1 %v21529_v26  ;;  %v21601_v26 = vld [vmem:[%s22422_s27 + $0x14a4] ss:$136 sps:$4 sm:$0xff]  }
 0x74c   : > { %15599 = vmatpush2.bf16.msra.mxu0 %v21524_v31  ;;  %v21596_v31 = vld [vmem:[%s22422_s27 + $0x3a0] ss:$136 sps:$4 sm:$0xff]  }
 0x74d   : > { %15640 = vmatpush2.bf16.msra.mxu1 %v21527_v32  ;;  %15600 = vmatprep.subr.bf16.mxu0 %v21532_v27  ;;  %v21599_v32 = vld [vmem:[%s22422_s27 + $0x14a0] ss:$136 sps:$4 sm:$0xff]   ;;  %v21604_v27 = vld [vmem:[%s22422_s27 + $0x294] ss:$136 sps:$4 sm:$0xff]  }
 0x74e   : > { %15641 = vmatprep.subr.bf16.mxu1 %v21535_v28  ;;  %v21607_v28 = vld [vmem:[%s22422_s27 + $0x1394] ss:$136 sps:$4 sm:$0xff]  }
 0x750   : > { %15601 = vmatpush2.bf16.msra.mxu0 %v21530_v63  ;;  %v21602_v63 = vld [vmem:[%s22422_s27 + $0x290] ss:$136 sps:$4 sm:$0xff]  }
 0x751   : > { %15642 = vmatpush2.bf16.msra.mxu1 %v21533_v25  ;;  %15602 = vmatprep.subr.bf16.mxu0 %v21538_v35  ;;  %v21605_v25 = vld [vmem:[%s22422_s27 + $0x1390] ss:$136 sps:$4 sm:$0xff]   ;;  %v21610_v35 = vld [vmem:[%s22422_s27 + $0x184] ss:$136 sps:$4 sm:$0xff]  }
 0x752   : > { %15643 = vmatprep.subr.bf16.mxu1 %v21541_v36  ;;  %v21613_v36 = vld [vmem:[%s22422_s27 + $0x1284] ss:$136 sps:$4 sm:$0xff]  }
 0x754   : > { %15603 = vmatpush2.bf16.msra.mxu0 %v21536_v29  ;;  %v21608_v29 = vld [vmem:[%s22422_s27 + $0x180] ss:$136 sps:$4 sm:$0xff]  }
 0x755   : > { %15644 = vmatpush2.bf16.msra.mxu1 %v21539_v44  ;;  %15604 = vmatprep.subr.bf16.mxu0 %v21544_v45  ;;  %v21611_v44 = vld [vmem:[%s22422_s27 + $0x1280] ss:$136 sps:$4 sm:$0xff]   ;;  %v21616_v45 = vld [vmem:[%s22422_s27 + $0x74] ss:$136 sps:$4 sm:$0xff]  }
 0x756   : > { %15645 = vmatprep.subr.bf16.mxu1 %v21547_v49  ;;  %v21619_v49 = vld [vmem:[%s22422_s27 + $0x1174] ss:$136 sps:$4 sm:$0xff]  }
 0x758   : > { %15605 = vmatpush2.bf16.msra.mxu0 %v21542_v9  ;;  %v21614_v9 = vld [vmem:[%s22422_s27 + $0x70] ss:$136 sps:$4 sm:$0xff]  }
 0x759   : > { %15646 = vmatpush2.bf16.msra.mxu1 %v21545_v10  ;;  %15606 = vmatprep.subr.bf16.mxu0 %v21550_v11  ;;  %v21617_v10 = vld [vmem:[%s22422_s27 + $0x1170] ss:$136 sps:$4 sm:$0xff]   ;;  %v21622_v11 = vld [vmem:[%s22422_s27 + $0x1064] ss:$136 sps:$4 sm:$0xff]  }
 0x75a   : > { %15647 = vmatprep.subr.bf16.mxu1 %v21553_v43  ;;  %v21625_v43 = vld [vmem:[%s22422_s27 + $0x2164] ss:$136 sps:$4 sm:$0xff]  }
 0x75c   : > { %15607 = vmatpush2.bf16.msra.mxu0 %v21548_v53  ;;  %v21620_v53 = vld [vmem:[%s22422_s27 + $0x1060] ss:$136 sps:$4 sm:$0xff]  }
 0x75d   : > { %15648 = vmatpush2.bf16.msra.mxu1 %v21551_v54  ;;  %15608 = vmatprep.subr.bf16.mxu0 %v21556_v46  ;;  %v21623_v54 = vld [vmem:[%s22422_s27 + $0x2160] ss:$136 sps:$4 sm:$0xff]   ;;  %v21628_v46 = vld [vmem:[%s22422_s27 + $0xf54] ss:$136 sps:$4 sm:$0xff]  }
 0x75e   : > { %15649 = vmatprep.subr.bf16.mxu1 %v21559_v58  ;;  %v21631_v58 = vld [vmem:[%s22422_s27 + $0x2054] ss:$136 sps:$4 sm:$0xff]  }
 0x760   : > { %15609 = vmatpush2.bf16.msra.mxu0 %v21554_v55  ;;  %v21626_v55 = vld [vmem:[%s22422_s27 + $0xf50] ss:$136 sps:$4 sm:$0xff]  }
 0x761   : > { %15650 = vmatpush2.bf16.msra.mxu1 %v21557_v56  ;;  %15610 = vmatprep.subr.bf16.mxu0 %v21562_v23  ;;  %v21629_v56 = vld [vmem:[%s22422_s27 + $0x2050] ss:$136 sps:$4 sm:$0xff]   ;;  %v21634_v23 = vld [vmem:[%s22422_s27 + $0xe44] ss:$136 sps:$4 sm:$0xff]  }
 0x762   : > { %15651 = vmatprep.subr.bf16.mxu1 %v21565_v24  ;;  %v21637_v24 = vld [vmem:[%s22422_s27 + $0x1f44] ss:$136 sps:$4 sm:$0xff]  }
 0x764   : > { %15611 = vmatpush2.bf16.msra.mxu0 %v21560_v19  ;;  %v21632_v19 = vld [vmem:[%s22422_s27 + $0xe40] ss:$136 sps:$4 sm:$0xff]  }
 0x765   : > { %15652 = vmatpush2.bf16.msra.mxu1 %v21563_v20  ;;  %15612 = vmatprep.subr.bf16.mxu0 %v21568_v59  ;;  %v21635_v20 = vld [vmem:[%s22422_s27 + $0x1f40] ss:$136 sps:$4 sm:$0xff]   ;;  %v21640_v59 = vld [vmem:[%s22422_s27 + $0xd34] ss:$136 sps:$4 sm:$0xff]  }
 0x766   : > { %15653 = vmatprep.subr.bf16.mxu1 %v21571_v60  ;;  %v21643_v60 = vld [vmem:[%s22422_s27 + $0x1e34] ss:$136 sps:$4 sm:$0xff]  }
 0x768   : > { %15613 = vmatpush2.bf16.msra.mxu0 %v21566_v61  ;;  %v21638_v61 = vld [vmem:[%s22422_s27 + $0xd30] ss:$136 sps:$4 sm:$0xff]  }
 0x769   : > { %15654 = vmatpush2.bf16.msra.mxu1 %v21569_v62  ;;  %15664 = vmatprep.subr.bf16.mxu0 %v21574_v57  ;;  %v21641_v62 = vld [vmem:[%s22422_s27 + $0x1e30] ss:$136 sps:$4 sm:$0xff]   ;;  %v21646_v57 = vld [vmem:[%s22422_s27 + $0xc24] ss:$136 sps:$4 sm:$0xff]  }
 0x76a   : > { %15705 = vmatprep.subr.bf16.mxu1 %v21577_v0  ;;  %v21649_v0 = vld [vmem:[%s22422_s27 + $0x1d24] ss:$136 sps:$4 sm:$0xff]  }
 0x76b   : > { %v24521_v39 = vpop.f32.mrf.mxu0  ;;  %15615 = vmatmul.mubr.bf16.vlgmr.msra.gmra.mxu0 %v22599_v17 }
 0x76c   : > { %v24523_v40 = vpop.f32.mrf.mxu1  ;;  %15656 = vmatmul.mubr.bf16.vlgmr.msra.gmra.mxu1 %v22603_v18  ;;  %15665 = vmatpush1.bf16.msra.mxu0 %v21572_v30  ;;  %v21644_v30 = vld [vmem:[%s22422_s27 + $0xc20] ss:$136 sps:$4 sm:$0xff]  }
 0x76d   : > { %15706 = vmatpush1.bf16.msra.mxu1 %v21575_v4  ;;  %v24529_v5 = vpop.f32.mrf.mxu0  ;;  %15666 = vmatprep.subr.bf16.mxu0 %v21580_v1  ;;  %v21647_v4 = vld [vmem:[%s22422_s27 + $0x1d20] ss:$136 sps:$4 sm:$0xff]   ;;  %v21652_v1 = vld [vmem:[%s22422_s27 + $0xb14] ss:$136 sps:$4 sm:$0xff]  }
 0x76e   : > { %v24531_v6 = vpop.f32.mrf.mxu1  ;;  %15707 = vmatprep.subr.bf16.mxu1 %v21583_v2  ;;  %15696 = vmatprep.mubr.bf16.mxu0 %v22484_v48  ;;  %v21655_v2 = vld [vmem:[%s22422_s27 + $0x1c14] ss:$136 sps:$4 sm:$0xff]  }
 0x76f   : > { %15737 = vmatprep.mubr.bf16.mxu1 %v22489_v52  ;;  %v15374_v3 = vpop.f32.mrf.mxu0 }
 0x770   : > { %v15415_v12 = vpop.f32.mrf.mxu1  ;;  %15667 = vmatpush1.bf16.msra.mxu0 %v21578_v33  ;;  %v21650_v33 = vld [vmem:[%s22422_s27 + $0xb10] ss:$136 sps:$4 sm:$0xff]   ;;  %v21656_v3 = vld [vmem:[%s22422_s27 + $0xa00] ss:$136 sps:$4 sm:$0xff]  }
 0x771   : > { %15708 = vmatpush1.bf16.msra.mxu1 %v21581_v34  ;;  %v15375_v13 = vpop.f32.mrf.mxu0  ;;  %15668 = vmatprep.subr.bf16.mxu0 %v21586_v41  ;;  %v21653_v34 = vld [vmem:[%s22422_s27 + $0x1c10] ss:$136 sps:$4 sm:$0xff]   ;;  %v21658_v41 = vld [vmem:[%s22422_s27 + $0xa04] ss:$136 sps:$4 sm:$0xff]   ;;  %v21659_v12 = vld [vmem:[%s22422_s27 + $0x1b00] ss:$136 sps:$4 sm:$0xff]  }
 0x772   : > { %v15416_v14 = vpop.f32.mrf.mxu1  ;;  %15709 = vmatprep.subr.bf16.mxu1 %v21589_v42  ;;  %v21661_v42 = vld [vmem:[%s22422_s27 + $0x1b04] ss:$136 sps:$4 sm:$0xff]   ;;  %v21662_v13 = vld [vmem:[%s22422_s27 + $0x8f0] ss:$136 sps:$4 sm:$0xff]  }
 0x773   : > { %v21665_v14 = vld [vmem:[%s22422_s27 + $0x19f0] ss:$136 sps:$4 sm:$0xff]  }
 0x774   : > { %15669 = vmatpush1.bf16.msra.mxu0 %v21584_v47  ;;  %v21664_v47 = vld [vmem:[%s22422_s27 + $0x8f4] ss:$136 sps:$4 sm:$0xff]  }
 0x775   : > { %15710 = vmatpush1.bf16.msra.mxu1 %v21587_v16  ;;  %15670 = vmatprep.subr.bf16.mxu0 %v21592_v50  ;;  %v21667_v16 = vld [vmem:[%s22422_s27 + $0x19f4] ss:$136 sps:$4 sm:$0xff]   ;;  %v21670_v50 = vld [vmem:[%s22422_s27 + $0x29e4] ss:$136 sps:$4 sm:$0xff]  }
 0x776   : > { %15711 = vmatprep.subr.bf16.mxu1 %v21595_v51  ;;  %v21673_v51 = vld [vmem:[%s22422_s27 + $0x3ae4] ss:$136 sps:$4 sm:$0xff]  }
 0x778   : > { %15671 = vmatpush1.bf16.msra.mxu0 %v21590_v21  ;;  %v21668_v21 = vld [vmem:[%s22422_s27 + $0x29e0] ss:$136 sps:$4 sm:$0xff]  }
 0x779   : > { %15712 = vmatpush1.bf16.msra.mxu1 %v21593_v22  ;;  %15672 = vmatprep.subr.bf16.mxu0 %v21598_v15  ;;  %v21671_v22 = vld [vmem:[%s22422_s27 + $0x3ae0] ss:$136 sps:$4 sm:$0xff]   ;;  %v21676_v15 = vld [vmem:[%s22422_s27 + $0x28d4] ss:$136 sps:$4 sm:$0xff]  }
 0x77a   : > { %15713 = vmatprep.subr.bf16.mxu1 %v21601_v26  ;;  %v21679_v26 = vld [vmem:[%s22422_s27 + $0x39d4] ss:$136 sps:$4 sm:$0xff]  }
 0x77c   : > { %15673 = vmatpush1.bf16.msra.mxu0 %v21596_v31  ;;  %v15412_v31 = vadd.f32 %v24523_v40, %v24521_v39  ;;  %v21682_v39 = vld [vmem:[%s22422_s27 + $0x27c4] ss:$136 sps:$4 sm:$0xff]  }
 0x77d   : > { %15714 = vmatpush1.bf16.msra.mxu1 %v21599_v32  ;;  %15674 = vmatprep.subr.bf16.mxu0 %v21604_v27  ;;  %v21685_v40 = vld [vmem:[%s22422_s27 + $0x38c4] ss:$136 sps:$4 sm:$0xff]  }
 0x77e   : > { %15715 = vmatprep.subr.bf16.mxu1 %v21607_v28  ;;  %v15414_v28 = vadd.f32 %v24531_v6, %v24529_v5  ;;  %v275_v5 = vld [vmem:[#allocation2] sm:$0xff] }
 0x780   : > { %15675 = vmatpush1.bf16.msra.mxu0 %v21602_v63 }
 0x781   : > { %15716 = vmatpush1.bf16.msra.mxu1 %v21605_v25  ;;  %15676 = vmatprep.subr.bf16.mxu0 %v21610_v35  ;;  %v21674_v25 = vld [vmem:[%s22422_s27 + $0x28d0] ss:$136 sps:$4 sm:$0xff]  }
 0x782   : > { %15717 = vmatprep.subr.bf16.mxu1 %v21613_v36  ;;  %v21677_v35 = vld [vmem:[%s22422_s27 + $0x39d0] ss:$136 sps:$4 sm:$0xff]  }
 0x783   : > { %v274_v36 = vld [vmem:[#allocation2 + $0xc8] sm:$0xff] }
 0x784   : > { %15677 = vmatpush1.bf16.msra.mxu0 %v21608_v29 }
 0x785   : > { %15718 = vmatpush1.bf16.msra.mxu1 %v21611_v44  ;;  %15678 = vmatprep.subr.bf16.mxu0 %v21616_v45 }
 0x786   : > { %15719 = vmatprep.subr.bf16.mxu1 %v21619_v49 }
 0x788   : > { %15679 = vmatpush1.bf16.msra.mxu0 %v21614_v9 }
 0x789   : > { %15720 = vmatpush1.bf16.msra.mxu1 %v21617_v10  ;;  %15680 = vmatprep.subr.bf16.mxu0 %v21622_v11 }
 0x78a   : > { %15721 = vmatprep.subr.bf16.mxu1 %v21625_v43  ;;  %v21680_v43 = vld [vmem:[%s22422_s27 + $0x27c0] ss:$136 sps:$4 sm:$0xff]  }
 0x78c   : > { %15681 = vmatpush2.bf16.msra.mxu0 %v21620_v53  ;;  %v21683_v53 = vld [vmem:[%s22422_s27 + $0x38c0] ss:$136 sps:$4 sm:$0xff]  }
 0x78d   : > { %15722 = vmatpush2.bf16.msra.mxu1 %v21623_v54  ;;  %15682 = vmatprep.subr.bf16.mxu0 %v21628_v46 }
 0x78e   : > { %15723 = vmatprep.subr.bf16.mxu1 %v21631_v58  ;;  %v21688_v58 = vld [vmem:[%s22422_s27 + $0x26b4] ss:$136 sps:$4 sm:$0xff]  }
 0x790   : > { %15683 = vmatpush2.bf16.msra.mxu0 %v21626_v55  ;;  %v21691_v55 = vld [vmem:[%s22422_s27 + $0x37b4] ss:$136 sps:$4 sm:$0xff]  }
 0x791   : > { %15724 = vmatpush2.bf16.msra.mxu1 %v21629_v56  ;;  %15684 = vmatprep.subr.bf16.mxu0 %v21634_v23  ;;  %v21686_v23 = vld [vmem:[%s22422_s27 + $0x26b0] ss:$136 sps:$4 sm:$0xff]  }
 0x792   : > { %15725 = vmatprep.subr.bf16.mxu1 %v21637_v24  ;;  %v21689_v24 = vld [vmem:[%s22422_s27 + $0x37b0] ss:$136 sps:$4 sm:$0xff]  }
 0x794   : > { %15685 = vmatpush2.bf16.msra.mxu0 %v21632_v19  ;;  %v21694_v19 = vld [vmem:[%s22422_s27 + $0x25a4] ss:$136 sps:$4 sm:$0xff]  }
 0x795   : > { %15726 = vmatpush2.bf16.msra.mxu1 %v21635_v20  ;;  %15686 = vmatprep.subr.bf16.mxu0 %v21640_v59  ;;  %v21697_v20 = vld [vmem:[%s22422_s27 + $0x36a4] ss:$136 sps:$4 sm:$0xff]   ;;  %v21692_v59 = vld [vmem:[%s22422_s27 + $0x25a0] ss:$136 sps:$4 sm:$0xff]  }
 0x796   : > { %15727 = vmatprep.subr.bf16.mxu1 %v21643_v60  ;;  %v21695_v60 = vld [vmem:[%s22422_s27 + $0x36a0] ss:$136 sps:$4 sm:$0xff]  }
 0x798   : > { %15687 = vmatpush2.bf16.msra.mxu0 %v21638_v61  ;;  %v21700_v61 = vld [vmem:[%s22422_s27 + $0x2494] ss:$136 sps:$4 sm:$0xff]  }
 0x799   : > { %15728 = vmatpush2.bf16.msra.mxu1 %v21641_v62  ;;  %15688 = vmatprep.subr.bf16.mxu0 %v21646_v57  ;;  %v21703_v62 = vld [vmem:[%s22422_s27 + $0x3594] ss:$136 sps:$4 sm:$0xff]   ;;  %v21698_v57 = vld [vmem:[%s22422_s27 + $0x2490] ss:$136 sps:$4 sm:$0xff]  }
 0x79a   : > { %15729 = vmatprep.subr.bf16.mxu1 %v21649_v0  ;;  %v21701_v0 = vld [vmem:[%s22422_s27 + $0x3590] ss:$136 sps:$4 sm:$0xff]  }
 0x79c   : > { %15689 = vmatpush2.bf16.msra.mxu0 %v21644_v30  ;;  %v21706_v30 = vld [vmem:[%s22422_s27 + $0x2384] ss:$136 sps:$4 sm:$0xff]  }
 0x79d   : > { %15730 = vmatpush2.bf16.msra.mxu1 %v21647_v4  ;;  %15690 = vmatprep.subr.bf16.mxu0 %v21652_v1  ;;  %v21709_v4 = vld [vmem:[%s22422_s27 + $0x3484] ss:$136 sps:$4 sm:$0xff]   ;;  %v21704_v1 = vld [vmem:[%s22422_s27 + $0x2380] ss:$136 sps:$4 sm:$0xff]  }
 0x79e   : > { %15731 = vmatprep.subr.bf16.mxu1 %v21655_v2  ;;  %v21707_v2 = vld [vmem:[%s22422_s27 + $0x3480] ss:$136 sps:$4 sm:$0xff]  }
 0x7a0   : > { %15691 = vmatpush2.bf16.msra.mxu0 %v21650_v33  ;;  %v21712_v33 = vld [vmem:[%s22422_s27 + $0x2274] ss:$136 sps:$4 sm:$0xff]  }
 0x7a1   : > { %15732 = vmatpush2.bf16.msra.mxu1 %v21653_v34  ;;  %15692 = vmatprep.subr.bf16.mxu0 %v21658_v41  ;;  %v21715_v34 = vld [vmem:[%s22422_s27 + $0x3374] ss:$136 sps:$4 sm:$0xff]   ;;  %v21710_v41 = vld [vmem:[%s22422_s27 + $0x2270] ss:$136 sps:$4 sm:$0xff]  }
 0x7a2   : > { %15733 = vmatprep.subr.bf16.mxu1 %v21661_v42  ;;  %v21713_v42 = vld [vmem:[%s22422_s27 + $0x3370] ss:$136 sps:$4 sm:$0xff]  }
 0x7a4   : > { %15693 = vmatpush2.bf16.msra.mxu0 %v21656_v3  ;;  %v21718_v3 = vld [vmem:[%s22422_s27 + $0x3264] ss:$136 sps:$4 sm:$0xff]  }
 0x7a5   : > { %15734 = vmatpush2.bf16.msra.mxu1 %v21659_v12  ;;  %15694 = vmatprep.subr.bf16.mxu0 %v21664_v47  ;;  %v21721_v12 = vld [vmem:[%s22422_s27 + $0x4364] ss:$136 sps:$4 sm:$0xff]   ;;  %v21716_v47 = vld [vmem:[%s22422_s27 + $0x3260] ss:$136 sps:$4 sm:$0xff]  }
 0x7a6   : > { %15735 = vmatprep.subr.bf16.mxu1 %v21667_v16  ;;  %v21719_v16 = vld [vmem:[%s22422_s27 + $0x4360] ss:$136 sps:$4 sm:$0xff]  }
 0x7a8   : > { %15695 = vmatpush2.bf16.msra.mxu0 %v21662_v13  ;;  %v21724_v13 = vld [vmem:[%s22422_s27 + $0x3154] ss:$136 sps:$4 sm:$0xff]  }
 0x7a9   : > { %15736 = vmatpush2.bf16.msra.mxu1 %v21665_v14  ;;  %15746 = vmatprep.subr.bf16.mxu0 %v21670_v50  ;;  %v21727_v14 = vld [vmem:[%s22422_s27 + $0x4254] ss:$136 sps:$4 sm:$0xff]   ;;  %v21722_v50 = vld [vmem:[%s22422_s27 + $0x3150] ss:$136 sps:$4 sm:$0xff]  }
 0x7aa   : > { %15787 = vmatprep.subr.bf16.mxu1 %v21673_v51  ;;  %v21725_v51 = vld [vmem:[%s22422_s27 + $0x4250] ss:$136 sps:$4 sm:$0xff]  }
 0x7ab   : > { %v15452_v32 = vpop.f32.mrf.mxu0  ;;  %15697 = vmatmul.mubr.bf16.vlgmr.msra.gmra.mxu0 %v22511_v7 }
 0x7ac   : > { %v15493_v27 = vpop.f32.mrf.mxu1  ;;  %15738 = vmatmul.mubr.bf16.vlgmr.msra.gmra.mxu1 %v22513_v8  ;;  %v15453_v63 = vadd.f32 %v15452_v32, %v15412_v31  ;;  %15747 = vmatpush1.bf16.msra.mxu0 %v21668_v21  ;;  %v21730_v21 = vld [vmem:[%s22422_s27 + $0x3044] ss:$136 sps:$4 sm:$0xff]   ;;  %v21736_v31 = vld [vmem:[%s22422_s27 + $0x2f34] ss:$136 sps:$4 sm:$0xff]  }
 0x7ad   : > { %15788 = vmatpush1.bf16.msra.mxu1 %v21671_v22  ;;  %v15454_v29 = vpop.f32.mrf.mxu0  ;;  %15748 = vmatprep.subr.bf16.mxu0 %v21676_v15  ;;  %v21733_v22 = vld [vmem:[%s22422_s27 + $0x4144] ss:$136 sps:$4 sm:$0xff]   ;;  %v21728_v15 = vld [vmem:[%s22422_s27 + $0x3040] ss:$136 sps:$4 sm:$0xff]   ;;  %v21739_v32 = vld [vmem:[%s22422_s27 + $0x4034] ss:$136 sps:$4 sm:$0xff]  }
 0x7ae   : > { %v15495_v44 = vpop.f32.mrf.mxu1  ;;  %15789 = vmatprep.subr.bf16.mxu1 %v21679_v26  ;;  %v15494_v45 = vadd.f32 %v15493_v27, %v15453_v63  ;;  %v15455_v49 = vadd.f32 %v15454_v29, %v15414_v28  ;;  %15778 = vmatprep.mubr.bf16.mxu0 %v22551_v37  ;;  %v21731_v26 = vld [vmem:[%s22422_s27 + $0x4140] ss:$136 sps:$4 sm:$0xff]   ;;  %v21734_v27 = vld [vmem:[%s22422_s27 + $0x2f30] ss:$136 sps:$4 sm:$0xff]   ;;  %v21742_v63 = vld [vmem:[%s22422_s27 + $0x2e24] ss:$136 sps:$4 sm:$0xff]  }
 0x7af   : > { %15819 = vmatprep.mubr.bf16.mxu1 %v22555_v38  ;;  %v15456_v6 = vpop.f32.mrf.mxu0  ;;  %v21737_v28 = vld [vmem:[%s22422_s27 + $0x4030] ss:$136 sps:$4 sm:$0xff]   ;;  %v21748_v29 = vld [vmem:[%s22422_s27 + $0x2d14] ss:$136 sps:$4 sm:$0xff]  }
 0x7b0   : > { %v15497_v9 = vpop.f32.mrf.mxu1  ;;  %v16180_v10 = vadd.f32 %v15494_v45, %v274_v36  ;;  %v15496_v11 = vadd.f32 %v15495_v44, %v15455_v49  ;;  %15749 = vmatpush1.bf16.msra.mxu0 %v21674_v25  ;;  %v21745_v25 = vld [vmem:[%s22422_s27 + $0x3f24] ss:$136 sps:$4 sm:$0xff]   ;;  %v21743_v36 = vld [vmem:[%s22422_s27 + $0x3f20] ss:$136 sps:$4 sm:$0xff]   ;;  %v21751_v44 = vld [vmem:[%s22422_s27 + $0x3e14] ss:$136 sps:$4 sm:$0xff]  }
 0x7b1   : > { %15790 = vmatpush1.bf16.msra.mxu1 %v21677_v35  ;;  %v15457_v54 = vpop.f32.mrf.mxu0  ;;  %15750 = vmatprep.subr.bf16.mxu0 %v21682_v39  ;;  %v21740_v35 = vld [vmem:[%s22422_s27 + $0x2e20] ss:$136 sps:$4 sm:$0xff]   ;;  %v21746_v39 = vld [vmem:[%s22422_s27 + $0x2d10] ss:$136 sps:$4 sm:$0xff]   ;;  %v21754_v45 = vld [vmem:[%s22422_s27 + $0x2c04] ss:$136 sps:$4 sm:$0xff]  }
 0x7b2   : > { %v15498_v46 = vpop.f32.mrf.mxu1  ;;  %15791 = vmatprep.subr.bf16.mxu1 %v21685_v40  ;;  %16214 = vst [vmem:[#allocation2 + $0xc8] sm:$0xff] %v16180_v10  ;;  %v16181_v56 = vadd.f32 %v15496_v11, %v275_v5  ;;  %v21749_v40 = vld [vmem:[%s22422_s27 + $0x3e10] ss:$136 sps:$4 sm:$0xff]   ;;  %v21757_v49 = vld [vmem:[%s22422_s27 + $0x3d04] ss:$136 sps:$4 sm:$0xff]  }
 0x7b3   : > { %v21752_v5 = vld [vmem:[%s22422_s27 + $0x2c00] ss:$136 sps:$4 sm:$0xff]   ;;  %v21760_v9 = vld [vmem:[%s22422_s27 + $0x2af4] ss:$136 sps:$4 sm:$0xff]   ;;  %v21758_v11 = vld [vmem:[%s22422_s27 + $0x2af0] ss:$136 sps:$4 sm:$0xff]  }
 0x7b4   : > { %16215 = vst [vmem:[#allocation2] sm:$0xff] %v16181_v56  ;;  %15751 = vmatpush1.bf16.msra.mxu0 %v21680_v43  ;;  %v21755_v6 = vld [vmem:[%s22422_s27 + $0x3d00] ss:$136 sps:$4 sm:$0xff]   ;;  %v21763_v10 = vld [vmem:[%s22422_s27 + $0x3bf4] ss:$136 sps:$4 sm:$0xff]  }
 0x7b5   : > { %15792 = vmatpush1.bf16.msra.mxu1 %v21683_v53  ;;  %15752 = vmatprep.subr.bf16.mxu0 %v21688_v58  ;;  %v21761_v43 = vld [vmem:[%s22422_s27 + $0x3bf0] ss:$136 sps:$4 sm:$0xff]   ;;  %v21766_v53 = vld [vmem:[%s22422_s27 + $0x7ec] ss:$136 sps:$4 sm:$0xff]   ;;  %v21775_v56 = vld [vmem:[%s22422_s27 + $0x17dc] ss:$136 sps:$4 sm:$0xff]  }
 0x7b6   : > { %15793 = vmatprep.subr.bf16.mxu1 %v21691_v55  ;;  %v21769_v54 = vld [vmem:[%s22422_s27 + $0x18ec] ss:$136 sps:$4 sm:$0xff]   ;;  %v21764_v46 = vld [vmem:[%s22422_s27 + $0x7e8] ss:$136 sps:$4 sm:$0xff]   ;;  %v21772_v55 = vld [vmem:[%s22422_s27 + $0x6dc] ss:$136 sps:$4 sm:$0xff]  }
 0x7b7   : > { %v21767_v58 = vld [vmem:[%s22422_s27 + $0x18e8] ss:$136 sps:$4 sm:$0xff]  }
 0x7b8   : > { %15753 = vmatpush1.bf16.msra.mxu0 %v21686_v23 }
 0x7b9   : > { %15794 = vmatpush1.bf16.msra.mxu1 %v21689_v24  ;;  %15754 = vmatprep.subr.bf16.mxu0 %v21694_v19  ;;  %v21770_v19 = vld [vmem:[%s22422_s27 + $0x6d8] ss:$136 sps:$4 sm:$0xff]  }
 0x7ba   : > { %15795 = vmatprep.subr.bf16.mxu1 %v21697_v20  ;;  %v21773_v20 = vld [vmem:[%s22422_s27 + $0x17d8] ss:$136 sps:$4 sm:$0xff]  }
 0x7bc   : > { %15755 = vmatpush1.bf16.msra.mxu0 %v21692_v59 }
 0x7bd   : > { %15796 = vmatpush1.bf16.msra.mxu1 %v21695_v60  ;;  %15756 = vmatprep.subr.bf16.mxu0 %v21700_v61  ;;  %v21778_v61 = vld [vmem:[%s22422_s27 + $0x5cc] ss:$136 sps:$4 sm:$0xff]  }
 0x7be   : > { %15797 = vmatprep.subr.bf16.mxu1 %v21703_v62  ;;  %v21781_v62 = vld [vmem:[%s22422_s27 + $0x16cc] ss:$136 sps:$4 sm:$0xff]  }
 0x7c0   : > { %15757 = vmatpush1.bf16.msra.mxu0 %v21698_v57 }
 0x7c1   : > { %15798 = vmatpush1.bf16.msra.mxu1 %v21701_v0  ;;  %15758 = vmatprep.subr.bf16.mxu0 %v21706_v30  ;;  %v21776_v30 = vld [vmem:[%s22422_s27 + $0x5c8] ss:$136 sps:$4 sm:$0xff]  }
 0x7c2   : > { %15799 = vmatprep.subr.bf16.mxu1 %v21709_v4  ;;  %v21779_v4 = vld [vmem:[%s22422_s27 + $0x16c8] ss:$136 sps:$4 sm:$0xff]  }
 0x7c4   : > { %15759 = vmatpush1.bf16.msra.mxu0 %v21704_v1 }
 0x7c5   : > { %15800 = vmatpush1.bf16.msra.mxu1 %v21707_v2  ;;  %15760 = vmatprep.subr.bf16.mxu0 %v21712_v33  ;;  %v21784_v33 = vld [vmem:[%s22422_s27 + $0x4bc] ss:$136 sps:$4 sm:$0xff]  }
 0x7c6   : > { %15801 = vmatprep.subr.bf16.mxu1 %v21715_v34  ;;  %v21787_v34 = vld [vmem:[%s22422_s27 + $0x15bc] ss:$136 sps:$4 sm:$0xff]  }
 0x7c8   : > { %15761 = vmatpush1.bf16.msra.mxu0 %v21710_v41  ;;  %v21782_v41 = vld [vmem:[%s22422_s27 + $0x4b8] ss:$136 sps:$4 sm:$0xff]  }
 0x7c9   : > { %15802 = vmatpush1.bf16.msra.mxu1 %v21713_v42  ;;  %15762 = vmatprep.subr.bf16.mxu0 %v21718_v3  ;;  %v21785_v42 = vld [vmem:[%s22422_s27 + $0x15b8] ss:$136 sps:$4 sm:$0xff]   ;;  %v21790_v3 = vld [vmem:[%s22422_s27 + $0x3ac] ss:$136 sps:$4 sm:$0xff]  }
 0x7ca   : > { %15803 = vmatprep.subr.bf16.mxu1 %v21721_v12  ;;  %v21793_v12 = vld [vmem:[%s22422_s27 + $0x14ac] ss:$136 sps:$4 sm:$0xff]  }
 0x7cc   : > { %15763 = vmatpush2.bf16.msra.mxu0 %v21716_v47  ;;  %v21788_v47 = vld [vmem:[%s22422_s27 + $0x3a8] ss:$136 sps:$4 sm:$0xff]  }
 0x7cd   : > { %15804 = vmatpush2.bf16.msra.mxu1 %v21719_v16  ;;  %15764 = vmatprep.subr.bf16.mxu0 %v21724_v13  ;;  %v21791_v16 = vld [vmem:[%s22422_s27 + $0x14a8] ss:$136 sps:$4 sm:$0xff]   ;;  %v21796_v13 = vld [vmem:[%s22422_s27 + $0x29c] ss:$136 sps:$4 sm:$0xff]  }
 0x7ce   : > { %15805 = vmatprep.subr.bf16.mxu1 %v21727_v14  ;;  %v21799_v14 = vld [vmem:[%s22422_s27 + $0x139c] ss:$136 sps:$4 sm:$0xff]  }
 0x7d0   : > { %15765 = vmatpush2.bf16.msra.mxu0 %v21722_v50  ;;  %v21794_v50 = vld [vmem:[%s22422_s27 + $0x298] ss:$136 sps:$4 sm:$0xff]  }
 0x7d1   : > { %15806 = vmatpush2.bf16.msra.mxu1 %v21725_v51  ;;  %15766 = vmatprep.subr.bf16.mxu0 %v21730_v21  ;;  %v21797_v51 = vld [vmem:[%s22422_s27 + $0x1398] ss:$136 sps:$4 sm:$0xff]   ;;  %v21802_v21 = vld [vmem:[%s22422_s27 + $0x18c] ss:$136 sps:$4 sm:$0xff]  }
 0x7d2   : > { %15807 = vmatprep.subr.bf16.mxu1 %v21733_v22  ;;  %v21805_v22 = vld [vmem:[%s22422_s27 + $0x128c] ss:$136 sps:$4 sm:$0xff]  }
 0x7d4   : > { %15767 = vmatpush2.bf16.msra.mxu0 %v21728_v15  ;;  %v21800_v15 = vld [vmem:[%s22422_s27 + $0x188] ss:$136 sps:$4 sm:$0xff]  }
 0x7d5   : > { %15808 = vmatpush2.bf16.msra.mxu1 %v21731_v26  ;;  %15768 = vmatprep.subr.bf16.mxu0 %v21736_v31  ;;  %v21803_v26 = vld [vmem:[%s22422_s27 + $0x1288] ss:$136 sps:$4 sm:$0xff]   ;;  %v21808_v31 = vld [vmem:[%s22422_s27 + $0x7c] ss:$136 sps:$4 sm:$0xff]  }
 0x7d6   : > { %15809 = vmatprep.subr.bf16.mxu1 %v21739_v32  ;;  %v21811_v32 = vld [vmem:[%s22422_s27 + $0x117c] ss:$136 sps:$4 sm:$0xff]  }
 0x7d8   : > { %15769 = vmatpush2.bf16.msra.mxu0 %v21734_v27  ;;  %v21806_v27 = vld [vmem:[%s22422_s27 + $0x78] ss:$136 sps:$4 sm:$0xff]  }
 0x7d9   : > { %15810 = vmatpush2.bf16.msra.mxu1 %v21737_v28  ;;  %15770 = vmatprep.subr.bf16.mxu0 %v21742_v63  ;;  %v21809_v28 = vld [vmem:[%s22422_s27 + $0x1178] ss:$136 sps:$4 sm:$0xff]   ;;  %v21814_v63 = vld [vmem:[%s22422_s27 + $0x106c] ss:$136 sps:$4 sm:$0xff]  }
 0x7da   : > { %15811 = vmatprep.subr.bf16.mxu1 %v21745_v25  ;;  %v21817_v25 = vld [vmem:[%s22422_s27 + $0x216c] ss:$136 sps:$4 sm:$0xff]  }
 0x7dc   : > { %15771 = vmatpush2.bf16.msra.mxu0 %v21740_v35  ;;  %v21812_v35 = vld [vmem:[%s22422_s27 + $0x1068] ss:$136 sps:$4 sm:$0xff]  }
 0x7dd   : > { %15812 = vmatpush2.bf16.msra.mxu1 %v21743_v36  ;;  %15772 = vmatprep.subr.bf16.mxu0 %v21748_v29  ;;  %v21815_v36 = vld [vmem:[%s22422_s27 + $0x2168] ss:$136 sps:$4 sm:$0xff]   ;;  %v21820_v29 = vld [vmem:[%s22422_s27 + $0xf5c] ss:$136 sps:$4 sm:$0xff]  }
 0x7de   : > { %15813 = vmatprep.subr.bf16.mxu1 %v21751_v44  ;;  %v21823_v44 = vld [vmem:[%s22422_s27 + $0x205c] ss:$136 sps:$4 sm:$0xff]  }
 0x7e0   : > { %15773 = vmatpush2.bf16.msra.mxu0 %v21746_v39  ;;  %v21818_v39 = vld [vmem:[%s22422_s27 + $0xf58] ss:$136 sps:$4 sm:$0xff]  }
 0x7e1   : > { %15814 = vmatpush2.bf16.msra.mxu1 %v21749_v40  ;;  %15774 = vmatprep.subr.bf16.mxu0 %v21754_v45  ;;  %v21821_v40 = vld [vmem:[%s22422_s27 + $0x2058] ss:$136 sps:$4 sm:$0xff]   ;;  %v21826_v45 = vld [vmem:[%s22422_s27 + $0xe4c] ss:$136 sps:$4 sm:$0xff]  }
 0x7e2   : > { %15815 = vmatprep.subr.bf16.mxu1 %v21757_v49  ;;  %v21829_v49 = vld [vmem:[%s22422_s27 + $0x1f4c] ss:$136 sps:$4 sm:$0xff]  }
 0x7e4   : > { %15775 = vmatpush2.bf16.msra.mxu0 %v21752_v5  ;;  %v21824_v5 = vld [vmem:[%s22422_s27 + $0xe48] ss:$136 sps:$4 sm:$0xff]  }
 0x7e5   : > { %15816 = vmatpush2.bf16.msra.mxu1 %v21755_v6  ;;  %15776 = vmatprep.subr.bf16.mxu0 %v21760_v9  ;;  %v21827_v6 = vld [vmem:[%s22422_s27 + $0x1f48] ss:$136 sps:$4 sm:$0xff]   ;;  %v21832_v9 = vld [vmem:[%s22422_s27 + $0xd3c] ss:$136 sps:$4 sm:$0xff]  }
 0x7e6   : > { %15817 = vmatprep.subr.bf16.mxu1 %v21763_v10  ;;  %v21835_v10 = vld [vmem:[%s22422_s27 + $0x1e3c] ss:$136 sps:$4 sm:$0xff]  }
 0x7e8   : > { %15777 = vmatpush2.bf16.msra.mxu0 %v21758_v11  ;;  %v21830_v11 = vld [vmem:[%s22422_s27 + $0xd38] ss:$136 sps:$4 sm:$0xff]  }
 0x7e9   : > { %15818 = vmatpush2.bf16.msra.mxu1 %v21761_v43  ;;  %15828 = vmatprep.subr.bf16.mxu0 %v21766_v53  ;;  %v21833_v43 = vld [vmem:[%s22422_s27 + $0x1e38] ss:$136 sps:$4 sm:$0xff]   ;;  %v21838_v53 = vld [vmem:[%s22422_s27 + $0xc2c] ss:$136 sps:$4 sm:$0xff]  }
 0x7ea   : > { %15869 = vmatprep.subr.bf16.mxu1 %v21769_v54  ;;  %v21841_v54 = vld [vmem:[%s22422_s27 + $0x1d2c] ss:$136 sps:$4 sm:$0xff]  }
 0x7eb   : > { %v24669_v23 = vpop.f32.mrf.mxu0  ;;  %15779 = vmatmul.mubr.bf16.vlgmr.msra.gmra.mxu0 %v22599_v17 }
 0x7ec   : > { %v24671_v24 = vpop.f32.mrf.mxu1  ;;  %15820 = vmatmul.mubr.bf16.vlgmr.msra.gmra.mxu1 %v22603_v18  ;;  %15829 = vmatpush1.bf16.msra.mxu0 %v21764_v46  ;;  %v21836_v46 = vld [vmem:[%s22422_s27 + $0xc28] ss:$136 sps:$4 sm:$0xff]  }
 0x7ed   : > { %15870 = vmatpush1.bf16.msra.mxu1 %v21767_v58  ;;  %v24677_v59 = vpop.f32.mrf.mxu0  ;;  %15830 = vmatprep.subr.bf16.mxu0 %v21772_v55  ;;  %v21839_v58 = vld [vmem:[%s22422_s27 + $0x1d28] ss:$136 sps:$4 sm:$0xff]   ;;  %v21844_v55 = vld [vmem:[%s22422_s27 + $0xb1c] ss:$136 sps:$4 sm:$0xff]  }
 0x7ee   : > { %v24679_v60 = vpop.f32.mrf.mxu1  ;;  %15871 = vmatprep.subr.bf16.mxu1 %v21775_v56  ;;  %15860 = vmatprep.mubr.bf16.mxu0 %v22484_v48  ;;  %v21847_v56 = vld [vmem:[%s22422_s27 + $0x1c1c] ss:$136 sps:$4 sm:$0xff]  }
 0x7ef   : > { %15901 = vmatprep.mubr.bf16.mxu1 %v22489_v52  ;;  %v15538_v57 = vpop.f32.mrf.mxu0 }
 0x7f0   : > { %v15579_v0 = vpop.f32.mrf.mxu1  ;;  %15831 = vmatpush1.bf16.msra.mxu0 %v21770_v19  ;;  %v21842_v19 = vld [vmem:[%s22422_s27 + $0xb18] ss:$136 sps:$4 sm:$0xff]   ;;  %v21848_v57 = vld [vmem:[%s22422_s27 + $0xa08] ss:$136 sps:$4 sm:$0xff]  }
 0x7f1   : > { %15872 = vmatpush1.bf16.msra.mxu1 %v21773_v20  ;;  %v15539_v1 = vpop.f32.mrf.mxu0  ;;  %15832 = vmatprep.subr.bf16.mxu0 %v21778_v61  ;;  %v21845_v20 = vld [vmem:[%s22422_s27 + $0x1c18] ss:$136 sps:$4 sm:$0xff]   ;;  %v21850_v61 = vld [vmem:[%s22422_s27 + $0xa0c] ss:$136 sps:$4 sm:$0xff]   ;;  %v21851_v0 = vld [vmem:[%s22422_s27 + $0x1b08] ss:$136 sps:$4 sm:$0xff]  }
 0x7f2   : > { %v15580_v2 = vpop.f32.mrf.mxu1  ;;  %15873 = vmatprep.subr.bf16.mxu1 %v21781_v62  ;;  %v21853_v62 = vld [vmem:[%s22422_s27 + $0x1b0c] ss:$136 sps:$4 sm:$0xff]   ;;  %v21854_v1 = vld [vmem:[%s22422_s27 + $0x8f8] ss:$136 sps:$4 sm:$0xff]  }
 0x7f3   : > { %v21857_v2 = vld [vmem:[%s22422_s27 + $0x19f8] ss:$136 sps:$4 sm:$0xff]  }
 0x7f4   : > { %15833 = vmatpush1.bf16.msra.mxu0 %v21776_v30  ;;  %v21856_v30 = vld [vmem:[%s22422_s27 + $0x8fc] ss:$136 sps:$4 sm:$0xff]  }
 0x7f5   : > { %15874 = vmatpush1.bf16.msra.mxu1 %v21779_v4  ;;  %15834 = vmatprep.subr.bf16.mxu0 %v21784_v33  ;;  %v21859_v4 = vld [vmem:[%s22422_s27 + $0x19fc] ss:$136 sps:$4 sm:$0xff]   ;;  %v21862_v33 = vld [vmem:[%s22422_s27 + $0x29ec] ss:$136 sps:$4 sm:$0xff]  }
 0x7f6   : > { %15875 = vmatprep.subr.bf16.mxu1 %v21787_v34  ;;  %v21865_v34 = vld [vmem:[%s22422_s27 + $0x3aec] ss:$136 sps:$4 sm:$0xff]  }
 0x7f8   : > { %15835 = vmatpush1.bf16.msra.mxu0 %v21782_v41  ;;  %v21860_v41 = vld [vmem:[%s22422_s27 + $0x29e8] ss:$136 sps:$4 sm:$0xff]  }
 0x7f9   : > { %15876 = vmatpush1.bf16.msra.mxu1 %v21785_v42  ;;  %15836 = vmatprep.subr.bf16.mxu0 %v21790_v3  ;;  %v21863_v42 = vld [vmem:[%s22422_s27 + $0x3ae8] ss:$136 sps:$4 sm:$0xff]   ;;  %v21868_v3 = vld [vmem:[%s22422_s27 + $0x28dc] ss:$136 sps:$4 sm:$0xff]  }
 0x7fa   : > { %15877 = vmatprep.subr.bf16.mxu1 %v21793_v12  ;;  %v21871_v12 = vld [vmem:[%s22422_s27 + $0x39dc] ss:$136 sps:$4 sm:$0xff]  }
 0x7fc   : > { %15837 = vmatpush1.bf16.msra.mxu0 %v21788_v47  ;;  %v15576_v47 = vadd.f32 %v24671_v24, %v24669_v23  ;;  %v21874_v23 = vld [vmem:[%s22422_s27 + $0x27cc] ss:$136 sps:$4 sm:$0xff]  }
 0x7fd   : > { %15878 = vmatpush1.bf16.msra.mxu1 %v21791_v16  ;;  %15838 = vmatprep.subr.bf16.mxu0 %v21796_v13  ;;  %v21877_v24 = vld [vmem:[%s22422_s27 + $0x38cc] ss:$136 sps:$4 sm:$0xff]  }
 0x7fe   : > { %15879 = vmatprep.subr.bf16.mxu1 %v21799_v14  ;;  %v15578_v14 = vadd.f32 %v24679_v60, %v24677_v59  ;;  %v277_v59 = vld [vmem:[#allocation2 + $0xe0] sm:$0xff] }
 0x800   : > { %15839 = vmatpush1.bf16.msra.mxu0 %v21794_v50 }
 0x801   : > { %15880 = vmatpush1.bf16.msra.mxu1 %v21797_v51  ;;  %15840 = vmatprep.subr.bf16.mxu0 %v21802_v21  ;;  %v21866_v51 = vld [vmem:[%s22422_s27 + $0x28d8] ss:$136 sps:$4 sm:$0xff]  }
 0x802   : > { %15881 = vmatprep.subr.bf16.mxu1 %v21805_v22  ;;  %v21869_v21 = vld [vmem:[%s22422_s27 + $0x39d8] ss:$136 sps:$4 sm:$0xff]   ;;  %v276_v22 = vld [vmem:[#allocation2 + $0x20] sm:$0xff] }
 0x804   : > { %15841 = vmatpush1.bf16.msra.mxu0 %v21800_v15 }
 0x805   : > { %15882 = vmatpush1.bf16.msra.mxu1 %v21803_v26  ;;  %15842 = vmatprep.subr.bf16.mxu0 %v21808_v31 }
 0x806   : > { %15883 = vmatprep.subr.bf16.mxu1 %v21811_v32 }
 0x808   : > { %15843 = vmatpush1.bf16.msra.mxu0 %v21806_v27 }
 0x809   : > { %15884 = vmatpush1.bf16.msra.mxu1 %v21809_v28  ;;  %15844 = vmatprep.subr.bf16.mxu0 %v21814_v63 }
 0x80a   : > { %15885 = vmatprep.subr.bf16.mxu1 %v21817_v25  ;;  %v21872_v25 = vld [vmem:[%s22422_s27 + $0x27c8] ss:$136 sps:$4 sm:$0xff]  }
 0x80c   : > { %15845 = vmatpush2.bf16.msra.mxu0 %v21812_v35  ;;  %v21875_v35 = vld [vmem:[%s22422_s27 + $0x38c8] ss:$136 sps:$4 sm:$0xff]  }
 0x80d   : > { %15886 = vmatpush2.bf16.msra.mxu1 %v21815_v36  ;;  %15846 = vmatprep.subr.bf16.mxu0 %v21820_v29 }
 0x80e   : > { %15887 = vmatprep.subr.bf16.mxu1 %v21823_v44  ;;  %v21880_v44 = vld [vmem:[%s22422_s27 + $0x26bc] ss:$136 sps:$4 sm:$0xff]  }
 0x810   : > { %15847 = vmatpush2.bf16.msra.mxu0 %v21818_v39  ;;  %v21883_v39 = vld [vmem:[%s22422_s27 + $0x37bc] ss:$136 sps:$4 sm:$0xff]  }
 0x811   : > { %15888 = vmatpush2.bf16.msra.mxu1 %v21821_v40  ;;  %15848 = vmatprep.subr.bf16.mxu0 %v21826_v45  ;;  %v21878_v45 = vld [vmem:[%s22422_s27 + $0x26b8] ss:$136 sps:$4 sm:$0xff]  }
 0x812   : > { %15889 = vmatprep.subr.bf16.mxu1 %v21829_v49  ;;  %v21881_v49 = vld [vmem:[%s22422_s27 + $0x37b8] ss:$136 sps:$4 sm:$0xff]  }
 0x814   : > { %15849 = vmatpush2.bf16.msra.mxu0 %v21824_v5  ;;  %v21886_v5 = vld [vmem:[%s22422_s27 + $0x25ac] ss:$136 sps:$4 sm:$0xff]  }
 0x815   : > { %15890 = vmatpush2.bf16.msra.mxu1 %v21827_v6  ;;  %15850 = vmatprep.subr.bf16.mxu0 %v21832_v9  ;;  %v21889_v6 = vld [vmem:[%s22422_s27 + $0x36ac] ss:$136 sps:$4 sm:$0xff]   ;;  %v21884_v9 = vld [vmem:[%s22422_s27 + $0x25a8] ss:$136 sps:$4 sm:$0xff]  }
 0x816   : > { %15891 = vmatprep.subr.bf16.mxu1 %v21835_v10  ;;  %v21887_v10 = vld [vmem:[%s22422_s27 + $0x36a8] ss:$136 sps:$4 sm:$0xff]  }
 0x818   : > { %15851 = vmatpush2.bf16.msra.mxu0 %v21830_v11  ;;  %v21892_v11 = vld [vmem:[%s22422_s27 + $0x249c] ss:$136 sps:$4 sm:$0xff]  }
 0x819   : > { %15892 = vmatpush2.bf16.msra.mxu1 %v21833_v43  ;;  %15852 = vmatprep.subr.bf16.mxu0 %v21838_v53  ;;  %v21895_v43 = vld [vmem:[%s22422_s27 + $0x359c] ss:$136 sps:$4 sm:$0xff]   ;;  %v21890_v53 = vld [vmem:[%s22422_s27 + $0x2498] ss:$136 sps:$4 sm:$0xff]  }
 0x81a   : > { %15893 = vmatprep.subr.bf16.mxu1 %v21841_v54  ;;  %v21893_v54 = vld [vmem:[%s22422_s27 + $0x3598] ss:$136 sps:$4 sm:$0xff]  }
 0x81c   : > { %15853 = vmatpush2.bf16.msra.mxu0 %v21836_v46  ;;  %v21898_v46 = vld [vmem:[%s22422_s27 + $0x238c] ss:$136 sps:$4 sm:$0xff]  }
 0x81d   : > { %15894 = vmatpush2.bf16.msra.mxu1 %v21839_v58  ;;  %15854 = vmatprep.subr.bf16.mxu0 %v21844_v55  ;;  %v21901_v58 = vld [vmem:[%s22422_s27 + $0x348c] ss:$136 sps:$4 sm:$0xff]   ;;  %v21896_v55 = vld [vmem:[%s22422_s27 + $0x2388] ss:$136 sps:$4 sm:$0xff]  }
 0x81e   : > { %15895 = vmatprep.subr.bf16.mxu1 %v21847_v56  ;;  %v21899_v56 = vld [vmem:[%s22422_s27 + $0x3488] ss:$136 sps:$4 sm:$0xff]  }
 0x820   : > { %15855 = vmatpush2.bf16.msra.mxu0 %v21842_v19  ;;  %v21904_v19 = vld [vmem:[%s22422_s27 + $0x227c] ss:$136 sps:$4 sm:$0xff]  }
 0x821   : > { %15896 = vmatpush2.bf16.msra.mxu1 %v21845_v20  ;;  %15856 = vmatprep.subr.bf16.mxu0 %v21850_v61  ;;  %v21907_v20 = vld [vmem:[%s22422_s27 + $0x337c] ss:$136 sps:$4 sm:$0xff]   ;;  %v21902_v61 = vld [vmem:[%s22422_s27 + $0x2278] ss:$136 sps:$4 sm:$0xff]  }
 0x822   : > { %15897 = vmatprep.subr.bf16.mxu1 %v21853_v62  ;;  %v21905_v62 = vld [vmem:[%s22422_s27 + $0x3378] ss:$136 sps:$4 sm:$0xff]  }
 0x824   : > { %15857 = vmatpush2.bf16.msra.mxu0 %v21848_v57  ;;  %v21910_v57 = vld [vmem:[%s22422_s27 + $0x326c] ss:$136 sps:$4 sm:$0xff]  }
 0x825   : > { %15898 = vmatpush2.bf16.msra.mxu1 %v21851_v0  ;;  %15858 = vmatprep.subr.bf16.mxu0 %v21856_v30  ;;  %v21913_v0 = vld [vmem:[%s22422_s27 + $0x436c] ss:$136 sps:$4 sm:$0xff]   ;;  %v21908_v30 = vld [vmem:[%s22422_s27 + $0x3268] ss:$136 sps:$4 sm:$0xff]  }
 0x826   : > { %15899 = vmatprep.subr.bf16.mxu1 %v21859_v4  ;;  %v21911_v4 = vld [vmem:[%s22422_s27 + $0x4368] ss:$136 sps:$4 sm:$0xff]  }
 0x828   : > { %15859 = vmatpush2.bf16.msra.mxu0 %v21854_v1  ;;  %v21916_v1 = vld [vmem:[%s22422_s27 + $0x315c] ss:$136 sps:$4 sm:$0xff]  }
 0x829   : > { %15900 = vmatpush2.bf16.msra.mxu1 %v21857_v2  ;;  %15910 = vmatprep.subr.bf16.mxu0 %v21862_v33  ;;  %v21919_v2 = vld [vmem:[%s22422_s27 + $0x425c] ss:$136 sps:$4 sm:$0xff]   ;;  %v21914_v33 = vld [vmem:[%s22422_s27 + $0x3158] ss:$136 sps:$4 sm:$0xff]  }
 0x82a   : > { %15951 = vmatprep.subr.bf16.mxu1 %v21865_v34  ;;  %v21917_v34 = vld [vmem:[%s22422_s27 + $0x4258] ss:$136 sps:$4 sm:$0xff]  }
 0x82b   : > { %v15616_v16 = vpop.f32.mrf.mxu0  ;;  %15861 = vmatmul.mubr.bf16.vlgmr.msra.gmra.mxu0 %v22511_v7 }
 0x82c   : > { %v15657_v13 = vpop.f32.mrf.mxu1  ;;  %15902 = vmatmul.mubr.bf16.vlgmr.msra.gmra.mxu1 %v22513_v8  ;;  %v15617_v50 = vadd.f32 %v15616_v16, %v15576_v47  ;;  %15911 = vmatpush1.bf16.msra.mxu0 %v21860_v41  ;;  %v21922_v41 = vld [vmem:[%s22422_s27 + $0x304c] ss:$136 sps:$4 sm:$0xff]   ;;  %v21928_v47 = vld [vmem:[%s22422_s27 + $0x2f3c] ss:$136 sps:$4 sm:$0xff]  }
 0x82d   : > { %15952 = vmatpush1.bf16.msra.mxu1 %v21863_v42  ;;  %v15618_v15 = vpop.f32.mrf.mxu0  ;;  %15912 = vmatprep.subr.bf16.mxu0 %v21868_v3  ;;  %v21925_v42 = vld [vmem:[%s22422_s27 + $0x414c] ss:$136 sps:$4 sm:$0xff]   ;;  %v21920_v3 = vld [vmem:[%s22422_s27 + $0x3048] ss:$136 sps:$4 sm:$0xff]   ;;  %v21931_v16 = vld [vmem:[%s22422_s27 + $0x403c] ss:$136 sps:$4 sm:$0xff]  }
 0x82e   : > { %v15659_v26 = vpop.f32.mrf.mxu1  ;;  %15953 = vmatprep.subr.bf16.mxu1 %v21871_v12  ;;  %v15658_v31 = vadd.f32 %v15657_v13, %v15617_v50  ;;  %v15619_v32 = vadd.f32 %v15618_v15, %v15578_v14  ;;  %15942 = vmatprep.mubr.bf16.mxu0 %v22551_v37  ;;  %v21923_v12 = vld [vmem:[%s22422_s27 + $0x4148] ss:$136 sps:$4 sm:$0xff]   ;;  %v21926_v13 = vld [vmem:[%s22422_s27 + $0x2f38] ss:$136 sps:$4 sm:$0xff]   ;;  %v21934_v50 = vld [vmem:[%s22422_s27 + $0x2e2c] ss:$136 sps:$4 sm:$0xff]  }
 0x82f   : > { %15983 = vmatprep.mubr.bf16.mxu1 %v22555_v38  ;;  %v15620_v60 = vpop.f32.mrf.mxu0  ;;  %v21929_v14 = vld [vmem:[%s22422_s27 + $0x4038] ss:$136 sps:$4 sm:$0xff]   ;;  %v21940_v15 = vld [vmem:[%s22422_s27 + $0x2d1c] ss:$136 sps:$4 sm:$0xff]  }
 0x830   : > { %v15661_v27 = vpop.f32.mrf.mxu1  ;;  %v16182_v28 = vadd.f32 %v15658_v31, %v276_v22  ;;  %v15660_v63 = vadd.f32 %v15659_v26, %v15619_v32  ;;  %15913 = vmatpush1.bf16.msra.mxu0 %v21866_v51  ;;  %v21937_v51 = vld [vmem:[%s22422_s27 + $0x3f2c] ss:$136 sps:$4 sm:$0xff]   ;;  %v21935_v22 = vld [vmem:[%s22422_s27 + $0x3f28] ss:$136 sps:$4 sm:$0xff]   ;;  %v21943_v26 = vld [vmem:[%s22422_s27 + $0x3e1c] ss:$136 sps:$4 sm:$0xff]  }
 0x831   : > { %15954 = vmatpush1.bf16.msra.mxu1 %v21869_v21  ;;  %v15621_v36 = vpop.f32.mrf.mxu0  ;;  %15914 = vmatprep.subr.bf16.mxu0 %v21874_v23  ;;  %v21932_v21 = vld [vmem:[%s22422_s27 + $0x2e28] ss:$136 sps:$4 sm:$0xff]   ;;  %v21938_v23 = vld [vmem:[%s22422_s27 + $0x2d18] ss:$136 sps:$4 sm:$0xff]   ;;  %v21946_v31 = vld [vmem:[%s22422_s27 + $0x2c0c] ss:$136 sps:$4 sm:$0xff]  }
 0x832   : > { %v15662_v29 = vpop.f32.mrf.mxu1  ;;  %15955 = vmatprep.subr.bf16.mxu1 %v21877_v24  ;;  %16216 = vst [vmem:[#allocation2 + $0x20] sm:$0xff] %v16182_v28  ;;  %v16183_v40 = vadd.f32 %v15660_v63, %v277_v59  ;;  %v21941_v24 = vld [vmem:[%s22422_s27 + $0x3e18] ss:$136 sps:$4 sm:$0xff]   ;;  %v21949_v32 = vld [vmem:[%s22422_s27 + $0x3d0c] ss:$136 sps:$4 sm:$0xff]  }
 0x833   : > { %v21944_v59 = vld [vmem:[%s22422_s27 + $0x2c08] ss:$136 sps:$4 sm:$0xff]   ;;  %v21952_v27 = vld [vmem:[%s22422_s27 + $0x2afc] ss:$136 sps:$4 sm:$0xff]   ;;  %v21950_v63 = vld [vmem:[%s22422_s27 + $0x2af8] ss:$136 sps:$4 sm:$0xff]  }
 0x834   : > { %16217 = vst [vmem:[#allocation2 + $0xe0] sm:$0xff] %v16183_v40  ;;  %15915 = vmatpush1.bf16.msra.mxu0 %v21872_v25  ;;  %v21947_v60 = vld [vmem:[%s22422_s27 + $0x3d08] ss:$136 sps:$4 sm:$0xff]   ;;  %v21955_v28 = vld [vmem:[%s22422_s27 + $0x3bfc] ss:$136 sps:$4 sm:$0xff]  }
 0x835   : > { %15956 = vmatpush1.bf16.msra.mxu1 %v21875_v35  ;;  %15916 = vmatprep.subr.bf16.mxu0 %v21880_v44  ;;  %v21953_v25 = vld [vmem:[%s22422_s27 + $0x3bf8] ss:$136 sps:$4 sm:$0xff]   ;;  %v21958_v35 = vld [vmem:[%s22422_s27 + $0x7f4] ss:$136 sps:$4 sm:$0xff]   ;;  %v21967_v40 = vld [vmem:[%s22422_s27 + $0x17e4] ss:$136 sps:$4 sm:$0xff]  }
 0x836   : > { %15957 = vmatprep.subr.bf16.mxu1 %v21883_v39  ;;  %v21961_v36 = vld [vmem:[%s22422_s27 + $0x18f4] ss:$136 sps:$4 sm:$0xff]   ;;  %v21956_v29 = vld [vmem:[%s22422_s27 + $0x7f0] ss:$136 sps:$4 sm:$0xff]   ;;  %v21964_v39 = vld [vmem:[%s22422_s27 + $0x6e4] ss:$136 sps:$4 sm:$0xff]  }
 0x837   : > { %v21959_v44 = vld [vmem:[%s22422_s27 + $0x18f0] ss:$136 sps:$4 sm:$0xff]  }
 0x838   : > { %15917 = vmatpush1.bf16.msra.mxu0 %v21878_v45 }
 0x839   : > { %15958 = vmatpush1.bf16.msra.mxu1 %v21881_v49  ;;  %15918 = vmatprep.subr.bf16.mxu0 %v21886_v5  ;;  %v21962_v5 = vld [vmem:[%s22422_s27 + $0x6e0] ss:$136 sps:$4 sm:$0xff]  }
 0x83a   : > { %15959 = vmatprep.subr.bf16.mxu1 %v21889_v6  ;;  %v21965_v6 = vld [vmem:[%s22422_s27 + $0x17e0] ss:$136 sps:$4 sm:$0xff]  }
 0x83c   : > { %15919 = vmatpush1.bf16.msra.mxu0 %v21884_v9 }
 0x83d   : > { %15960 = vmatpush1.bf16.msra.mxu1 %v21887_v10  ;;  %15920 = vmatprep.subr.bf16.mxu0 %v21892_v11  ;;  %v21970_v11 = vld [vmem:[%s22422_s27 + $0x5d4] ss:$136 sps:$4 sm:$0xff]  }
 0x83e   : > { %15961 = vmatprep.subr.bf16.mxu1 %v21895_v43  ;;  %v21973_v43 = vld [vmem:[%s22422_s27 + $0x16d4] ss:$136 sps:$4 sm:$0xff]  }
 0x840   : > { %15921 = vmatpush1.bf16.msra.mxu0 %v21890_v53 }
 0x841   : > { %15962 = vmatpush1.bf16.msra.mxu1 %v21893_v54  ;;  %15922 = vmatprep.subr.bf16.mxu0 %v21898_v46  ;;  %v21968_v46 = vld [vmem:[%s22422_s27 + $0x5d0] ss:$136 sps:$4 sm:$0xff]  }
 0x842   : > { %15963 = vmatprep.subr.bf16.mxu1 %v21901_v58  ;;  %v21971_v58 = vld [vmem:[%s22422_s27 + $0x16d0] ss:$136 sps:$4 sm:$0xff]  }
 0x844   : > { %15923 = vmatpush1.bf16.msra.mxu0 %v21896_v55 }
 0x845   : > { %15964 = vmatpush1.bf16.msra.mxu1 %v21899_v56  ;;  %15924 = vmatprep.subr.bf16.mxu0 %v21904_v19  ;;  %v21976_v19 = vld [vmem:[%s22422_s27 + $0x4c4] ss:$136 sps:$4 sm:$0xff]  }
 0x846   : > { %15965 = vmatprep.subr.bf16.mxu1 %v21907_v20  ;;  %v21977_v20 = vld [vmem:[%s22422_s27 + $0x15c0] ss:$136 sps:$4 sm:$0xff]  }
 0x848   : > { %15925 = vmatpush1.bf16.msra.mxu0 %v21902_v61  ;;  %v21982_v61 = vld [vmem:[%s22422_s27 + $0x3b4] ss:$136 sps:$4 sm:$0xff]  }
 0x849   : > { %15966 = vmatpush1.bf16.msra.mxu1 %v21905_v62  ;;  %15926 = vmatprep.subr.bf16.mxu0 %v21910_v57  ;;  %v21985_v62 = vld [vmem:[%s22422_s27 + $0x14b4] ss:$136 sps:$4 sm:$0xff]   ;;  %v21980_v57 = vld [vmem:[%s22422_s27 + $0x3b0] ss:$136 sps:$4 sm:$0xff]  }
 0x84a   : > { %15967 = vmatprep.subr.bf16.mxu1 %v21913_v0  ;;  %v21983_v0 = vld [vmem:[%s22422_s27 + $0x14b0] ss:$136 sps:$4 sm:$0xff]  }
 0x84c   : > { %15927 = vmatpush2.bf16.msra.mxu0 %v21908_v30  ;;  %v21988_v30 = vld [vmem:[%s22422_s27 + $0x2a4] ss:$136 sps:$4 sm:$0xff]  }
 0x84d   : > { %15968 = vmatpush2.bf16.msra.mxu1 %v21911_v4  ;;  %15928 = vmatprep.subr.bf16.mxu0 %v21916_v1  ;;  %v21991_v4 = vld [vmem:[%s22422_s27 + $0x13a4] ss:$136 sps:$4 sm:$0xff]   ;;  %v21986_v1 = vld [vmem:[%s22422_s27 + $0x2a0] ss:$136 sps:$4 sm:$0xff]  }
 0x84e   : > { %15969 = vmatprep.subr.bf16.mxu1 %v21919_v2  ;;  %v21989_v2 = vld [vmem:[%s22422_s27 + $0x13a0] ss:$136 sps:$4 sm:$0xff]  }
 0x850   : > { %15929 = vmatpush2.bf16.msra.mxu0 %v21914_v33  ;;  %v21994_v33 = vld [vmem:[%s22422_s27 + $0x194] ss:$136 sps:$4 sm:$0xff]  }
 0x851   : > { %15970 = vmatpush2.bf16.msra.mxu1 %v21917_v34  ;;  %15930 = vmatprep.subr.bf16.mxu0 %v21922_v41  ;;  %v21997_v34 = vld [vmem:[%s22422_s27 + $0x1294] ss:$136 sps:$4 sm:$0xff]   ;;  %v21992_v41 = vld [vmem:[%s22422_s27 + $0x190] ss:$136 sps:$4 sm:$0xff]  }
 0x852   : > { %15971 = vmatprep.subr.bf16.mxu1 %v21925_v42  ;;  %v21995_v42 = vld [vmem:[%s22422_s27 + $0x1290] ss:$136 sps:$4 sm:$0xff]  }
 0x854   : > { %15931 = vmatpush2.bf16.msra.mxu0 %v21920_v3  ;;  %v22000_v3 = vld [vmem:[%s22422_s27 + $0x84] ss:$136 sps:$4 sm:$0xff]  }
 0x855   : > { %15972 = vmatpush2.bf16.msra.mxu1 %v21923_v12  ;;  %15932 = vmatprep.subr.bf16.mxu0 %v21928_v47  ;;  %v22003_v12 = vld [vmem:[%s22422_s27 + $0x1184] ss:$136 sps:$4 sm:$0xff]   ;;  %v21998_v47 = vld [vmem:[%s22422_s27 + $0x80] ss:$136 sps:$4 sm:$0xff]  }
 0x856   : > { %15973 = vmatprep.subr.bf16.mxu1 %v21931_v16  ;;  %v22001_v16 = vld [vmem:[%s22422_s27 + $0x1180] ss:$136 sps:$4 sm:$0xff]  }
 0x858   : > { %15933 = vmatpush2.bf16.msra.mxu0 %v21926_v13  ;;  %v22006_v13 = vld [vmem:[%s22422_s27 + $0x1074] ss:$136 sps:$4 sm:$0xff]  }
 0x859   : > { %15974 = vmatpush2.bf16.msra.mxu1 %v21929_v14  ;;  %15934 = vmatprep.subr.bf16.mxu0 %v21934_v50  ;;  %v22009_v14 = vld [vmem:[%s22422_s27 + $0x2174] ss:$136 sps:$4 sm:$0xff]   ;;  %v22004_v50 = vld [vmem:[%s22422_s27 + $0x1070] ss:$136 sps:$4 sm:$0xff]  }
 0x85a   : > { %15975 = vmatprep.subr.bf16.mxu1 %v21937_v51  ;;  %v22007_v51 = vld [vmem:[%s22422_s27 + $0x2170] ss:$136 sps:$4 sm:$0xff]  }
 0x85c   : > { %15935 = vmatpush2.bf16.msra.mxu0 %v21932_v21  ;;  %v22012_v21 = vld [vmem:[%s22422_s27 + $0xf64] ss:$136 sps:$4 sm:$0xff]  }
 0x85d   : > { %15976 = vmatpush2.bf16.msra.mxu1 %v21935_v22  ;;  %15936 = vmatprep.subr.bf16.mxu0 %v21940_v15  ;;  %v22015_v22 = vld [vmem:[%s22422_s27 + $0x2064] ss:$136 sps:$4 sm:$0xff]   ;;  %v22010_v15 = vld [vmem:[%s22422_s27 + $0xf60] ss:$136 sps:$4 sm:$0xff]  }
 0x85e   : > { %15977 = vmatprep.subr.bf16.mxu1 %v21943_v26  ;;  %v22013_v26 = vld [vmem:[%s22422_s27 + $0x2060] ss:$136 sps:$4 sm:$0xff]  }
 0x860   : > { %15937 = vmatpush2.bf16.msra.mxu0 %v21938_v23  ;;  %v22018_v23 = vld [vmem:[%s22422_s27 + $0xe54] ss:$136 sps:$4 sm:$0xff]  }
 0x861   : > { %15978 = vmatpush2.bf16.msra.mxu1 %v21941_v24  ;;  %15938 = vmatprep.subr.bf16.mxu0 %v21946_v31  ;;  %v22021_v24 = vld [vmem:[%s22422_s27 + $0x1f54] ss:$136 sps:$4 sm:$0xff]   ;;  %v22016_v31 = vld [vmem:[%s22422_s27 + $0xe50] ss:$136 sps:$4 sm:$0xff]  }
 0x862   : > { %15979 = vmatprep.subr.bf16.mxu1 %v21949_v32  ;;  %v22019_v32 = vld [vmem:[%s22422_s27 + $0x1f50] ss:$136 sps:$4 sm:$0xff]  }
 0x864   : > { %15939 = vmatpush2.bf16.msra.mxu0 %v21944_v59  ;;  %v22024_v59 = vld [vmem:[%s22422_s27 + $0xd44] ss:$136 sps:$4 sm:$0xff]  }
 0x865   : > { %15980 = vmatpush2.bf16.msra.mxu1 %v21947_v60  ;;  %15940 = vmatprep.subr.bf16.mxu0 %v21952_v27  ;;  %v22027_v60 = vld [vmem:[%s22422_s27 + $0x1e44] ss:$136 sps:$4 sm:$0xff]   ;;  %v22022_v27 = vld [vmem:[%s22422_s27 + $0xd40] ss:$136 sps:$4 sm:$0xff]  }
 0x866   : > { %15981 = vmatprep.subr.bf16.mxu1 %v21955_v28  ;;  %v22025_v28 = vld [vmem:[%s22422_s27 + $0x1e40] ss:$136 sps:$4 sm:$0xff]  }
 0x868   : > { %15941 = vmatpush2.bf16.msra.mxu0 %v21950_v63  ;;  %v22030_v63 = vld [vmem:[%s22422_s27 + $0xc34] ss:$136 sps:$4 sm:$0xff]  }
 0x869   : > { %15982 = vmatpush2.bf16.msra.mxu1 %v21953_v25  ;;  %15992 = vmatprep.subr.bf16.mxu0 %v21958_v35  ;;  %v22033_v25 = vld [vmem:[%s22422_s27 + $0x1d34] ss:$136 sps:$4 sm:$0xff]   ;;  %v22028_v35 = vld [vmem:[%s22422_s27 + $0xc30] ss:$136 sps:$4 sm:$0xff]  }
 0x86a   : > { %16033 = vmatprep.subr.bf16.mxu1 %v21961_v36  ;;  %v22031_v36 = vld [vmem:[%s22422_s27 + $0x1d30] ss:$136 sps:$4 sm:$0xff]  }
 0x86b   : > { %v24817_v45 = vpop.f32.mrf.mxu0  ;;  %15943 = vmatmul.mubr.bf16.vlgmr.msra.gmra.mxu0 %v22599_v17 }
 0x86c   : > { %v24819_v49 = vpop.f32.mrf.mxu1  ;;  %15984 = vmatmul.mubr.bf16.vlgmr.msra.gmra.mxu1 %v22603_v18  ;;  %15993 = vmatpush1.bf16.msra.mxu0 %v21956_v29  ;;  %v22036_v29 = vld [vmem:[%s22422_s27 + $0xb24] ss:$136 sps:$4 sm:$0xff]  }
 0x86d   : > { %16034 = vmatpush1.bf16.msra.mxu1 %v21959_v44  ;;  %v24825_v9 = vpop.f32.mrf.mxu0  ;;  %15994 = vmatprep.subr.bf16.mxu0 %v21964_v39  ;;  %v22039_v44 = vld [vmem:[%s22422_s27 + $0x1c24] ss:$136 sps:$4 sm:$0xff]   ;;  %v22034_v39 = vld [vmem:[%s22422_s27 + $0xb20] ss:$136 sps:$4 sm:$0xff]  }
 0x86e   : > { %v24827_v10 = vpop.f32.mrf.mxu1  ;;  %16035 = vmatprep.subr.bf16.mxu1 %v21967_v40  ;;  %16024 = vmatprep.mubr.bf16.mxu0 %v22484_v48  ;;  %v21979_v48 = vld [vmem:[%s22422_s27 + $0x15c4] ss:$136 sps:$4 sm:$0xff]   ;;  %v22037_v40 = vld [vmem:[%s22422_s27 + $0x1c20] ss:$136 sps:$4 sm:$0xff]  }
 0x86f   : > { %16065 = vmatprep.mubr.bf16.mxu1 %v22489_v52  ;;  %v15702_v53 = vpop.f32.mrf.mxu0  ;;  %v21974_v52 = vld [vmem:[%s22422_s27 + $0x4c0] ss:$136 sps:$4 sm:$0xff]  }
 0x870   : > { %v15743_v54 = vpop.f32.mrf.mxu1  ;;  %15995 = vmatpush1.bf16.msra.mxu0 %v21962_v5  ;;  %v22042_v5 = vld [vmem:[%s22422_s27 + $0xa14] ss:$136 sps:$4 sm:$0xff]   ;;  %v22048_v53 = vld [vmem:[%s22422_s27 + $0x904] ss:$136 sps:$4 sm:$0xff]  }
 0x871   : > { %16036 = vmatpush1.bf16.msra.mxu1 %v21965_v6  ;;  %v15703_v55 = vpop.f32.mrf.mxu0  ;;  %15996 = vmatprep.subr.bf16.mxu0 %v21970_v11  ;;  %v22045_v6 = vld [vmem:[%s22422_s27 + $0x1b14] ss:$136 sps:$4 sm:$0xff]   ;;  %v22040_v11 = vld [vmem:[%s22422_s27 + $0xa10] ss:$136 sps:$4 sm:$0xff]   ;;  %v22051_v54 = vld [vmem:[%s22422_s27 + $0x1a04] ss:$136 sps:$4 sm:$0xff]  }
 0x872   : > { %v15744_v56 = vpop.f32.mrf.mxu1  ;;  %16037 = vmatprep.subr.bf16.mxu1 %v21973_v43  ;;  %v22043_v43 = vld [vmem:[%s22422_s27 + $0x1b10] ss:$136 sps:$4 sm:$0xff]   ;;  %v22054_v55 = vld [vmem:[%s22422_s27 + $0x29f4] ss:$136 sps:$4 sm:$0xff]  }
 0x873   : > { %v22057_v56 = vld [vmem:[%s22422_s27 + $0x3af4] ss:$136 sps:$4 sm:$0xff]  }
 0x874   : > { %15997 = vmatpush1.bf16.msra.mxu0 %v21968_v46  ;;  %v22046_v46 = vld [vmem:[%s22422_s27 + $0x900] ss:$136 sps:$4 sm:$0xff]  }
 0x875   : > { %16038 = vmatpush1.bf16.msra.mxu1 %v21971_v58  ;;  %15998 = vmatprep.subr.bf16.mxu0 %v21976_v19  ;;  %v22049_v58 = vld [vmem:[%s22422_s27 + $0x1a00] ss:$136 sps:$4 sm:$0xff]   ;;  %v22052_v19 = vld [vmem:[%s22422_s27 + $0x29f0] ss:$136 sps:$4 sm:$0xff]  }
 0x876   : > { %16039 = vmatprep.subr.bf16.mxu1 %v21979_v48  ;;  %v22055_v48 = vld [vmem:[%s22422_s27 + $0x3af0] ss:$136 sps:$4 sm:$0xff]  }
 0x878   : > { %15999 = vmatpush1.bf16.msra.mxu0 %v21974_v52  ;;  %v22060_v52 = vld [vmem:[%s22422_s27 + $0x28e4] ss:$136 sps:$4 sm:$0xff]  }
 0x879   : > { %16040 = vmatpush1.bf16.msra.mxu1 %v21977_v20  ;;  %16000 = vmatprep.subr.bf16.mxu0 %v21982_v61  ;;  %v22063_v20 = vld [vmem:[%s22422_s27 + $0x39e4] ss:$136 sps:$4 sm:$0xff]   ;;  %v15740_v61 = vadd.f32 %v24819_v49, %v24817_v45  ;;  %v22066_v45 = vld [vmem:[%s22422_s27 + $0x27d4] ss:$136 sps:$4 sm:$0xff]  }
 0x87a   : > { %16041 = vmatprep.subr.bf16.mxu1 %v21985_v62  ;;  %v22069_v49 = vld [vmem:[%s22422_s27 + $0x38d4] ss:$136 sps:$4 sm:$0xff]  }
 0x87c   : > { %16001 = vmatpush1.bf16.msra.mxu0 %v21980_v57 }
 0x87d   : > { %16042 = vmatpush1.bf16.msra.mxu1 %v21983_v0  ;;  %16002 = vmatprep.subr.bf16.mxu0 %v21988_v30  ;;  %v15742_v0 = vadd.f32 %v24827_v10, %v24825_v9 }
 0x87e   : > { %16043 = vmatprep.subr.bf16.mxu1 %v21991_v4  ;;  %v22058_v4 = vld [vmem:[%s22422_s27 + $0x28e0] ss:$136 sps:$4 sm:$0xff]  }
 0x880   : > { %16003 = vmatpush1.bf16.msra.mxu0 %v21986_v1  ;;  %v22061_v1 = vld [vmem:[%s22422_s27 + $0x39e0] ss:$136 sps:$4 sm:$0xff]  }
 0x881   : > { %16044 = vmatpush1.bf16.msra.mxu1 %v21989_v2  ;;  %16004 = vmatprep.subr.bf16.mxu0 %v21994_v33  ;;  %v278_v2 = vld [vmem:[#allocation2 + $0xa8] sm:$0xff] }
 0x882   : > { %16045 = vmatprep.subr.bf16.mxu1 %v21997_v34 }
 0x884   : > { %16005 = vmatpush1.bf16.msra.mxu0 %v21992_v41 }
 0x885   : > { %16046 = vmatpush1.bf16.msra.mxu1 %v21995_v42  ;;  %16006 = vmatprep.subr.bf16.mxu0 %v22000_v3 }
 0x886   : > { %16047 = vmatprep.subr.bf16.mxu1 %v22003_v12  ;;  %v22064_v12 = vld [vmem:[%s22422_s27 + $0x27d0] ss:$136 sps:$4 sm:$0xff]  }
 0x888   : > { %16007 = vmatpush1.bf16.msra.mxu0 %v21998_v47  ;;  %v22067_v47 = vld [vmem:[%s22422_s27 + $0x38d0] ss:$136 sps:$4 sm:$0xff]  }
 0x889   : > { %16048 = vmatpush1.bf16.msra.mxu1 %v22001_v16  ;;  %16008 = vmatprep.subr.bf16.mxu0 %v22006_v13 }
 0x88a   : > { %16049 = vmatprep.subr.bf16.mxu1 %v22009_v14 }
 0x88c   : > { %16009 = vmatpush2.bf16.msra.mxu0 %v22004_v50  ;;  %v22070_v50 = vld [vmem:[%s22422_s27 + $0x26c0] ss:$136 sps:$4 sm:$0xff]  }
 0x88d   : > { %16050 = vmatpush2.bf16.msra.mxu1 %v22007_v51  ;;  %16010 = vmatprep.subr.bf16.mxu0 %v22012_v21  ;;  %v22073_v51 = vld [vmem:[%s22422_s27 + $0x37c0] ss:$136 sps:$4 sm:$0xff]   ;;  %v22078_v21 = vld [vmem:[%s22422_s27 + $0x25b4] ss:$136 sps:$4 sm:$0xff]  }
 0x88e   : > { %16051 = vmatprep.subr.bf16.mxu1 %v22015_v22  ;;  %v22081_v22 = vld [vmem:[%s22422_s27 + $0x36b4] ss:$136 sps:$4 sm:$0xff]  }
 0x890   : > { %16011 = vmatpush2.bf16.msra.mxu0 %v22010_v15  ;;  %v22076_v15 = vld [vmem:[%s22422_s27 + $0x25b0] ss:$136 sps:$4 sm:$0xff]  }
 0x891   : > { %16052 = vmatpush2.bf16.msra.mxu1 %v22013_v26  ;;  %16012 = vmatprep.subr.bf16.mxu0 %v22018_v23  ;;  %v22079_v26 = vld [vmem:[%s22422_s27 + $0x36b0] ss:$136 sps:$4 sm:$0xff]   ;;  %v22084_v23 = vld [vmem:[%s22422_s27 + $0x24a4] ss:$136 sps:$4 sm:$0xff]  }
 0x892   : > { %16053 = vmatprep.subr.bf16.mxu1 %v22021_v24  ;;  %v22087_v24 = vld [vmem:[%s22422_s27 + $0x35a4] ss:$136 sps:$4 sm:$0xff]  }
 0x894   : > { %16013 = vmatpush2.bf16.msra.mxu0 %v22016_v31  ;;  %v22082_v31 = vld [vmem:[%s22422_s27 + $0x24a0] ss:$136 sps:$4 sm:$0xff]  }
 0x895   : > { %16054 = vmatpush2.bf16.msra.mxu1 %v22019_v32  ;;  %16014 = vmatprep.subr.bf16.mxu0 %v22024_v59  ;;  %v22085_v32 = vld [vmem:[%s22422_s27 + $0x35a0] ss:$136 sps:$4 sm:$0xff]   ;;  %v22090_v59 = vld [vmem:[%s22422_s27 + $0x2394] ss:$136 sps:$4 sm:$0xff]  }
 0x896   : > { %16055 = vmatprep.subr.bf16.mxu1 %v22027_v60  ;;  %v22093_v60 = vld [vmem:[%s22422_s27 + $0x3494] ss:$136 sps:$4 sm:$0xff]  }
 0x898   : > { %16015 = vmatpush2.bf16.msra.mxu0 %v22022_v27  ;;  %v22088_v27 = vld [vmem:[%s22422_s27 + $0x2390] ss:$136 sps:$4 sm:$0xff]  }
 0x899   : > { %16056 = vmatpush2.bf16.msra.mxu1 %v22025_v28  ;;  %16016 = vmatprep.subr.bf16.mxu0 %v22030_v63  ;;  %v22091_v28 = vld [vmem:[%s22422_s27 + $0x3490] ss:$136 sps:$4 sm:$0xff]   ;;  %v22096_v63 = vld [vmem:[%s22422_s27 + $0x2284] ss:$136 sps:$4 sm:$0xff]  }
 0x89a   : > { %16057 = vmatprep.subr.bf16.mxu1 %v22033_v25  ;;  %v22099_v25 = vld [vmem:[%s22422_s27 + $0x3384] ss:$136 sps:$4 sm:$0xff]  }
 0x89c   : > { %16017 = vmatpush2.bf16.msra.mxu0 %v22028_v35  ;;  %v22094_v35 = vld [vmem:[%s22422_s27 + $0x2280] ss:$136 sps:$4 sm:$0xff]  }
 0x89d   : > { %16058 = vmatpush2.bf16.msra.mxu1 %v22031_v36  ;;  %16018 = vmatprep.subr.bf16.mxu0 %v22036_v29  ;;  %v22097_v36 = vld [vmem:[%s22422_s27 + $0x3380] ss:$136 sps:$4 sm:$0xff]   ;;  %v22102_v29 = vld [vmem:[%s22422_s27 + $0x3274] ss:$136 sps:$4 sm:$0xff]  }
 0x89e   : > { %16059 = vmatprep.subr.bf16.mxu1 %v22039_v44  ;;  %v22105_v44 = vld [vmem:[%s22422_s27 + $0x4374] ss:$136 sps:$4 sm:$0xff]  }
 0x8a0   : > { %16019 = vmatpush2.bf16.msra.mxu0 %v22034_v39  ;;  %v22100_v39 = vld [vmem:[%s22422_s27 + $0x3270] ss:$136 sps:$4 sm:$0xff]  }
 0x8a1   : > { %16060 = vmatpush2.bf16.msra.mxu1 %v22037_v40  ;;  %16020 = vmatprep.subr.bf16.mxu0 %v22042_v5  ;;  %v22103_v40 = vld [vmem:[%s22422_s27 + $0x4370] ss:$136 sps:$4 sm:$0xff]   ;;  %v22108_v5 = vld [vmem:[%s22422_s27 + $0x3164] ss:$136 sps:$4 sm:$0xff]  }
 0x8a2   : > { %16061 = vmatprep.subr.bf16.mxu1 %v22045_v6  ;;  %v22111_v6 = vld [vmem:[%s22422_s27 + $0x4264] ss:$136 sps:$4 sm:$0xff]  }
 0x8a4   : > { %16021 = vmatpush2.bf16.msra.mxu0 %v22040_v11  ;;  %v22106_v11 = vld [vmem:[%s22422_s27 + $0x3160] ss:$136 sps:$4 sm:$0xff]  }
 0x8a5   : > { %16062 = vmatpush2.bf16.msra.mxu1 %v22043_v43  ;;  %16022 = vmatprep.subr.bf16.mxu0 %v22048_v53  ;;  %v22109_v43 = vld [vmem:[%s22422_s27 + $0x4260] ss:$136 sps:$4 sm:$0xff]   ;;  %v22114_v53 = vld [vmem:[%s22422_s27 + $0x3054] ss:$136 sps:$4 sm:$0xff]  }
 0x8a6   : > { %16063 = vmatprep.subr.bf16.mxu1 %v22051_v54  ;;  %v22117_v54 = vld [vmem:[%s22422_s27 + $0x4154] ss:$136 sps:$4 sm:$0xff]  }
 0x8a8   : > { %16023 = vmatpush2.bf16.msra.mxu0 %v22046_v46  ;;  %v22112_v46 = vld [vmem:[%s22422_s27 + $0x3050] ss:$136 sps:$4 sm:$0xff]  }
 0x8a9   : > { %16064 = vmatpush2.bf16.msra.mxu1 %v22049_v58  ;;  %16074 = vmatprep.subr.bf16.mxu0 %v22054_v55  ;;  %v22115_v58 = vld [vmem:[%s22422_s27 + $0x4150] ss:$136 sps:$4 sm:$0xff]   ;;  %v22120_v55 = vld [vmem:[%s22422_s27 + $0x2f44] ss:$136 sps:$4 sm:$0xff]  }
 0x8aa   : > { %16115 = vmatprep.subr.bf16.mxu1 %v22057_v56  ;;  %v22123_v56 = vld [vmem:[%s22422_s27 + $0x4044] ss:$136 sps:$4 sm:$0xff]  }
 0x8ab   : > { %v15780_v62 = vpop.f32.mrf.mxu0  ;;  %16025 = vmatmul.mubr.bf16.vlgmr.msra.gmra.mxu0 %v22511_v7 }
 0x8ac   : > { %v15821_v57 = vpop.f32.mrf.mxu1  ;;  %16066 = vmatmul.mubr.bf16.vlgmr.msra.gmra.mxu1 %v22513_v8  ;;  %v15781_v30 = vadd.f32 %v15780_v62, %v15740_v61  ;;  %16075 = vmatpush1.bf16.msra.mxu0 %v22052_v19  ;;  %v279_v8 = vld [vmem:[#allocation2 + $0x58] sm:$0xff]  ;;  %v22124_v61 = vld [vmem:[%s22422_s27 + $0x2e30] ss:$136 sps:$4 sm:$0xff]  }
 0x8ad   : > { %16116 = vmatpush1.bf16.msra.mxu1 %v22055_v48  ;;  %v15782_v33 = vpop.f32.mrf.mxu0  ;;  %16076 = vmatprep.subr.bf16.mxu0 %v22060_v52  ;;  %v22118_v19 = vld [vmem:[%s22422_s27 + $0x2f40] ss:$136 sps:$4 sm:$0xff]   ;;  %v22126_v52 = vld [vmem:[%s22422_s27 + $0x2e34] ss:$136 sps:$4 sm:$0xff]   ;;  %v22127_v62 = vld [vmem:[%s22422_s27 + $0x3f30] ss:$136 sps:$4 sm:$0xff]  }
 0x8ae   : > { %v15823_v34 = vpop.f32.mrf.mxu1  ;;  %16117 = vmatprep.subr.bf16.mxu1 %v22063_v20  ;;  %v15822_v7 = vadd.f32 %v15821_v57, %v15781_v30  ;;  %v15783_v41 = vadd.f32 %v15782_v33, %v15742_v0  ;;  %16106 = vmatprep.mubr.bf16.mxu0 %v22551_v37  ;;  %v22072_v37 = vld [vmem:[%s22422_s27 + $0x26c4] ss:$136 sps:$4 sm:$0xff]   ;;  %v22121_v48 = vld [vmem:[%s22422_s27 + $0x4040] ss:$136 sps:$4 sm:$0xff]   ;;  %v22129_v20 = vld [vmem:[%s22422_s27 + $0x3f34] ss:$136 sps:$4 sm:$0xff]  }
 0x8af   : > { %16147 = vmatprep.mubr.bf16.mxu1 %v22555_v38  ;;  %v15784_v9 = vpop.f32.mrf.mxu0  ;;  %v22075_v38 = vld [vmem:[%s22422_s27 + $0x37c4] ss:$136 sps:$4 sm:$0xff]   ;;  %v22130_v30 = vld [vmem:[%s22422_s27 + $0x2d20] ss:$136 sps:$4 sm:$0xff]   ;;  %v22136_v33 = vld [vmem:[%s22422_s27 + $0x2c10] ss:$136 sps:$4 sm:$0xff]  }
 0x8b0   : > { %v15825_v10 = vpop.f32.mrf.mxu1  ;;  %v16184_v42 = vadd.f32 %v15822_v7, %v278_v2  ;;  %v15824_v3 = vadd.f32 %v15823_v34, %v15783_v41  ;;  %16077 = vmatpush1.bf16.msra.mxu0 %v22058_v4  ;;  %v22132_v57 = vld [vmem:[%s22422_s27 + $0x2d24] ss:$136 sps:$4 sm:$0xff]   ;;  %v22133_v4 = vld [vmem:[%s22422_s27 + $0x3e20] ss:$136 sps:$4 sm:$0xff]   ;;  %v22141_v2 = vld [vmem:[%s22422_s27 + $0x3d14] ss:$136 sps:$4 sm:$0xff]  }
 0x8b1   : > { %16118 = vmatpush1.bf16.msra.mxu1 %v22061_v1  ;;  %v15785_v16 = vpop.f32.mrf.mxu0  ;;  %16078 = vmatprep.subr.bf16.mxu0 %v22066_v45  ;;  %v22135_v0 = vld [vmem:[%s22422_s27 + $0x3e24] ss:$136 sps:$4 sm:$0xff]   ;;  %v22138_v1 = vld [vmem:[%s22422_s27 + $0x2c14] ss:$136 sps:$4 sm:$0xff]   ;;  %v22139_v34 = vld [vmem:[%s22422_s27 + $0x3d10] ss:$136 sps:$4 sm:$0xff]  }
 0x8b2   : > { %v15826_v13 = vpop.f32.mrf.mxu1  ;;  %16119 = vmatprep.subr.bf16.mxu1 %v22069_v49  ;;  %16218 = vst [vmem:[#allocation2 + $0xa8] sm:$0xff] %v16184_v42  ;;  %v16185_v14 = vadd.f32 %v15824_v3, %v279_v8  ;;  %v22144_v45 = vld [vmem:[%s22422_s27 + $0x2b04] ss:$136 sps:$4 sm:$0xff]   ;;  %v22142_v7 = vld [vmem:[%s22422_s27 + $0x2b00] ss:$136 sps:$4 sm:$0xff]  }
 0x8b3   : > { %v22147_v49 = vld [vmem:[%s22422_s27 + $0x3c04] ss:$136 sps:$4 sm:$0xff]   ;;  %v22145_v41 = vld [vmem:[%s22422_s27 + $0x3c00] ss:$136 sps:$4 sm:$0xff]  }
 0x8b4   : > { %16219 = vst [vmem:[#allocation2 + $0x58] sm:$0xff] %v16185_v14  ;;  %16079 = vmatpush1.bf16.msra.mxu0 %v22064_v12 }
 0x8b5   : > { %16120 = vmatpush1.bf16.msra.mxu1 %v22067_v47  ;;  %16080 = vmatprep.subr.bf16.mxu0 %v22072_v37 }
 0x8b6   : > { %16121 = vmatprep.subr.bf16.mxu1 %v22075_v38 }
 0x8b8   : > { %16081 = vmatpush1.bf16.msra.mxu0 %v22070_v50 }
 0x8b9   : > { %16122 = vmatpush1.bf16.msra.mxu1 %v22073_v51  ;;  %16082 = vmatprep.subr.bf16.mxu0 %v22078_v21  ;;  %v280_v51 = vld [vmem:[#allocation2 + $0xf0] sm:$0xff] }
 0x8ba   : > { %16123 = vmatprep.subr.bf16.mxu1 %v22081_v22 }
 0x8bc   : > { %16083 = vmatpush1.bf16.msra.mxu0 %v22076_v15 }
 0x8bd   : > { %16124 = vmatpush1.bf16.msra.mxu1 %v22079_v26  ;;  %16084 = vmatprep.subr.bf16.mxu0 %v22084_v23  ;;  %v281_v23 = vld [vmem:[#allocation2 + $0xa0] sm:$0xff] }
 0x8be   : > { %16125 = vmatprep.subr.bf16.mxu1 %v22087_v24 }
 0x8c0   : > { %16085 = vmatpush1.bf16.msra.mxu0 %v22082_v31 }
 0x8c1   : > { %16126 = vmatpush1.bf16.msra.mxu1 %v22085_v32  ;;  %16086 = vmatprep.subr.bf16.mxu0 %v22090_v59 }
 0x8c2   : > { %16127 = vmatprep.subr.bf16.mxu1 %v22093_v60 }
 0x8c4   : > { %16087 = vmatpush1.bf16.msra.mxu0 %v22088_v27 }
 0x8c5   : > { %16128 = vmatpush1.bf16.msra.mxu1 %v22091_v28  ;;  %16088 = vmatprep.subr.bf16.mxu0 %v22096_v63 }
 0x8c6   : > { %16129 = vmatprep.subr.bf16.mxu1 %v22099_v25 }
 0x8c8   : > { %16089 = vmatpush1.bf16.msra.mxu0 %v22094_v35 }
 0x8c9   : > { %16130 = vmatpush1.bf16.msra.mxu1 %v22097_v36  ;;  %16090 = vmatprep.subr.bf16.mxu0 %v22102_v29 }
 0x8ca   : > { %16131 = vmatprep.subr.bf16.mxu1 %v22105_v44 }
 0x8cc   : > { %16091 = vmatpush2.bf16.msra.mxu0 %v22100_v39 }
 0x8cd   : > { %16132 = vmatpush2.bf16.msra.mxu1 %v22103_v40  ;;  %16092 = vmatprep.subr.bf16.mxu0 %v22108_v5 }
 0x8ce   : > { %16133 = vmatprep.subr.bf16.mxu1 %v22111_v6 }
 0x8d0   : > { %16093 = vmatpush2.bf16.msra.mxu0 %v22106_v11 }
 0x8d1   : > { %16134 = vmatpush2.bf16.msra.mxu1 %v22109_v43  ;;  %16094 = vmatprep.subr.bf16.mxu0 %v22114_v53  ;;  %v282_v43 = vld [vmem:[#allocation2 + $0x70] sm:$0xff] }
 0x8d2   : > { %16135 = vmatprep.subr.bf16.mxu1 %v22117_v54 }
 0x8d4   : > { %16095 = vmatpush2.bf16.msra.mxu0 %v22112_v46 }
 0x8d5   : > { %16136 = vmatpush2.bf16.msra.mxu1 %v22115_v58  ;;  %16096 = vmatprep.subr.bf16.mxu0 %v22120_v55  ;;  %v283_v55 = vld [vmem:[#allocation2 + $0xd8] sm:$0xff] }
 0x8d6   : > { %16137 = vmatprep.subr.bf16.mxu1 %v22123_v56 }
 0x8d8   : > { %16097 = vmatpush2.bf16.msra.mxu0 %v22118_v19 }
 0x8d9   : > { %16138 = vmatpush2.bf16.msra.mxu1 %v22121_v48  ;;  %16098 = vmatprep.subr.bf16.mxu0 %v22126_v52 }
 0x8da   : > { %16139 = vmatprep.subr.bf16.mxu1 %v22129_v20 }
 0x8dc   : > { %16099 = vmatpush2.bf16.msra.mxu0 %v22124_v61 }
 0x8dd   : > { %16140 = vmatpush2.bf16.msra.mxu1 %v22127_v62  ;;  %16100 = vmatprep.subr.bf16.mxu0 %v22132_v57 }
 0x8de   : > { %16141 = vmatprep.subr.bf16.mxu1 %v22135_v0 }
 0x8e0   : > { %16101 = vmatpush2.bf16.msra.mxu0 %v22130_v30 }
 0x8e1   : > { %16142 = vmatpush2.bf16.msra.mxu1 %v22133_v4  ;;  %16102 = vmatprep.subr.bf16.mxu0 %v22138_v1 }
 0x8e2   : > { %16143 = vmatprep.subr.bf16.mxu1 %v22141_v2 }
 0x8e4   : > { %16103 = vmatpush2.bf16.msra.mxu0 %v22136_v33 }
 0x8e5   : > { %16144 = vmatpush2.bf16.msra.mxu1 %v22139_v34  ;;  %16104 = vmatprep.subr.bf16.mxu0 %v22144_v45 }
 0x8e6   : > { %16145 = vmatprep.subr.bf16.mxu1 %v22147_v49 }
 0x8e8   : > { %16105 = vmatpush2.bf16.msra.mxu0 %v22142_v7 }
 0x8e9   : > { %16146 = vmatpush2.bf16.msra.mxu1 %v22145_v41 }
 0x8eb   : > { %v15862_v8 = vpop.f32.mrf.mxu0  ;;  %16107 = vmatmul.mubr.bf16.vlgmr.msra.gmra.mxu0 %v22599_v17 }
 0x8ec   : > { %v15903_v9 = vpop.f32.mrf.mxu1  ;;  %16148 = vmatmul.mubr.bf16.vlgmr.msra.gmra.mxu1 %v22603_v18 }
 0x8ed   : > { %v15864_v10 = vpop.f32.mrf.mxu0  ;;  %v15904_v13 = vadd.f32 %v15903_v9, %v15862_v8 }
 0x8ee   : > { %v15905_v42 = vpop.f32.mrf.mxu1 }
 0x8ef   : > { %v15866_v3 = vpop.f32.mrf.mxu0  ;;  %v15906_v14 = vadd.f32 %v15905_v42, %v15864_v10 }
 0x8f0   : > { %v15907_v12 = vpop.f32.mrf.mxu1 }
 0x8f1   : > { %v15867_v47 = vpop.f32.mrf.mxu0 }
 0x8f2   : > { %v15908_v16 = vpop.f32.mrf.mxu1 }
 0x92b   : > { %v15944_v37 = vpop.f32.mrf.mxu0 }
 0x92c   : > { %v15985_v38 = vpop.f32.mrf.mxu1  ;;  %v15945_v50 = vadd.f32 %v15944_v37, %v15904_v13 }
 0x92d   : > { %v15946_v21 = vpop.f32.mrf.mxu0 }
 0x92e   : > { %v15987_v22 = vpop.f32.mrf.mxu1  ;;  %v15986_v15 = vadd.f32 %v15985_v38, %v15945_v50  ;;  %v15947_v26 = vadd.f32 %v15946_v21, %v15906_v14 }
 0x92f   : > { %v15948_v17 = vpop.f32.mrf.mxu0 }
 0x930   : > { %v15989_v24 = vpop.f32.mrf.mxu1  ;;  %v16186_v18 = vadd.f32 %v15986_v15, %v280_v51  ;;  %v15988_v31 = vadd.f32 %v15987_v22, %v15947_v26 }
 0x931   : > { %v15949_v32 = vpop.f32.mrf.mxu0 }
 0x932   : > { %v15990_v59 = vpop.f32.mrf.mxu1  ;;  %16220 = vst [vmem:[#allocation2 + $0xf0] sm:$0xff] %v16186_v18  ;;  %v16187_v60 = vadd.f32 %v15988_v31, %v281_v23 }
 0x934   : > { %16221 = vst [vmem:[#allocation2 + $0xa0] sm:$0xff] %v16187_v60 }
 0x96b   : > { %v16026_v27 = vpop.f32.mrf.mxu0 }
 0x96c   : > { %v16067_v28 = vpop.f32.mrf.mxu1 }
 0x96d   : > { %v16028_v63 = vpop.f32.mrf.mxu0  ;;  %v16068_v39 = vadd.f32 %v16067_v28, %v16026_v27 }
 0x96e   : > { %v16069_v25 = vpop.f32.mrf.mxu1 }
 0x96f   : > { %v16030_v35 = vpop.f32.mrf.mxu0  ;;  %v16070_v6 = vadd.f32 %v16069_v25, %v16028_v63 }
 0x970   : > { %v16071_v36 = vpop.f32.mrf.mxu1 }
 0x971   : > { %v16031_v29 = vpop.f32.mrf.mxu0 }
 0x972   : > { %v16072_v44 = vpop.f32.mrf.mxu1 }
 0x9ab   : > { %v16108_v40 = vpop.f32.mrf.mxu0 }
 0x9ac   : > { %v16149_v5 = vpop.f32.mrf.mxu1  ;;  %v16109_v11 = vadd.f32 %v16108_v40, %v16068_v39 }
 0x9ad   : > { %v16110_v53 = vpop.f32.mrf.mxu0 }
 0x9ae   : > { %v16151_v54 = vpop.f32.mrf.mxu1  ;;  %v16150_v46 = vadd.f32 %v16149_v5, %v16109_v11  ;;  %v16111_v58 = vadd.f32 %v16110_v53, %v16070_v6 }
 0x9af   : > { %v16112_v56 = vpop.f32.mrf.mxu0 }
 0x9b0   : > { %v16153_v19 = vpop.f32.mrf.mxu1  ;;  %v16188_v48 = vadd.f32 %v16150_v46, %v282_v43  ;;  %v16152_v52 = vadd.f32 %v16151_v54, %v16111_v58  ;;  %16227 = sbr.rel (%p18807_p12) target bundleno = 2700 (0xa8c), region = 52 }
 0x9b1   : > { %v16113_v20 = vpop.f32.mrf.mxu0 }
 0x9b2   : > { %v16154_v61 = vpop.f32.mrf.mxu1  ;;  %16222 = vst [vmem:[#allocation2 + $0x70] sm:$0xff] %v16188_v48  ;;  %v16189_v62 = vadd.f32 %v16152_v52, %v283_v55 }
 0x9b4   : > { %16223 = vst [vmem:[#allocation2 + $0xd8] sm:$0xff] %v16189_v62 }
 0x9b5   : > { %v16306_v57 = vlaneseq  ;;  %v16228_v30 = vld [vmem:[#allocation2 + $0xb0] sm:$0xff]  ;;  %v16231_v7 = vld [vmem:[#allocation2 + $0x48] sm:$0xff]  ;;  %v16235_v32 = vld [vmem:[#allocation2 + $0x18] sm:$0xff]  ;;  %vm16545_vm0 = vcmask 7168  }
 0x9b6   : > { %v16229_v2 = vld [vmem:[#allocation2 + $0xd0] sm:$0xff]  ;;  %v16262_v49 = vmax.f32 %v16228_v30, 0.0  ;;  %v16232_v47 = vld [vmem:[#allocation2 + $0x108] sm:$0xff]  ;;  %v16265_v16 = vmax.f32 %v16231_v7, 0.0  ;;  %v16236_v63 = vld [vmem:[#allocation2 + $0x80] sm:$0xff]  ;;  %v16269_v35 = vmax.f32 %v16235_v32, 0.0 }
 0x9b7   : > { %v16307_v0 = vshrl.u32 %v16306_v57, 7  ;;  %v16296_v33 = vld [vmem:[#allocation7] sm:$0xff]  ;;  %v16263_v41 = vmax.f32 %v16229_v2, 0.0  ;;  %v16233_v13 = vld [vmem:[#allocation2 + $0x68] sm:$0xff]  ;;  %v16266_v51 = vmax.f32 %v16232_v47, 0.0  ;;  %v16297_v25 = vld [vmem:[#allocation7 + $0x8] sm:$0xff] }
 0x9b8   : > { %v16230_v45 = vld [vmem:[#allocation2 + $0x10] sm:$0xff]  ;;  %v16267_v23 = vmax.f32 %v16233_v13, 0.0  ;;  %v16237_v39 = vld [vmem:[#allocation2 + $0x88] sm:$0xff]  ;;  %v16270_v40 = vmax.f32 %v16236_v63, 0.0  ;;  %v16239_v55 = vld [vmem:[#allocation2 + $0x100] sm:$0xff] }
 0x9b9   : > { %v24962_v4 = vsub.s32 0, %v16307_v0  ;;  %v24964_v1 = vsub.s32 1, %v16307_v0  ;;  %v24966_v34 = vsub.s32 2, %v16307_v0  ;;  %v24970_v10 = vsub.s32 3, %v16307_v0  ;;  %v16234_v26 = vld [vmem:[#allocation2 + $0x30] sm:$0xff]  ;;  %v16238_v43 = vld [vmem:[#allocation2 + $0xe8] sm:$0xff] }
 0x9ba   : > { %v16264_v42 = vmax.f32 %v16230_v45, 0.0  ;;  %v24973_v12 = vsub.s32 4, %v16307_v0  ;;  %v24976_v38 = vsub.s32 5, %v16307_v0  ;;  %v24979_v22 = vsub.s32 6, %v16307_v0  ;;  %v16240_v20 = vld [vmem:[#allocation2 + $0xc0] sm:$0xff]  ;;  %v16241_v30 = vld [vmem:[#allocation2 + $0x28] sm:$0xff] }
 0x9bb   : > { %v16309_v8 = vrot.slane %v16296_v33, %v24962_v4  ;;  %v16313_v9 = vrot.slane %v16296_v33, %v24964_v1  ;;  %v16317_v3 = vrot.slane %v16296_v33, %v24966_v34  ;;  %v16321_v37 = vrot.slane %v16296_v33, %v24970_v10  ;;  %v16242_v7 = vld [vmem:[#allocation2 + $0xf8] sm:$0xff] }
 0x9bc   : > { %v16325_v21 = vrot.slane %v16296_v33, %v24973_v12  ;;  %v16329_v17 = vrot.slane %v16296_v33, %v24976_v38  ;;  %v24982_v24 = vsub.s32 7, %v16307_v0  ;;  %v16268_v59 = vmax.f32 %v16234_v26, 0.0 }
 0x9bd   : > { %v16476_v14 = vmul.f32 %v16309_v8, %v16262_v49  ;;  %v16477_v50 = vmul.f32 %v16313_v9, %v16263_v41  ;;  %v16478_v15 = vmul.f32 %v16317_v3, %v16264_v42  ;;  %v16479_v18 = vmul.f32 %v16321_v37, %v16265_v16  ;;  %v16243_v3 = vld [vmem:[#allocation2 + $0xb8] sm:$0xff] }
 0x9be   : > { %v16333_v60 = vrot.slane %v16296_v33, %v24979_v22  ;;  %v16480_v27 = vmul.f32 %v16325_v21, %v16266_v51  ;;  %v16337_v36 = vrot.slane %v16296_v33, %v24982_v24  ;;  %v16481_v29 = vmul.f32 %v16329_v17, %v16267_v23  ;;  %v16245_v23 = vld [vmem:[#allocation2 + $0x90] sm:$0xff] }
 0x9bf   : > { %v16510_v31 = vadd.f32 %v16477_v50, %v16476_v14  ;;  %v16341_v5 = vrot.slane %v16297_v25, %v24962_v4  ;;  %v16271_v53 = vmax.f32 %v16237_v39, 0.0  ;;  %v16345_v54 = vrot.slane %v16297_v25, %v24964_v1  ;;  %v16244_v14 = vld [vmem:[#allocation2 + $0x40] sm:$0xff]  ;;  %v16248_v39 = vld [vmem:[#allocation2 + $0x8] sm:$0xff] }
 0x9c0   : > { %v16482_v6 = vmul.f32 %v16333_v60, %v16268_v59  ;;  %v16483_v46 = vmul.f32 %v16337_v36, %v16269_v35  ;;  %v16272_v56 = vmax.f32 %v16238_v43, 0.0  ;;  %v16349_v19 = vrot.slane %v16297_v25, %v24966_v34  ;;  %v16298_v50 = vld [vmem:[#allocation7 + $0x10] sm:$0xff]  ;;  %v16247_v35 = vld [vmem:[#allocation2 + $0x38] sm:$0xff]  ;;  %v16249_v43 = vld [vmem:[#allocation2 + $0x50] sm:$0xff] }
 0x9c1   : > { %v16511_v28 = vadd.f32 %v16510_v31, %v16478_v15  ;;  %v16484_v48 = vmul.f32 %v16341_v5, %v16270_v40  ;;  %v16273_v61 = vmax.f32 %v16239_v55, 0.0  ;;  %v16353_v62 = vrot.slane %v16297_v25, %v24970_v10  ;;  %v16246_v59 = vld [vmem:[#allocation2 + $0x60] sm:$0xff]  ;;  %v16250_v55 = vld [vmem:[#allocation2 + $0x98] sm:$0xff] }
 0x9c2   : > { %v16485_v57 = vmul.f32 %v16345_v54, %v16271_v53  ;;  %v16274_v2 = vmax.f32 %v16240_v20, 0.0  ;;  %v16357_v33 = vrot.slane %v16297_v25, %v24973_v12  ;;  %v16486_v45 = vmul.f32 %v16349_v19, %v16272_v56  ;;  %v16251_v20 = vld [vmem:[#allocation2 + $0x78] sm:$0xff] }
 0x9c3   : > { %v16512_v44 = vadd.f32 %v16511_v28, %v16479_v18  ;;  %v16275_v41 = vmax.f32 %v16241_v30, 0.0  ;;  %v16361_v8 = vrot.slane %v16297_v25, %v24976_v38  ;;  %v16487_v9 = vmul.f32 %v16353_v62, %v16273_v61  ;;  %v16252_v30 = vld [vmem:[#allocation2 + $0xc8] sm:$0xff] }
 0x9c4   : > { %v16276_v47 = vmax.f32 %v16242_v7, 0.0  ;;  %v16365_v16 = vrot.slane %v16297_v25, %v24979_v22  ;;  %v16488_v13 = vmul.f32 %v16357_v33, %v16274_v2  ;;  %v16277_v51 = vmax.f32 %v16243_v3, 0.0  ;;  %v16299_v2 = vld [vmem:[#allocation7 + $0x18] sm:$0xff] }
 0x9c5   : > { %v16513_v11 = vadd.f32 %v16512_v44, %v16480_v27  ;;  %v16369_v21 = vrot.slane %v16297_v25, %v24982_v24  ;;  %v16489_v15 = vmul.f32 %v16361_v8, %v16275_v41  ;;  %v16278_v17 = vmax.f32 %v16244_v14, 0.0  ;;  %v16253_v41 = vld [vmem:[#allocation2] sm:$0xff] }
 0x9c6   : > { %v16373_v18 = vrot.slane %v16298_v50, %v24962_v4  ;;  %v16490_v31 = vmul.f32 %v16365_v16, %v16276_v47  ;;  %v16279_v60 = vmax.f32 %v16245_v23, 0.0  ;;  %v16377_v27 = vrot.slane %v16298_v50, %v24964_v1  ;;  %v16254_v47 = vld [vmem:[#allocation2 + $0x20] sm:$0xff]  ;;  %v16256_v23 = vld [vmem:[#allocation2 + $0xa8] sm:$0xff] }
 0x9c7   : > { %v16514_v58 = vadd.f32 %v16513_v11, %v16481_v29  ;;  %v16491_v28 = vmul.f32 %v16369_v21, %v16277_v51  ;;  %v16280_v36 = vmax.f32 %v16246_v59, 0.0  ;;  %v16381_v29 = vrot.slane %v16298_v50, %v24966_v34  ;;  %v16255_v51 = vld [vmem:[#allocation2 + $0xe0] sm:$0xff]  ;;  %v16257_v59 = vld [vmem:[#allocation2 + $0x58] sm:$0xff] }
 0x9c8   : > { %v16492_v44 = vmul.f32 %v16373_v18, %v16278_v17  ;;  %v16281_v40 = vmax.f32 %v16247_v35, 0.0  ;;  %v16385_v5 = vrot.slane %v16298_v50, %v24970_v10  ;;  %v16282_v53 = vmax.f32 %v16248_v39, 0.0  ;;  %v16258_v35 = vld [vmem:[#allocation2 + $0xf0] sm:$0xff] }
 0x9c9   : > { %v16515_v52 = vadd.f32 %v16514_v58, %v16482_v6  ;;  %v16493_v6 = vmul.f32 %v16377_v27, %v16279_v60  ;;  %v16389_v54 = vrot.slane %v16298_v50, %v24973_v12  ;;  %v16283_v56 = vmax.f32 %v16249_v43, 0.0 }
 0x9ca   : > { %v16393_v19 = vrot.slane %v16298_v50, %v24976_v38  ;;  %v16284_v61 = vmax.f32 %v16250_v55, 0.0  ;;  %v16397_v62 = vrot.slane %v16298_v50, %v24979_v22  ;;  %v16285_v33 = vmax.f32 %v16251_v20, 0.0 }
 0x9cb   : > { %v16516_v0 = vadd.f32 %v16515_v52, %v16483_v46  ;;  %v16494_v46 = vmul.f32 %v16381_v29, %v16280_v36  ;;  %v16286_v8 = vmax.f32 %v16252_v30, 0.0  ;;  %v16287_v16 = vmax.f32 %v16253_v41, 0.0 }
 0x9cc   : > { %v16288_v21 = vmax.f32 %v16254_v47, 0.0  ;;  %v16289_v17 = vmax.f32 %v16255_v51, 0.0  ;;  %v16417_v18 = vrot.slane %v16299_v2, %v24970_v10  ;;  %v16290_v60 = vmax.f32 %v16256_v23, 0.0 }
 0x9cd   : > { %v16517_v49 = vadd.f32 %v16516_v0, %v16484_v48  ;;  %v16495_v48 = vmul.f32 %v16385_v5, %v16281_v40  ;;  %v16421_v27 = vrot.slane %v16299_v2, %v24973_v12  ;;  %v16291_v36 = vmax.f32 %v16257_v59, 0.0 }
 0x9ce   : > { %v16425_v29 = vrot.slane %v16299_v2, %v24976_v38  ;;  %v16292_v39 = vmax.f32 %v16258_v35, 0.0  ;;  %v16429_v40 = vrot.slane %v16299_v2, %v24979_v22 }
 0x9cf   : > { %v16518_v42 = vadd.f32 %v16517_v49, %v16485_v57  ;;  %v16496_v57 = vmul.f32 %v16389_v54, %v16282_v53  ;;  %v16497_v49 = vmul.f32 %v16393_v19, %v16283_v56  ;;  %v16504_v5 = vmul.f32 %v16421_v27, %v16290_v60 }
 0x9d0   : > { %v16433_v53 = vrot.slane %v16299_v2, %v24982_v24  ;;  %v16505_v12 = vmul.f32 %v16425_v29, %v16291_v36  ;;  %v16506_v38 = vmul.f32 %v16429_v40, %v16292_v39 }
 0x9d1   : > { %v16519_v37 = vadd.f32 %v16518_v42, %v16486_v45  ;;  %v16401_v45 = vrot.slane %v16298_v50, %v24982_v24  ;;  %v16498_v42 = vmul.f32 %v16397_v62, %v16284_v61 }
 0x9d3   : > { %v16520_v26 = vadd.f32 %v16519_v37, %v16487_v9  ;;  %v16405_v9 = vrot.slane %v16299_v2, %v24962_v4  ;;  %v16499_v37 = vmul.f32 %v16401_v45, %v16285_v33 }
 0x9d5   : > { %v16521_v32 = vadd.f32 %v16520_v26, %v16488_v13  ;;  %v16409_v13 = vrot.slane %v16299_v2, %v24964_v1  ;;  %v16500_v26 = vmul.f32 %v16405_v9, %v16286_v8 }
 0x9d7   : > { %v16522_v63 = vadd.f32 %v16521_v32, %v16489_v15  ;;  %v16413_v15 = vrot.slane %v16299_v2, %v24966_v34 }
 0x9d9   : > { %v16523_v25 = vadd.f32 %v16522_v63, %v16490_v31  ;;  %v16501_v31 = vmul.f32 %v16409_v13, %v16287_v16 }
 0x9db   : > { %v16524_v11 = vadd.f32 %v16523_v25, %v16491_v28  ;;  %v16502_v28 = vmul.f32 %v16413_v15, %v16288_v21  ;;  %v16259_v25 = vld [vmem:[#allocation2 + $0xa0] sm:$0xff] }
 0x9dc   : > { %v16293_v43 = vmax.f32 %v16259_v25, 0.0 }
 0x9dd   : > { %v16525_v58 = vadd.f32 %v16524_v11, %v16492_v44  ;;  %v16503_v44 = vmul.f32 %v16417_v18, %v16289_v17  ;;  %v16300_v11 = vld [vmem:[#allocation7 + $0x20] sm:$0x3] }
 0x9de   : > { %v16437_v55 = vrot.slane %v16300_v11, %v24962_v4 }
 0x9df   : > { %v16526_v52 = vadd.f32 %v16525_v58, %v16493_v6  ;;  %v16260_v6 = vld [vmem:[#allocation2 + $0x70] sm:$0xff] }
 0x9e0   : > { %v16294_v58 = vmax.f32 %v16260_v6, 0.0 }
 0x9e1   : > { %v16527_v0 = vadd.f32 %v16526_v52, %v16494_v46  ;;  %v16261_v46 = vld [vmem:[#allocation2 + $0xd8] sm:$0xff]  ;;  %v16507_v52 = vmul.f32 %v16433_v53, %v16293_v43 }
 0x9e2   : > { %v16295_v19 = vmax.f32 %v16261_v46, 0.0  ;;  %v16508_v20 = vmul.f32 %v16437_v55, %v16294_v58 }
 0x9e3   : > { %v16528_v7 = vadd.f32 %v16527_v0, %v16495_v48  ;;  %v16441_v48 = vrot.slane %v16300_v11, %v24964_v1 }
 0x9e5   : > { %v16529_v3 = vadd.f32 %v16528_v7, %v16496_v57  ;;  %v16509_v62 = vmul.f32 %v16441_v48, %v16295_v19 }
 0x9e7   : > { %v16530_v14 = vadd.f32 %v16529_v3, %v16497_v49 }
 0x9e9   : > { %v16531_v50 = vadd.f32 %v16530_v14, %v16498_v42 }
 0x9eb   : > { %v16532_v32 = vadd.f32 %v16531_v50, %v16499_v37 }
 0x9ed   : > { %v16533_v63 = vadd.f32 %v16532_v32, %v16500_v26 }
 0x9ef   : > { %v16534_v34 = vadd.f32 %v16533_v63, %v16501_v31 }
 0x9f1   : > { %v16535_v10 = vadd.f32 %v16534_v34, %v16502_v28 }
 0x9f3   : > { %v16536_v54 = vadd.f32 %v16535_v10, %v16503_v44 }
 0x9f5   : > { %v16537_v56 = vadd.f32 %v16536_v54, %v16504_v5 }
 0x9f7   : > { %v16538_v22 = vadd.f32 %v16537_v56, %v16505_v12 }
 0x9f9   : > { %v16539_v61 = vadd.f32 %v16538_v22, %v16506_v38 }
 0x9fb   : > { %v16540_v57 = vadd.f32 %v16539_v61, %v16507_v52 }
 0x9fd   : > { %v16541_v0 = vadd.f32 %v16540_v57, %v16508_v20 }
 0x9ff   : > { %v16542_v30 = vadd.f32 %v16541_v0, %v16509_v62 }
 0xa01   : > { %16543 = vadd.xlane.f32.xlu0 %v16542_v30 }
 0xa8a   : > { %v16544_v24 = vpop.xlane.xlu0 %16543 }
 0xa8b   : > { %16546 = vst.msk [vmem:[%s25031_s3] sm:$0xff] %vm16545_vm0, %v16544_v24 }
 0xa8c PF: > { %p14_p2 = scmp.ge.s32.totalorder %s22320_s17, 5   ;;  %s25047_s12 = smov %s22262_s13 }
 0xa8d   : > { %s25048_s13 = smov %s22266_s14  ;;  %s25049_s14 = smov %s22330_s20 }
 0xa8e   : > { %s25050_s15 = smov %s22320_s17  ;;  %16 = sbr.rel (!%p14_p2) target bundleno = 4 (0x4), region = 86 }
 0xa93   :  { %16558 = vsyncpa [#allocation4], 1 }
 0xa94   :  { %16560 = vsyncpa [#allocation4 + $0x1], 1 }
 0xa95   :  { %16561 = vsyncpa [#allocation6], 1 }
 0xa96   :  { %16563 = vsyncpa [#allocation6 + $0x1], 1 }

</bundles_post_ra>
